<compile_context>
chip_gen: v5e
topology: v5e:2x2
jax: 0.10.0
libtpu: 0.0.40
codegen_flags: <defaults>
</compile_context>

<pallas_src>
import jax
import jax.numpy as jnp
import numpy as np
from jax.experimental import pallas as pl
from jax.experimental.pallas import tpu as pltpu

K = 5        # conv kernel size (all three convs)
PADR = 16    # zero rows appended before shifted reads (max shift = 4*4 in conv3)


def _round_up(x, m):
    return (x + m - 1) // m * m


# ------------------------------- Pallas kernel -------------------------------

def _lenet_kernel(x_ref, t1_ref, b1_ref, p1_ref, t2_ref, b2_ref, p2_ref,
                  t3_ref, b3_ref, wl1_ref, bl1_ref, wl2_ref, bl2_ref, out_ref):
    """One batch block of BB samples (R = BB*32 rows, global row = b*32 + r).

    Row/lane layout invariants (per sample):
      stage         valid rows              lanes
      x             r = 0..31               j = 0..31
      y1 (conv1)    r = 0..27               o*28 + jo   (6 x 28)
      a1 (pool1)    r = 2*po, po = 0..13    c*14 + qo   (6 x 14)
      y2 (conv2)    r = 2*p,  p  = 0..9     u*10 + q    (16 x 10)
      a2 (pool2)    r = 4*po, po = 0..4     u*5  + qo   (16 x 5)
      y3..logits    r = 0                   feature index
    All other rows hold finite garbage (cross-sample / zero-pad reads).  The
    shift strides below (1, 2, 4) guarantee valid rows only ever read valid
    rows; the wrapper extracts row 0 of every 32-row sample block.
    """
    f32, bf16 = jnp.float32, jnp.bfloat16
    R = x_ref.shape[0]

    def pad_rows(a):
        # Extra zero rows so global sublane shifts never read out of bounds.
        return jnp.concatenate([a, jnp.zeros((PADR, a.shape[1]), a.dtype)], axis=0)

    def conv(a, w_ref, b_ref, row_stride):
        """relu(sum_di a[di*row_stride : +R] @ w[di] + bias).  a: padded bf16."""
        acc = jnp.zeros((R, w_ref.shape[2]), f32)
        for di in range(w_ref.shape[0]):
            s = di * row_stride
            acc = acc + jnp.dot(a[s:s + R, :], w_ref[di],
                                preferred_element_type=f32)
        return jnp.maximum(acc + b_ref[...], 0.0)

    def pool(y, p_ref, row_stride):
        """2x2 avg pool: add row pair (r, r+row_stride), then 0.25 column matmul."""
        yp = pad_rows(y)
        rs = (yp[0:R, :] + yp[row_stride:row_stride + R, :]).astype(bf16)
        return jnp.dot(rs, p_ref[...], preferred_element_type=f32)

    x = pad_rows(x_ref[...].astype(bf16))                                   # (R+16, 32)
    y1 = conv(x, t1_ref, b1_ref, row_stride=1)                              # (R, 168)
    a1 = pool(y1, p1_ref, row_stride=1)                                     # (R, 84)
    y2 = conv(pad_rows(a1.astype(bf16)), t2_ref, b2_ref, row_stride=2)      # (R, 160)
    a2 = pool(y2, p2_ref, row_stride=2)                                     # (R, 80)
    y3 = conv(pad_rows(a2.astype(bf16)), t3_ref, b3_ref, row_stride=4)      # (R, 120)
    h1 = jnp.maximum(jnp.dot(y3.astype(bf16), wl1_ref[...],
                             preferred_element_type=f32) + bl1_ref[...], 0.0)
    out_ref[...] = jnp.dot(h1.astype(bf16), wl2_ref[...],
                           preferred_element_type=f32) + bl2_ref[...]


# ------------------------------- host helpers --------------------------------

def init_params(key):
    ks = jax.random.split(key, 10)

    def w(k, shape):
        return (0.1 * jax.random.normal(k, shape)).astype(jnp.float32)

    return {
        "w1": w(ks[0], (6, 1, 5, 5)),    "b1": w(ks[1], (6,)),
        "w2": w(ks[2], (16, 6, 5, 5)),   "b2": w(ks[3], (16,)),
        "w3": w(ks[4], (120, 16, 5, 5)), "b3": w(ks[5], (120,)),
        "wl1": w(ks[6], (84, 120)),      "bl1": w(ks[7], (84,)),
        "wl2": w(ks[8], (10, 84)),       "bl2": w(ks[9], (10,)),
    }


def prepare_params(p):
    """One-time rearrangement of PyTorch-layout params into kernel-ready arrays.

    Conv weights become per-di Toeplitz matrices contracting (in-channel, dj) on
    lanes; pool matrices pair columns with 0.25; all MXU operands stored as bf16
    (exact for the 0.25 pool entries), biases kept f32 as broadcast rows.
    """
    w1 = np.asarray(p["w1"], np.float32)   # (6, 1, 5, 5)
    w2 = np.asarray(p["w2"], np.float32)   # (16, 6, 5, 5)
    w3 = np.asarray(p["w3"], np.float32)   # (120, 16, 5, 5)
    b1 = np.asarray(p["b1"], np.float32)
    b2 = np.asarray(p["b2"], np.float32)
    b3 = np.asarray(p["b3"], np.float32)
    bl1 = np.asarray(p["bl1"], np.float32)
    bl2 = np.asarray(p["bl2"], np.float32)

    # conv1: t1[di][jin, o*28+jo] = w1[o,0,di,jin-jo]  (0 <= jin-jo <= 4)
    t1 = np.zeros((5, 32, 168), np.float32)
    for di in range(5):
        for o in range(6):
            for jo in range(28):
                for dj in range(5):
                    t1[di, jo + dj, o * 28 + jo] = w1[o, 0, di, dj]

    # pool1 columns: p1[o*28+jc, o*14+qo] = 0.25 for jc in {2qo, 2qo+1}
    p1 = np.zeros((168, 84), np.float32)
    for o in range(6):
        for qo in range(14):
            p1[o * 28 + 2 * qo, o * 14 + qo] = 0.25
            p1[o * 28 + 2 * qo + 1, o * 14 + qo] = 0.25

    # conv2: t2[di][c*14+jin, u*10+q] = w2[u,c,di,jin-q]  (0 <= jin-q <= 4)
    t2 = np.zeros((5, 84, 160), np.float32)
    for di in range(5):
        for u in range(16):
            for c in range(6):
                for q in range(10):
                    for dj in range(5):
                        t2[di, c * 14 + q + dj, u * 10 + q] = w2[u, c, di, dj]

    # pool2 columns: p2[u*10+q, u*5+qo] = 0.25 for q in {2qo, 2qo+1}
    p2 = np.zeros((160, 80), np.float32)
    for u in range(16):
        for qo in range(5):
            p2[u * 10 + 2 * qo, u * 5 + qo] = 0.25
            p2[u * 10 + 2 * qo + 1, u * 5 + qo] = 0.25

    # conv3 (5x5 -> 1x1): t3[di][u*5+dj, v] = w3[v,u,di,dj]
    t3 = np.zeros((5, 80, 120), np.float32)
    for di in range(5):
        for v in range(120):
            for u in range(16):
                for dj in range(5):
                    t3[di, u * 5 + dj, v] = w3[v, u, di, dj]

    bf = jnp.bfloat16
    return {
        "t1": jnp.asarray(t1, bf), "p1": jnp.asarray(p1, bf),
        "t2": jnp.asarray(t2, bf), "p2": jnp.asarray(p2, bf),
        "t3": jnp.asarray(t3, bf),
        "wl1": jnp.asarray(np.asarray(p["wl1"], np.float32).T, bf),  # (120, 84)
        "wl2": jnp.asarray(np.asarray(p["wl2"], np.float32).T, bf),  # (84, 10)
        "b1": jnp.asarray(np.repeat(b1, 28).reshape(1, 168), jnp.float32),
        "b2": jnp.asarray(np.repeat(b2, 10).reshape(1, 160), jnp.float32),
        "b3": jnp.asarray(b3.reshape(1, 120), jnp.float32),
        "bl1": jnp.asarray(bl1.reshape(1, 84), jnp.float32),
        "bl2": jnp.asarray(bl2.reshape(1, 10), jnp.float32),
    }


def lenet_forward(x, prep, *, batch_block=64):
    """x: (N, 1, 32, 32) float32 -> logits (N, 10)."""
    n = x.shape[0]
    assert x.shape[1:] == (1, 32, 32), "LeNet expects 32x32 single-channel input"
    bb = min(batch_block, _round_up(n, 8))      # samples per grid step
    npad = _round_up(n, bb)
    xr = x.reshape(n, 32, 32).astype(jnp.float32)
    if npad != n:
        xr = jnp.pad(xr, ((0, npad - n), (0, 0), (0, 0)))
    x2d = xr.reshape(npad * 32, 32)             # rows = (sample, image row)
    R = bb * 32

    c2 = lambda i: (0, 0)
    c3 = lambda i: (0, 0, 0)

    out2d = pl.pallas_call(
        _lenet_kernel,
        out_shape=jax.ShapeDtypeStruct((npad * 32, 10), jnp.float32),
        grid=(npad // bb,),
        in_specs=[
            pl.BlockSpec((R, 32), lambda i: (i, 0)),   # x block (BB samples)
            pl.BlockSpec((5, 32, 168), c3),            # conv1 Toeplitz taps
            pl.BlockSpec((1, 168), c2),                # b1 row
            pl.BlockSpec((168, 84), c2),               # pool1 column matrix
            pl.BlockSpec((5, 84, 160), c3),            # conv2 Toeplitz taps
            pl.BlockSpec((1, 160), c2),                # b2 row
            pl.BlockSpec((160, 80), c2),               # pool2 column matrix
            pl.BlockSpec((5, 80, 120), c3),            # conv3 taps
            pl.BlockSpec((1, 120), c2),                # b3 row
            pl.BlockSpec((120, 84), c2),               # fc1 weight (transposed)
            pl.BlockSpec((1, 84), c2),                 # fc1 bias
            pl.BlockSpec((84, 10), c2),                # fc2 weight (transposed)
            pl.BlockSpec((1, 10), c2),                 # fc2 bias
        ],
        out_specs=pl.BlockSpec((R, 10), lambda i: (i, 0)),
        compiler_params=pltpu.CompilerParams(
            dimension_semantics=("parallel",),
            vmem_limit_bytes=48 * 1024 * 1024),
    )(x2d, prep["t1"], prep["b1"], prep["p1"], prep["t2"], prep["b2"],
      prep["p2"], prep["t3"], prep["b3"], prep["wl1"], prep["bl1"],
      prep["wl2"], prep["bl2"])

    # Valid logits live on row 0 of every 32-row sample block.
    logits = out2d.reshape(npad, 32, 10)[:, 0, :]
    return logits[:n]


# Pure-JAX reference (PyTorch semantics) for the correctness check.
def ref_forward(x, p):
    def conv(x, w, b):
        y = jax.lax.conv_general_dilated(
            x, w, window_strides=(1, 1), padding="VALID",
            dimension_numbers=("NCHW", "OIHW", "NCHW"))
        return y + b[None, :, None, None]

    def pool(x):
        n, c, h, w = x.shape
        return x.reshape(n, c, h // 2, 2, w // 2, 2).mean(axis=(3, 5))

    x = jax.nn.relu(conv(x, p["w1"], p["b1"])); x = pool(x)
    x = jax.nn.relu(conv(x, p["w2"], p["b2"])); x = pool(x)
    x = jax.nn.relu(conv(x, p["w3"], p["b3"]))
    x = x.reshape(x.shape[0], -1)
    x = jax.nn.relu(x @ p["wl1"].T + p["bl1"])
    return x @ p["wl2"].T + p["bl2"]


if __name__ == "__main__":
    key = jax.random.PRNGKey(0)
    kx, kp = jax.random.split(key)
    params = init_params(kp)
    prep = prepare_params(params)        # one-time weight rearrangement (host side)

    fwd = jax.jit(lenet_forward)

    # Small deterministic check (batch=2).
    x_small = jax.random.normal(kx, (2, 1, 32, 32), dtype=jnp.float32)
    out_small = jax.block_until_ready(fwd(x_small, prep))
    assert out_small.shape == (2, 10) and out_small.dtype == jnp.float32
    ref_small = np.asarray(ref_forward(x_small, params))
    err = float(np.max(np.abs(np.asarray(out_small) - ref_small)))
    assert np.allclose(np.asarray(out_small), ref_small, rtol=2e-2, atol=2e-2), ("max abs err", err)

    # Larger batch exercising multiple grid steps and batch padding.
    x_big = jax.random.normal(jax.random.PRNGKey(1), (80, 1, 32, 32), dtype=jnp.float32)
    out_big = jax.block_until_ready(fwd(x_big, prep))
    ref_big = np.asarray(ref_forward(x_big, params))
    err_big = float(np.max(np.abs(np.asarray(out_big) - ref_big)))
    assert out_big.shape == (80, 10)
    assert np.allclose(np.asarray(out_big), ref_big, rtol=2e-2, atol=2e-2), ("max abs err", err_big)

    print("KERNEL_OK")
</pallas_src>

<mosaic_0001>
module attributes {stable_mosaic.version = 11 : i64} {
  func.func @_lenet_kernel(%arg0: i32, %arg1: memref<256x32xf32, #tpu.memory_space<vmem>>, %arg2: memref<5x32x168xbf16, #tpu.memory_space<vmem>>, %arg3: memref<1x168xf32, #tpu.memory_space<vmem>>, %arg4: memref<168x84xbf16, #tpu.memory_space<vmem>>, %arg5: memref<5x84x160xbf16, #tpu.memory_space<vmem>>, %arg6: memref<1x160xf32, #tpu.memory_space<vmem>>, %arg7: memref<160x80xbf16, #tpu.memory_space<vmem>>, %arg8: memref<5x80x120xbf16, #tpu.memory_space<vmem>>, %arg9: memref<1x120xf32, #tpu.memory_space<vmem>>, %arg10: memref<120x84xbf16, #tpu.memory_space<vmem>>, %arg11: memref<1x84xf32, #tpu.memory_space<vmem>>, %arg12: memref<84x10xbf16, #tpu.memory_space<vmem>>, %arg13: memref<1x10xf32, #tpu.memory_space<vmem>>, %arg14: memref<256x10xf32, #tpu.memory_space<vmem>>) attributes {dimension_semantics = [#tpu.dimension_semantics<parallel>], iteration_bounds = array<i64: 1>, scalar_prefetch = 0 : i64, scratch_operands = 0 : i64, tpu.core_type = #tpu.core_type<tc>, window_params = [{transform_indices = @transform_0, window_bounds = array<i64: 256, 32>}, {pipeline_mode = #tpu.pipeline_mode<synchronous>, transform_indices = @transform_1, window_bounds = array<i64: 5, 32, 168>}, {pipeline_mode = #tpu.pipeline_mode<synchronous>, transform_indices = @transform_2, window_bounds = array<i64: 1, 168>}, {pipeline_mode = #tpu.pipeline_mode<synchronous>, transform_indices = @transform_3, window_bounds = array<i64: 168, 84>}, {pipeline_mode = #tpu.pipeline_mode<synchronous>, transform_indices = @transform_4, window_bounds = array<i64: 5, 84, 160>}, {pipeline_mode = #tpu.pipeline_mode<synchronous>, transform_indices = @transform_5, window_bounds = array<i64: 1, 160>}, {pipeline_mode = #tpu.pipeline_mode<synchronous>, transform_indices = @transform_6, window_bounds = array<i64: 160, 80>}, {pipeline_mode = #tpu.pipeline_mode<synchronous>, transform_indices = @transform_7, window_bounds = array<i64: 5, 80, 120>}, {pipeline_mode = #tpu.pipeline_mode<synchronous>, transform_indices = @transform_8, window_bounds = array<i64: 1, 120>}, {pipeline_mode = #tpu.pipeline_mode<synchronous>, transform_indices = @transform_9, window_bounds = array<i64: 120, 84>}, {pipeline_mode = #tpu.pipeline_mode<synchronous>, transform_indices = @transform_10, window_bounds = array<i64: 1, 84>}, {pipeline_mode = #tpu.pipeline_mode<synchronous>, transform_indices = @transform_11, window_bounds = array<i64: 84, 10>}, {pipeline_mode = #tpu.pipeline_mode<synchronous>, transform_indices = @transform_12, window_bounds = array<i64: 1, 10>}, {transform_indices = @transform_13, window_bounds = array<i64: 256, 10>}]} {
    %c0 = arith.constant 0 : index
    %c0_0 = arith.constant 0 : index
    %0 = vector.load %arg1[%c0, %c0_0] : memref<256x32xf32, #tpu.memory_space<vmem>>, vector<256x32xf32>
    %1 = arith.truncf %0 : vector<256x32xf32> to vector<256x32xbf16>
    %cst = arith.constant 0.000000e+00 : bf16
    %2 = vector.broadcast %cst : bf16 to vector<16x32xbf16>
    %3 = tpu.concatenate %1, %2 in 0 : vector<256x32xbf16>, vector<16x32xbf16> -> vector<272x32xbf16>
    %cst_1 = arith.constant 0.000000e+00 : f32
    %4 = vector.broadcast %cst_1 : f32 to vector<256x168xf32>
    %5 = vector.extract_strided_slice %3 {offsets = [0, 0], sizes = [256, 32], strides = [1, 1]} : vector<272x32xbf16> to vector<256x32xbf16>
    %c0_2 = arith.constant 0 : index
    %c0_3 = arith.constant 0 : index
    %c0_4 = arith.constant 0 : index
    %6 = vector.load %arg2[%c0_2, %c0_3, %c0_4] : memref<5x32x168xbf16, #tpu.memory_space<vmem>>, vector<1x32x168xbf16>
    %7 = vector.shape_cast %6 : vector<1x32x168xbf16> to vector<32x168xbf16>
    %cst_5 = arith.constant dense<0.000000e+00> : vector<256x168xf32>
    %8 = tpu.matmul %5, %7, %cst_5 {dimension_numbers = #tpu.dot_dimension_numbers<[1], [0], [0], [1], [0, 0, 1, 1], [], []>} : vector<256x32xbf16>, vector<32x168xbf16>, vector<256x168xf32> -> vector<256x168xf32>
    %9 = arith.addf %4, %8 : vector<256x168xf32>
    %10 = vector.extract_strided_slice %3 {offsets = [1, 0], sizes = [256, 32], strides = [1, 1]} : vector<272x32xbf16> to vector<256x32xbf16>
    %c1 = arith.constant 1 : index
    %c0_6 = arith.constant 0 : index
    %c0_7 = arith.constant 0 : index
    %11 = vector.load %arg2[%c1, %c0_6, %c0_7] : memref<5x32x168xbf16, #tpu.memory_space<vmem>>, vector<1x32x168xbf16>
    %12 = vector.shape_cast %11 : vector<1x32x168xbf16> to vector<32x168xbf16>
    %cst_8 = arith.constant dense<0.000000e+00> : vector<256x168xf32>
    %13 = tpu.matmul %10, %12, %cst_8 {dimension_numbers = #tpu.dot_dimension_numbers<[1], [0], [0], [1], [0, 0, 1, 1], [], []>} : vector<256x32xbf16>, vector<32x168xbf16>, vector<256x168xf32> -> vector<256x168xf32>
    %14 = arith.addf %9, %13 : vector<256x168xf32>
    %15 = vector.extract_strided_slice %3 {offsets = [2, 0], sizes = [256, 32], strides = [1, 1]} : vector<272x32xbf16> to vector<256x32xbf16>
    %c2 = arith.constant 2 : index
    %c0_9 = arith.constant 0 : index
    %c0_10 = arith.constant 0 : index
    %16 = vector.load %arg2[%c2, %c0_9, %c0_10] : memref<5x32x168xbf16, #tpu.memory_space<vmem>>, vector<1x32x168xbf16>
    %17 = vector.shape_cast %16 : vector<1x32x168xbf16> to vector<32x168xbf16>
    %cst_11 = arith.constant dense<0.000000e+00> : vector<256x168xf32>
    %18 = tpu.matmul %15, %17, %cst_11 {dimension_numbers = #tpu.dot_dimension_numbers<[1], [0], [0], [1], [0, 0, 1, 1], [], []>} : vector<256x32xbf16>, vector<32x168xbf16>, vector<256x168xf32> -> vector<256x168xf32>
    %19 = arith.addf %14, %18 : vector<256x168xf32>
    %20 = vector.extract_strided_slice %3 {offsets = [3, 0], sizes = [256, 32], strides = [1, 1]} : vector<272x32xbf16> to vector<256x32xbf16>
    %c3 = arith.constant 3 : index
    %c0_12 = arith.constant 0 : index
    %c0_13 = arith.constant 0 : index
    %21 = vector.load %arg2[%c3, %c0_12, %c0_13] : memref<5x32x168xbf16, #tpu.memory_space<vmem>>, vector<1x32x168xbf16>
    %22 = vector.shape_cast %21 : vector<1x32x168xbf16> to vector<32x168xbf16>
    %cst_14 = arith.constant dense<0.000000e+00> : vector<256x168xf32>
    %23 = tpu.matmul %20, %22, %cst_14 {dimension_numbers = #tpu.dot_dimension_numbers<[1], [0], [0], [1], [0, 0, 1, 1], [], []>} : vector<256x32xbf16>, vector<32x168xbf16>, vector<256x168xf32> -> vector<256x168xf32>
    %24 = arith.addf %19, %23 : vector<256x168xf32>
    %25 = vector.extract_strided_slice %3 {offsets = [4, 0], sizes = [256, 32], strides = [1, 1]} : vector<272x32xbf16> to vector<256x32xbf16>
    %c4 = arith.constant 4 : index
    %c0_15 = arith.constant 0 : index
    %c0_16 = arith.constant 0 : index
    %26 = vector.load %arg2[%c4, %c0_15, %c0_16] : memref<5x32x168xbf16, #tpu.memory_space<vmem>>, vector<1x32x168xbf16>
    %27 = vector.shape_cast %26 : vector<1x32x168xbf16> to vector<32x168xbf16>
    %cst_17 = arith.constant dense<0.000000e+00> : vector<256x168xf32>
    %28 = tpu.matmul %25, %27, %cst_17 {dimension_numbers = #tpu.dot_dimension_numbers<[1], [0], [0], [1], [0, 0, 1, 1], [], []>} : vector<256x32xbf16>, vector<32x168xbf16>, vector<256x168xf32> -> vector<256x168xf32>
    %29 = arith.addf %24, %28 : vector<256x168xf32>
    %c0_18 = arith.constant 0 : index
    %c0_19 = arith.constant 0 : index
    %30 = vector.load %arg3[%c0_18, %c0_19] : memref<1x168xf32, #tpu.memory_space<vmem>>, vector<1x168xf32>
    %31 = vector.broadcast %30 : vector<1x168xf32> to vector<256x168xf32>
    %32 = arith.addf %29, %31 : vector<256x168xf32>
    %cst_20 = arith.constant 0.000000e+00 : f32
    %33 = vector.broadcast %cst_20 : f32 to vector<256x168xf32>
    %34 = arith.maximumf %32, %33 : vector<256x168xf32>
    %cst_21 = arith.constant 0.000000e+00 : f32
    %35 = vector.broadcast %cst_21 : f32 to vector<16x168xf32>
    %36 = tpu.concatenate %34, %35 in 0 : vector<256x168xf32>, vector<16x168xf32> -> vector<272x168xf32>
    %37 = vector.extract_strided_slice %36 {offsets = [0, 0], sizes = [256, 168], strides = [1, 1]} : vector<272x168xf32> to vector<256x168xf32>
    %38 = vector.extract_strided_slice %36 {offsets = [1, 0], sizes = [256, 168], strides = [1, 1]} : vector<272x168xf32> to vector<256x168xf32>
    %39 = arith.addf %37, %38 : vector<256x168xf32>
    %40 = arith.truncf %39 : vector<256x168xf32> to vector<256x168xbf16>
    %c0_22 = arith.constant 0 : index
    %c0_23 = arith.constant 0 : index
    %41 = vector.load %arg4[%c0_22, %c0_23] : memref<168x84xbf16, #tpu.memory_space<vmem>>, vector<168x84xbf16>
    %cst_24 = arith.constant dense<0.000000e+00> : vector<256x84xf32>
    %42 = tpu.matmul %40, %41, %cst_24 {dimension_numbers = #tpu.dot_dimension_numbers<[1], [0], [0], [1], [0, 0, 1, 1], [], []>} : vector<256x168xbf16>, vector<168x84xbf16>, vector<256x84xf32> -> vector<256x84xf32>
    %43 = arith.truncf %42 : vector<256x84xf32> to vector<256x84xbf16>
    %cst_25 = arith.constant 0.000000e+00 : bf16
    %44 = vector.broadcast %cst_25 : bf16 to vector<16x84xbf16>
    %45 = tpu.concatenate %43, %44 in 0 : vector<256x84xbf16>, vector<16x84xbf16> -> vector<272x84xbf16>
    %cst_26 = arith.constant 0.000000e+00 : f32
    %46 = vector.broadcast %cst_26 : f32 to vector<256x160xf32>
    %47 = vector.extract_strided_slice %45 {offsets = [0, 0], sizes = [256, 84], strides = [1, 1]} : vector<272x84xbf16> to vector<256x84xbf16>
    %c0_27 = arith.constant 0 : index
    %c0_28 = arith.constant 0 : index
    %c0_29 = arith.constant 0 : index
    %48 = vector.load %arg5[%c0_27, %c0_28, %c0_29] : memref<5x84x160xbf16, #tpu.memory_space<vmem>>, vector<1x84x160xbf16>
    %49 = vector.shape_cast %48 : vector<1x84x160xbf16> to vector<84x160xbf16>
    %cst_30 = arith.constant dense<0.000000e+00> : vector<256x160xf32>
    %50 = tpu.matmul %47, %49, %cst_30 {dimension_numbers = #tpu.dot_dimension_numbers<[1], [0], [0], [1], [0, 0, 1, 1], [], []>} : vector<256x84xbf16>, vector<84x160xbf16>, vector<256x160xf32> -> vector<256x160xf32>
    %51 = arith.addf %46, %50 : vector<256x160xf32>
    %52 = vector.extract_strided_slice %45 {offsets = [2, 0], sizes = [256, 84], strides = [1, 1]} : vector<272x84xbf16> to vector<256x84xbf16>
    %c1_31 = arith.constant 1 : index
    %c0_32 = arith.constant 0 : index
    %c0_33 = arith.constant 0 : index
    %53 = vector.load %arg5[%c1_31, %c0_32, %c0_33] : memref<5x84x160xbf16, #tpu.memory_space<vmem>>, vector<1x84x160xbf16>
    %54 = vector.shape_cast %53 : vector<1x84x160xbf16> to vector<84x160xbf16>
    %cst_34 = arith.constant dense<0.000000e+00> : vector<256x160xf32>
    %55 = tpu.matmul %52, %54, %cst_34 {dimension_numbers = #tpu.dot_dimension_numbers<[1], [0], [0], [1], [0, 0, 1, 1], [], []>} : vector<256x84xbf16>, vector<84x160xbf16>, vector<256x160xf32> -> vector<256x160xf32>
    %56 = arith.addf %51, %55 : vector<256x160xf32>
    %57 = vector.extract_strided_slice %45 {offsets = [4, 0], sizes = [256, 84], strides = [1, 1]} : vector<272x84xbf16> to vector<256x84xbf16>
    %c2_35 = arith.constant 2 : index
    %c0_36 = arith.constant 0 : index
    %c0_37 = arith.constant 0 : index
    %58 = vector.load %arg5[%c2_35, %c0_36, %c0_37] : memref<5x84x160xbf16, #tpu.memory_space<vmem>>, vector<1x84x160xbf16>
    %59 = vector.shape_cast %58 : vector<1x84x160xbf16> to vector<84x160xbf16>
    %cst_38 = arith.constant dense<0.000000e+00> : vector<256x160xf32>
    %60 = tpu.matmul %57, %59, %cst_38 {dimension_numbers = #tpu.dot_dimension_numbers<[1], [0], [0], [1], [0, 0, 1, 1], [], []>} : vector<256x84xbf16>, vector<84x160xbf16>, vector<256x160xf32> -> vector<256x160xf32>
    %61 = arith.addf %56, %60 : vector<256x160xf32>
    %62 = vector.extract_strided_slice %45 {offsets = [6, 0], sizes = [256, 84], strides = [1, 1]} : vector<272x84xbf16> to vector<256x84xbf16>
    %c3_39 = arith.constant 3 : index
    %c0_40 = arith.constant 0 : index
    %c0_41 = arith.constant 0 : index
    %63 = vector.load %arg5[%c3_39, %c0_40, %c0_41] : memref<5x84x160xbf16, #tpu.memory_space<vmem>>, vector<1x84x160xbf16>
    %64 = vector.shape_cast %63 : vector<1x84x160xbf16> to vector<84x160xbf16>
    %cst_42 = arith.constant dense<0.000000e+00> : vector<256x160xf32>
    %65 = tpu.matmul %62, %64, %cst_42 {dimension_numbers = #tpu.dot_dimension_numbers<[1], [0], [0], [1], [0, 0, 1, 1], [], []>} : vector<256x84xbf16>, vector<84x160xbf16>, vector<256x160xf32> -> vector<256x160xf32>
    %66 = arith.addf %61, %65 : vector<256x160xf32>
    %67 = vector.extract_strided_slice %45 {offsets = [8, 0], sizes = [256, 84], strides = [1, 1]} : vector<272x84xbf16> to vector<256x84xbf16>
    %c4_43 = arith.constant 4 : index
    %c0_44 = arith.constant 0 : index
    %c0_45 = arith.constant 0 : index
    %68 = vector.load %arg5[%c4_43, %c0_44, %c0_45] : memref<5x84x160xbf16, #tpu.memory_space<vmem>>, vector<1x84x160xbf16>
    %69 = vector.shape_cast %68 : vector<1x84x160xbf16> to vector<84x160xbf16>
    %cst_46 = arith.constant dense<0.000000e+00> : vector<256x160xf32>
    %70 = tpu.matmul %67, %69, %cst_46 {dimension_numbers = #tpu.dot_dimension_numbers<[1], [0], [0], [1], [0, 0, 1, 1], [], []>} : vector<256x84xbf16>, vector<84x160xbf16>, vector<256x160xf32> -> vector<256x160xf32>
    %71 = arith.addf %66, %70 : vector<256x160xf32>
    %c0_47 = arith.constant 0 : index
    %c0_48 = arith.constant 0 : index
    %72 = vector.load %arg6[%c0_47, %c0_48] : memref<1x160xf32, #tpu.memory_space<vmem>>, vector<1x160xf32>
    %73 = vector.broadcast %72 : vector<1x160xf32> to vector<256x160xf32>
    %74 = arith.addf %71, %73 : vector<256x160xf32>
    %cst_49 = arith.constant 0.000000e+00 : f32
    %75 = vector.broadcast %cst_49 : f32 to vector<256x160xf32>
    %76 = arith.maximumf %74, %75 : vector<256x160xf32>
    %cst_50 = arith.constant 0.000000e+00 : f32
    %77 = vector.broadcast %cst_50 : f32 to vector<16x160xf32>
    %78 = tpu.concatenate %76, %77 in 0 : vector<256x160xf32>, vector<16x160xf32> -> vector<272x160xf32>
    %79 = vector.extract_strided_slice %78 {offsets = [0, 0], sizes = [256, 160], strides = [1, 1]} : vector<272x160xf32> to vector<256x160xf32>
    %80 = vector.extract_strided_slice %78 {offsets = [2, 0], sizes = [256, 160], strides = [1, 1]} : vector<272x160xf32> to vector<256x160xf32>
    %81 = arith.addf %79, %80 : vector<256x160xf32>
    %82 = arith.truncf %81 : vector<256x160xf32> to vector<256x160xbf16>
    %c0_51 = arith.constant 0 : index
    %c0_52 = arith.constant 0 : index
    %83 = vector.load %arg7[%c0_51, %c0_52] : memref<160x80xbf16, #tpu.memory_space<vmem>>, vector<160x80xbf16>
    %cst_53 = arith.constant dense<0.000000e+00> : vector<256x80xf32>
    %84 = tpu.matmul %82, %83, %cst_53 {dimension_numbers = #tpu.dot_dimension_numbers<[1], [0], [0], [1], [0, 0, 1, 1], [], []>} : vector<256x160xbf16>, vector<160x80xbf16>, vector<256x80xf32> -> vector<256x80xf32>
    %85 = arith.truncf %84 : vector<256x80xf32> to vector<256x80xbf16>
    %cst_54 = arith.constant 0.000000e+00 : bf16
    %86 = vector.broadcast %cst_54 : bf16 to vector<16x80xbf16>
    %87 = tpu.concatenate %85, %86 in 0 : vector<256x80xbf16>, vector<16x80xbf16> -> vector<272x80xbf16>
    %cst_55 = arith.constant 0.000000e+00 : f32
    %88 = vector.broadcast %cst_55 : f32 to vector<256x120xf32>
    %89 = vector.extract_strided_slice %87 {offsets = [0, 0], sizes = [256, 80], strides = [1, 1]} : vector<272x80xbf16> to vector<256x80xbf16>
    %c0_56 = arith.constant 0 : index
    %c0_57 = arith.constant 0 : index
    %c0_58 = arith.constant 0 : index
    %90 = vector.load %arg8[%c0_56, %c0_57, %c0_58] : memref<5x80x120xbf16, #tpu.memory_space<vmem>>, vector<1x80x120xbf16>
    %91 = vector.shape_cast %90 : vector<1x80x120xbf16> to vector<80x120xbf16>
    %cst_59 = arith.constant dense<0.000000e+00> : vector<256x120xf32>
    %92 = tpu.matmul %89, %91, %cst_59 {dimension_numbers = #tpu.dot_dimension_numbers<[1], [0], [0], [1], [0, 0, 1, 1], [], []>} : vector<256x80xbf16>, vector<80x120xbf16>, vector<256x120xf32> -> vector<256x120xf32>
    %93 = arith.addf %88, %92 : vector<256x120xf32>
    %94 = vector.extract_strided_slice %87 {offsets = [4, 0], sizes = [256, 80], strides = [1, 1]} : vector<272x80xbf16> to vector<256x80xbf16>
    %c1_60 = arith.constant 1 : index
    %c0_61 = arith.constant 0 : index
    %c0_62 = arith.constant 0 : index
    %95 = vector.load %arg8[%c1_60, %c0_61, %c0_62] : memref<5x80x120xbf16, #tpu.memory_space<vmem>>, vector<1x80x120xbf16>
    %96 = vector.shape_cast %95 : vector<1x80x120xbf16> to vector<80x120xbf16>
    %cst_63 = arith.constant dense<0.000000e+00> : vector<256x120xf32>
    %97 = tpu.matmul %94, %96, %cst_63 {dimension_numbers = #tpu.dot_dimension_numbers<[1], [0], [0], [1], [0, 0, 1, 1], [], []>} : vector<256x80xbf16>, vector<80x120xbf16>, vector<256x120xf32> -> vector<256x120xf32>
    %98 = arith.addf %93, %97 : vector<256x120xf32>
    %99 = vector.extract_strided_slice %87 {offsets = [8, 0], sizes = [256, 80], strides = [1, 1]} : vector<272x80xbf16> to vector<256x80xbf16>
    %c2_64 = arith.constant 2 : index
    %c0_65 = arith.constant 0 : index
    %c0_66 = arith.constant 0 : index
    %100 = vector.load %arg8[%c2_64, %c0_65, %c0_66] : memref<5x80x120xbf16, #tpu.memory_space<vmem>>, vector<1x80x120xbf16>
    %101 = vector.shape_cast %100 : vector<1x80x120xbf16> to vector<80x120xbf16>
    %cst_67 = arith.constant dense<0.000000e+00> : vector<256x120xf32>
    %102 = tpu.matmul %99, %101, %cst_67 {dimension_numbers = #tpu.dot_dimension_numbers<[1], [0], [0], [1], [0, 0, 1, 1], [], []>} : vector<256x80xbf16>, vector<80x120xbf16>, vector<256x120xf32> -> vector<256x120xf32>
    %103 = arith.addf %98, %102 : vector<256x120xf32>
    %104 = vector.extract_strided_slice %87 {offsets = [12, 0], sizes = [256, 80], strides = [1, 1]} : vector<272x80xbf16> to vector<256x80xbf16>
    %c3_68 = arith.constant 3 : index
    %c0_69 = arith.constant 0 : index
    %c0_70 = arith.constant 0 : index
    %105 = vector.load %arg8[%c3_68, %c0_69, %c0_70] : memref<5x80x120xbf16, #tpu.memory_space<vmem>>, vector<1x80x120xbf16>
    %106 = vector.shape_cast %105 : vector<1x80x120xbf16> to vector<80x120xbf16>
    %cst_71 = arith.constant dense<0.000000e+00> : vector<256x120xf32>
    %107 = tpu.matmul %104, %106, %cst_71 {dimension_numbers = #tpu.dot_dimension_numbers<[1], [0], [0], [1], [0, 0, 1, 1], [], []>} : vector<256x80xbf16>, vector<80x120xbf16>, vector<256x120xf32> -> vector<256x120xf32>
    %108 = arith.addf %103, %107 : vector<256x120xf32>
    %109 = vector.extract_strided_slice %87 {offsets = [16, 0], sizes = [256, 80], strides = [1, 1]} : vector<272x80xbf16> to vector<256x80xbf16>
    %c4_72 = arith.constant 4 : index
    %c0_73 = arith.constant 0 : index
    %c0_74 = arith.constant 0 : index
    %110 = vector.load %arg8[%c4_72, %c0_73, %c0_74] : memref<5x80x120xbf16, #tpu.memory_space<vmem>>, vector<1x80x120xbf16>
    %111 = vector.shape_cast %110 : vector<1x80x120xbf16> to vector<80x120xbf16>
    %cst_75 = arith.constant dense<0.000000e+00> : vector<256x120xf32>
    %112 = tpu.matmul %109, %111, %cst_75 {dimension_numbers = #tpu.dot_dimension_numbers<[1], [0], [0], [1], [0, 0, 1, 1], [], []>} : vector<256x80xbf16>, vector<80x120xbf16>, vector<256x120xf32> -> vector<256x120xf32>
    %113 = arith.addf %108, %112 : vector<256x120xf32>
    %c0_76 = arith.constant 0 : index
    %c0_77 = arith.constant 0 : index
    %114 = vector.load %arg9[%c0_76, %c0_77] : memref<1x120xf32, #tpu.memory_space<vmem>>, vector<1x120xf32>
    %115 = vector.broadcast %114 : vector<1x120xf32> to vector<256x120xf32>
    %116 = arith.addf %113, %115 : vector<256x120xf32>
    %cst_78 = arith.constant 0.000000e+00 : f32
    %117 = vector.broadcast %cst_78 : f32 to vector<256x120xf32>
    %118 = arith.maximumf %116, %117 : vector<256x120xf32>
    %119 = arith.truncf %118 : vector<256x120xf32> to vector<256x120xbf16>
    %c0_79 = arith.constant 0 : index
    %c0_80 = arith.constant 0 : index
    %120 = vector.load %arg10[%c0_79, %c0_80] : memref<120x84xbf16, #tpu.memory_space<vmem>>, vector<120x84xbf16>
    %cst_81 = arith.constant dense<0.000000e+00> : vector<256x84xf32>
    %121 = tpu.matmul %119, %120, %cst_81 {dimension_numbers = #tpu.dot_dimension_numbers<[1], [0], [0], [1], [0, 0, 1, 1], [], []>} : vector<256x120xbf16>, vector<120x84xbf16>, vector<256x84xf32> -> vector<256x84xf32>
    %c0_82 = arith.constant 0 : index
    %c0_83 = arith.constant 0 : index
    %122 = vector.load %arg11[%c0_82, %c0_83] : memref<1x84xf32, #tpu.memory_space<vmem>>, vector<1x84xf32>
    %123 = vector.broadcast %122 : vector<1x84xf32> to vector<256x84xf32>
    %124 = arith.addf %121, %123 : vector<256x84xf32>
    %cst_84 = arith.constant 0.000000e+00 : f32
    %125 = vector.broadcast %cst_84 : f32 to vector<256x84xf32>
    %126 = arith.maximumf %124, %125 : vector<256x84xf32>
    %127 = arith.truncf %126 : vector<256x84xf32> to vector<256x84xbf16>
    %c0_85 = arith.constant 0 : index
    %c0_86 = arith.constant 0 : index
    %128 = vector.load %arg12[%c0_85, %c0_86] : memref<84x10xbf16, #tpu.memory_space<vmem>>, vector<84x10xbf16>
    %cst_87 = arith.constant dense<0.000000e+00> : vector<256x10xf32>
    %129 = tpu.matmul %127, %128, %cst_87 {dimension_numbers = #tpu.dot_dimension_numbers<[1], [0], [0], [1], [0, 0, 1, 1], [], []>} : vector<256x84xbf16>, vector<84x10xbf16>, vector<256x10xf32> -> vector<256x10xf32>
    %c0_88 = arith.constant 0 : index
    %c0_89 = arith.constant 0 : index
    %130 = vector.load %arg13[%c0_88, %c0_89] : memref<1x10xf32, #tpu.memory_space<vmem>>, vector<1x10xf32>
    %131 = vector.broadcast %130 : vector<1x10xf32> to vector<256x10xf32>
    %132 = arith.addf %129, %131 : vector<256x10xf32>
    %c0_90 = arith.constant 0 : index
    %c0_91 = arith.constant 0 : index
    %133 = vector.load %arg14[%c0_90, %c0_91] : memref<256x10xf32, #tpu.memory_space<vmem>>, vector<256x10xf32>
    tpu.vector_store %arg14[%c0_90, %c0_91], %132 {strides = array<i32>} : memref<256x10xf32, #tpu.memory_space<vmem>>, vector<256x10xf32>,
    return
  }
  func.func @transform_0(%arg0: i32) -> (i32, i32) {
    %c0_i32 = arith.constant 0 : i32
    %c0_i32_0 = arith.constant 0 : i32
    return %arg0, %c0_i32 : i32, i32
  }
  func.func @transform_1(%arg0: i32) -> (i32, i32, i32) {
    %c0_i32 = arith.constant 0 : i32
    %c0_i32_0 = arith.constant 0 : i32
    %c0_i32_1 = arith.constant 0 : i32
    %c0_i32_2 = arith.constant 0 : i32
    return %c0_i32, %c0_i32_0, %c0_i32_1 : i32, i32, i32
  }
  func.func @transform_2(%arg0: i32) -> (i32, i32) {
    %c0_i32 = arith.constant 0 : i32
    %c0_i32_0 = arith.constant 0 : i32
    %c0_i32_1 = arith.constant 0 : i32
    return %c0_i32, %c0_i32_0 : i32, i32
  }
  func.func @transform_3(%arg0: i32) -> (i32, i32) {
    %c0_i32 = arith.constant 0 : i32
    %c0_i32_0 = arith.constant 0 : i32
    %c0_i32_1 = arith.constant 0 : i32
    return %c0_i32, %c0_i32_0 : i32, i32
  }
  func.func @transform_4(%arg0: i32) -> (i32, i32, i32) {
    %c0_i32 = arith.constant 0 : i32
    %c0_i32_0 = arith.constant 0 : i32
    %c0_i32_1 = arith.constant 0 : i32
    %c0_i32_2 = arith.constant 0 : i32
    return %c0_i32, %c0_i32_0, %c0_i32_1 : i32, i32, i32
  }
  func.func @transform_5(%arg0: i32) -> (i32, i32) {
    %c0_i32 = arith.constant 0 : i32
    %c0_i32_0 = arith.constant 0 : i32
    %c0_i32_1 = arith.constant 0 : i32
    return %c0_i32, %c0_i32_0 : i32, i32
  }
  func.func @transform_6(%arg0: i32) -> (i32, i32) {
    %c0_i32 = arith.constant 0 : i32
    %c0_i32_0 = arith.constant 0 : i32
    %c0_i32_1 = arith.constant 0 : i32
    return %c0_i32, %c0_i32_0 : i32, i32
  }
  func.func @transform_7(%arg0: i32) -> (i32, i32, i32) {
    %c0_i32 = arith.constant 0 : i32
    %c0_i32_0 = arith.constant 0 : i32
    %c0_i32_1 = arith.constant 0 : i32
    %c0_i32_2 = arith.constant 0 : i32
    return %c0_i32, %c0_i32_0, %c0_i32_1 : i32, i32, i32
  }
  func.func @transform_8(%arg0: i32) -> (i32, i32) {
    %c0_i32 = arith.constant 0 : i32
    %c0_i32_0 = arith.constant 0 : i32
    %c0_i32_1 = arith.constant 0 : i32
    return %c0_i32, %c0_i32_0 : i32, i32
  }
  func.func @transform_9(%arg0: i32) -> (i32, i32) {
    %c0_i32 = arith.constant 0 : i32
    %c0_i32_0 = arith.constant 0 : i32
    %c0_i32_1 = arith.constant 0 : i32
    return %c0_i32, %c0_i32_0 : i32, i32
  }
  func.func @transform_10(%arg0: i32) -> (i32, i32) {
    %c0_i32 = arith.constant 0 : i32
    %c0_i32_0 = arith.constant 0 : i32
    %c0_i32_1 = arith.constant 0 : i32
    return %c0_i32, %c0_i32_0 : i32, i32
  }
  func.func @transform_11(%arg0: i32) -> (i32, i32) {
    %c0_i32 = arith.constant 0 : i32
    %c0_i32_0 = arith.constant 0 : i32
    %c0_i32_1 = arith.constant 0 : i32
    return %c0_i32, %c0_i32_0 : i32, i32
  }
  func.func @transform_12(%arg0: i32) -> (i32, i32) {
    %c0_i32 = arith.constant 0 : i32
    %c0_i32_0 = arith.constant 0 : i32
    %c0_i32_1 = arith.constant 0 : i32
    return %c0_i32, %c0_i32_0 : i32, i32
  }
  func.func @transform_13(%arg0: i32) -> (i32, i32) {
    %c0_i32 = arith.constant 0 : i32
    %c0_i32_0 = arith.constant 0 : i32
    return %arg0, %c0_i32 : i32, i32
  }
}

</mosaic_0001>

<bundles_post_ra>
// kernel: lenet_forward.1
= control target key start
LH: loop header
LB: loop body
LE: loop exit
PB: predicated region body
PF: predicated region fallthrough
CT: control target
= control target key end

     0   :  { %vm351_vm0 = vcmask 261120   ;;  %vm198_vm1 = vsmask.f32 7424  ;;  %vm1163_vm2 = vsmask.f32 6400  ;;  %vm814_vm3 = vcmask 1046528   ;;  %s12458_s1 = inlined_call_operand.vmem [shape: bf16[5,32,168], index: 1, kind: input, shape index: {}]   ;;  %s12459_s0 = inlined_call_operand.vmem [shape: f32[256,32], index: 0, kind: input, shape index: {}]   ;;  %s12460_s3 = inlined_call_operand.vmem [shape: bf16[168,84], index: 3, kind: input, shape index: {}]   ;;  %s12461_s2 = inlined_call_operand.vmem [shape: f32[1,168], index: 2, kind: input, shape index: {}]   ;;  %s12462_s4 = inlined_call_operand.vmem [shape: bf16[5,84,160], index: 4, kind: input, shape index: {}]   ;;  %s12463_s6 = inlined_call_operand.vmem [shape: bf16[160,80], index: 6, kind: input, shape index: {}]   ;;  %s12464_s7 = inlined_call_operand.vmem [shape: bf16[5,80,120], index: 7, kind: input, shape index: {}]   ;;  %s12465_s5 = inlined_call_operand.vmem [shape: f32[1,160], index: 5, kind: input, shape index: {}]   ;;  %s12466_s9 = inlined_call_operand.vmem [shape: bf16[120,84], index: 9, kind: input, shape index: {}]   ;;  %s12467_s11 = inlined_call_operand.vmem [shape: bf16[84,10], index: 11, kind: input, shape index: {}]   ;;  %s12468_s8 = inlined_call_operand.vmem [shape: f32[1,120], index: 8, kind: input, shape index: {}]   ;;  %s12469_s10 = inlined_call_operand.vmem [shape: f32[1,84], index: 10, kind: input, shape index: {}]   ;;  %s12470_s12 = inlined_call_operand.vmem [shape: f32[1,10], index: 12, kind: input, shape index: {}]   ;;  %s12471_s13 = inlined_call_operand.vmem [shape: f32[256,10], index: 13, kind: output, shape index: {}]  }
   0x1   :  { %v7196_v0 = vld [vmem:[%s12458_s1 + $0x10] sm:$0xf]  ;;  %v8208_v1 = vld [vmem:[%s12458_s1 + $0x14] sm:$0xf0]  ;;  %v7188_v5 = vld [vmem:[%s12458_s1] sm:$0xf] }
   0x2   :  { %v7148_v2 = vld [vmem:[%s12458_s1 + $0x30] sm:$0xf]  ;;  %v8424_v3 = vor.u32 %v8208_v1, %v7196_v0  ;;  %v8212_v4 = vld [vmem:[%s12458_s1 + $0x34] sm:$0xf0]  ;;  %v8206_v6 = vld [vmem:[%s12458_s1 + $0x4] sm:$0xf0] }
   0x3   :  { %v7149_v7 = vor.u32 %v8212_v4, %v7148_v2  ;;  %v45_v8 = vld [vmem:[%s12459_s0] sm:$0xff]  ;;  %v46_v9 = vld [vmem:[%s12459_s0 + $0x8] sm:$0xff]  ;;  %v8445_v11 = vor.u32 %v8206_v6, %v7188_v5  ;;  %v47_v15 = vld [vmem:[%s12459_s0 + $0x10] sm:$0xff]  ;;  %vm2514_vm4 = vcmask 1043456   ;;  %vm1548_vm5 = vcmask 1045504  }
   0x4   :  { %v7140_v10 = vld [vmem:[%s12458_s1 + $0x20] sm:$0xf]  ;;  %636 = vmatpush.bf16.msra.mxu2 %v8424_v3  ;;  %v77_v12 = vpack.c.bf16 %v45_v8, %v45_v8  ;;  %v78_v13 = vpack.c.bf16 %v46_v9, %v46_v9  ;;  %v8210_v14 = vld [vmem:[%s12458_s1 + $0x24] sm:$0xf0]  ;;  %v48_v16 = vld [vmem:[%s12459_s0 + $0x18] sm:$0xff]  ;;  %v79_v18 = vpack.c.bf16 %v47_v15, %v47_v15  ;;  %vm2967_vm6 = vcmask 1041408  }
   0x5   :  { %406 = vmatpush.bf16.msra.mxu0 %v7149_v7  ;;  %8332 = vmatpush.bf16.msra.mxu3 %v7149_v7  ;;  %v7141_v17 = vor.u32 %v8210_v14, %v7140_v10  ;;  %v80_v19 = vpack.c.bf16 %v48_v16, %v48_v16  ;;  %v69_v20 = vld [vmem:[%s12459_s0 + $0xc0] sm:$0xff]  ;;  %v70_v21 = vld [vmem:[%s12459_s0 + $0xc8] sm:$0xff]  ;;  %v71_v22 = vld [vmem:[%s12459_s0 + $0xd0] sm:$0xff]  ;;  %vm2465_vm7 = vcmask 326656   ;;  %vm2918_vm8 = vcmask 687104  }
   0x6   :  { %v141_v23 = vunpack.c.l.b16 %v77_v12  ;;  %v142_v24 = vunpack.c.l.b16 %v78_v13  ;;  %v72_v25 = vld [vmem:[%s12459_s0 + $0xd8] sm:$0xff]  ;;  %v101_v26 = vpack.c.bf16 %v69_v20, %v69_v20  ;;  %v102_v27 = vpack.c.bf16 %v70_v21, %v70_v21  ;;  %v8211_v28 = vld [vmem:[%s12458_s1 + $0x34] sm:$0xf]  ;;  %v8209_v34 = vld [vmem:[%s12458_s1 + $0x24] sm:$0xf] }
   0x7   :  { %v7150_v29 = vld [vmem:[%s12458_s1 + $0x38] sm:$0xf0]  ;;  %v143_v30 = vunpack.c.l.b16 %v79_v18  ;;  %v144_v31 = vunpack.c.l.b16 %v80_v19  ;;  %v103_v32 = vpack.c.bf16 %v71_v22, %v71_v22  ;;  %v104_v33 = vpack.c.bf16 %v72_v25, %v72_v25  ;;  %v7142_v35 = vld [vmem:[%s12458_s1 + $0x28] sm:$0xf0]  ;;  %v49_v36 = vld [vmem:[%s12459_s0 + $0x20] sm:$0xff] }
   0x8   :  { %637 = vmatpush.bf16.msra.mxu2 %v8445_v11  ;;  %v8484_v37 = vpack.c.b16 %v142_v24, %v141_v23  ;;  %v165_v38 = vunpack.c.l.b16 %v101_v26  ;;  %v166_v39 = vunpack.c.l.b16 %v102_v27  ;;  %v7153_v40 = vor.u32 %v8211_v28, %v7150_v29  ;;  %v50_v41 = vld [vmem:[%s12459_s0 + $0x28] sm:$0xff]  ;;  %v73_v56 = vld [vmem:[%s12459_s0 + $0xe0] sm:$0xff]  ;;  %v51_v14 = vld [vmem:[%s12459_s0 + $0x30] sm:$0xff] }
   0x9   :  { %407 = vmatpush.bf16.msra.mxu0 %v7141_v17  ;;  %8333 = vmatpush.bf16.msra.mxu3 %v7141_v17  ;;  %v8489_v42 = vpack.c.b16 %v144_v31, %v143_v30  ;;  %v167_v43 = vunpack.c.l.b16 %v103_v32  ;;  %v168_v44 = vunpack.c.l.b16 %v104_v33  ;;  %v7145_v45 = vor.u32 %v8209_v34, %v7142_v35  ;;  %v74_v57 = vld [vmem:[%s12459_s0 + $0xe8] sm:$0xff]  ;;  %v52_v15 = vld [vmem:[%s12459_s0 + $0x38] sm:$0xff] }
   0xa   :  { %v200_v46 = vshrl.u32 %v8484_v37, 16  ;;  %v202_v47 = vshll.u32 %v8484_v37, 16  ;;  %v8493_v48 = vpack.c.b16 %v166_v39, %v165_v38  ;;  %495 = vmatpush.bf16.msra.mxu1 %v7153_v40  ;;  %v81_v49 = vpack.c.bf16 %v49_v36, %v49_v36  ;;  %v76_v18 = vld [vmem:[%s12459_s0 + $0xf8] sm:$0xff]  ;;  %v53_v36 = vld [vmem:[%s12459_s0 + $0x40] sm:$0xff]  ;;  %v54_v38 = vld [vmem:[%s12459_s0 + $0x48] sm:$0xff] }
   0xb   :  { %7202 = vmatmul.msk.bf16.vlgmr.msra.gmra.mxu2 %vm351_vm0, %v8484_v37  ;;  %v207_v50 = vshll.u32 %v8489_v42, 16  ;;  %v8498_v51 = vpack.c.b16 %v168_v44, %v167_v43  ;;  %v82_v52 = vpack.c.bf16 %v50_v41, %v50_v41  ;;  %v105_v1 = vpack.c.bf16 %v73_v56, %v73_v56 }
   0xc   :  { %v204_v53 = vrot.slane %v202_v47, 1  ;;  %v12480_v54 = vshll.u32 %v8493_v48, 16  ;;  %v12481_v55 = vshrl.u32 %v8493_v48, 16  ;;  %v145_v62 = vunpack.c.l.b16 %v81_v49 }
   0xd   :  { %8334 = vmatpush.bf16.msrb.mxu3 %v7153_v40  ;;  %v209_v58 = vrot.slane %v207_v50, 1  ;;  %v12478_v59 = vshll.u32 %v8498_v51, 16  ;;  %v146_v63 = vunpack.c.l.b16 %v82_v52  ;;  %v106_v2 = vpack.c.bf16 %v74_v57, %v74_v57 }
   0xe   :  { %v205_v60 = vor.u32 %v204_v53, %v200_v46  ;;  %v8517_v61 = vrot.slane %v12480_v54, 1  ;;  %496 = vmatpush.bf16.msra.mxu1 %v7145_v45  ;;  %v169_v6 = vunpack.c.l.b16 %v105_v1  ;;  %v211_v12 = vshrl.u32 %v8489_v42, 16  ;;  %v56_v1 = vld [vmem:[%s12459_s0 + $0x58] sm:$0xff] }
   0xf   :  { %v305_v0 = vrot.slane %v12478_v59, 1  ;;  %v170_v7 = vunpack.c.l.b16 %v106_v2  ;;  %v8530_v9 = vpack.c.b16 %v146_v63, %v145_v62  ;;  %v12479_v16 = vshrl.u32 %v8498_v51, 16 }
  0x10   :  { %v210_v4 = vsel %vm198_vm1, %v205_v60, %v209_v58  ;;  %v301_v5 = vor.u32 %v12481_v55, %v8517_v61  ;;  %v213_v19 = vor.u32 %v211_v12, %v209_v58  ;;  %v83_v21 = vpack.c.bf16 %v51_v14, %v51_v14 }
  0x11   :  { %8335 = vmatpush.bf16.msrb.mxu3 %v7145_v45  ;;  %7154 = vmatmul.msk.bf16.vlgmr.msra.gmra.mxu0 %vm351_vm0, %v210_v4  ;;  %12530 = vst [vmem:[#allocation2_spill] sm:$0xff] %v8530_v9  ;;  %v8534_v10 = vpack.c.b16 %v170_v7, %v169_v6  ;;  %v215_v13 = vshll.u32 %v8530_v9, 16  ;;  %v84_v22 = vpack.c.bf16 %v52_v15, %v52_v15  ;;  %v219_v34 = vshrl.u32 %v8530_v9, 16 }
  0x12   :  { %7170 = vmatmul.msk.bf16.vlgmr.msra.gmra.mxu1 %vm351_vm0, %v210_v4  ;;  %v8528_v8 = vsel %vm198_vm1, %v301_v5, %v305_v0  ;;  %v108_v25 = vpack.c.bf16 %v76_v18, %v76_v18  ;;  %v147_v27 = vunpack.c.l.b16 %v83_v21  ;;  %v85_v44 = vpack.c.bf16 %v53_v36, %v53_v36 }
  0x13   :  { %7166 = vmatmul.msk.bf16.vlgmr.msra.gmra.mxu3 %vm351_vm0, %v8528_v8  ;;  %v12476_v17 = vshll.u32 %v8534_v10, 16  ;;  %v217_v20 = vrot.slane %v215_v13, 1  ;;  %v148_v28 = vunpack.c.l.b16 %v84_v22  ;;  %v12477_v39 = vshrl.u32 %v8534_v10, 16 }
  0x14   :  { %v172_v31 = vunpack.c.l.b16 %v108_v25  ;;  %v86_v45 = vpack.c.bf16 %v54_v38, %v54_v38  ;;  %v149_v56 = vunpack.c.l.b16 %v85_v44  ;;  %v88_v7 = vpack.c.bf16 %v56_v1, %v56_v1  ;;  %v58_v25 = vld [vmem:[%s12459_s0 + $0x68] sm:$0xff]  ;;  %v8216_v44 = vld [vmem:[%s12458_s1 + $0x54] sm:$0xf0] }
  0x15   :  { %8336 = vmatpush.bf16.msra.mxu3 %v8424_v3  ;;  %v75_v3 = vld [vmem:[%s12459_s0 + $0xf0] sm:$0xff]  ;;  %v313_v23 = vrot.slane %v12476_v17, 1  ;;  %v218_v26 = vsel %vm198_vm1, %v213_v19, %v217_v20  ;;  %v8570_v32 = vpack.c.b16 %v148_v28, %v147_v27  ;;  %v221_v41 = vor.u32 %v219_v34, %v217_v20 }
  0x16   :  { %v107_v24 = vpack.c.bf16 %v75_v3, %v75_v3  ;;  %v150_v57 = vunpack.c.l.b16 %v86_v45  ;;  %v12472_v15 = vmov 0   ;;  %v152_v20 = vunpack.c.l.b16 %v88_v7  ;;  %v8215_v45 = vld [vmem:[%s12458_s1 + $0x54] sm:$0xf] }
  0x17   :  { %12531 = vst [vmem:[#allocation3_spill] sm:$0xff] %v8570_v32  ;;  %v223_v35 = vshll.u32 %v8570_v32, 16  ;;  %v317_v49 = vor.u32 %v12477_v39, %v313_v23  ;;  %v227_v62 = vshrl.u32 %v8570_v32, 16  ;;  %v8624_v3 = vrot.slane %v12472_v15, 1 }
  0x18   :  { %v171_v30 = vunpack.c.l.b16 %v107_v24  ;;  %v8602_v60 = vpack.c.b16 %v150_v57, %v149_v56  ;;  %v57_v24 = vld [vmem:[%s12459_s0 + $0x60] sm:$0xff]  ;;  %v59_v57 = vld [vmem:[%s12459_s0 + $0x70] sm:$0xff]  ;;  %v1168_v17 = vrot.slane %v207_v50, 2  ;;  %v1167_v39 = vrot.slane %v211_v12, 1 }
  0x19   :  { %8337 = vmatpush.bf16.msra.mxu3 %v8445_v11  ;;  %v309_v11 = vor.u32 %v12479_v16, %v305_v0  ;;  %v225_v43 = vrot.slane %v223_v35, 1  ;;  %v55_v0 = vld [vmem:[%s12459_s0 + $0x50] sm:$0xff]  ;;  %12533 = vst [vmem:[#allocation5_spill] sm:$0xff] %v8624_v3  ;;  %v89_v28 = vpack.c.bf16 %v57_v24, %v57_v24  ;;  %v7292_v16 = vld [vmem:[%s12458_s1 + $0x60] sm:$0xf]  ;;  %v1165_v12 = vrot.slane %v202_v47, 2 }
  0x1a   :  { %v8574_v33 = vpack.c.b16 %v172_v31, %v171_v30  ;;  %12532 = vst [vmem:[#allocation4_spill] sm:$0xff] %v8602_v60  ;;  %v12496_v63 = vshll.u32 %v8602_v60, 16  ;;  %v87_v6 = vpack.c.bf16 %v55_v0, %v55_v0  ;;  %v90_v30 = vpack.c.bf16 %v58_v25, %v58_v25  ;;  %v60_v0 = vld [vmem:[%s12459_s0 + $0x78] sm:$0xff]  ;;  %v61_v25 = vld [vmem:[%s12459_s0 + $0x80] sm:$0xff] }
  0x1b   :  { %7203 = vmatmul.msk.bf16.gmra.mxu2 %vm351_vm0, %v8489_v42  ;;  %v8566_v29 = vsel %vm198_vm1, %v309_v11, %v313_v23  ;;  %v226_v53 = vsel %vm198_vm1, %v221_v41, %v225_v43  ;;  %v229_v4 = vor.u32 %v227_v62, %v225_v43  ;;  %v12497_v11 = vshrl.u32 %v8602_v60, 16  ;;  %v7248_v43 = vld [vmem:[%s12458_s1 + $0x50] sm:$0xf] }
  0x1c   :  { %v12474_v40 = vshll.u32 %v8574_v33, 16  ;;  %v12475_v2 = vshrl.u32 %v8574_v33, 16  ;;  %v233_v5 = vrot.slane %v12496_v63, 1  ;;  %v151_v19 = vunpack.c.l.b16 %v87_v6 }
  0x1d   :  { %v153_v36 = vunpack.c.l.b16 %v89_v28  ;;  %v154_v38 = vunpack.c.l.b16 %v90_v30  ;;  %v92_v6 = vpack.c.bf16 %v60_v0, %v60_v0  ;;  %v93_v30 = vpack.c.bf16 %v61_v25, %v61_v25 }
  0x1e   :  { %v321_v52 = vrot.slane %v12474_v40, 1  ;;  %v234_v18 = vsel %vm198_vm1, %v229_v4, %v233_v5  ;;  %v8633_v22 = vpack.c.b16 %v152_v20, %v151_v19  ;;  %vm3846_vm9 = vcmask 1044480  }
  0x1f   :  { %v8654_v41 = vpack.c.b16 %v154_v38, %v153_v36  ;;  %v157_v36 = vunpack.c.l.b16 %v93_v30  ;;  %vm5617_vm10 = vcmask 654336   ;;  %vm6720_vm11 = vcmask 982016  }
  0x20   :  { %v8598_v58 = vsel %vm198_vm1, %v317_v49, %v321_v52  ;;  %v325_v14 = vor.u32 %v12475_v2, %v321_v52  ;;  %12534 = vst [vmem:[#allocation6_spill] sm:$0xff] %v8633_v22  ;;  %v12494_v23 = vshll.u32 %v8633_v22, 16  ;;  %v7249_v49 = vor.u32 %v8216_v44, %v7248_v43  ;;  %v7250_v52 = vld [vmem:[%s12458_s1 + $0x58] sm:$0xf0]  ;;  %v8207_v44 = vld [vmem:[%s12458_s1 + $0x14] sm:$0xf] }
  0x21   :  { %7155 = vmatmul.msk.bf16.gmra.mxu0 %vm351_vm0, %v218_v26  ;;  %12535 = vst [vmem:[#allocation7_spill] sm:$0xff] %v8654_v41  ;;  %v12492_v56 = vshll.u32 %v8654_v41, 16  ;;  %v12493_v20 = vshrl.u32 %v8654_v41, 16  ;;  %vm7097_vm12 = vcmask 80896  }
  0x22   :  { %7171 = vmatmul.msk.bf16.gmra.mxu1 %vm351_vm0, %v218_v26  ;;  %v8629_v21 = vsel %vm198_vm1, %v325_v14, %v8624_v3  ;;  %v237_v26 = vor.u32 %v12497_v11, %v233_v5  ;;  %v241_v27 = vrot.slane %v12494_v23, 1  ;;  %922 = vmatpush.bf16.msrb.mxu0 %v7249_v49  ;;  %v91_v5 = vpack.c.bf16 %v59_v57, %v59_v57  ;;  %v63_v57 = vld [vmem:[%s12459_s0 + $0x90] sm:$0xff] }
  0x23   :  { %7167 = vmatmul.msk.bf16.gmra.mxu3 %vm351_vm0, %v8566_v29  ;;  %v249_v4 = vrot.slane %v12492_v56, 1 }
  0x24   :  { %v242_v31 = vsel %vm198_vm1, %v237_v26, %v241_v27  ;;  %v155_v14 = vunpack.c.l.b16 %v91_v5  ;;  %v62_v26 = vld [vmem:[%s12459_s0 + $0x88] sm:$0xff] }
  0x2b   :  { %7204 = vmatmul.msk.bf16.gmra.mxu2 %vm351_vm0, %v8530_v9 }
  0x31   :  { %7156 = vmatmul.msk.bf16.gmra.mxu0 %vm351_vm0, %v226_v53 }
  0x32   :  { %7172 = vmatmul.msk.bf16.gmra.mxu1 %vm351_vm0, %v226_v53  ;;  %v7253_v53 = vor.u32 %v8215_v45, %v7250_v52  ;;  %v7198_v45 = vld [vmem:[%s12458_s1 + $0x18] sm:$0xf0] }
  0x33   :  { %7168 = vmatmul.msk.bf16.gmra.mxu3 %vm351_vm0, %v8598_v58  ;;  %v7201_v49 = vor.u32 %v8207_v44, %v7198_v45 }
  0x34   :  { %1011 = vmatpush.bf16.msrb.mxu1 %v7253_v53 }
  0x3b   :  { %7205 = vmatmul.msk.bf16.gmra.mxu2 %vm351_vm0, %v8570_v32 }
  0x41   :  { %7157 = vmatmul.msk.bf16.gmra.mxu0 %vm351_vm0, %v234_v18 }
  0x42   :  { %7173 = vmatmul.msk.bf16.gmra.mxu1 %vm351_vm0, %v234_v18  ;;  %v156_v18 = vunpack.c.l.b16 %v92_v6 }
  0x43   :  { %7169 = vmatmul.msk.bf16.gmra.mxu3 %vm351_vm0, %v8629_v21 }
  0x44   :  { %v8687_v19 = vpack.c.b16 %v156_v18, %v155_v14 }
  0x46   :  { %12536 = vst [vmem:[#allocation8_spill] sm:$0xff] %v8687_v19  ;;  %v12490_v24 = vshll.u32 %v8687_v19, 16  ;;  %v12491_v52 = vshrl.u32 %v8687_v19, 16 }
  0x48   :  { %v257_v28 = vrot.slane %v12490_v24, 1 }
  0x4a   :  { %v261_v0 = vor.u32 %v12491_v52, %v257_v28 }
  0x4b   :  { %7206 = vmatmul.msk.bf16.gmra.mxu2 %vm351_vm0, %v8602_v60 }
  0x51   :  { %7158 = vmatmul.msk.bf16.gmra.mxu0 %vm351_vm0, %v242_v31 }
  0x52   :  { %7174 = vmatmul.msk.bf16.gmra.mxu1 %vm351_vm0, %v242_v31 }
  0x53   :  { %7182 = vmatmul.msk.bf16.vlgmr.msrb.gmra.mxu3 %vm351_vm0, %v8528_v8  ;;  %v12495_v8 = vshrl.u32 %v8633_v22, 16 }
  0x54   :  { %725 = vmatpush.bf16.msrb.mxu3 %v7201_v49 }
  0x55   :  { %v245_v1 = vor.u32 %v12495_v8, %v241_v27  ;;  %v253_v27 = vor.u32 %v12493_v20, %v249_v4 }
  0x57   :  { %v250_v7 = vsel %vm198_vm1, %v245_v1, %v249_v4  ;;  %v258_v31 = vsel %vm198_vm1, %v253_v27, %v257_v28  ;;  %v95_v4 = vpack.c.bf16 %v63_v57, %v63_v57  ;;  %v65_v27 = vld [vmem:[%s12459_s0 + $0xa0] sm:$0xff]  ;;  %v66_v28 = vld [vmem:[%s12459_s0 + $0xa8] sm:$0xff] }
  0x5b   :  { %7207 = vmatmul.msk.bf16.gmra.mxu2 %vm351_vm0, %v8633_v22 }
  0x61   :  { %7159 = vmatmul.msk.bf16.gmra.mxu0 %vm351_vm0, %v250_v7 }
  0x62   :  { %7175 = vmatmul.msk.bf16.gmra.mxu1 %vm351_vm0, %v250_v7  ;;  %v159_v7 = vunpack.c.l.b16 %v95_v4  ;;  %v7190_v4 = vld [vmem:[%s12458_s1 + $0x8] sm:$0xf0] }
  0x63   :  { %7183 = vmatmul.msk.bf16.gmra.mxu3 %vm351_vm0, %v8566_v29  ;;  %v94_v29 = vpack.c.bf16 %v62_v26, %v62_v26 }
  0x65   :  { %v158_v38 = vunpack.c.l.b16 %v94_v29 }
  0x67   :  { %v8708_v43 = vpack.c.b16 %v158_v38, %v157_v36 }
  0x69   :  { %v12488_v53 = vshll.u32 %v8708_v43, 16  ;;  %v12489_v25 = vshrl.u32 %v8708_v43, 16 }
  0x6b   :  { %7208 = vmatmul.msk.bf16.gmra.mxu2 %vm351_vm0, %v8654_v41  ;;  %v265_v1 = vrot.slane %v12488_v53, 1 }
  0x6d   :  { %v266_v6 = vsel %vm198_vm1, %v261_v0, %v265_v1  ;;  %v269_v30 = vor.u32 %v12489_v25, %v265_v1  ;;  %v8205_v1 = vld [vmem:[%s12458_s1 + $0x4] sm:$0xf] }
  0x71   :  { %7160 = vmatmul.msk.bf16.gmra.mxu0 %vm351_vm0, %v258_v31 }
  0x72   :  { %7176 = vmatmul.msk.bf16.gmra.mxu1 %vm351_vm0, %v258_v31  ;;  %v97_v31 = vpack.c.bf16 %v65_v27, %v65_v27 }
  0x73   :  { %7184 = vmatmul.msk.bf16.gmra.mxu3 %vm351_vm0, %v8598_v58  ;;  %v64_v58 = vld [vmem:[%s12459_s0 + $0x98] sm:$0xff] }
  0x74   :  { %v96_v5 = vpack.c.bf16 %v64_v58, %v64_v58  ;;  %v161_v45 = vunpack.c.l.b16 %v97_v31  ;;  %v67_v31 = vld [vmem:[%s12459_s0 + $0xb0] sm:$0xff] }
  0x76   :  { %v160_v14 = vunpack.c.l.b16 %v96_v5  ;;  %v7193_v5 = vor.u32 %v8205_v1, %v7190_v4 }
  0x78   :  { %v8735_v18 = vpack.c.b16 %v160_v14, %v159_v7  ;;  %726 = vmatpush.bf16.msrb.mxu3 %v7193_v5 }
  0x7a   :  { %v12485_v26 = vshll.u32 %v8735_v18, 16  ;;  %v12487_v14 = vshrl.u32 %v8735_v18, 16 }
  0x7b   :  { %7209 = vmatmul.msk.bf16.gmra.mxu2 %vm351_vm0, %v8687_v19 }
  0x7c   :  { %v273_v29 = vrot.slane %v12485_v26, 1 }
  0x7e   :  { %v274_v44 = vsel %vm198_vm1, %v269_v30, %v273_v29 }
  0x81   :  { %7161 = vmatmul.msk.bf16.gmra.mxu0 %vm351_vm0, %v266_v6 }
  0x82   :  { %7177 = vmatmul.msk.bf16.gmra.mxu1 %vm351_vm0, %v266_v6 }
  0x83   :  { %7185 = vmatmul.msk.bf16.gmra.mxu3 %vm351_vm0, %v8629_v21  ;;  %v98_v21 = vpack.c.bf16 %v66_v28, %v66_v28 }
  0x85   :  { %v162_v49 = vunpack.c.l.b16 %v98_v21  ;;  %v68_v21 = vld [vmem:[%s12459_s0 + $0xb8] sm:$0xff] }
  0x87   :  { %v8760_v0 = vpack.c.b16 %v162_v49, %v161_v45  ;;  %v99_v45 = vpack.c.bf16 %v67_v31, %v67_v31  ;;  %v100_v49 = vpack.c.bf16 %v68_v21, %v68_v21  ;;  %v7300_v31 = vld [vmem:[%s12458_s1 + $0x70] sm:$0xf]  ;;  %v8220_v21 = vld [vmem:[%s12458_s1 + $0x74] sm:$0xf0] }
  0x89   :  { %v12483_v27 = vshll.u32 %v8760_v0, 16  ;;  %v163_v15 = vunpack.c.l.b16 %v99_v45  ;;  %v164_v40 = vunpack.c.l.b16 %v100_v49  ;;  %v12484_v49 = vshrl.u32 %v8760_v0, 16 }
  0x8b   :  { %7210 = vmatmul.msk.bf16.gmra.mxu2 %vm351_vm0, %v8708_v43 }
  0x8e   :  { %v409_v36 = vpop.f32.mrf.mxu0  ;;  %v639_v38 = vpop.f32.mrf.mxu2 }
  0x8f   :  { %v8754_v57 = vadd.f32 %v639_v38, %v409_v36  ;;  %v8756_v58 = vpop.f32.mrf.mxu1  ;;  %v277_v38 = vor.u32 %v12487_v14, %v273_v29  ;;  %v8799_v29 = vpack.c.b16 %v164_v40, %v163_v15  ;;  %v7301_v40 = vor.u32 %v8220_v21, %v7300_v31 }
  0x90   :  { %v1164_v15 = vrot.slane %v200_v46, 1  ;;  %v8218_v46 = vld [vmem:[%s12458_s1 + $0x64] sm:$0xf0] }
  0x91   :  { %7162 = vmatmul.msk.bf16.gmra.mxu0 %vm351_vm0, %v274_v44  ;;  %1307 = vmatpush.bf16.msrb.mxu2 %v7301_v40  ;;  %v7293_v31 = vor.u32 %v8218_v46, %v7292_v16  ;;  %v8837_v40 = vor.u32 %v1168_v17, %v1167_v39  ;;  %v7240_v16 = vld [vmem:[%s12458_s1 + $0x40] sm:$0xf] }
  0x92   :  { %7178 = vmatmul.msk.bf16.gmra.mxu1 %vm351_vm0, %v274_v44  ;;  %v281_v44 = vrot.slane %v12483_v27, 1 }
  0x93   :  { %7214 = vmatmul.msk.bf16.vlgmr.msra.gmra.mxu3 %vm351_vm0, %v8493_v48 }
  0x94   :  { %v282_v5 = vsel %vm198_vm1, %v277_v38, %v281_v44  ;;  %v285_v21 = vor.u32 %v12484_v49, %v281_v44  ;;  %v8214_v44 = vld [vmem:[%s12458_s1 + $0x44] sm:$0xf0] }
  0x95   :  { %1308 = vmatpush.bf16.msrb.mxu2 %v7293_v31  ;;  %v7241_v17 = vor.u32 %v8214_v44, %v7240_v16  ;;  %v8213_v44 = vld [vmem:[%s12458_s1 + $0x44] sm:$0xf] }
  0x96   :  { %v8770_v6 = vpop.f32.mrf.mxu3  ;;  %v411_v7 = vpop.f32.mrf.mxu0 }
  0x97   :  { %12537 = vst [vmem:[#allocation9_spill] sm:$0xff] %v8770_v6  ;;  %v641_v28 = vpop.f32.mrf.mxu2  ;;  %v8774_v30 = vpop.f32.mrf.mxu1  ;;  %923 = vmatpush.bf16.msrb.mxu0 %v7241_v17 }
  0x98   :  { %v8782_v36 = vadd.f32 %v641_v28, %v411_v7 }
  0x9b   :  { %7211 = vmatmul.msk.bf16.gmra.mxu2 %vm351_vm0, %v8735_v18 }
  0x9e   :  { %v8790_v1 = vpop.f32.mrf.mxu3  ;;  %v414_v4 = vpop.f32.mrf.mxu0 }
  0x9f   :  { %12538 = vst [vmem:[#allocation10_spill] sm:$0xff] %v8790_v1  ;;  %v644_v7 = vpop.f32.mrf.mxu2  ;;  %v8793_v28 = vpop.f32.mrf.mxu1 }
  0xa0   :  { %v8795_v2 = vadd.f32 %v644_v7, %v414_v4  ;;  %v12482_v4 = vshll.u32 %v8799_v29, 16 }
  0xa1   :  { %7163 = vmatmul.msk.bf16.gmra.mxu0 %vm351_vm0, %v282_v5 }
  0xa2   :  { %7179 = vmatmul.msk.bf16.gmra.mxu1 %vm351_vm0, %v282_v5  ;;  %v289_v50 = vrot.slane %v12482_v4, 1 }
  0xa3   :  { %7215 = vmatmul.msk.bf16.gmra.mxu3 %vm351_vm0, %v8498_v51 }
  0xa4   :  { %v290_v47 = vsel %vm198_vm1, %v285_v21, %v289_v50  ;;  %v8219_v21 = vld [vmem:[%s12458_s1 + $0x74] sm:$0xf] }
  0xa6   :  { %v8809_v38 = vpop.f32.mrf.mxu3  ;;  %v416_v45 = vpop.f32.mrf.mxu0 }
  0xa7   :  { %12539 = vst [vmem:[#allocation11_spill] sm:$0xff] %v8809_v38  ;;  %v646_v5 = vpop.f32.mrf.mxu2  ;;  %v8815_v7 = vpop.f32.mrf.mxu1 }
  0xa8   :  { %v8821_v59 = vadd.f32 %v646_v5, %v416_v45  ;;  %v1166_v45 = vor.u32 %v1165_v12, %v1164_v15 }
  0xaa   :  { %v8850_v31 = vsel %vm1163_vm2, %v1166_v45, %v8837_v40  ;;  %v7302_v45 = vld [vmem:[%s12458_s1 + $0x78] sm:$0xf0] }
  0xab   :  { %7212 = vmatmul.msk.bf16.gmra.mxu2 %vm351_vm0, %v8760_v0  ;;  %v7305_v16 = vor.u32 %v8219_v21, %v7302_v45 }
  0xad   :  { %1396 = vmatpush.bf16.msra.mxu3 %v7305_v16 }
  0xae   :  { %v8845_v5 = vpop.f32.mrf.mxu3  ;;  %v419_v46 = vpop.f32.mrf.mxu0 }
  0xaf   :  { %12540 = vst [vmem:[#allocation12_spill] sm:$0xff] %v8845_v5  ;;  %v649_v39 = vpop.f32.mrf.mxu2  ;;  %v8852_v15 = vpop.f32.mrf.mxu1 }
  0xb0   :  { %v8854_v12 = vadd.f32 %v649_v39, %v419_v46  ;;  %v7242_v46 = vld [vmem:[%s12458_s1 + $0x48] sm:$0xf0]  ;;  %v12486_v39 = vshrl.u32 %v8799_v29, 16 }
  0xb1   :  { %7164 = vmatmul.msk.bf16.gmra.mxu0 %vm351_vm0, %v290_v47  ;;  %v7245_v54 = vor.u32 %v8213_v44, %v7242_v46 }
  0xb2   :  { %7180 = vmatmul.msk.bf16.gmra.mxu1 %vm351_vm0, %v290_v47  ;;  %v293_v21 = vor.u32 %v12486_v39, %v289_v50 }
  0xb3   :  { %7216 = vmatmul.msk.bf16.gmra.mxu3 %vm351_vm0, %v8534_v10  ;;  %1012 = vmatpush.bf16.msrb.mxu1 %v7245_v54 }
  0xb4   :  { %v298_v26 = vsel %vm198_vm1, %v293_v21, %v8517_v61  ;;  %v815_v61 = vrot.slane %v8484_v37, 1 }
  0xb6   :  { %v8872_v47 = vpop.f32.mrf.mxu3  ;;  %v421_v17 = vpop.f32.mrf.mxu0 }
  0xb7   :  { %12541 = vst [vmem:[#allocation13_spill] sm:$0xff] %v8872_v47  ;;  %v651_v55 = vpop.f32.mrf.mxu2  ;;  %v8875_v4 = vpop.f32.mrf.mxu1 }
  0xb8   :  { %v8877_v27 = vadd.f32 %v651_v55, %v421_v17 }
  0xbb   :  { %7213 = vmatmul.msk.bf16.gmra.mxu2 %vm351_vm0, %v8799_v29 }
  0xbe   :  { %v8883_v45 = vpop.f32.mrf.mxu3  ;;  %v424_v49 = vpop.f32.mrf.mxu0 }
  0xbf   :  { %12542 = vst [vmem:[#allocation14_spill] sm:$0xff] %v8883_v45  ;;  %v654_v16 = vpop.f32.mrf.mxu2  ;;  %v8887_v44 = vpop.f32.mrf.mxu1 }
  0xc0   :  { %v8889_v46 = vadd.f32 %v654_v16, %v424_v49  ;;  %v816_v49 = vrot.slane %v8489_v42, 1 }
  0xc1   :  { %7165 = vmatmul.msk.bf16.gmra.mxu0 %vm351_vm0, %v298_v26 }
  0xc2   :  { %7181 = vmatmul.msk.bf16.gmra.mxu1 %vm351_vm0, %v298_v26  ;;  %v817_v16 = vsel %vm814_vm3, %v815_v61, %v816_v49 }
  0xc3   :  { %7217 = vmatmul.msk.bf16.gmra.mxu3 %vm351_vm0, %v8574_v33 }
  0xc6   :  { %v8895_v54 = vpop.f32.mrf.mxu3  ;;  %v426_v55 = vpop.f32.mrf.mxu0 }
  0xc7   :  { %12543 = vst [vmem:[#allocation15_spill] sm:$0xff] %v8895_v54  ;;  %v656_v50 = vpop.f32.mrf.mxu2  ;;  %v8897_v17 = vpop.f32.mrf.mxu1 }
  0xc8   :  { %v8899_v39 = vadd.f32 %v656_v50, %v426_v55  ;;  %v1171_v55 = vrot.slane %v219_v34, 1  ;;  %v1172_v50 = vrot.slane %v215_v13, 2  ;;  %v818_v13 = vrot.slane %v8530_v9, 1 }
  0xca   :  { %v1173_v24 = vor.u32 %v1172_v50, %v1171_v55  ;;  %v819_v50 = vsel %vm814_vm3, %v816_v49, %v818_v13 }
  0xcb   :  { %7306 = vmatmul.msk.bf16.vlgmr.msrb.gmra.mxu2 %vm351_vm0, %v8850_v31 }
  0xcc   :  { %v8928_v34 = vsel %vm1163_vm2, %v8837_v40, %v1173_v24 }
  0xcd   :  { %12546 = vst [vmem:[#allocation18_spill] sm:$0xff] %v8928_v34 }
  0xce   :  { %v8905_v26 = vpop.f32.mrf.mxu3  ;;  %v429_v21 = vpop.f32.mrf.mxu0 }
  0xcf   :  { %12544 = vst [vmem:[#allocation16_spill] sm:$0xff] %v8905_v26  ;;  %v659_v14 = vpop.f32.mrf.mxu2  ;;  %v8908_v53 = vpop.f32.mrf.mxu1 }
  0xd0   :  { %v8910_v25 = vadd.f32 %v659_v14, %v429_v21 }
  0xd1   :  { %7254 = vmatmul.msk.bf16.vlgmr.msrb.gmra.mxu0 %vm351_vm0, %v817_v16 }
  0xd2   :  { %7270 = vmatmul.msk.bf16.vlgmr.msrb.gmra.mxu1 %vm351_vm0, %v817_v16 }
  0xd3   :  { %7218 = vmatmul.msk.bf16.vlgmr.msrb.gmra.mxu3 %vm351_vm0, %v8484_v37 }
  0xd6   :  { %v8920_v61 = vpop.f32.mrf.mxu3  ;;  %v431_v52 = vpop.f32.mrf.mxu0 }
  0xd7   :  { %12545 = vst [vmem:[#allocation17_spill] sm:$0xff] %v8920_v61  ;;  %v661_v56 = vpop.f32.mrf.mxu2  ;;  %v8922_v14 = vpop.f32.mrf.mxu1 }
  0xd8   :  { %v8924_v21 = vadd.f32 %v661_v56, %v431_v52  ;;  %v1175_v56 = vrot.slane %v227_v62, 1  ;;  %v1176_v52 = vrot.slane %v223_v35, 2  ;;  %v820_v35 = vrot.slane %v8570_v32, 1 }
  0xda   :  { %v1177_v40 = vor.u32 %v1176_v52, %v1175_v56  ;;  %v821_v56 = vsel %vm814_vm3, %v818_v13, %v820_v35 }
  0xdb   :  { %7307 = vmatmul.msk.bf16.gmra.mxu2 %vm351_vm0, %v8928_v34 }
  0xdc   :  { %v8955_v62 = vsel %vm1163_vm2, %v1173_v24, %v1177_v40  ;;  %v12552_v24 = vshll.u32 %v8602_v60, 16 }
  0xdd   :  { %12549 = vst [vmem:[#allocation21_spill] sm:$0xff] %v8955_v62 }
  0xde   :  { %v8933_v16 = vpop.f32.mrf.mxu3  ;;  %v434_v55 = vpop.f32.mrf.mxu0  ;;  %v1180_v47 = vrot.slane %v12552_v24, 2  ;;  %v822_v24 = vrot.slane %v8602_v60, 1 }
  0xdf   :  { %12547 = vst [vmem:[#allocation19_spill] sm:$0xff] %v8933_v16  ;;  %v664_v20 = vpop.f32.mrf.mxu2  ;;  %v8936_v23 = vpop.f32.mrf.mxu1 }
  0xe0   :  { %v8938_v8 = vadd.f32 %v664_v20, %v434_v55 }
  0xe1   :  { %7255 = vmatmul.msk.bf16.gmra.mxu0 %vm351_vm0, %v819_v50 }
  0xe2   :  { %7271 = vmatmul.msk.bf16.gmra.mxu1 %vm351_vm0, %v819_v50 }
  0xe3   :  { %7219 = vmatmul.msk.bf16.gmra.mxu3 %vm351_vm0, %v8489_v42 }
  0xe6   :  { %v8948_v49 = vpop.f32.mrf.mxu3  ;;  %v436_v63 = vpop.f32.mrf.mxu0 }
  0xe7   :  { %12548 = vst [vmem:[#allocation20_spill] sm:$0xff] %v8948_v49  ;;  %v666_v11 = vpop.f32.mrf.mxu2  ;;  %v8950_v20 = vpop.f32.mrf.mxu1 }
  0xe8   :  { %v8952_v55 = vadd.f32 %v666_v11, %v436_v63  ;;  %v12551_v63 = vshrl.u32 %v8602_v60, 16 }
  0xea   :  { %v1179_v11 = vrot.slane %v12551_v63, 1 }
  0xeb   :  { %7308 = vmatmul.msk.bf16.gmra.mxu2 %vm351_vm0, %v8955_v62 }
  0xee   :  { %v8960_v50 = vpop.f32.mrf.mxu3  ;;  %v439_v26 = vpop.f32.mrf.mxu0 }
  0xef   :  { %12550 = vst [vmem:[#allocation22_spill] sm:$0xff] %v8960_v50  ;;  %v669_v52 = vpop.f32.mrf.mxu2  ;;  %v8963_v54 = vpop.f32.mrf.mxu1  ;;  %v1181_v50 = vor.u32 %v1180_v47, %v1179_v11  ;;  %v823_v47 = vsel %vm814_vm3, %v820_v35, %v822_v24 }
  0xf0   :  { %v8965_v45 = vadd.f32 %v669_v52, %v439_v26 }
  0xf1   :  { %7256 = vmatmul.msk.bf16.gmra.mxu0 %vm351_vm0, %v821_v56  ;;  %v8982_v63 = vsel %vm1163_vm2, %v1177_v40, %v1181_v50  ;;  %v12557_v40 = vshll.u32 %v8633_v22, 16 }
  0xf2   :  { %7272 = vmatmul.msk.bf16.gmra.mxu1 %vm351_vm0, %v821_v56  ;;  %12554 = vst [vmem:[#allocation24_spill] sm:$0xff] %v8982_v63 }
  0xf3   :  { %7220 = vmatmul.msk.bf16.gmra.mxu3 %vm351_vm0, %v8530_v9  ;;  %v1184_v61 = vrot.slane %v12557_v40, 2  ;;  %v824_v40 = vrot.slane %v8633_v22, 1 }
  0xf6   :  { %v8975_v13 = vpop.f32.mrf.mxu3  ;;  %v441_v49 = vpop.f32.mrf.mxu0 }
  0xf7   :  { %12553 = vst [vmem:[#allocation23_spill] sm:$0xff] %v8975_v13  ;;  %v671_v5 = vpop.f32.mrf.mxu2  ;;  %v8977_v26 = vpop.f32.mrf.mxu1 }
  0xf8   :  { %v8979_v52 = vadd.f32 %v671_v5, %v441_v49  ;;  %v12556_v5 = vshrl.u32 %v8633_v22, 16 }
  0xfa   :  { %v1183_v49 = vrot.slane %v12556_v5, 1 }
  0xfb   :  { %7309 = vmatmul.msk.bf16.gmra.mxu2 %vm351_vm0, %v8982_v63 }
  0xfe   :  { %v8987_v56 = vpop.f32.mrf.mxu3  ;;  %v444_v16 = vpop.f32.mrf.mxu0 }
  0xff   :  { %12555 = vst [vmem:[#allocation25_spill] sm:$0xff] %v8987_v56  ;;  %v674_v11 = vpop.f32.mrf.mxu2  ;;  %v8990_v13 = vpop.f32.mrf.mxu1  ;;  %v1185_v56 = vor.u32 %v1184_v61, %v1183_v49  ;;  %v825_v61 = vsel %vm814_vm3, %v822_v24, %v824_v40 }
 0x100   :  { %v8992_v38 = vadd.f32 %v674_v11, %v444_v16 }
 0x101   :  { %7257 = vmatmul.msk.bf16.gmra.mxu0 %vm351_vm0, %v823_v47  ;;  %v9009_v5 = vsel %vm1163_vm2, %v1181_v50, %v1185_v56  ;;  %v12562_v50 = vshll.u32 %v8654_v41, 16 }
 0x102   :  { %7273 = vmatmul.msk.bf16.gmra.mxu1 %vm351_vm0, %v823_v47  ;;  %12559 = vst [vmem:[#allocation27_spill] sm:$0xff] %v9009_v5 }
 0x103   :  { %7221 = vmatmul.msk.bf16.gmra.mxu3 %vm351_vm0, %v8570_v32  ;;  %v1188_v32 = vrot.slane %v12562_v50, 2 }
 0x106   :  { %v9002_v35 = vpop.f32.mrf.mxu3  ;;  %v446_v1 = vpop.f32.mrf.mxu0 }
 0x107   :  { %12558 = vst [vmem:[#allocation26_spill] sm:$0xff] %v9002_v35  ;;  %v676_v6 = vpop.f32.mrf.mxu2  ;;  %v9004_v16 = vpop.f32.mrf.mxu1 }
 0x108   :  { %v9006_v11 = vadd.f32 %v676_v6, %v446_v1  ;;  %v12561_v6 = vshrl.u32 %v8654_v41, 16 }
 0x10a   :  { %v1187_v1 = vrot.slane %v12561_v6, 1  ;;  %v8224_v6 = vld [vmem:[%s12458_s1 + $0x94] sm:$0xf0] }
 0x10b   :  { %7310 = vmatmul.msk.bf16.gmra.mxu2 %vm351_vm0, %v9009_v5 }
 0x10e   :  { %v9014_v47 = vpop.f32.mrf.mxu3  ;;  %v449_v63 = vpop.f32.mrf.mxu0 }
 0x10f   :  { %12560 = vst [vmem:[#allocation28_spill] sm:$0xff] %v9014_v47  ;;  %v679_v49 = vpop.f32.mrf.mxu2  ;;  %v9017_v35 = vpop.f32.mrf.mxu1  ;;  %v1189_v47 = vor.u32 %v1188_v32, %v1187_v1 }
 0x110   :  { %v9019_v62 = vadd.f32 %v679_v49, %v449_v63  ;;  %v7352_v49 = vld [vmem:[%s12458_s1 + $0x90] sm:$0xf] }
 0x111   :  { %7258 = vmatmul.msk.bf16.gmra.mxu0 %vm351_vm0, %v825_v61  ;;  %v9045_v32 = vsel %vm1163_vm2, %v1185_v56, %v1189_v47  ;;  %v7353_v1 = vor.u32 %v8224_v6, %v7352_v49  ;;  %v12569_v6 = vshrl.u32 %v8687_v19, 16 }
 0x112   :  { %7274 = vmatmul.msk.bf16.gmra.mxu1 %vm351_vm0, %v825_v61  ;;  %v8223_v61 = vld [vmem:[%s12458_s1 + $0x94] sm:$0xf]  ;;  %12566 = vst [vmem:[#allocation32_spill] sm:$0xff] %v9045_v32 }
 0x113   :  { %7222 = vmatmul.msk.bf16.gmra.mxu3 %vm351_vm0, %v8602_v60  ;;  %1656 = vmatpush.bf16.msra.mxu0 %v7353_v1 }
 0x116   :  { %v9029_v24 = vpop.f32.mrf.mxu3  ;;  %v451_v5 = vpop.f32.mrf.mxu0 }
 0x117   :  { %12563 = vst [vmem:[#allocation29_spill] sm:$0xff] %v9029_v24  ;;  %v681_v34 = vpop.f32.mrf.mxu2  ;;  %v9031_v63 = vpop.f32.mrf.mxu1  ;;  %v7354_v24 = vld [vmem:[%s12458_s1 + $0x98] sm:$0xf0] }
 0x118   :  { %12564 = vst [vmem:[#allocation30_spill] sm:$0xff] %v9031_v63  ;;  %v9042_v50 = vadd.f32 %v681_v34, %v451_v5  ;;  %v7357_v60 = vor.u32 %v8223_v61, %v7354_v24  ;;  %v826_v63 = vrot.slane %v8654_v41, 1  ;;  %v1191_v24 = vrot.slane %v12569_v6, 1 }
 0x119   :  { %v12570_v61 = vshll.u32 %v8687_v19, 16 }
 0x11a   :  { %12565 = vst [vmem:[#allocation31_spill] sm:$0xff] %v9042_v50  ;;  %1745 = vmatpush.bf16.msra.mxu1 %v7357_v60  ;;  %v827_v5 = vsel %vm814_vm3, %v824_v40, %v826_v63 }
 0x11b   :  { %7311 = vmatmul.msk.bf16.gmra.mxu2 %vm351_vm0, %v9045_v32  ;;  %v1192_v1 = vrot.slane %v12570_v61, 2  ;;  %v828_v61 = vrot.slane %v8687_v19, 1 }
 0x11d   :  { %v1193_v60 = vor.u32 %v1192_v1, %v1191_v24  ;;  %v829_v24 = vsel %vm814_vm3, %v826_v63, %v828_v61  ;;  %v8217_v63 = vld [vmem:[%s12458_s1 + $0x64] sm:$0xf] }
 0x11e   :  { %v9053_v9 = vpop.f32.mrf.mxu3  ;;  %v454_v34 = vpop.f32.mrf.mxu0 }
 0x11f   :  { %12567 = vst [vmem:[#allocation33_spill] sm:$0xff] %v9053_v9  ;;  %v684_v56 = vpop.f32.mrf.mxu2  ;;  %v9056_v50 = vpop.f32.mrf.mxu1  ;;  %v9075_v6 = vsel %vm1163_vm2, %v1189_v47, %v1193_v60  ;;  %v12579_v47 = vshll.u32 %v8708_v43, 16 }
 0x120   :  { %12568 = vst [vmem:[#allocation34_spill] sm:$0xff] %v9056_v50  ;;  %v9058_v49 = vadd.f32 %v684_v56, %v454_v34 }
 0x121   :  { %7259 = vmatmul.msk.bf16.gmra.mxu0 %vm351_vm0, %v827_v5  ;;  %12574 = vst [vmem:[#allocation38_spill] sm:$0xff] %v9075_v6 }
 0x122   :  { %7275 = vmatmul.msk.bf16.gmra.mxu1 %vm351_vm0, %v827_v5 }
 0x123   :  { %7223 = vmatmul.msk.bf16.gmra.mxu3 %vm351_vm0, %v8633_v22 }
 0x126   :  { %v9068_v40 = vpop.f32.mrf.mxu3  ;;  %v456_v32 = vpop.f32.mrf.mxu0 }
 0x127   :  { %12571 = vst [vmem:[#allocation35_spill] sm:$0xff] %v9068_v40  ;;  %v686_v9 = vpop.f32.mrf.mxu2  ;;  %v9070_v34 = vpop.f32.mrf.mxu1 }
 0x128   :  { %12572 = vst [vmem:[#allocation36_spill] sm:$0xff] %v9070_v34  ;;  %v9072_v56 = vadd.f32 %v686_v9, %v456_v32  ;;  %v12578_v9 = vshrl.u32 %v8708_v43, 16  ;;  %v1196_v34 = vrot.slane %v12579_v47, 2 }
 0x12a   :  { %12573 = vst [vmem:[#allocation37_spill] sm:$0xff] %v9072_v56  ;;  %v1195_v32 = vrot.slane %v12578_v9, 1 }
 0x12b   :  { %7312 = vmatmul.msk.bf16.gmra.mxu2 %vm351_vm0, %v9075_v6 }
 0x12e   :  { %v9080_v5 = vpop.f32.mrf.mxu3  ;;  %v459_v22 = vpop.f32.mrf.mxu0 }
 0x12f   :  { %12575 = vst [vmem:[#allocation39_spill] sm:$0xff] %v9080_v5  ;;  %v689_v1 = vpop.f32.mrf.mxu2  ;;  %v9083_v40 = vpop.f32.mrf.mxu1 }
 0x130   :  { %12576 = vst [vmem:[#allocation40_spill] sm:$0xff] %v9083_v40  ;;  %v9085_v50 = vadd.f32 %v689_v1, %v459_v22  ;;  %v7294_v22 = vld [vmem:[%s12458_s1 + $0x68] sm:$0xf0]  ;;  %v1197_v1 = vor.u32 %v1196_v34, %v1195_v32 }
 0x131   :  { %7260 = vmatmul.msk.bf16.gmra.mxu0 %vm351_vm0, %v829_v24  ;;  %v7297_v9 = vor.u32 %v8217_v63, %v7294_v22 }
 0x132   :  { %12577 = vst [vmem:[#allocation41_spill] sm:$0xff] %v9085_v50  ;;  %7276 = vmatmul.msk.bf16.gmra.mxu1 %vm351_vm0, %v829_v24  ;;  %v830_v50 = vrot.slane %v8708_v43, 1 }
 0x133   :  { %7224 = vmatmul.msk.bf16.gmra.mxu3 %vm351_vm0, %v8654_v41  ;;  %v9108_v41 = vsel %vm1163_vm2, %v1193_v60, %v1197_v1  ;;  %v12587_v60 = vshll.u32 %v8735_v18, 16 }
 0x134   :  { %1397 = vmatpush.bf16.msra.mxu3 %v7297_v9  ;;  %12582 = vst [vmem:[#allocation44_spill] sm:$0xff] %v9108_v41  ;;  %v831_v32 = vsel %vm814_vm3, %v828_v61, %v830_v50 }
 0x136   :  { %v9101_v6 = vpop.f32.mrf.mxu3  ;;  %v461_v47 = vpop.f32.mrf.mxu0 }
 0x137   :  { %12580 = vst [vmem:[#allocation42_spill] sm:$0xff] %v9101_v6  ;;  %v691_v5 = vpop.f32.mrf.mxu2  ;;  %v9103_v40 = vpop.f32.mrf.mxu1  ;;  %v1200_v6 = vrot.slane %v12587_v60, 2  ;;  %v832_v60 = vrot.slane %v8735_v18, 1 }
 0x138   :  { %12581 = vst [vmem:[#allocation43_spill] sm:$0xff] %v9103_v40  ;;  %v9105_v24 = vadd.f32 %v691_v5, %v461_v47  ;;  %v12586_v5 = vshrl.u32 %v8735_v18, 16 }
 0x13a   :  { %v1199_v47 = vrot.slane %v12586_v5, 1 }
 0x13b   :  { %7313 = vmatmul.msk.bf16.gmra.mxu2 %vm351_vm0, %v9108_v41 }
 0x13c   :  { %v1201_v41 = vor.u32 %v1200_v6, %v1199_v47  ;;  %v833_v6 = vsel %vm814_vm3, %v830_v50, %v832_v60 }
 0x13e   :  { %v9113_v56 = vpop.f32.mrf.mxu3  ;;  %v464_v34 = vpop.f32.mrf.mxu0  ;;  %v9135_v5 = vsel %vm1163_vm2, %v1197_v1, %v1201_v41  ;;  %v12594_v1 = vshll.u32 %v8760_v0, 16 }
 0x13f   :  { %12583 = vst [vmem:[#allocation45_spill] sm:$0xff] %v9113_v56  ;;  %v694_v63 = vpop.f32.mrf.mxu2  ;;  %v9116_v22 = vpop.f32.mrf.mxu1 }
 0x140   :  { %12584 = vst [vmem:[#allocation46_spill] sm:$0xff] %v9116_v22  ;;  %v9118_v9 = vadd.f32 %v694_v63, %v464_v34 }
 0x141   :  { %7261 = vmatmul.msk.bf16.gmra.mxu0 %vm351_vm0, %v831_v32  ;;  %12591 = vst [vmem:[#allocation51_spill] sm:$0xff] %v9135_v5 }
 0x142   :  { %12585 = vst [vmem:[#allocation47_spill] sm:$0xff] %v9118_v9  ;;  %7277 = vmatmul.msk.bf16.gmra.mxu1 %vm351_vm0, %v831_v32 }
 0x143   :  { %7225 = vmatmul.msk.bf16.gmra.mxu3 %vm351_vm0, %v8687_v19 }
 0x146   :  { %v9128_v61 = vpop.f32.mrf.mxu3  ;;  %v466_v56 = vpop.f32.mrf.mxu0 }
 0x147   :  { %12588 = vst [vmem:[#allocation48_spill] sm:$0xff] %v9128_v61  ;;  %v696_v22 = vpop.f32.mrf.mxu2  ;;  %v9130_v34 = vpop.f32.mrf.mxu1 }
 0x148   :  { %12589 = vst [vmem:[#allocation49_spill] sm:$0xff] %v9130_v34  ;;  %v9132_v63 = vadd.f32 %v696_v22, %v466_v56  ;;  %v12593_v56 = vshrl.u32 %v8760_v0, 16  ;;  %v1204_v34 = vrot.slane %v12594_v1, 2 }
 0x14a   :  { %12590 = vst [vmem:[#allocation50_spill] sm:$0xff] %v9132_v63  ;;  %v1203_v22 = vrot.slane %v12593_v56, 1 }
 0x14b   :  { %7314 = vmatmul.msk.bf16.gmra.mxu2 %vm351_vm0, %v9135_v5 }
 0x14c   :  { %v1205_v50 = vor.u32 %v1204_v34, %v1203_v22 }
 0x14e   :  { %v9140_v32 = vpop.f32.mrf.mxu3  ;;  %v925_v19 = vpop.f32.mrf.mxu0  ;;  %v9157_v1 = vsel %vm1163_vm2, %v1201_v41, %v1205_v50 }
 0x14f   :  { %12592 = vst [vmem:[#allocation52_spill] sm:$0xff] %v9140_v32  ;;  %v1094_v47 = vadd.f32 %v925_v19, %v8754_v57  ;;  %v1310_v61 = vpop.f32.mrf.mxu2  ;;  %v1014_v9 = vpop.f32.mrf.mxu1 }
 0x151   :  { %v9148_v63 = vadd.f32 %v1310_v61, %v1094_v47  ;;  %7262 = vmatmul.msk.bf16.gmra.mxu0 %vm351_vm0, %v833_v6 }
 0x152   :  { %7278 = vmatmul.msk.bf16.gmra.mxu1 %vm351_vm0, %v833_v6  ;;  %v834_v6 = vrot.slane %v8760_v0, 1 }
 0x153   :  { %7226 = vmatmul.msk.bf16.gmra.mxu3 %vm351_vm0, %v8708_v43 }
 0x156   :  { %v728_v5 = vpop.f32.mrf.mxu3  ;;  %v927_v19 = vpop.f32.mrf.mxu0 }
 0x157   :  { %v729_v57 = vadd.f32 %v728_v5, %v8756_v58  ;;  %v1096_v32 = vadd.f32 %v927_v19, %v8782_v36  ;;  %v1312_v56 = vpop.f32.mrf.mxu2  ;;  %v1016_v40 = vpop.f32.mrf.mxu1  ;;  %v835_v58 = vsel %vm814_vm3, %v832_v60, %v834_v6 }
 0x159   :  { %v9159_v61 = vadd.f32 %v1014_v9, %v729_v57  ;;  %v9161_v47 = vadd.f32 %v1312_v56, %v1096_v32  ;;  %v12597_v9 = vshrl.u32 %v8799_v29, 16  ;;  %v12598_v32 = vshll.u32 %v8799_v29, 16 }
 0x15b   :  { %12595 = vst [vmem:[#allocation53_spill] sm:$0xff] %v9159_v61  ;;  %7315 = vmatmul.msk.bf16.gmra.mxu2 %vm351_vm0, %v9157_v1  ;;  %v1207_v57 = vrot.slane %v12597_v9, 1  ;;  %v1208_v56 = vrot.slane %v12598_v32, 2 }
 0x15c   :  { %12596 = vst [vmem:[#allocation54_spill] sm:$0xff] %v9161_v47 }
 0x15e   :  { %v730_v34 = vpop.f32.mrf.mxu3  ;;  %v930_v22 = vpop.f32.mrf.mxu0 }
 0x15f   :  { %v731_v36 = vadd.f32 %v730_v34, %v8774_v30  ;;  %v1098_v5 = vadd.f32 %v930_v22, %v8795_v2  ;;  %v1315_v19 = vpop.f32.mrf.mxu2  ;;  %v1019_v41 = vpop.f32.mrf.mxu1  ;;  %v1209_v2 = vor.u32 %v1208_v56, %v1207_v57 }
 0x161   :  { %v9173_v47 = vadd.f32 %v1016_v40, %v731_v36  ;;  %v9175_v61 = vadd.f32 %v1315_v19, %v1098_v5  ;;  %7263 = vmatmul.msk.bf16.gmra.mxu0 %vm351_vm0, %v835_v58  ;;  %v9184_v40 = vsel %vm1163_vm2, %v1205_v50, %v1209_v2 }
 0x162   :  { %7279 = vmatmul.msk.bf16.gmra.mxu1 %vm351_vm0, %v835_v58  ;;  %v836_v58 = vrot.slane %v8799_v29, 1 }
 0x163   :  { %7227 = vmatmul.msk.bf16.gmra.mxu3 %vm351_vm0, %v8735_v18 }
 0x166   :  { %v733_v30 = vpop.f32.mrf.mxu3  ;;  %v932_v60 = vpop.f32.mrf.mxu0 }
 0x167   :  { %v734_v34 = vadd.f32 %v733_v30, %v8793_v28  ;;  %v1100_v22 = vadd.f32 %v932_v60, %v8821_v59  ;;  %v1317_v9 = vpop.f32.mrf.mxu2  ;;  %v1021_v32 = vpop.f32.mrf.mxu1  ;;  %v837_v28 = vsel %vm814_vm3, %v834_v6, %v836_v58 }
 0x169   :  { %v9186_v36 = vadd.f32 %v1019_v41, %v734_v34  ;;  %v9188_v5 = vadd.f32 %v1317_v9, %v1100_v22  ;;  %v12600_v41 = vshrl.u32 %v8493_v48, 16  ;;  %v12601_v34 = vshll.u32 %v8493_v48, 16 }
 0x16b   :  { %12599 = vst [vmem:[#allocation55_spill] sm:$0xff] %v9188_v5  ;;  %7316 = vmatmul.msk.bf16.gmra.mxu2 %vm351_vm0, %v9184_v40  ;;  %v1211_v60 = vrot.slane %v12600_v41, 1  ;;  %v1212_v22 = vrot.slane %v12601_v34, 2 }
 0x16e   :  { %v735_v19 = vpop.f32.mrf.mxu3  ;;  %v935_v57 = vpop.f32.mrf.mxu0 }
 0x16f   :  { %v736_v59 = vadd.f32 %v735_v19, %v8815_v7  ;;  %v1102_v56 = vadd.f32 %v935_v57, %v8854_v12  ;;  %v1320_v30 = vpop.f32.mrf.mxu2  ;;  %v1024_v50 = vpop.f32.mrf.mxu1  ;;  %v1213_v7 = vor.u32 %v1212_v22, %v1211_v60 }
 0x171   :  { %v9200_v9 = vadd.f32 %v1021_v32, %v736_v59  ;;  %v9202_v5 = vadd.f32 %v1320_v30, %v1102_v56  ;;  %7264 = vmatmul.msk.bf16.gmra.mxu0 %vm351_vm0, %v837_v28  ;;  %v9211_v32 = vsel %vm1163_vm2, %v1209_v2, %v1213_v7 }
 0x172   :  { %7280 = vmatmul.msk.bf16.gmra.mxu1 %vm351_vm0, %v837_v28  ;;  %v838_v28 = vrot.slane %v8493_v48, 1 }
 0x173   :  { %7228 = vmatmul.msk.bf16.gmra.mxu3 %vm351_vm0, %v8760_v0 }
 0x176   :  { %v738_v12 = vpop.f32.mrf.mxu3  ;;  %v937_v6 = vpop.f32.mrf.mxu0 }
 0x177   :  { %v739_v19 = vadd.f32 %v738_v12, %v8852_v15  ;;  %v1104_v57 = vadd.f32 %v937_v6, %v8877_v27  ;;  %v1322_v41 = vpop.f32.mrf.mxu2  ;;  %v1026_v34 = vpop.f32.mrf.mxu1  ;;  %v839_v15 = vsel %vm814_vm3, %v836_v58, %v838_v28 }
 0x179   :  { %v9213_v59 = vadd.f32 %v1024_v50, %v739_v19  ;;  %v9215_v56 = vadd.f32 %v1322_v41, %v1104_v57  ;;  %v12603_v50 = vshrl.u32 %v8498_v51, 16  ;;  %v12604_v19 = vshll.u32 %v8498_v51, 16 }
 0x17b   :  { %12602 = vst [vmem:[#allocation56_spill] sm:$0xff] %v9215_v56  ;;  %7317 = vmatmul.msk.bf16.gmra.mxu2 %vm351_vm0, %v9211_v32  ;;  %v1215_v6 = vrot.slane %v12603_v50, 1  ;;  %v1216_v57 = vrot.slane %v12604_v19, 2 }
 0x17e   :  { %v740_v30 = vpop.f32.mrf.mxu3  ;;  %v940_v60 = vpop.f32.mrf.mxu0 }
 0x17f   :  { %v741_v27 = vadd.f32 %v740_v30, %v8875_v4  ;;  %v1106_v22 = vadd.f32 %v940_v60, %v8889_v46  ;;  %v1325_v12 = vpop.f32.mrf.mxu2  ;;  %v1029_v2 = vpop.f32.mrf.mxu1  ;;  %v1217_v4 = vor.u32 %v1216_v57, %v1215_v6 }
 0x181   :  { %v9227_v41 = vadd.f32 %v1026_v34, %v741_v27  ;;  %v9229_v56 = vadd.f32 %v1325_v12, %v1106_v22  ;;  %7265 = vmatmul.msk.bf16.gmra.mxu0 %vm351_vm0, %v839_v15  ;;  %v9238_v34 = vsel %vm1163_vm2, %v1213_v7, %v1217_v4 }
 0x182   :  { %7281 = vmatmul.msk.bf16.gmra.mxu1 %vm351_vm0, %v839_v15  ;;  %12605 = vst [vmem:[#allocation57_spill] sm:$0xff] %v9238_v34  ;;  %v840_v15 = vrot.slane %v8498_v51, 1 }
 0x183   :  { %7229 = vmatmul.msk.bf16.gmra.mxu3 %vm351_vm0, %v8799_v29 }
 0x186   :  { %v743_v46 = vpop.f32.mrf.mxu3  ;;  %v942_v58 = vpop.f32.mrf.mxu0 }
 0x187   :  { %v744_v30 = vadd.f32 %v743_v46, %v8887_v44  ;;  %v1108_v60 = vadd.f32 %v942_v58, %v8899_v39  ;;  %v1327_v50 = vpop.f32.mrf.mxu2  ;;  %v1031_v19 = vpop.f32.mrf.mxu1  ;;  %v841_v44 = vsel %vm814_vm3, %v838_v28, %v840_v15  ;;  %v12607_v58 = vshll.u32 %v8534_v10, 16 }
 0x189   :  { %v9240_v27 = vadd.f32 %v1029_v2, %v744_v30  ;;  %v9242_v22 = vadd.f32 %v1327_v50, %v1108_v60  ;;  %v12606_v2 = vshrl.u32 %v8534_v10, 16  ;;  %v1220_v30 = vrot.slane %v12607_v58, 2 }
 0x18b   :  { %7318 = vmatmul.msk.bf16.gmra.mxu2 %vm351_vm0, %v9238_v34  ;;  %v1219_v46 = vrot.slane %v12606_v2, 1 }
 0x18e   :  { %v745_v12 = vpop.f32.mrf.mxu3  ;;  %v945_v6 = vpop.f32.mrf.mxu0 }
 0x18f   :  { %v746_v39 = vadd.f32 %v745_v12, %v8897_v17  ;;  %v9250_v57 = vadd.f32 %v945_v6, %v8910_v25  ;;  %v1034_v7 = vpop.f32.mrf.mxu1  ;;  %v1221_v17 = vor.u32 %v1220_v30, %v1219_v46 }
 0x191   :  { %v9256_v60 = vadd.f32 %v1031_v19, %v746_v39  ;;  %7266 = vmatmul.msk.bf16.gmra.mxu0 %vm351_vm0, %v841_v44  ;;  %v9267_v2 = vsel %vm1163_vm2, %v1217_v4, %v1221_v17  ;;  %v8222_v39 = vld [vmem:[%s12458_s1 + $0x84] sm:$0xf0]  ;;  %v7346_v4 = vld [vmem:[%s12458_s1 + $0x88] sm:$0xf0] }
 0x192   :  { %7282 = vmatmul.msk.bf16.gmra.mxu1 %vm351_vm0, %v841_v44  ;;  %12609 = vst [vmem:[#allocation59_spill] sm:$0xff] %v9267_v2  ;;  %v7344_v44 = vld [vmem:[%s12458_s1 + $0x80] sm:$0xf] }
 0x193   :  { %7230 = vmatmul.msk.bf16.gmra.mxu3 %vm351_vm0, %v8493_v48  ;;  %v7345_v46 = vor.u32 %v8222_v39, %v7344_v44  ;;  %v12611_v39 = vshrl.u32 %v8574_v33, 16 }
 0x195   :  { %1657 = vmatpush.bf16.msra.mxu0 %v7345_v46 }
 0x196   :  { %v748_v28 = vpop.f32.mrf.mxu3  ;;  %v947_v25 = vpop.f32.mrf.mxu0 }
 0x197   :  { %v749_v50 = vadd.f32 %v748_v28, %v8908_v53  ;;  %v9264_v12 = vadd.f32 %v947_v25, %v8924_v21  ;;  %v1036_v6 = vpop.f32.mrf.mxu1  ;;  %v8221_v53 = vld [vmem:[%s12458_s1 + $0x84] sm:$0xf]  ;;  %v842_v21 = vrot.slane %v8534_v10, 1 }
 0x199   :  { %12608 = vst [vmem:[#allocation58_spill] sm:$0xff] %v9264_v12  ;;  %v9269_v19 = vadd.f32 %v1034_v7, %v749_v50  ;;  %v7349_v7 = vor.u32 %v8221_v53, %v7346_v4  ;;  %v843_v28 = vsel %vm814_vm3, %v840_v15, %v842_v21  ;;  %v12612_v12 = vshll.u32 %v8574_v33, 16 }
 0x19b   :  { %12610 = vst [vmem:[#allocation60_spill] sm:$0xff] %v9269_v19  ;;  %7319 = vmatmul.msk.bf16.gmra.mxu2 %vm351_vm0, %v9267_v2  ;;  %1746 = vmatpush.bf16.msra.mxu1 %v7349_v7  ;;  %v1223_v19 = vrot.slane %v12611_v39, 1  ;;  %v1224_v34 = vrot.slane %v12612_v12, 2  ;;  %v844_v7 = vrot.slane %v8574_v33, 1 }
 0x19e   :  { %v750_v58 = vpop.f32.mrf.mxu3  ;;  %v950_v30 = vpop.f32.mrf.mxu0 }
 0x19f   :  { %v751_v25 = vadd.f32 %v750_v58, %v8922_v14  ;;  %v9289_v50 = vadd.f32 %v950_v30, %v8938_v8  ;;  %v1039_v44 = vpop.f32.mrf.mxu1  ;;  %v1225_v14 = vor.u32 %v1224_v34, %v1223_v19  ;;  %v845_v19 = vsel %vm814_vm3, %v842_v21, %v844_v7 }
 0x1a1   :  { %v9295_v2 = vadd.f32 %v1036_v6, %v751_v25  ;;  %7267 = vmatmul.msk.bf16.gmra.mxu0 %vm351_vm0, %v843_v28  ;;  %v9306_v12 = vsel %vm1163_vm2, %v1221_v17, %v1225_v14 }
 0x1a2   :  { %7283 = vmatmul.msk.bf16.gmra.mxu1 %vm351_vm0, %v843_v28  ;;  %v12613_v28 = vmov 0  }
 0x1a3   :  { %7231 = vmatmul.msk.bf16.gmra.mxu3 %vm351_vm0, %v8498_v51  ;;  %v9319_v17 = vrot.slane %v12613_v28, 2 }
 0x1a5   :  { %12614 = vst [vmem:[#allocation61_spill] sm:$0xff] %v9319_v17  ;;  %v1231_v21 = vor.u32 %v9319_v17, %v8624_v3 }
 0x1a6   :  { %v753_v15 = vpop.f32.mrf.mxu3  ;;  %v952_v8 = vpop.f32.mrf.mxu0 }
 0x1a7   :  { %v754_v53 = vadd.f32 %v753_v15, %v8936_v23  ;;  %v9303_v46 = vadd.f32 %v952_v8, %v8952_v55  ;;  %v1041_v4 = vpop.f32.mrf.mxu1 }
 0x1a9   :  { %v9308_v6 = vadd.f32 %v1039_v44, %v754_v53 }
 0x1ab   :  { %7320 = vmatmul.msk.bf16.gmra.mxu2 %vm351_vm0, %v9306_v12 }
 0x1ae   :  { %v755_v58 = vpop.f32.mrf.mxu3  ;;  %v955_v34 = vpop.f32.mrf.mxu0 }
 0x1af   :  { %v756_v23 = vadd.f32 %v755_v58, %v8950_v20  ;;  %v9316_v55 = vadd.f32 %v955_v34, %v8965_v45  ;;  %v1044_v30 = vpop.f32.mrf.mxu1  ;;  %v8232_v20 = vld [vmem:[%s12460_s3 + $0x38] sm:$0xff]  ;;  %v2401_v45 = vld [vmem:[%s12460_s3 + $0x50] sm:$0xf]  ;;  %v9340_v34 = vsel %vm1163_vm2, %v1225_v14, %v1231_v21 }
 0x1b0   :  { %v2443_v44 = vunpack.c.l.b16 %v2401_v45  ;;  %2518 = vmatpush.bf16.msra.mxu2 %v8232_v20  ;;  %12615 = vst [vmem:[#allocation62_spill] sm:$0xff] %v9340_v34 }
 0x1b1   :  { %v9321_v25 = vadd.f32 %v1041_v4, %v756_v23  ;;  %7268 = vmatmul.msk.bf16.gmra.mxu0 %vm351_vm0, %v845_v19 }
 0x1b2   :  { %7284 = vmatmul.msk.bf16.gmra.mxu1 %vm351_vm0, %v845_v19  ;;  %v2454_v8 = vpack.c.b16 %v2443_v44, %v2443_v44 }
 0x1b3   :  { %7232 = vmatmul.msk.bf16.gmra.mxu3 %vm351_vm0, %v8534_v10 }
 0x1b4   :  { %v2516_v19 = vsel %vm2514_vm4, %v2454_v8, 0  ;;  %v1549_v8 = vrot.slane %v8484_v37, 2  ;;  %v8231_v37 = vld [vmem:[%s12460_s3 + $0x30] sm:$0xff] }
 0x1b5   :  { %2612 = vmatpush.bf16.msrb.mxu3 %v2516_v19  ;;  %2519 = vmatpush.bf16.msra.mxu2 %v8231_v37 }
 0x1b6   :  { %v758_v39 = vpop.f32.mrf.mxu3  ;;  %v957_v15 = vpop.f32.mrf.mxu0 }
 0x1b7   :  { %v759_v53 = vadd.f32 %v758_v39, %v8963_v54  ;;  %v9337_v4 = vadd.f32 %v957_v15, %v8979_v52  ;;  %v1046_v58 = vpop.f32.mrf.mxu1  ;;  %v847_v54 = vsel %vm814_vm3, %v844_v7, %v8624_v3 }
 0x1b9   :  { %v9343_v23 = vadd.f32 %v1044_v30, %v759_v53  ;;  %v1550_v53 = vrot.slane %v8489_v42, 2 }
 0x1bb   :  { %7321 = vmatmul.msk.bf16.gmra.mxu2 %vm351_vm0, %v9340_v34 }
 0x1be   :  { %v760_v20 = vpop.f32.mrf.mxu3  ;;  %v960_v45 = vpop.f32.mrf.mxu0 }
 0x1bf   :  { %v761_v52 = vadd.f32 %v760_v20, %v8977_v26  ;;  %v9351_v44 = vadd.f32 %v960_v45, %v8992_v38  ;;  %v1049_v14 = vpop.f32.mrf.mxu1  ;;  %v1551_v20 = vsel %vm1548_vm5, %v1549_v8, %v1550_v53 }
 0x1c1   :  { %v9353_v21 = vadd.f32 %v1046_v58, %v761_v52  ;;  %7269 = vmatmul.msk.bf16.gmra.mxu0 %vm351_vm0, %v847_v54  ;;  %v12621_v52 = vld [vmem:[#allocation31_spill] sm:$0xff] }
 0x1c2   :  { %7285 = vmatmul.msk.bf16.gmra.mxu1 %vm351_vm0, %v847_v54 }
 0x1c3   :  { %12616 = vst [vmem:[#allocation63_spill] sm:$0xff] %v9353_v21  ;;  %7233 = vmatmul.msk.bf16.gmra.mxu3 %vm351_vm0, %v8574_v33 }
 0x1c6   :  { %v763_v30 = vpop.f32.mrf.mxu3  ;;  %v962_v39 = vpop.f32.mrf.mxu0 }
 0x1c7   :  { %v764_v15 = vadd.f32 %v763_v30, %v8990_v13  ;;  %v9361_v7 = vadd.f32 %v962_v39, %v9006_v11  ;;  %v1051_v26 = vpop.f32.mrf.mxu1 }
 0x1c9   :  { %12617 = vst [vmem:[#allocation64_spill] sm:$0xff] %v9361_v7  ;;  %v9363_v38 = vadd.f32 %v1049_v14, %v764_v15  ;;  %v12624_v15 = vld [vmem:[#allocation2_spill] sm:$0xff] }
 0x1cb   :  { %12618 = vst [vmem:[#allocation65_spill] sm:$0xff] %v9363_v38 }
 0x1ce   :  { %v765_v58 = vpop.f32.mrf.mxu3  ;;  %v965_v19 = vpop.f32.mrf.mxu0 }
 0x1cf   :  { %v766_v45 = vadd.f32 %v765_v58, %v9004_v16  ;;  %v9370_v54 = vadd.f32 %v965_v19, %v9019_v62  ;;  %v1054_v13 = vpop.f32.mrf.mxu1  ;;  %v12625_v19 = vld [vmem:[#allocation30_spill] sm:$0xff] }
 0x1d1   :  { %12619 = vst [vmem:[#allocation66_spill] sm:$0xff] %v9370_v54  ;;  %v9372_v11 = vadd.f32 %v1051_v26, %v766_v45  ;;  %7358 = vmatmul.msk.bf16.vlgmr.msra.gmra.mxu0 %vm351_vm0, %v1551_v20  ;;  %v1552_v26 = vrot.slane %v12624_v15, 2 }
 0x1d2   :  { %7374 = vmatmul.msk.bf16.vlgmr.msra.gmra.mxu1 %vm351_vm0, %v1551_v20 }
 0x1d3   :  { %12620 = vst [vmem:[#allocation67_spill] sm:$0xff] %v9372_v11  ;;  %7322 = vmatmul.msk.bf16.vlgmr.msra.gmra.mxu3 %vm351_vm0, %v8850_v31  ;;  %v1553_v31 = vsel %vm1548_vm5, %v1550_v53, %v1552_v26  ;;  %v12630_v53 = vld [vmem:[#allocation37_spill] sm:$0xff] }
 0x1d6   :  { %v768_v42 = vpop.f32.mrf.mxu3  ;;  %v967_v16 = vpop.f32.mrf.mxu0 }
 0x1d7   :  { %v769_v62 = vadd.f32 %v768_v42, %v9017_v35  ;;  %v9383_v14 = vadd.f32 %v967_v16, %v12621_v52  ;;  %v1056_v30 = vpop.f32.mrf.mxu1  ;;  %v12628_v35 = vld [vmem:[#allocation18_spill] sm:$0xff] }
 0x1d8   :  { %v12629_v16 = vld [vmem:[#allocation34_spill] sm:$0xff] }
 0x1d9   :  { %12622 = vst [vmem:[#allocation31_spill] sm:$0xff] %v9383_v14  ;;  %v9385_v39 = vadd.f32 %v1054_v13, %v769_v62 }
 0x1db   :  { %12623 = vst [vmem:[#allocation68_spill] sm:$0xff] %v9385_v39 }
 0x1de   :  { %v770_v8 = vpop.f32.mrf.mxu3  ;;  %v970_v58 = vpop.f32.mrf.mxu0 }
 0x1df   :  { %v771_v20 = vadd.f32 %v770_v8, %v12625_v19  ;;  %v9391_v45 = vadd.f32 %v970_v58, %v9058_v49  ;;  %v1059_v37 = vpop.f32.mrf.mxu1  ;;  %v12633_v8 = vld [vmem:[#allocation3_spill] sm:$0xff] }
 0x1e1   :  { %12626 = vst [vmem:[#allocation2_spill] sm:$0xff] %v9391_v45  ;;  %v9393_v28 = vadd.f32 %v1056_v30, %v771_v20  ;;  %7359 = vmatmul.msk.bf16.gmra.mxu0 %vm351_vm0, %v1553_v31  ;;  %v1554_v30 = vrot.slane %v12633_v8, 2 }
 0x1e2   :  { %7375 = vmatmul.msk.bf16.gmra.mxu1 %vm351_vm0, %v1553_v31  ;;  %v12634_v31 = vld [vmem:[#allocation36_spill] sm:$0xff] }
 0x1e3   :  { %12627 = vst [vmem:[#allocation30_spill] sm:$0xff] %v9393_v28  ;;  %7323 = vmatmul.msk.bf16.gmra.mxu3 %vm351_vm0, %v12628_v35  ;;  %v1555_v20 = vsel %vm1548_vm5, %v1552_v26, %v1554_v30  ;;  %v12635_v28 = vld [vmem:[#allocation41_spill] sm:$0xff] }
 0x1e6   :  { %v773_v13 = vpop.f32.mrf.mxu3  ;;  %v972_v42 = vpop.f32.mrf.mxu0 }
 0x1e7   :  { %v774_v62 = vadd.f32 %v773_v13, %v12629_v16  ;;  %v9401_v52 = vadd.f32 %v972_v42, %v12630_v53  ;;  %v1061_v15 = vpop.f32.mrf.mxu1  ;;  %v8230_v13 = vld [vmem:[%s12460_s3 + $0x28] sm:$0xff]  ;;  %v12639_v16 = vld [vmem:[#allocation40_spill] sm:$0xff] }
 0x1e8   :  { %2520 = vmatpush.bf16.msra.mxu2 %v8230_v13 }
 0x1e9   :  { %12631 = vst [vmem:[#allocation18_spill] sm:$0xff] %v9401_v52  ;;  %v9403_v49 = vadd.f32 %v1059_v37, %v774_v62  ;;  %v12638_v37 = vld [vmem:[#allocation21_spill] sm:$0xff] }
 0x1eb   :  { %12632 = vst [vmem:[#allocation34_spill] sm:$0xff] %v9403_v49  ;;  %v9432_v49 = vpop.f32.mrf.mxu2 }
 0x1ee   :  { %v775_v58 = vpop.f32.mrf.mxu3  ;;  %v975_v19 = vpop.f32.mrf.mxu0 }
 0x1ef   :  { %v776_v3 = vadd.f32 %v775_v58, %v12634_v31  ;;  %v9409_v35 = vadd.f32 %v975_v19, %v12635_v28  ;;  %v1064_v45 = vpop.f32.mrf.mxu1  ;;  %v12643_v31 = vld [vmem:[#allocation43_spill] sm:$0xff] }
 0x1f1   :  { %12636 = vst [vmem:[#allocation37_spill] sm:$0xff] %v9409_v35  ;;  %v9411_v39 = vadd.f32 %v1061_v15, %v776_v3  ;;  %7360 = vmatmul.msk.bf16.gmra.mxu0 %vm351_vm0, %v1555_v20  ;;  %v12642_v15 = vld [vmem:[#allocation4_spill] sm:$0xff] }
 0x1f2   :  { %7376 = vmatmul.msk.bf16.gmra.mxu1 %vm351_vm0, %v1555_v20  ;;  %v1556_v8 = vrot.slane %v12642_v15, 2 }
 0x1f3   :  { %12637 = vst [vmem:[#allocation3_spill] sm:$0xff] %v9411_v39  ;;  %7324 = vmatmul.msk.bf16.gmra.mxu3 %vm351_vm0, %v12638_v37  ;;  %v12644_v39 = vld [vmem:[#allocation47_spill] sm:$0xff] }
 0x1f4   :  { %v1557_v20 = vsel %vm1548_vm5, %v1554_v30, %v1556_v8  ;;  %v12648_v30 = vld [vmem:[#allocation46_spill] sm:$0xff] }
 0x1f6   :  { %v778_v26 = vpop.f32.mrf.mxu3  ;;  %v977_v42 = vpop.f32.mrf.mxu0 }
 0x1f7   :  { %v779_v28 = vadd.f32 %v778_v26, %v12639_v16  ;;  %v9422_v62 = vadd.f32 %v977_v42, %v9105_v24  ;;  %v1066_v3 = vpop.f32.mrf.mxu1  ;;  %v12647_v24 = vld [vmem:[#allocation24_spill] sm:$0xff] }
 0x1f9   :  { %12640 = vst [vmem:[#allocation36_spill] sm:$0xff] %v9422_v62  ;;  %v9424_v53 = vadd.f32 %v1064_v45, %v779_v28  ;;  %v12649_v28 = vld [vmem:[#allocation50_spill] sm:$0xff] }
 0x1fb   :  { %12641 = vst [vmem:[#allocation41_spill] sm:$0xff] %v9424_v53  ;;  %v12666_v53 = vld [vmem:[#allocation35_spill] sm:$0xff] }
 0x1fe   :  { %v780_v58 = vpop.f32.mrf.mxu3  ;;  %v980_v19 = vpop.f32.mrf.mxu0 }
 0x1ff   :  { %v781_v37 = vadd.f32 %v780_v58, %v12643_v31  ;;  %v9430_v13 = vadd.f32 %v980_v19, %v12644_v39  ;;  %v1069_v35 = vpop.f32.mrf.mxu1  ;;  %v12652_v19 = vld [vmem:[#allocation6_spill] sm:$0xff] }
 0x200   :  { %v1558_v31 = vrot.slane %v12652_v19, 2  ;;  %v12658_v19 = vld [vmem:[#allocation27_spill] sm:$0xff] }
 0x201   :  { %12645 = vst [vmem:[#allocation21_spill] sm:$0xff] %v9430_v13  ;;  %v9434_v26 = vadd.f32 %v1066_v3, %v781_v37  ;;  %7361 = vmatmul.msk.bf16.gmra.mxu0 %vm351_vm0, %v1557_v20  ;;  %v8234_v3 = vld [vmem:[%s12460_s3 + $0x48] sm:$0xff]  ;;  %v12653_v37 = vld [vmem:[#allocation9_spill] sm:$0xff] }
 0x202   :  { %7377 = vmatmul.msk.bf16.gmra.mxu1 %vm351_vm0, %v1557_v20  ;;  %v9450_v20 = vpop.f32.mrf.mxu2  ;;  %2613 = vmatpush.bf16.msrb.mxu3 %v8234_v3  ;;  %v8229_v3 = vld [vmem:[%s12460_s3 + $0x20] sm:$0xff] }
 0x203   :  { %12646 = vst [vmem:[#allocation40_spill] sm:$0xff] %v9434_v26  ;;  %7325 = vmatmul.msk.bf16.gmra.mxu3 %vm351_vm0, %v12647_v24  ;;  %v12654_v24 = vld [vmem:[#allocation29_spill] sm:$0xff]  ;;  %2521 = vmatpush.bf16.msra.mxu2 %v8229_v3  ;;  %v12667_v3 = vld [vmem:[#allocation19_spill] sm:$0xff] }
 0x204   :  { %v700_v26 = vadd.f32 %v12654_v24, %v12653_v37  ;;  %v12659_v37 = vld [vmem:[#allocation10_spill] sm:$0xff] }
 0x206   :  { %v783_v45 = vpop.f32.mrf.mxu3  ;;  %v982_v42 = vpop.f32.mrf.mxu0 }
 0x207   :  { %v784_v16 = vadd.f32 %v783_v45, %v12648_v30  ;;  %v9442_v15 = vadd.f32 %v982_v42, %v12649_v28  ;;  %v1071_v39 = vpop.f32.mrf.mxu1  ;;  %v1559_v42 = vsel %vm1548_vm5, %v1556_v8, %v1558_v31  ;;  %v12655_v30 = vld [vmem:[#allocation49_spill] sm:$0xff] }
 0x208   :  { %v12660_v8 = vld [vmem:[#allocation33_spill] sm:$0xff] }
 0x209   :  { %12650 = vst [vmem:[#allocation4_spill] sm:$0xff] %v9442_v15  ;;  %v9444_v58 = vadd.f32 %v1069_v35, %v784_v16  ;;  %v702_v24 = vadd.f32 %v12660_v8, %v12659_v37  ;;  %v12665_v15 = vld [vmem:[#allocation11_spill] sm:$0xff] }
 0x20a   :  { %v705_v62 = vadd.f32 %v12666_v53, %v12665_v15  ;;  %v12671_v53 = vld [vmem:[#allocation12_spill] sm:$0xff]  ;;  %v12672_v15 = vld [vmem:[#allocation39_spill] sm:$0xff] }
 0x20b   :  { %12651 = vst [vmem:[#allocation43_spill] sm:$0xff] %v9444_v58 }
 0x20e   :  { %v785_v13 = vpop.f32.mrf.mxu3  ;;  %v985_v45 = vpop.f32.mrf.mxu0 }
 0x20f   :  { %v786_v28 = vadd.f32 %v785_v13, %v12655_v30  ;;  %v9456_v35 = vadd.f32 %v985_v45, %v700_v26  ;;  %v1074_v16 = vpop.f32.mrf.mxu1  ;;  %v9469_v13 = vpop.f32.mrf.mxu2  ;;  %v12661_v45 = vld [vmem:[#allocation17_spill] sm:$0xff] }
 0x211   :  { %12656 = vst [vmem:[#allocation47_spill] sm:$0xff] %v9456_v35  ;;  %v9458_v58 = vadd.f32 %v1071_v39, %v786_v28  ;;  %7362 = vmatmul.msk.bf16.gmra.mxu0 %vm351_vm0, %v1559_v42 }
 0x212   :  { %7378 = vmatmul.msk.bf16.gmra.mxu1 %vm351_vm0, %v1559_v42 }
 0x213   :  { %12657 = vst [vmem:[#allocation24_spill] sm:$0xff] %v9458_v58  ;;  %7326 = vmatmul.msk.bf16.gmra.mxu3 %vm351_vm0, %v12658_v19  ;;  %v12664_v19 = vld [vmem:[#allocation7_spill] sm:$0xff] }
 0x214   :  { %v1560_v35 = vrot.slane %v12664_v19, 2 }
 0x216   :  { %v788_v26 = vpop.f32.mrf.mxu3  ;;  %v987_v39 = vpop.f32.mrf.mxu0  ;;  %v1561_v37 = vsel %vm1548_vm5, %v1558_v31, %v1560_v35 }
 0x217   :  { %v789_v30 = vadd.f32 %v788_v26, %v12661_v45  ;;  %v9472_v28 = vadd.f32 %v987_v39, %v702_v24  ;;  %v1076_v42 = vpop.f32.mrf.mxu1  ;;  %v9480_v8 = vpop.f32.mrf.mxu2  ;;  %v707_v39 = vadd.f32 %v12672_v15, %v12671_v53  ;;  %v12679_v15 = vld [vmem:[#allocation22_spill] sm:$0xff] }
 0x219   :  { %12662 = vst [vmem:[#allocation46_spill] sm:$0xff] %v9472_v28  ;;  %v9474_v58 = vadd.f32 %v1074_v16, %v789_v30  ;;  %v12670_v16 = vld [vmem:[#allocation32_spill] sm:$0xff] }
 0x21a   :  { %v12673_v30 = vld [vmem:[#allocation20_spill] sm:$0xff] }
 0x21b   :  { %12663 = vst [vmem:[#allocation50_spill] sm:$0xff] %v9474_v58 }
 0x21e   :  { %v790_v52 = vpop.f32.mrf.mxu3  ;;  %v990_v14 = vpop.f32.mrf.mxu0 }
 0x21f   :  { %v791_v11 = vadd.f32 %v790_v52, %v12667_v3  ;;  %v9483_v54 = vadd.f32 %v990_v14, %v705_v62  ;;  %v1079_v24 = vpop.f32.mrf.mxu1  ;;  %v9496_v62 = vpop.f32.mrf.mxu2 }
 0x221   :  { %12668 = vst [vmem:[#allocation6_spill] sm:$0xff] %v9483_v54  ;;  %v9485_v26 = vadd.f32 %v1076_v42, %v791_v11  ;;  %7363 = vmatmul.msk.bf16.gmra.mxu0 %vm351_vm0, %v1561_v37  ;;  %v12676_v42 = vld [vmem:[#allocation8_spill] sm:$0xff] }
 0x222   :  { %7379 = vmatmul.msk.bf16.gmra.mxu1 %vm351_vm0, %v1561_v37  ;;  %v1562_v3 = vrot.slane %v12676_v42, 2  ;;  %v12677_v37 = vld [vmem:[#allocation13_spill] sm:$0xff] }
 0x223   :  { %12669 = vst [vmem:[#allocation9_spill] sm:$0xff] %v9485_v26  ;;  %7327 = vmatmul.msk.bf16.gmra.mxu3 %vm351_vm0, %v12670_v16  ;;  %v12678_v26 = vld [vmem:[#allocation42_spill] sm:$0xff] }
 0x224   :  { %v710_v54 = vadd.f32 %v12678_v26, %v12677_v37  ;;  %v1563_v53 = vsel %vm1548_vm5, %v1560_v35, %v1562_v3  ;;  %v12683_v26 = vld [vmem:[#allocation14_spill] sm:$0xff] }
 0x226   :  { %v793_v31 = vpop.f32.mrf.mxu3  ;;  %v992_v45 = vpop.f32.mrf.mxu0 }
 0x227   :  { %v794_v19 = vadd.f32 %v793_v31, %v12673_v30  ;;  %v9494_v52 = vadd.f32 %v992_v45, %v707_v39  ;;  %v1081_v14 = vpop.f32.mrf.mxu1  ;;  %v12682_v45 = vld [vmem:[#allocation38_spill] sm:$0xff]  ;;  %v12684_v30 = vld [vmem:[#allocation45_spill] sm:$0xff] }
 0x229   :  { %12674 = vst [vmem:[#allocation29_spill] sm:$0xff] %v9494_v52  ;;  %v9498_v11 = vadd.f32 %v1079_v24, %v794_v19  ;;  %v9511_v24 = vpop.f32.mrf.mxu2  ;;  %v712_v19 = vadd.f32 %v12684_v30, %v12683_v26  ;;  %v12690_v52 = vld [vmem:[#allocation25_spill] sm:$0xff] }
 0x22b   :  { %12675 = vst [vmem:[#allocation49_spill] sm:$0xff] %v9498_v11 }
 0x22e   :  { %v795_v16 = vpop.f32.mrf.mxu3  ;;  %v995_v58 = vpop.f32.mrf.mxu0 }
 0x22f   :  { %v796_v28 = vadd.f32 %v795_v16, %v12679_v15  ;;  %v9505_v38 = vadd.f32 %v995_v58, %v710_v54  ;;  %v1084_v39 = vpop.f32.mrf.mxu1  ;;  %v8228_v54 = vld [vmem:[%s12460_s3 + $0x18] sm:$0xff]  ;;  %v12688_v15 = vld [vmem:[#allocation15_spill] sm:$0xff] }
 0x230   :  { %2522 = vmatpush.bf16.msra.mxu2 %v8228_v54  ;;  %v12695_v54 = vld [vmem:[#allocation52_spill] sm:$0xff] }
 0x231   :  { %12680 = vst [vmem:[#allocation27_spill] sm:$0xff] %v9505_v38  ;;  %v9507_v31 = vadd.f32 %v1081_v14, %v796_v28  ;;  %7364 = vmatmul.msk.bf16.gmra.mxu0 %vm351_vm0, %v1563_v53  ;;  %v12685_v28 = vld [vmem:[#allocation23_spill] sm:$0xff]  ;;  %v9528_v26 = vpop.f32.mrf.mxu2 }
 0x232   :  { %7380 = vmatmul.msk.bf16.gmra.mxu1 %vm351_vm0, %v1563_v53  ;;  %v1564_v53 = vrot.slane %v8708_v43, 2  ;;  %v8227_v43 = vld [vmem:[%s12460_s3 + $0x10] sm:$0xff] }
 0x233   :  { %12681 = vst [vmem:[#allocation10_spill] sm:$0xff] %v9507_v31  ;;  %7328 = vmatmul.msk.bf16.gmra.mxu3 %vm351_vm0, %v12682_v45  ;;  %v12689_v45 = vld [vmem:[#allocation48_spill] sm:$0xff] }
 0x234   :  { %v715_v31 = vadd.f32 %v12689_v45, %v12688_v15  ;;  %v1565_v11 = vsel %vm1548_vm5, %v1562_v3, %v1564_v53  ;;  %2523 = vmatpush.bf16.msra.mxu2 %v8227_v43  ;;  %v12694_v3 = vld [vmem:[#allocation16_spill] sm:$0xff]  ;;  %v1566_v43 = vrot.slane %v8735_v18, 2  ;;  %v12703_v18 = vld [vmem:[#allocation51_spill] sm:$0xff] }
 0x236   :  { %v798_v58 = vpop.f32.mrf.mxu3  ;;  %v997_v35 = vpop.f32.mrf.mxu0 }
 0x237   :  { %v799_v14 = vadd.f32 %v798_v58, %v12685_v28  ;;  %v9521_v42 = vadd.f32 %v997_v35, %v712_v19  ;;  %v1086_v37 = vpop.f32.mrf.mxu1 }
 0x239   :  { %12686 = vst [vmem:[#allocation33_spill] sm:$0xff] %v9521_v42  ;;  %v9523_v16 = vadd.f32 %v1084_v39, %v799_v14  ;;  %v12693_v39 = vld [vmem:[#allocation44_spill] sm:$0xff]  ;;  %v9548_v28 = vpop.f32.mrf.mxu2 }
 0x23a   :  { %12696 = vst [vmem:[#allocation35_spill] sm:$0xff] %v9548_v28 }
 0x23b   :  { %12687 = vst [vmem:[#allocation17_spill] sm:$0xff] %v9523_v16 }
 0x23e   :  { %v800_v30 = vpop.f32.mrf.mxu3  ;;  %v1000_v38 = vpop.f32.mrf.mxu0 }
 0x23f   :  { %v801_v7 = vadd.f32 %v800_v30, %v12690_v52  ;;  %v9532_v58 = vadd.f32 %v1000_v38, %v715_v31  ;;  %v1089_v19 = vpop.f32.mrf.mxu1  ;;  %v717_v52 = vadd.f32 %v12695_v54, %v12694_v3  ;;  %v8225_v30 = vld [vmem:[%s12460_s3] sm:$0xff] }
 0x240   :  { %v1892_v54 = vld [vmem:[%s12461_s2] sm:$0x3] }
 0x241   :  { %12691 = vst [vmem:[#allocation7_spill] sm:$0xff] %v9532_v58  ;;  %v9534_v35 = vadd.f32 %v1086_v37, %v801_v7  ;;  %7365 = vmatmul.msk.bf16.gmra.mxu0 %vm351_vm0, %v1565_v11  ;;  %v8226_v7 = vld [vmem:[%s12460_s3 + $0x8] sm:$0xff]  ;;  %v9579_v58 = vperm.slane %v1892_v54, 1 }
 0x242   :  { %7381 = vmatmul.msk.bf16.gmra.mxu1 %vm351_vm0, %v1565_v11  ;;  %v12697_v11 = vld [vmem:[#allocation26_spill] sm:$0xff]  ;;  %2524 = vmatpush.bf16.msra.mxu2 %v8226_v7 }
 0x243   :  { %12692 = vst [vmem:[#allocation11_spill] sm:$0xff] %v9534_v35  ;;  %7329 = vmatmul.msk.bf16.gmra.mxu3 %vm351_vm0, %v12693_v39  ;;  %v12705_v35 = vld [vmem:[#allocation54_spill] sm:$0xff] }
 0x246   :  { %v803_v38 = vpop.f32.mrf.mxu3  ;;  %v1002_v31 = vpop.f32.mrf.mxu0  ;;  %2525 = vmatpush.bf16.msra.mxu2 %v8225_v30 }
 0x247   :  { %v804_v14 = vadd.f32 %v803_v38, %v12697_v11  ;;  %v9551_v37 = vadd.f32 %v1002_v31, %v717_v52  ;;  %v1091_v15 = vpop.f32.mrf.mxu1  ;;  %v1567_v52 = vsel %vm1548_vm5, %v1564_v53, %v1566_v43  ;;  %v12700_v38 = vld [vmem:[#allocation28_spill] sm:$0xff] }
 0x249   :  { %12698 = vst [vmem:[#allocation19_spill] sm:$0xff] %v9551_v37  ;;  %v9553_v45 = vadd.f32 %v1089_v19, %v804_v14  ;;  %v9564_v19 = vpop.f32.mrf.mxu2 }
 0x24a   :  { %12701 = vst [vmem:[#allocation12_spill] sm:$0xff] %v9564_v19 }
 0x24b   :  { %12699 = vst [vmem:[#allocation32_spill] sm:$0xff] %v9553_v45  ;;  %v9569_v45 = vperm.slane %v1892_v54, 0 }
 0x24e   :  { %v805_v39 = vpop.f32.mrf.mxu3  ;;  %v1659_v3 = vpop.f32.mrf.mxu0 }
 0x24f   :  { %v806_v31 = vadd.f32 %v805_v39, %v12700_v38  ;;  %v1748_v7 = vpop.f32.mrf.mxu1  ;;  %v1828_v14 = vadd.f32 %v1659_v3, %v9148_v63  ;;  %v12704_v38 = vld [vmem:[#allocation53_spill] sm:$0xff] }
 0x251   :  { %v9566_v11 = vadd.f32 %v1091_v15, %v806_v31  ;;  %7366 = vmatmul.msk.bf16.gmra.mxu0 %vm351_vm0, %v1567_v52  ;;  %v1898_v53 = vadd.f32 %v9569_v45, %v1828_v14  ;;  %v9582_v16 = vpop.f32.mrf.mxu2 }
 0x252   :  { %7382 = vmatmul.msk.bf16.gmra.mxu1 %vm351_vm0, %v1567_v52  ;;  %v1568_v52 = vrot.slane %v8760_v0, 2  ;;  %12706 = vst [vmem:[#allocation20_spill] sm:$0xff] %v9582_v16 }
 0x253   :  { %12702 = vst [vmem:[#allocation39_spill] sm:$0xff] %v9566_v11  ;;  %7330 = vmatmul.msk.bf16.gmra.mxu3 %vm351_vm0, %v12703_v18  ;;  %v1962_v11 = vmax.f32 %v1898_v53, 0.0 }
 0x255   :  { %v2092_v42 = vrot.slane %v1962_v11, 1 }
 0x256   :  { %v1399_v30 = vpop.f32.mrf.mxu3  ;;  %v1661_v39 = vpop.f32.mrf.mxu0 }
 0x257   :  { %v1480_v37 = vadd.f32 %v1399_v30, %v12704_v38  ;;  %v1830_v15 = vadd.f32 %v1661_v39, %v12705_v35  ;;  %v1750_v31 = vpop.f32.mrf.mxu1  ;;  %v1569_v35 = vsel %vm1548_vm5, %v1566_v43, %v1568_v52 }
 0x259   :  { %v1900_v63 = vadd.f32 %v9569_v45, %v1830_v15  ;;  %v1829_v3 = vadd.f32 %v1748_v7, %v1480_v37  ;;  %v7456_v15 = vld [vmem:[%s12462_s4 + $0xa8] sm:$0x33] }
 0x25b   :  { %v1964_v18 = vmax.f32 %v1900_v63, 0.0  ;;  %v1899_v19 = vadd.f32 %v9579_v58, %v1829_v3  ;;  %v9601_v3 = vpop.f32.mrf.mxu2 }
 0x25c   :  { %12707 = vst [vmem:[#allocation8_spill] sm:$0xff] %v9601_v3 }
 0x25d   :  { %v2093_v14 = vrot.slane %v1964_v18, 1 }
 0x25e   :  { %v1401_v28 = vpop.f32.mrf.mxu3  ;;  %v1664_v30 = vpop.f32.mrf.mxu0 }
 0x25f   :  { %v2094_v53 = vsel %vm814_vm3, %v2092_v42, %v2093_v14  ;;  %v1482_v39 = vadd.f32 %v1401_v28, %v9173_v47  ;;  %v1832_v37 = vadd.f32 %v1664_v30, %v9175_v61  ;;  %v1753_v54 = vpop.f32.mrf.mxu1  ;;  %v8233_v42 = vld [vmem:[%s12460_s3 + $0x40] sm:$0xff]  ;;  %v1963_v47 = vmax.f32 %v1899_v19, 0.0 }
 0x260   :  { %v2285_v7 = vadd.f32 %v2094_v53, %v1962_v11  ;;  %v2894_v28 = vunpack.c.l.b16 %v7456_v15  ;;  %v2895_v61 = vunpack.c.h.b16 %v7456_v15  ;;  %2614 = vmatpush.bf16.msrb.mxu3 %v8233_v42 }
 0x261   :  { %v1902_v0 = vadd.f32 %v9569_v45, %v1832_v37  ;;  %v1831_v38 = vadd.f32 %v1750_v31, %v1482_v39  ;;  %7367 = vmatmul.msk.bf16.gmra.mxu0 %vm351_vm0, %v1569_v35  ;;  %v2095_v53 = vrot.slane %v1963_v47, 1 }
 0x262   :  { %7383 = vmatmul.msk.bf16.gmra.mxu1 %vm351_vm0, %v1569_v35  ;;  %v2906_v31 = vpack.c.b16 %v2894_v28, %v2894_v28  ;;  %v2907_v63 = vpack.c.b16 %v2895_v61, %v2895_v61  ;;  %v12708_v28 = vld [vmem:[#allocation55_spill] sm:$0xff] }
 0x263   :  { %v1966_v43 = vmax.f32 %v1902_v0, 0.0  ;;  %v1901_v11 = vadd.f32 %v9579_v58, %v1831_v38  ;;  %7331 = vmatmul.msk.bf16.gmra.mxu3 %vm351_vm0, %v9157_v1 }
 0x264   :  { %v2969_v19 = vsel %vm2967_vm6, %v2906_v31, 0  ;;  %v2972_v0 = vsel %vm2967_vm6, %v2907_v63, 0  ;;  %v1570_v63 = vrot.slane %v8799_v29, 2 }
 0x265   :  { %v2098_v30 = vrot.slane %v1966_v43, 1  ;;  %v1965_v35 = vmax.f32 %v1901_v11, 0.0  ;;  %2976 = vmatpush.bf16.msrb.mxu0 %v2969_v19  ;;  %3065 = vmatpush.bf16.msrb.mxu1 %v2972_v0  ;;  %v9615_v0 = vpop.f32.mrf.mxu2 }
 0x266   :  { %v1404_v39 = vpop.f32.mrf.mxu3  ;;  %v1666_v37 = vpop.f32.mrf.mxu0 }
 0x267   :  { %v2099_v38 = vsel %vm814_vm3, %v2093_v14, %v2098_v30  ;;  %v2096_v15 = vrot.slane %v1965_v35, 1  ;;  %v1484_v1 = vadd.f32 %v1404_v39, %v9186_v36  ;;  %v1834_v61 = vadd.f32 %v1666_v37, %v12708_v28  ;;  %v1755_v42 = vpop.f32.mrf.mxu1 }
 0x268   :  { %v2287_v3 = vadd.f32 %v2099_v38, %v1964_v18  ;;  %v1571_v18 = vsel %vm1548_vm5, %v1568_v52, %v1570_v63 }
 0x269   :  { %v2097_v11 = vsel %vm814_vm3, %v2095_v53, %v2096_v15  ;;  %v1904_v16 = vadd.f32 %v9569_v45, %v1834_v61  ;;  %v1833_v34 = vadd.f32 %v1753_v54, %v1484_v1 }
 0x26a   :  { %v9610_v21 = vadd.f32 %v2097_v11, %v1963_v47  ;;  %v2349_v31 = vpack.c.bf16 %v2287_v3, %v2285_v7 }
 0x26b   :  { %v1968_v14 = vmax.f32 %v1904_v16, 0.0  ;;  %v1903_v17 = vadd.f32 %v9579_v58, %v1833_v34 }
 0x26c   :  { %2526 = vmatmul.bf16.vlgmr.msra.gmra.mxu2 %v2349_v31 }
 0x26d   :  { %v2102_v36 = vrot.slane %v1968_v14, 1  ;;  %v1967_v39 = vmax.f32 %v1903_v17, 0.0 }
 0x26e   :  { %v1406_v37 = vpop.f32.mrf.mxu3  ;;  %v1669_v19 = vpop.f32.mrf.mxu0 }
 0x26f   :  { %v2100_v53 = vrot.slane %v1967_v39, 1  ;;  %v1486_v54 = vadd.f32 %v1406_v37, %v9200_v9  ;;  %v1836_v47 = vadd.f32 %v1669_v19, %v9202_v5  ;;  %v1758_v7 = vpop.f32.mrf.mxu1  ;;  %v2103_v29 = vsel %vm814_vm3, %v2098_v30, %v2102_v36  ;;  %v9634_v19 = vpop.f32.mrf.mxu2 }
 0x270   :  { %v2289_v16 = vadd.f32 %v2103_v29, %v1966_v43  ;;  %v1572_v29 = vrot.slane %v8493_v48, 2 }
 0x271   :  { %v2101_v34 = vsel %vm814_vm3, %v2096_v15, %v2100_v53  ;;  %v1906_v3 = vadd.f32 %v9569_v45, %v1836_v47  ;;  %v1835_v17 = vadd.f32 %v1755_v42, %v1486_v54  ;;  %7368 = vmatmul.msk.bf16.gmra.mxu0 %vm351_vm0, %v1571_v18  ;;  %v12709_v42 = vld [vmem:[#allocation56_spill] sm:$0xff] }
 0x272   :  { %7384 = vmatmul.msk.bf16.gmra.mxu1 %vm351_vm0, %v1571_v18  ;;  %v9624_v52 = vadd.f32 %v2101_v34, %v1965_v35 }
 0x273   :  { %v1970_v38 = vmax.f32 %v1906_v3, 0.0  ;;  %v1905_v9 = vadd.f32 %v9579_v58, %v1835_v17  ;;  %7332 = vmatmul.msk.bf16.gmra.mxu3 %vm351_vm0, %v9184_v40 }
 0x274   :  { %v2350_v5 = vpack.c.bf16 %v9624_v52, %v9610_v21 }
 0x275   :  { %v2106_v43 = vrot.slane %v1970_v38, 1  ;;  %v1969_v30 = vmax.f32 %v1905_v9, 0.0 }
 0x276   :  { %v1409_v15 = vpop.f32.mrf.mxu3  ;;  %v1671_v1 = vpop.f32.mrf.mxu0 }
 0x277   :  { %v2104_v28 = vrot.slane %v1969_v30, 1  ;;  %v1488_v61 = vadd.f32 %v1409_v15, %v9213_v59  ;;  %v1838_v11 = vadd.f32 %v1671_v1, %v12709_v42  ;;  %v2107_v35 = vsel %vm814_vm3, %v2102_v36, %v2106_v43  ;;  %v1760_v31 = vpop.f32.mrf.mxu1 }
 0x278   :  { %v2291_v37 = vadd.f32 %v2107_v35, %v1968_v14  ;;  %v1573_v15 = vsel %vm1548_vm5, %v1570_v63, %v1572_v29  ;;  %v9652_v63 = vpop.f32.mrf.mxu2 }
 0x279   :  { %v1908_v40 = vadd.f32 %v9569_v45, %v1838_v11  ;;  %v1837_v18 = vadd.f32 %v1758_v7, %v1488_v61  ;;  %v2105_v54 = vsel %vm814_vm3, %v2100_v53, %v2104_v28 }
 0x27a   :  { %v2351_v47 = vpack.c.bf16 %v2291_v37, %v2289_v16  ;;  %v9639_v34 = vadd.f32 %v2105_v54, %v1967_v39 }
 0x27b   :  { %v1972_v3 = vmax.f32 %v1908_v40, 0.0  ;;  %v1907_v59 = vadd.f32 %v9579_v58, %v1837_v18 }
 0x27c   :  { %2531 = vmatmul.bf16.gmra.mxu2 %v2351_v47 }
 0x27d   :  { %v2110_v17 = vrot.slane %v1972_v3, 1  ;;  %v1971_v36 = vmax.f32 %v1907_v59, 0.0  ;;  %v7491_v59 = vld [vmem:[%s12462_s4 + $0x98] sm:$0xf] }
 0x27e   :  { %v1411_v9 = vpop.f32.mrf.mxu3  ;;  %v1674_v14 = vpop.f32.mrf.mxu0 }
 0x27f   :  { %v2108_v1 = vrot.slane %v1971_v36, 1  ;;  %v1490_v7 = vadd.f32 %v1411_v9, %v9227_v41  ;;  %v1840_v53 = vadd.f32 %v1674_v14, %v9229_v56  ;;  %v1763_v16 = vpop.f32.mrf.mxu1  ;;  %v2111_v48 = vsel %vm814_vm3, %v2106_v43, %v2110_v17 }
 0x280   :  { %v2293_v39 = vadd.f32 %v2111_v48, %v1970_v38 }
 0x281   :  { %v2109_v61 = vsel %vm814_vm3, %v2104_v28, %v2108_v1  ;;  %v1910_v42 = vadd.f32 %v9569_v45, %v1840_v53  ;;  %v1839_v11 = vadd.f32 %v1760_v31, %v1490_v7  ;;  %7369 = vmatmul.msk.bf16.gmra.mxu0 %vm351_vm0, %v1573_v15 }
 0x282   :  { %7385 = vmatmul.msk.bf16.gmra.mxu1 %vm351_vm0, %v1573_v15  ;;  %v9650_v35 = vadd.f32 %v2109_v61, %v1969_v30  ;;  %v8253_v15 = vld [vmem:[%s12462_s4 + $0x9c] sm:$0xf]  ;;  %v1574_v61 = vrot.slane %v8498_v51, 2 }
 0x283   :  { %v1974_v41 = vmax.f32 %v1910_v42, 0.0  ;;  %v1909_v56 = vadd.f32 %v9579_v58, %v1839_v11  ;;  %7333 = vmatmul.msk.bf16.gmra.mxu3 %vm351_vm0, %v9211_v32  ;;  %v8254_v32 = vld [vmem:[%s12462_s4 + $0x9c] sm:$0xf0] }
 0x284   :  { %v2352_v38 = vpack.c.bf16 %v9650_v35, %v9639_v34  ;;  %v7492_v14 = vor.u32 %v8254_v32, %v7491_v59 }
 0x285   :  { %v2114_v43 = vrot.slane %v1974_v41, 1  ;;  %v1973_v28 = vmax.f32 %v1909_v56, 0.0  ;;  %v1495_v56 = vadd.f32 %v9432_v49, %v9250_v57 }
 0x286   :  { %v1414_v31 = vpop.f32.mrf.mxu3  ;;  %v1676_v37 = vpop.f32.mrf.mxu0  ;;  %2977 = vmatpush.bf16.msrb.mxu0 %v7492_v14 }
 0x287   :  { %v2112_v40 = vrot.slane %v1973_v28, 1  ;;  %v1492_v18 = vadd.f32 %v1414_v31, %v9240_v27  ;;  %v1842_v30 = vadd.f32 %v1676_v37, %v9242_v22  ;;  %v2115_v54 = vsel %vm814_vm3, %v2110_v17, %v2114_v43  ;;  %v1765_v47 = vpop.f32.mrf.mxu1  ;;  %v7493_v27 = vld [vmem:[%s12462_s4 + $0xa0] sm:$0xf0]  ;;  %v9682_v31 = vpop.f32.mrf.mxu2 }
 0x288   :  { %v2295_v9 = vadd.f32 %v2115_v54, %v1972_v3  ;;  %v7496_v7 = vor.u32 %v8253_v15, %v7493_v27 }
 0x289   :  { %v1912_v22 = vadd.f32 %v9569_v45, %v1842_v30  ;;  %v1841_v17 = vadd.f32 %v1763_v16, %v1492_v18  ;;  %v2113_v53 = vsel %vm814_vm3, %v2108_v1, %v2112_v40 }
 0x28a   :  { %v2353_v48 = vpack.c.bf16 %v2295_v9, %v2293_v39  ;;  %v9677_v3 = vadd.f32 %v2113_v53, %v1971_v36  ;;  %3066 = vmatpush.bf16.msrb.mxu1 %v7496_v7  ;;  %v1575_v39 = vsel %vm1548_vm5, %v1572_v29, %v1574_v61  ;;  %v12712_v53 = vld [vmem:[#allocation60_spill] sm:$0xff] }
 0x28b   :  { %v1976_v42 = vmax.f32 %v1912_v22, 0.0  ;;  %v1911_v11 = vadd.f32 %v9579_v58, %v1841_v17 }
 0x28c   :  { %2536 = vmatmul.bf16.gmra.mxu2 %v2353_v48 }
 0x28d   :  { %v2118_v16 = vrot.slane %v1976_v42, 1  ;;  %v1975_v37 = vmax.f32 %v1911_v11, 0.0 }
 0x28e   :  { %v1416_v18 = vpop.f32.mrf.mxu3  ;;  %v1679_v1 = vpop.f32.mrf.mxu0 }
 0x28f   :  { %v2116_v51 = vrot.slane %v1975_v37, 1  ;;  %v1494_v36 = vadd.f32 %v1416_v18, %v9256_v60  ;;  %v1844_v30 = vadd.f32 %v1679_v1, %v1495_v56  ;;  %v1768_v54 = vpop.f32.mrf.mxu1  ;;  %v2119_v59 = vsel %vm814_vm3, %v2114_v43, %v2118_v16  ;;  %v12710_v60 = vld [vmem:[#allocation57_spill] sm:$0xff]  ;;  %v12711_v43 = vld [vmem:[#allocation58_spill] sm:$0xff]  ;;  %v9700_v7 = vpop.f32.mrf.mxu2 }
 0x290   :  { %v2297_v32 = vadd.f32 %v2119_v59, %v1974_v41  ;;  %v1576_v59 = vrot.slane %v8534_v10, 2 }
 0x291   :  { %v2117_v9 = vsel %vm814_vm3, %v2112_v40, %v2116_v51  ;;  %v1914_v57 = vadd.f32 %v9569_v45, %v1844_v30  ;;  %v1843_v49 = vadd.f32 %v1765_v47, %v1494_v36  ;;  %7370 = vmatmul.msk.bf16.gmra.mxu0 %vm351_vm0, %v1575_v39  ;;  %v1497_v40 = vadd.f32 %v9450_v20, %v12711_v43 }
 0x292   :  { %7386 = vmatmul.msk.bf16.gmra.mxu1 %vm351_vm0, %v1575_v39  ;;  %v9691_v14 = vadd.f32 %v2117_v9, %v1973_v28 }
 0x293   :  { %v1978_v29 = vmax.f32 %v1914_v57, 0.0  ;;  %v1913_v15 = vadd.f32 %v9579_v58, %v1843_v49  ;;  %7334 = vmatmul.msk.bf16.gmra.mxu3 %vm351_vm0, %v12710_v60 }
 0x294   :  { %v2354_v41 = vpack.c.bf16 %v9691_v14, %v9677_v3 }
 0x295   :  { %v2122_v27 = vrot.slane %v1978_v29, 1  ;;  %v1977_v47 = vmax.f32 %v1913_v15, 0.0  ;;  %v1499_v15 = vadd.f32 %v9469_v13, %v9289_v50 }
 0x296   :  { %v1419_v22 = vpop.f32.mrf.mxu3  ;;  %v1681_v17 = vpop.f32.mrf.mxu0 }
 0x297   :  { %v2120_v28 = vrot.slane %v1977_v47, 1  ;;  %v1496_v48 = vadd.f32 %v1419_v22, %v12712_v53  ;;  %v1846_v11 = vadd.f32 %v1681_v17, %v1497_v40  ;;  %v2123_v56 = vsel %vm814_vm3, %v2118_v16, %v2122_v27  ;;  %v1770_v18 = vpop.f32.mrf.mxu1  ;;  %v9715_v17 = vpop.f32.mrf.mxu2 }
 0x298   :  { %v2299_v1 = vadd.f32 %v2123_v56, %v1976_v42 }
 0x299   :  { %v1916_v39 = vadd.f32 %v9569_v45, %v1846_v11  ;;  %v1845_v36 = vadd.f32 %v1768_v54, %v1496_v48  ;;  %v2121_v30 = vsel %vm814_vm3, %v2116_v51, %v2120_v28  ;;  %v1577_v54 = vsel %vm1548_vm5, %v1574_v61, %v1576_v59  ;;  %v12713_v11 = vld [vmem:[#allocation59_spill] sm:$0xff] }
 0x29a   :  { %v2355_v20 = vpack.c.bf16 %v2299_v1, %v2297_v32  ;;  %v9707_v9 = vadd.f32 %v2121_v30, %v1975_v37 }
 0x29b   :  { %v1980_v57 = vmax.f32 %v1916_v39, 0.0  ;;  %v1915_v49 = vadd.f32 %v9579_v58, %v1845_v36 }
 0x29c   :  { %2541 = vmatmul.bf16.gmra.mxu2 %v2355_v20 }
 0x29d   :  { %v2126_v16 = vrot.slane %v1980_v57, 1  ;;  %v1979_v60 = vmax.f32 %v1915_v49, 0.0 }
 0x29e   :  { %v1421_v42 = vpop.f32.mrf.mxu3  ;;  %v1684_v43 = vpop.f32.mrf.mxu0 }
 0x29f   :  { %v2124_v40 = vrot.slane %v1979_v60, 1  ;;  %v1498_v51 = vadd.f32 %v1421_v42, %v9295_v2  ;;  %v1848_v32 = vadd.f32 %v1684_v43, %v1499_v15  ;;  %v1773_v10 = vpop.f32.mrf.mxu1  ;;  %v2127_v37 = vsel %vm814_vm3, %v2122_v27, %v2126_v16 }
 0x2a0   :  { %v2301_v22 = vadd.f32 %v2127_v37, %v1978_v29  ;;  %v1501_v27 = vadd.f32 %v9480_v8, %v9303_v46  ;;  %v1578_v46 = vrot.slane %v8574_v33, 2 }
 0x2a1   :  { %v2125_v53 = vsel %vm814_vm3, %v2120_v28, %v2124_v40  ;;  %v1918_v50 = vadd.f32 %v9569_v45, %v1848_v32  ;;  %v1847_v13 = vadd.f32 %v1770_v18, %v1498_v51  ;;  %7371 = vmatmul.msk.bf16.gmra.mxu0 %vm351_vm0, %v1577_v54  ;;  %v9737_v51 = vpop.f32.mrf.mxu2 }
 0x2a2   :  { %7387 = vmatmul.msk.bf16.gmra.mxu1 %vm351_vm0, %v1577_v54  ;;  %v9721_v61 = vadd.f32 %v2125_v53, %v1977_v47 }
 0x2a3   :  { %v1982_v48 = vmax.f32 %v1918_v50, 0.0  ;;  %v1917_v2 = vadd.f32 %v9579_v58, %v1847_v13  ;;  %7335 = vmatmul.msk.bf16.gmra.mxu3 %vm351_vm0, %v12713_v11 }
 0x2a4   :  { %v2356_v29 = vpack.c.bf16 %v9721_v61, %v9707_v9 }
 0x2a5   :  { %v2130_v28 = vrot.slane %v1982_v48, 1  ;;  %v1981_v56 = vmax.f32 %v1917_v2, 0.0 }
 0x2a6   :  { %v1424_v18 = vpop.f32.mrf.mxu3  ;;  %v1686_v1 = vpop.f32.mrf.mxu0 }
 0x2a7   :  { %v2128_v39 = vrot.slane %v1981_v56, 1  ;;  %v1500_v47 = vadd.f32 %v1424_v18, %v9308_v6  ;;  %v1850_v36 = vadd.f32 %v1686_v1, %v1501_v27  ;;  %v2131_v30 = vsel %vm814_vm3, %v2126_v16, %v2130_v28  ;;  %v1775_v20 = vpop.f32.mrf.mxu1 }
 0x2a8   :  { %v2303_v49 = vadd.f32 %v2131_v30, %v1980_v57  ;;  %v1503_v16 = vadd.f32 %v9496_v62, %v9316_v55 }
 0x2a9   :  { %v1920_v15 = vadd.f32 %v9569_v45, %v1850_v36  ;;  %v1849_v42 = vadd.f32 %v1773_v10, %v1500_v47  ;;  %v2129_v43 = vsel %vm814_vm3, %v2124_v40, %v2128_v39  ;;  %v1579_v40 = vsel %vm1548_vm5, %v1576_v59, %v1578_v46 }
 0x2aa   :  { %v2357_v54 = vpack.c.bf16 %v2303_v49, %v2301_v22  ;;  %v9735_v8 = vadd.f32 %v2129_v43, %v1979_v60  ;;  %v8251_v43 = vld [vmem:[%s12462_s4 + $0x8c] sm:$0xf] }
 0x2ab   :  { %v1984_v32 = vmax.f32 %v1920_v15, 0.0  ;;  %v1919_v6 = vadd.f32 %v9579_v58, %v1849_v42 }
 0x2ac   :  { %2546 = vmatmul.bf16.gmra.mxu2 %v2357_v54 }
 0x2ad   :  { %v2134_v57 = vrot.slane %v1984_v32, 1  ;;  %v1983_v37 = vmax.f32 %v1919_v6, 0.0 }
 0x2ae   :  { %v1426_v53 = vpop.f32.mrf.mxu3  ;;  %v1689_v10 = vpop.f32.mrf.mxu0 }
 0x2af   :  { %v2132_v22 = vrot.slane %v1983_v37, 1  ;;  %v1502_v33 = vadd.f32 %v1426_v53, %v9321_v25  ;;  %v1852_v60 = vadd.f32 %v1689_v10, %v1503_v16  ;;  %v1778_v50 = vpop.f32.mrf.mxu1  ;;  %v2135_v13 = vsel %vm814_vm3, %v2130_v28, %v2134_v57  ;;  %v9758_v28 = vpop.f32.mrf.mxu2 }
 0x2b0   :  { %v2305_v2 = vadd.f32 %v2135_v13, %v1982_v48  ;;  %v1505_v48 = vadd.f32 %v9511_v24, %v9337_v4  ;;  %v8252_v4 = vld [vmem:[%s12462_s4 + $0x8c] sm:$0xf0] }
 0x2b1   :  { %v2133_v11 = vsel %vm814_vm3, %v2128_v39, %v2132_v22  ;;  %v1922_v27 = vadd.f32 %v9569_v45, %v1852_v60  ;;  %v1851_v18 = vadd.f32 %v1775_v20, %v1502_v33  ;;  %7372 = vmatmul.msk.bf16.gmra.mxu0 %vm351_vm0, %v1579_v40  ;;  %v1507_v33 = vadd.f32 %v9528_v26, %v9351_v44 }
 0x2b2   :  { %7388 = vmatmul.msk.bf16.gmra.mxu1 %vm351_vm0, %v1579_v40  ;;  %v9749_v55 = vadd.f32 %v2133_v11, %v1981_v56 }
 0x2b3   :  { %v1986_v62 = vmax.f32 %v1922_v27, 0.0  ;;  %v1921_v59 = vadd.f32 %v9579_v58, %v1851_v18  ;;  %7336 = vmatmul.msk.bf16.gmra.mxu3 %vm351_vm0, %v9306_v12  ;;  %v7483_v12 = vld [vmem:[%s12462_s4 + $0x88] sm:$0xf] }
 0x2b4   :  { %v2358_v25 = vpack.c.bf16 %v9749_v55, %v9735_v8  ;;  %v7484_v42 = vor.u32 %v8252_v4, %v7483_v12  ;;  %v12716_v4 = vld [vmem:[#allocation62_spill] sm:$0xff] }
 0x2b5   :  { %v2138_v1 = vrot.slane %v1986_v62, 1  ;;  %v1985_v39 = vmax.f32 %v1921_v59, 0.0 }
 0x2b6   :  { %v1429_v47 = vpop.f32.mrf.mxu3  ;;  %v1691_v36 = vpop.f32.mrf.mxu0  ;;  %2978 = vmatpush.bf16.msrb.mxu0 %v7484_v42 }
 0x2b7   :  { %v2136_v56 = vrot.slane %v1985_v39, 1  ;;  %v1504_v30 = vadd.f32 %v1429_v47, %v9343_v23  ;;  %v1854_v20 = vadd.f32 %v1691_v36, %v1505_v48  ;;  %v2139_v49 = vsel %vm814_vm3, %v2134_v57, %v2138_v1  ;;  %v1780_v15 = vpop.f32.mrf.mxu1  ;;  %v7485_v23 = vld [vmem:[%s12462_s4 + $0x90] sm:$0xf0] }
 0x2b8   :  { %v2307_v24 = vadd.f32 %v2139_v49, %v1984_v32  ;;  %v7488_v16 = vor.u32 %v8251_v43, %v7485_v23 }
 0x2b9   :  { %v1924_v54 = vadd.f32 %v9569_v45, %v1854_v20  ;;  %v1853_v6 = vadd.f32 %v1778_v50, %v1504_v30  ;;  %v2137_v57 = vsel %vm814_vm3, %v2132_v22, %v2136_v56  ;;  %v12714_v50 = vld [vmem:[#allocation61_spill] sm:$0xff]  ;;  %v9783_v22 = vpop.f32.mrf.mxu2 }
 0x2ba   :  { %v2359_v53 = vpack.c.bf16 %v2307_v24, %v2305_v2  ;;  %v9776_v10 = vadd.f32 %v2137_v57, %v1983_v37  ;;  %3067 = vmatpush.bf16.msrb.mxu1 %v7488_v16  ;;  %v1581_v18 = vsel %vm1548_vm5, %v1578_v46, %v12714_v50  ;;  %v12715_v37 = vld [vmem:[#allocation63_spill] sm:$0xff] }
 0x2bb   :  { %v1988_v32 = vmax.f32 %v1924_v54, 0.0  ;;  %v1923_v40 = vadd.f32 %v9579_v58, %v1853_v6  ;;  %v12719_v6 = vld [vmem:[#allocation65_spill] sm:$0xff] }
 0x2bc   :  { %2551 = vmatmul.bf16.gmra.mxu2 %v2359_v53 }
 0x2bd   :  { %v2142_v60 = vrot.slane %v1988_v32, 1  ;;  %v1987_v13 = vmax.f32 %v1923_v40, 0.0 }
 0x2be   :  { %v1431_v11 = vpop.f32.mrf.mxu3  ;;  %v1694_v27 = vpop.f32.mrf.mxu0 }
 0x2bf   :  { %v2140_v2 = vrot.slane %v1987_v13, 1  ;;  %v1506_v59 = vadd.f32 %v1431_v11, %v12715_v37  ;;  %v1856_v48 = vadd.f32 %v1694_v27, %v1507_v33  ;;  %v1783_v47 = vpop.f32.mrf.mxu1  ;;  %v2143_v36 = vsel %vm814_vm3, %v2138_v1, %v2142_v60  ;;  %v12717_v1 = vld [vmem:[#allocation64_spill] sm:$0xff] }
 0x2c0   :  { %v2309_v30 = vadd.f32 %v2143_v36, %v1986_v62 }
 0x2c1   :  { %v2141_v20 = vsel %vm814_vm3, %v2136_v56, %v2140_v2  ;;  %v1926_v44 = vadd.f32 %v9569_v45, %v1856_v48  ;;  %v1855_v26 = vadd.f32 %v1780_v15, %v1506_v59  ;;  %7373 = vmatmul.msk.bf16.gmra.mxu0 %vm351_vm0, %v1581_v18  ;;  %v12718_v56 = vld [vmem:[#allocation35_spill] sm:$0xff]  ;;  %v9802_v33 = vpop.f32.mrf.mxu2 }
 0x2c2   :  { %7389 = vmatmul.msk.bf16.gmra.mxu1 %vm351_vm0, %v1581_v18  ;;  %v9791_v46 = vadd.f32 %v2141_v20, %v1985_v39  ;;  %v1509_v24 = vadd.f32 %v12718_v56, %v12717_v1  ;;  %v12720_v20 = vld [vmem:[#allocation66_spill] sm:$0xff]  ;;  %v12722_v56 = vld [vmem:[#allocation67_spill] sm:$0xff] }
 0x2c3   :  { %v1990_v49 = vmax.f32 %v1926_v44, 0.0  ;;  %v1925_v12 = vadd.f32 %v9579_v58, %v1855_v26  ;;  %7337 = vmatmul.msk.bf16.gmra.mxu3 %vm351_vm0, %v12716_v4  ;;  %v12721_v44 = vld [vmem:[#allocation12_spill] sm:$0xff] }
 0x2c4   :  { %v2360_v62 = vpack.c.bf16 %v9791_v46, %v9776_v10  ;;  %v1511_v26 = vadd.f32 %v12721_v44, %v12720_v20 }
 0x2c5   :  { %v2146_v42 = vrot.slane %v1990_v49, 1  ;;  %v1989_v15 = vmax.f32 %v1925_v12, 0.0 }
 0x2c6   :  { %v1434_v43 = vpop.f32.mrf.mxu3  ;;  %v1696_v23 = vpop.f32.mrf.mxu0 }
 0x2c7   :  { %v2144_v54 = vrot.slane %v1989_v15, 1  ;;  %v1508_v39 = vadd.f32 %v1434_v43, %v12719_v6  ;;  %v1858_v16 = vadd.f32 %v1696_v23, %v1509_v24  ;;  %v2147_v57 = vsel %vm814_vm3, %v2142_v60, %v2146_v42  ;;  %v1785_v53 = vpop.f32.mrf.mxu1 }
 0x2c8   :  { %v2311_v40 = vadd.f32 %v2147_v57, %v1988_v32 }
 0x2c9   :  { %v1928_v11 = vadd.f32 %v9569_v45, %v1858_v16  ;;  %v1857_v27 = vadd.f32 %v1783_v47, %v1508_v39  ;;  %v2145_v18 = vsel %vm814_vm3, %v2140_v2, %v2144_v54  ;;  %v9817_v16 = vpop.f32.mrf.mxu2 }
 0x2ca   :  { %v2361_v37 = vpack.c.bf16 %v2311_v40, %v2309_v30  ;;  %v9806_v59 = vadd.f32 %v2145_v18, %v1987_v13 }
 0x2cb   :  { %v1992_v48 = vmax.f32 %v1928_v11, 0.0  ;;  %v1927_v36 = vadd.f32 %v9579_v58, %v1857_v27 }
 0x2cc   :  { %2556 = vmatmul.bf16.gmra.mxu2 %v2361_v37 }
 0x2cd   :  { %v2150_v60 = vrot.slane %v1992_v48, 1  ;;  %v1991_v12 = vmax.f32 %v1927_v36, 0.0  ;;  %v12725_v36 = vld [vmem:[#allocation68_spill] sm:$0xff] }
 0x2ce   :  { %v1436_v32 = vpop.f32.mrf.mxu3  ;;  %v1699_v4 = vpop.f32.mrf.mxu0 }
 0x2cf   :  { %v2148_v1 = vrot.slane %v1991_v12, 1  ;;  %v1510_v24 = vadd.f32 %v1436_v32, %v12722_v56  ;;  %v1860_v47 = vadd.f32 %v1699_v4, %v1511_v26  ;;  %v1788_v43 = vpop.f32.mrf.mxu1  ;;  %v2151_v2 = vsel %vm814_vm3, %v2146_v42, %v2150_v60  ;;  %v12723_v42 = vld [vmem:[#allocation31_spill] sm:$0xff] }
 0x2d0   :  { %v2313_v13 = vadd.f32 %v2151_v2, %v1990_v49 }
 0x2d1   :  { %v2149_v30 = vsel %vm814_vm3, %v2144_v54, %v2148_v1  ;;  %v1930_v23 = vadd.f32 %v9569_v45, %v1860_v47  ;;  %v1859_v6 = vadd.f32 %v1785_v53, %v1510_v24  ;;  %v12724_v54 = vld [vmem:[#allocation20_spill] sm:$0xff] }
 0x2d2   :  { %v9815_v39 = vadd.f32 %v2149_v30, %v1989_v15  ;;  %v1513_v11 = vadd.f32 %v12724_v54, %v12723_v42  ;;  %v12726_v30 = vld [vmem:[#allocation2_spill] sm:$0xff] }
 0x2d3   :  { %v1994_v57 = vmax.f32 %v1930_v23, 0.0  ;;  %v1929_v40 = vadd.f32 %v9579_v58, %v1859_v6  ;;  %7430 = vmatmul.msk.bf16.vlgmr.msrb.gmra.mxu3 %vm2465_vm7, %v2350_v5  ;;  %v12727_v23 = vld [vmem:[#allocation8_spill] sm:$0xff] }
 0x2d4   :  { %v2362_v49 = vpack.c.bf16 %v9815_v39, %v9806_v59  ;;  %v1515_v6 = vadd.f32 %v12727_v23, %v12726_v30 }
 0x2d5   :  { %v2154_v27 = vrot.slane %v1994_v57, 1  ;;  %v1993_v53 = vmax.f32 %v1929_v40, 0.0  ;;  %v9837_v40 = vpop.f32.mrf.mxu2 }
 0x2d6   :  { %v1439_v15 = vpop.f32.mrf.mxu3  ;;  %v1701_v18 = vpop.f32.mrf.mxu0 }
 0x2d7   :  { %v2152_v37 = vrot.slane %v1993_v53, 1  ;;  %v1512_v20 = vadd.f32 %v1439_v15, %v12725_v36  ;;  %v1862_v44 = vadd.f32 %v1701_v18, %v1513_v11  ;;  %v2155_v26 = vsel %vm814_vm3, %v2150_v60, %v2154_v27  ;;  %v1790_v32 = vpop.f32.mrf.mxu1 }
 0x2d8   :  { %v2315_v21 = vadd.f32 %v2155_v26, %v1992_v48  ;;  %v7475_v26 = vld [vmem:[%s12462_s4 + $0x78] sm:$0xf] }
 0x2d9   :  { %v1932_v52 = vadd.f32 %v9569_v45, %v1862_v44  ;;  %v1861_v5 = vadd.f32 %v1788_v43, %v1512_v20  ;;  %v2153_v4 = vsel %vm814_vm3, %v2148_v1, %v2152_v37  ;;  %v12728_v43 = vld [vmem:[#allocation30_spill] sm:$0xff] }
 0x2da   :  { %v2363_v56 = vpack.c.bf16 %v2315_v21, %v2313_v13  ;;  %v9832_v24 = vadd.f32 %v2153_v4, %v1991_v12  ;;  %v8250_v21 = vld [vmem:[%s12462_s4 + $0x7c] sm:$0xf0] }
 0x2db   :  { %v1996_v47 = vmax.f32 %v1932_v52, 0.0  ;;  %v1931_v2 = vadd.f32 %v9579_v58, %v1861_v5  ;;  %v8249_v52 = vld [vmem:[%s12462_s4 + $0x7c] sm:$0xf]  ;;  %v7476_v5 = vor.u32 %v8250_v21, %v7475_v26 }
 0x2dc   :  { %2561 = vmatmul.bf16.gmra.mxu2 %v2363_v56 }
 0x2dd   :  { %v2158_v60 = vrot.slane %v1996_v47, 1  ;;  %v1995_v42 = vmax.f32 %v1931_v2, 0.0  ;;  %2979 = vmatpush.bf16.msrb.mxu0 %v7476_v5  ;;  %v12729_v2 = vld [vmem:[#allocation18_spill] sm:$0xff]  ;;  %v12731_v5 = vld [vmem:[#allocation37_spill] sm:$0xff] }
 0x2de   :  { %v1441_v48 = vpop.f32.mrf.mxu3  ;;  %v1704_v54 = vpop.f32.mrf.mxu0  ;;  %v1517_v30 = vadd.f32 %v9615_v0, %v12729_v2 }
 0x2df   :  { %v2156_v11 = vrot.slane %v1995_v42, 1  ;;  %v1514_v15 = vadd.f32 %v1441_v48, %v12728_v43  ;;  %v1864_v1 = vadd.f32 %v1704_v54, %v1515_v6  ;;  %v1793_v13 = vpop.f32.mrf.mxu1  ;;  %v2159_v12 = vsel %vm814_vm3, %v2154_v27, %v2158_v60  ;;  %v9866_v54 = vpop.f32.mrf.mxu2 }
 0x2e0   :  { %v2317_v18 = vadd.f32 %v2159_v12, %v1994_v57  ;;  %v7477_v57 = vld [vmem:[%s12462_s4 + $0x80] sm:$0xf0] }
 0x2e1   :  { %v2157_v36 = vsel %vm814_vm3, %v2152_v37, %v2156_v11  ;;  %v1934_v20 = vadd.f32 %v9569_v45, %v1864_v1  ;;  %v1863_v44 = vadd.f32 %v1790_v32, %v1514_v15  ;;  %v7480_v4 = vor.u32 %v8249_v52, %v7477_v57  ;;  %v12730_v15 = vld [vmem:[#allocation34_spill] sm:$0xff] }
 0x2e2   :  { %v9855_v27 = vadd.f32 %v2157_v36, %v1993_v53  ;;  %v1519_v57 = vadd.f32 %v9634_v19, %v12731_v5 }
 0x2e3   :  { %v1998_v37 = vmax.f32 %v1934_v20, 0.0  ;;  %v1933_v32 = vadd.f32 %v9579_v58, %v1863_v44  ;;  %7431 = vmatmul.msk.bf16.gmra.mxu3 %vm2465_vm7, %v2352_v38  ;;  %3068 = vmatpush.bf16.msrb.mxu1 %v7480_v4 }
 0x2e4   :  { %v2364_v56 = vpack.c.bf16 %v9855_v27, %v9832_v24 }
 0x2e5   :  { %v2162_v23 = vrot.slane %v1998_v37, 1  ;;  %v1997_v6 = vmax.f32 %v1933_v32, 0.0 }
 0x2e6   :  { %v1444_v53 = vpop.f32.mrf.mxu3  ;;  %v1706_v48 = vpop.f32.mrf.mxu0 }
 0x2e7   :  { %v2160_v43 = vrot.slane %v1997_v6, 1  ;;  %v1516_v34 = vadd.f32 %v1444_v53, %v12730_v15  ;;  %v1866_v35 = vadd.f32 %v1706_v48, %v1517_v30  ;;  %v2163_v38 = vsel %vm814_vm3, %v2158_v60, %v2162_v23  ;;  %v1795_v1 = vpop.f32.mrf.mxu1  ;;  %v12732_v30 = vld [vmem:[#allocation3_spill] sm:$0xff] }
 0x2e8   :  { %v2319_v12 = vadd.f32 %v2163_v38, %v1996_v47 }
 0x2e9   :  { %v1936_v36 = vadd.f32 %v9569_v45, %v1866_v35  ;;  %v1865_v20 = vadd.f32 %v1793_v13, %v1516_v34  ;;  %v2161_v0 = vsel %vm814_vm3, %v2156_v11, %v2160_v43 }
 0x2ea   :  { %v2365_v44 = vpack.c.bf16 %v2319_v12, %v2317_v18  ;;  %v9872_v26 = vadd.f32 %v2161_v0, %v1995_v42 }
 0x2eb   :  { %v2000_v21 = vmax.f32 %v1936_v36, 0.0  ;;  %v1935_v52 = vadd.f32 %v9579_v58, %v1865_v20 }
 0x2ec   :  { %2566 = vmatmul.bf16.gmra.mxu2 %v2365_v44  ;;  %v12734_v44 = vld [vmem:[#allocation41_spill] sm:$0xff] }
 0x2ed   :  { %v2166_v32 = vrot.slane %v2000_v21, 1  ;;  %v1999_v4 = vmax.f32 %v1935_v52, 0.0 }
 0x2ee   :  { %v1446_v60 = vpop.f32.mrf.mxu3  ;;  %v1709_v2 = vpop.f32.mrf.mxu0 }
 0x2ef   :  { %v2164_v47 = vrot.slane %v1999_v4, 1  ;;  %v1518_v53 = vadd.f32 %v1446_v60, %v12732_v30  ;;  %v1868_v13 = vadd.f32 %v1709_v2, %v1519_v57  ;;  %v9878_v48 = vpop.f32.mrf.mxu2  ;;  %v1798_v11 = vpop.f32.mrf.mxu1  ;;  %v2167_v42 = vsel %vm814_vm3, %v2162_v23, %v2166_v32  ;;  %v12733_v23 = vld [vmem:[#allocation36_spill] sm:$0xff] }
 0x2f0   :  { %v2321_v18 = vadd.f32 %v2167_v42, %v1998_v37  ;;  %v1521_v37 = vadd.f32 %v9652_v63, %v12733_v23 }
 0x2f1   :  { %v2165_v15 = vsel %vm814_vm3, %v2160_v43, %v2164_v47  ;;  %v1938_v34 = vadd.f32 %v9569_v45, %v1868_v13  ;;  %v1867_v35 = vadd.f32 %v1795_v1, %v1518_v53 }
 0x2f2   :  { %v9883_v19 = vadd.f32 %v2165_v15, %v1997_v6 }
 0x2f3   :  { %v2002_v38 = vmax.f32 %v1938_v34, 0.0  ;;  %v1937_v12 = vadd.f32 %v9579_v58, %v1867_v35  ;;  %7432 = vmatmul.msk.bf16.gmra.mxu3 %vm2465_vm7, %v2354_v41  ;;  %v2818_v41 = vld [vmem:[%s12462_s4 + $0x50] sm:$0x33] }
 0x2f4   :  { %v2366_v36 = vpack.c.bf16 %v9883_v19, %v9872_v26  ;;  %v3183_v2 = vunpack.c.l.b16 %v2818_v41  ;;  %v3184_v63 = vunpack.c.h.b16 %v2818_v41  ;;  %v7611_v26 = vld [vmem:[%s12462_s4 + $0x100] sm:$0x33] }
 0x2f5   :  { %v2170_v43 = vrot.slane %v2002_v38, 1  ;;  %v2001_v20 = vmax.f32 %v1937_v12, 0.0  ;;  %v3514_v19 = vunpack.c.l.b16 %v7611_v26 }
 0x2f6   :  { %v1449_v0 = vpop.f32.mrf.mxu3  ;;  %v1711_v1 = vpop.f32.mrf.mxu0  ;;  %v3195_v15 = vpack.c.b16 %v3183_v2, %v3183_v2  ;;  %v3196_v34 = vpack.c.b16 %v3184_v63, %v3184_v63 }
 0x2f7   :  { %v2168_v6 = vrot.slane %v2001_v20, 1  ;;  %v1520_v52 = vadd.f32 %v1449_v0, %v12734_v44  ;;  %v1870_v5 = vadd.f32 %v1711_v1, %v1521_v37  ;;  %v9895_v57 = vpop.f32.mrf.mxu2  ;;  %v2171_v3 = vsel %vm814_vm3, %v2166_v32, %v2170_v43  ;;  %v1800_v14 = vpop.f32.mrf.mxu1  ;;  %v12735_v37 = vld [vmem:[#allocation21_spill] sm:$0xff] }
 0x2f8   :  { %v2323_v60 = vadd.f32 %v2171_v3, %v2000_v21  ;;  %v3256_v23 = vsel %vm2967_vm6, %v3195_v15, 0  ;;  %v3259_v21 = vsel %vm2967_vm6, %v3196_v34, 0  ;;  %v1523_v0 = vadd.f32 %v9682_v31, %v12735_v37 }
 0x2f9   :  { %v1940_v30 = vadd.f32 %v9569_v45, %v1870_v5  ;;  %v1869_v53 = vadd.f32 %v1798_v11, %v1520_v52  ;;  %v2169_v13 = vsel %vm814_vm3, %v2164_v47, %v2168_v6  ;;  %3263 = vmatpush.bf16.msrb.mxu2 %v3256_v23  ;;  %3352 = vmatpush.bf16.msra.mxu3 %v3259_v21  ;;  %v12738_v23 = vld [vmem:[#allocation43_spill] sm:$0xff] }
 0x2fa   :  { %v2367_v42 = vpack.c.bf16 %v2323_v60, %v2321_v18  ;;  %v9903_v35 = vadd.f32 %v2169_v13, %v1999_v4  ;;  %v12736_v4 = vld [vmem:[#allocation40_spill] sm:$0xff] }
 0x2fb   :  { %v2004_v12 = vmax.f32 %v1940_v30, 0.0  ;;  %v1939_v32 = vadd.f32 %v9579_v58, %v1869_v53 }
 0x2fc   :  { %2571 = vmatmul.bf16.gmra.mxu2 %v2367_v42 }
 0x2fd   :  { %v2174_v1 = vrot.slane %v2004_v12, 1  ;;  %v2003_v11 = vmax.f32 %v1939_v32, 0.0 }
 0x2fe   :  { %v1451_v47 = vpop.f32.mrf.mxu3  ;;  %v1714_v18 = vpop.f32.mrf.mxu0 }
 0x2ff   :  { %v2172_v44 = vrot.slane %v2003_v11, 1  ;;  %v1522_v52 = vadd.f32 %v1451_v47, %v12736_v4  ;;  %v1872_v5 = vadd.f32 %v1714_v18, %v1523_v0  ;;  %v9911_v3 = vpop.f32.mrf.mxu2  ;;  %v1803_v41 = vpop.f32.mrf.mxu1  ;;  %v2175_v60 = vsel %vm814_vm3, %v2170_v43, %v2174_v1  ;;  %v12737_v43 = vld [vmem:[#allocation4_spill] sm:$0xff]  ;;  %v8247_v4 = vld [vmem:[%s12462_s4 + $0x6c] sm:$0xf] }
 0x300   :  { %v2325_v2 = vadd.f32 %v2175_v60, %v2002_v38  ;;  %v1525_v38 = vadd.f32 %v9700_v7, %v12737_v43  ;;  %v8248_v7 = vld [vmem:[%s12462_s4 + $0x6c] sm:$0xf0]  ;;  %v12739_v43 = vld [vmem:[#allocation47_spill] sm:$0xff] }
 0x301   :  { %v2173_v63 = vsel %vm814_vm3, %v2168_v6, %v2172_v44  ;;  %v1942_v31 = vadd.f32 %v9569_v45, %v1872_v5  ;;  %v1871_v30 = vadd.f32 %v1800_v14, %v1522_v52  ;;  %v7469_v52 = vld [vmem:[%s12462_s4 + $0x70] sm:$0xf0] }
 0x302   :  { %v9916_v53 = vadd.f32 %v2173_v63, %v2001_v20  ;;  %v7472_v60 = vor.u32 %v8247_v4, %v7469_v52 }
 0x303   :  { %v2006_v13 = vmax.f32 %v1942_v31, 0.0  ;;  %v1941_v42 = vadd.f32 %v9579_v58, %v1871_v30  ;;  %7433 = vmatmul.msk.bf16.gmra.mxu3 %vm2465_vm7, %v2356_v29  ;;  %v7467_v29 = vld [vmem:[%s12462_s4 + $0x68] sm:$0xf] }
 0x304   :  { %v2368_v15 = vpack.c.bf16 %v9916_v53, %v9903_v35  ;;  %v7468_v18 = vor.u32 %v8248_v7, %v7467_v29  ;;  %3069 = vmatpush.bf16.msrb.mxu1 %v7472_v60 }
 0x305   :  { %v2178_v6 = vrot.slane %v2006_v13, 1  ;;  %v2005_v34 = vmax.f32 %v1941_v42, 0.0 }
 0x306   :  { %v1454_v32 = vpop.f32.mrf.mxu3  ;;  %v1716_v14 = vpop.f32.mrf.mxu0  ;;  %2980 = vmatpush.bf16.msrb.mxu0 %v7468_v18 }
 0x307   :  { %v2176_v20 = vrot.slane %v2005_v34, 1  ;;  %v1524_v21 = vadd.f32 %v1454_v32, %v12738_v23  ;;  %v1874_v37 = vadd.f32 %v1716_v14, %v1525_v38  ;;  %v9928_v0 = vpop.f32.mrf.mxu2  ;;  %v2179_v9 = vsel %vm814_vm3, %v2174_v1, %v2178_v6  ;;  %v1805_v61 = vpop.f32.mrf.mxu1 }
 0x308   :  { %v2327_v47 = vadd.f32 %v2179_v9, %v2004_v12  ;;  %v1527_v38 = vadd.f32 %v9715_v17, %v12739_v43 }
 0x309   :  { %v1944_v1 = vadd.f32 %v9569_v45, %v1874_v37  ;;  %v1873_v5 = vadd.f32 %v1803_v41, %v1524_v21  ;;  %v2177_v63 = vsel %vm814_vm3, %v2172_v44, %v2176_v20  ;;  %v12740_v21 = vld [vmem:[#allocation24_spill] sm:$0xff] }
 0x30a   :  { %v2369_v31 = vpack.c.bf16 %v2327_v47, %v2325_v2  ;;  %v9945_v30 = vadd.f32 %v2177_v63, %v2003_v11 }
 0x30b   :  { %v2008_v12 = vmax.f32 %v1944_v1, 0.0  ;;  %v1943_v42 = vadd.f32 %v9579_v58, %v1873_v5 }
 0x30c   :  { %2576 = vmatmul.bf16.gmra.mxu2 %v2369_v31  ;;  %v12742_v31 = vld [vmem:[#allocation50_spill] sm:$0xff] }
 0x30d   :  { %v2182_v32 = vrot.slane %v2008_v12, 1  ;;  %v2007_v14 = vmax.f32 %v1943_v42, 0.0 }
 0x30e   :  { %v1456_v23 = vpop.f32.mrf.mxu3  ;;  %v1719_v37 = vpop.f32.mrf.mxu0 }
 0x30f   :  { %v2180_v41 = vrot.slane %v2007_v14, 1  ;;  %v1526_v9 = vadd.f32 %v1456_v23, %v12740_v21  ;;  %v1876_v44 = vadd.f32 %v1719_v37, %v1527_v38  ;;  %v9951_v2 = vpop.f32.mrf.mxu2  ;;  %v1808_v11 = vpop.f32.mrf.mxu1  ;;  %v2183_v29 = vsel %vm814_vm3, %v2178_v6, %v2182_v32  ;;  %v12741_v6 = vld [vmem:[#allocation46_spill] sm:$0xff] }
 0x310   :  { %v2329_v7 = vadd.f32 %v2183_v29, %v2006_v13  ;;  %v1529_v13 = vadd.f32 %v9737_v51, %v12741_v6 }
 0x311   :  { %v2181_v47 = vsel %vm814_vm3, %v2176_v20, %v2180_v41  ;;  %v1946_v18 = vadd.f32 %v9569_v45, %v1876_v44  ;;  %v1875_v4 = vadd.f32 %v1805_v61, %v1526_v9 }
 0x312   :  { %v9956_v17 = vadd.f32 %v2181_v47, %v2005_v34  ;;  %v12743_v47 = vld [vmem:[#allocation6_spill] sm:$0xff] }
 0x313   :  { %v2010_v52 = vmax.f32 %v1946_v18, 0.0  ;;  %v1945_v1 = vadd.f32 %v9579_v58, %v1875_v4  ;;  %7434 = vmatmul.msk.bf16.gmra.mxu3 %vm2465_vm7, %v2358_v25  ;;  %v1531_v18 = vadd.f32 %v9758_v28, %v12743_v47 }
 0x314   :  { %v2370_v5 = vpack.c.bf16 %v9956_v17, %v9945_v30 }
 0x315   :  { %v2186_v20 = vrot.slane %v2010_v52, 1  ;;  %v2009_v60 = vmax.f32 %v1945_v1, 0.0 }
 0x316   :  { %v1459_v63 = vpop.f32.mrf.mxu3  ;;  %v1721_v61 = vpop.f32.mrf.mxu0 }
 0x317   :  { %v2184_v34 = vrot.slane %v2009_v60, 1  ;;  %v1528_v42 = vadd.f32 %v1459_v63, %v12742_v31  ;;  %v1878_v43 = vadd.f32 %v1721_v61, %v1529_v13  ;;  %v9968_v38 = vpop.f32.mrf.mxu2  ;;  %v2187_v8 = vsel %vm814_vm3, %v2182_v32, %v2186_v20  ;;  %v1810_v55 = vpop.f32.mrf.mxu1  ;;  %v12744_v13 = vld [vmem:[#allocation9_spill] sm:$0xff] }
 0x318   :  { %v2331_v25 = vadd.f32 %v2187_v8, %v2008_v12 }
 0x319   :  { %v1948_v23 = vadd.f32 %v9569_v45, %v1878_v43  ;;  %v1877_v37 = vadd.f32 %v1808_v11, %v1528_v42  ;;  %v2185_v21 = vsel %vm814_vm3, %v2180_v41, %v2184_v34 }
 0x31a   :  { %v2371_v51 = vpack.c.bf16 %v2331_v25, %v2329_v7  ;;  %v9973_v9 = vadd.f32 %v2185_v21, %v2007_v14 }
 0x31b   :  { %v2012_v44 = vmax.f32 %v1948_v23, 0.0  ;;  %v1947_v29 = vadd.f32 %v9579_v58, %v1877_v37 }
 0x31c   :  { %2581 = vmatmul.bf16.gmra.mxu2 %v2371_v51  ;;  %v12746_v51 = vld [vmem:[#allocation49_spill] sm:$0xff] }
 0x31d   :  { %v2190_v4 = vrot.slane %v2012_v44, 1  ;;  %v2011_v1 = vmax.f32 %v1947_v29, 0.0 }
 0x31e   :  { %v1461_v32 = vpop.f32.mrf.mxu3  ;;  %v1724_v6 = vpop.f32.mrf.mxu0 }
 0x31f   :  { %v2188_v12 = vrot.slane %v2011_v1, 1  ;;  %v1530_v63 = vadd.f32 %v1461_v32, %v12744_v13  ;;  %v1880_v11 = vadd.f32 %v1724_v6, %v1531_v18  ;;  %v9979_v61 = vpop.f32.mrf.mxu2  ;;  %v1813_v41 = vpop.f32.mrf.mxu1  ;;  %v2191_v14 = vsel %vm814_vm3, %v2186_v20, %v2190_v4  ;;  %v12745_v20 = vld [vmem:[#allocation29_spill] sm:$0xff]  ;;  %v8243_v13 = vld [vmem:[%s12462_s4 + $0x44] sm:$0xf] }
 0x320   :  { %v2333_v7 = vadd.f32 %v2191_v14, %v2010_v52  ;;  %v1533_v52 = vadd.f32 %v9783_v22, %v12745_v20  ;;  %v8244_v22 = vld [vmem:[%s12462_s4 + $0x44] sm:$0xf0] }
 0x321   :  { %v2189_v31 = vsel %vm814_vm3, %v2184_v34, %v2188_v12  ;;  %v1950_v42 = vadd.f32 %v9569_v45, %v1880_v11  ;;  %v1879_v43 = vadd.f32 %v1810_v55, %v1530_v63  ;;  %v7565_v63 = vld [vmem:[%s12462_s4 + $0x48] sm:$0xf0] }
 0x322   :  { %v9984_v28 = vadd.f32 %v2189_v31, %v2009_v60  ;;  %v7568_v14 = vor.u32 %v8243_v13, %v7565_v63  ;;  %v12747_v20 = vld [vmem:[#allocation27_spill] sm:$0xff] }
 0x323   :  { %v2014_v8 = vmax.f32 %v1950_v42, 0.0  ;;  %v1949_v25 = vadd.f32 %v9579_v58, %v1879_v43  ;;  %7435 = vmatmul.msk.bf16.gmra.mxu3 %vm2465_vm7, %v2360_v62  ;;  %v7563_v62 = vld [vmem:[%s12462_s4 + $0x40] sm:$0xf] }
 0x324   :  { %v2372_v23 = vpack.c.bf16 %v9984_v28, %v9973_v9  ;;  %v7564_v6 = vor.u32 %v8244_v22, %v7563_v62  ;;  %3353 = vmatpush.bf16.msra.mxu3 %v7568_v14  ;;  %v7648_v9 = vld [vmem:[%s12462_s4 + $0xf8] sm:$0xf0] }
 0x325   :  { %v2194_v34 = vrot.slane %v2014_v8, 1  ;;  %v2013_v37 = vmax.f32 %v1949_v25, 0.0 }
 0x326   :  { %v1464_v21 = vpop.f32.mrf.mxu3  ;;  %v1726_v55 = vpop.f32.mrf.mxu0  ;;  %3264 = vmatpush.bf16.msrb.mxu2 %v7564_v6 }
 0x327   :  { %v2192_v60 = vrot.slane %v2013_v37, 1  ;;  %v1532_v29 = vadd.f32 %v1464_v21, %v12746_v51  ;;  %v1882_v47 = vadd.f32 %v1726_v55, %v1533_v52  ;;  %v9996_v18 = vpop.f32.mrf.mxu2  ;;  %v2195_v10 = vsel %vm814_vm3, %v2190_v4, %v2194_v34  ;;  %v1815_v46 = vpop.f32.mrf.mxu1 }
 0x328   :  { %v2335_v32 = vadd.f32 %v2195_v10, %v2012_v44  ;;  %v1535_v52 = vadd.f32 %v9802_v33, %v12747_v20 }
 0x329   :  { %v1952_v4 = vadd.f32 %v9569_v45, %v1882_v47  ;;  %v1881_v11 = vadd.f32 %v1813_v41, %v1532_v29  ;;  %v2193_v31 = vsel %vm814_vm3, %v2188_v12, %v2192_v60  ;;  %v12748_v29 = vld [vmem:[#allocation10_spill] sm:$0xff] }
 0x32a   :  { %v2373_v42 = vpack.c.bf16 %v2335_v32, %v2333_v7  ;;  %v10013_v43 = vadd.f32 %v2193_v31, %v2011_v1 }
 0x32b   :  { %v2016_v44 = vmax.f32 %v1952_v4, 0.0  ;;  %v1951_v25 = vadd.f32 %v9579_v58, %v1881_v11  ;;  %v12749_v11 = vld [vmem:[#allocation33_spill] sm:$0xff] }
 0x32c   :  { %2586 = vmatmul.bf16.gmra.mxu2 %v2373_v42  ;;  %v12750_v42 = vld [vmem:[#allocation17_spill] sm:$0xff] }
 0x32d   :  { %v2198_v21 = vrot.slane %v2016_v44, 1  ;;  %v2015_v55 = vmax.f32 %v1951_v25, 0.0 }
 0x32e   :  { %v1466_v51 = vpop.f32.mrf.mxu3  ;;  %v1729_v47 = vpop.f32.mrf.mxu0 }
 0x32f   :  { %v2196_v41 = vrot.slane %v2015_v55, 1  ;;  %v1534_v10 = vadd.f32 %v1466_v51, %v12748_v29  ;;  %v1884_v12 = vadd.f32 %v1729_v47, %v1535_v52  ;;  %v10019_v7 = vpop.f32.mrf.mxu2  ;;  %v2199_v1 = vsel %vm814_vm3, %v2194_v34, %v2198_v21  ;;  %v1818_v62 = vpop.f32.mrf.mxu1 }
 0x330   :  { %v2337_v22 = vadd.f32 %v2199_v1, %v2014_v8  ;;  %v1537_v8 = vadd.f32 %v9817_v16, %v12749_v11 }
 0x331   :  { %v2197_v32 = vsel %vm814_vm3, %v2192_v60, %v2196_v41  ;;  %v1954_v6 = vadd.f32 %v9569_v45, %v1884_v12  ;;  %v1883_v13 = vadd.f32 %v1815_v46, %v1534_v10  ;;  %v7459_v10 = vld [vmem:[%s12462_s4 + $0x58] sm:$0xf]  ;;  %v8246_v12 = vld [vmem:[%s12462_s4 + $0x5c] sm:$0xf0] }
 0x332   :  { %v10024_v33 = vadd.f32 %v2197_v32, %v2013_v37 }
 0x333   :  { %v2018_v63 = vmax.f32 %v1954_v6, 0.0  ;;  %v1953_v4 = vadd.f32 %v9579_v58, %v1883_v13  ;;  %7436 = vmatmul.msk.bf16.gmra.mxu3 %vm2465_vm7, %v2362_v49  ;;  %v7555_v6 = vld [vmem:[%s12462_s4 + $0x30] sm:$0xf]  ;;  %v8242_v13 = vld [vmem:[%s12462_s4 + $0x34] sm:$0xf0] }
 0x334   :  { %v2374_v34 = vpack.c.bf16 %v10024_v33, %v10013_v43 }
 0x335   :  { %v2202_v60 = vrot.slane %v2018_v63, 1  ;;  %v2017_v14 = vmax.f32 %v1953_v4, 0.0 }
 0x336   :  { %v1469_v31 = vpop.f32.mrf.mxu3  ;;  %v1731_v46 = vpop.f32.mrf.mxu0 }
 0x337   :  { %v2200_v37 = vrot.slane %v2017_v14, 1  ;;  %v1536_v25 = vadd.f32 %v1469_v31, %v12750_v42  ;;  %v1886_v20 = vadd.f32 %v1731_v46, %v1537_v8  ;;  %v10036_v52 = vpop.f32.mrf.mxu2  ;;  %v2203_v59 = vsel %vm814_vm3, %v2198_v21, %v2202_v60  ;;  %v1820_v16 = vpop.f32.mrf.mxu1  ;;  %v8245_v21 = vld [vmem:[%s12462_s4 + $0x5c] sm:$0xf] }
 0x338   :  { %v2339_v39 = vadd.f32 %v2203_v59, %v2016_v44  ;;  %v7556_v31 = vor.u32 %v8242_v13, %v7555_v6 }
 0x339   :  { %v1956_v49 = vadd.f32 %v9569_v45, %v1886_v20  ;;  %v1885_v51 = vadd.f32 %v1818_v62, %v1536_v25  ;;  %v2201_v47 = vsel %vm814_vm3, %v2196_v41, %v2200_v37  ;;  %v7460_v41 = vor.u32 %v8246_v12, %v7459_v10  ;;  %v12752_v20 = vld [vmem:[#allocation11_spill] sm:$0xff] }
 0x33a   :  { %v2375_v29 = vpack.c.bf16 %v2339_v39, %v2337_v22  ;;  %v10050_v44 = vadd.f32 %v2201_v47, %v2015_v55  ;;  %v7461_v22 = vld [vmem:[%s12462_s4 + $0x60] sm:$0xf0]  ;;  %v12751_v55 = vld [vmem:[#allocation7_spill] sm:$0xff]  ;;  %3265 = vmatpush.bf16.msrb.mxu2 %v7556_v31  ;;  %v12754_v31 = vld [vmem:[#allocation32_spill] sm:$0xff] }
 0x33b   :  { %v2020_v1 = vmax.f32 %v1956_v49, 0.0  ;;  %v1955_v62 = vadd.f32 %v9579_v58, %v1885_v51  ;;  %v7464_v32 = vor.u32 %v8245_v21, %v7461_v22  ;;  %v1539_v4 = vadd.f32 %v9837_v40, %v12751_v55  ;;  %2981 = vmatpush.bf16.msrb.mxu0 %v7460_v41  ;;  %v7547_v40 = vld [vmem:[%s12462_s4 + $0x20] sm:$0xf] }
 0x33c   :  { %2591 = vmatmul.bf16.gmra.mxu2 %v2375_v29  ;;  %v8240_v29 = vld [vmem:[%s12462_s4 + $0x24] sm:$0xf0] }
 0x33d   :  { %v2206_v11 = vrot.slane %v2020_v1, 1  ;;  %v2019_v8 = vmax.f32 %v1955_v62, 0.0  ;;  %3070 = vmatpush.bf16.msrb.mxu1 %v7464_v32  ;;  %v7548_v62 = vor.u32 %v8240_v29, %v7547_v40  ;;  %v12753_v32 = vld [vmem:[#allocation19_spill] sm:$0xff] }
 0x33e   :  { %v1471_v46 = vpop.f32.mrf.mxu3  ;;  %v1734_v42 = vpop.f32.mrf.mxu0  ;;  %v1541_v6 = vadd.f32 %v9866_v54, %v12753_v32  ;;  %v8236_v54 = vld [vmem:[%s12462_s4 + $0x4] sm:$0xf0] }
 0x33f   :  { %v2204_v25 = vrot.slane %v2019_v8, 1  ;;  %v1538_v59 = vadd.f32 %v1471_v46, %v12752_v20  ;;  %v1888_v39 = vadd.f32 %v1734_v42, %v1539_v4  ;;  %v10065_v49 = vpop.f32.mrf.mxu2  ;;  %v2207_v51 = vsel %vm814_vm3, %v2202_v60, %v2206_v11  ;;  %3266 = vmatpush.bf16.msrb.mxu2 %v7548_v62 }
 0x340   :  { %v2341_v47 = vadd.f32 %v2207_v51, %v2018_v63  ;;  %v1823_v63 = vpop.f32.mrf.mxu1  ;;  %v7531_v51 = vld [vmem:[%s12462_s4] sm:$0xf] }
 0x341   :  { %v2205_v10 = vsel %vm814_vm3, %v2200_v37, %v2204_v25  ;;  %v1958_v12 = vadd.f32 %v9569_v45, %v1888_v39  ;;  %v1887_v21 = vadd.f32 %v1820_v16, %v1538_v59  ;;  %v7539_v37 = vld [vmem:[%s12462_s4 + $0x10] sm:$0xf]  ;;  %v8238_v16 = vld [vmem:[%s12462_s4 + $0x14] sm:$0xf0] }
 0x342   :  { %v10076_v41 = vadd.f32 %v2205_v10, %v2017_v14  ;;  %v7540_v27 = vor.u32 %v8238_v16, %v7539_v37  ;;  %v7532_v10 = vor.u32 %v8236_v54, %v7531_v51  ;;  %v8241_v16 = vld [vmem:[%s12462_s4 + $0x34] sm:$0xf] }
 0x343   :  { %v2022_v22 = vmax.f32 %v1958_v12, 0.0  ;;  %v1957_v60 = vadd.f32 %v9579_v58, %v1887_v21  ;;  %7437 = vmatmul.msk.bf16.gmra.mxu3 %vm2465_vm7, %v2364_v56 }
 0x344   :  { %v2376_v14 = vpack.c.bf16 %v10076_v41, %v10050_v44  ;;  %3267 = vmatpush.bf16.msrb.mxu2 %v7540_v27  ;;  %v12755_v27 = vld [vmem:[#allocation39_spill] sm:$0xff] }
 0x345   :  { %v2210_v13 = vrot.slane %v2022_v22, 1  ;;  %v2021_v24 = vmax.f32 %v1957_v60, 0.0  ;;  %v12518_v60 = vmov 0.0  }
 0x346   :  { %v1474_v56 = vpop.f32.mrf.mxu3  ;;  %v1736_v55 = vpop.f32.mrf.mxu0  ;;  %v2218_v37 = vrot.slane %v12518_v60, 1 }
 0x347   :  { %v2208_v4 = vrot.slane %v2021_v24, 1  ;;  %v1540_v46 = vadd.f32 %v1474_v56, %v12754_v31  ;;  %v1890_v42 = vadd.f32 %v1736_v55, %v1541_v6  ;;  %v10094_v20 = vpop.f32.mrf.mxu2  ;;  %v2211_v59 = vsel %vm814_vm3, %v2206_v11, %v2210_v13 }
 0x348   :  { %v2343_v39 = vadd.f32 %v2211_v59, %v2020_v1  ;;  %3268 = vmatpush.bf16.msrb.mxu2 %v7532_v10  ;;  %v1825_v32 = vpop.f32.mrf.mxu1 }
 0x349   :  { %v1960_v40 = vadd.f32 %v9569_v45, %v1890_v42  ;;  %v1889_v29 = vadd.f32 %v1823_v63, %v1540_v46  ;;  %v2209_v12 = vsel %vm814_vm3, %v2204_v25, %v2208_v4  ;;  %v7557_v45 = vld [vmem:[%s12462_s4 + $0x38] sm:$0xf0] }
 0x34a   :  { %v2377_v21 = vpack.c.bf16 %v2343_v39, %v2341_v47  ;;  %v10105_v62 = vadd.f32 %v2209_v12, %v2019_v8  ;;  %v7560_v25 = vor.u32 %v8241_v16, %v7557_v45  ;;  %v3526_v45 = vpack.c.b16 %v3514_v19, %v3514_v19 }
 0x34b   :  { %v2024_v11 = vmax.f32 %v1960_v40, 0.0  ;;  %v1959_v1 = vadd.f32 %v9579_v58, %v1889_v29 }
 0x34c   :  { %2596 = vmatmul.bf16.gmra.mxu2 %v2377_v21  ;;  %3354 = vmatpush.bf16.msra.mxu3 %v7560_v25 }
 0x34d   :  { %v2214_v47 = vrot.slane %v2024_v11, 1  ;;  %v2023_v8 = vmax.f32 %v1959_v1, 0.0 }
 0x34e   :  { %v1476_v63 = vpop.f32.mrf.mxu3 }
 0x34f   :  { %v2212_v6 = vrot.slane %v2023_v8, 1  ;;  %v1542_v56 = vadd.f32 %v1476_v63, %v12755_v27  ;;  %v10116_v55 = vpop.f32.mrf.mxu2  ;;  %v2215_v31 = vsel %vm814_vm3, %v2210_v13, %v2214_v47  ;;  %v2219_v46 = vsel %vm814_vm3, %v2214_v47, %v2218_v37 }
 0x350   :  { %v2345_v42 = vadd.f32 %v2215_v31, %v2022_v22  ;;  %v2347_v59 = vadd.f32 %v2219_v46, %v2024_v11  ;;  %v3587_v63 = vsel %vm2967_vm6, %v3526_v45, 0 }
 0x351   :  { %v2213_v39 = vsel %vm814_vm3, %v2208_v4, %v2212_v6  ;;  %v1891_v51 = vadd.f32 %v1825_v32, %v1542_v56  ;;  %3594 = vmatpush.bf16.msra.mxu0 %v3587_v63 }
 0x352   :  { %v2379_v54 = vpack.c.bf16 %v2347_v59, %v2345_v42  ;;  %v10121_v40 = vadd.f32 %v2213_v39, %v2021_v24 }
 0x353   :  { %v1961_v29 = vadd.f32 %v9579_v58, %v1891_v51  ;;  %7438 = vmatmul.msk.bf16.gmra.mxu3 %vm2465_vm7, %v2366_v36  ;;  %v3515_v36 = vunpack.c.h.b16 %v7611_v26 }
 0x354   :  { %v2378_v13 = vpack.c.bf16 %v10121_v40, %v10105_v62  ;;  %v7640_v62 = vld [vmem:[%s12462_s4 + $0xe8] sm:$0xf0] }
 0x355   :  { %v2025_v10 = vmax.f32 %v1961_v29, 0.0  ;;  %v3527_v25 = vpack.c.b16 %v3515_v36, %v3515_v36 }
 0x356   :  { %v2616_v12 = vpop.f32.mrf.mxu3 }
 0x357   :  { %v2216_v22 = vrot.slane %v2025_v10, 1  ;;  %v10130_v21 = vpop.f32.mrf.mxu2  ;;  %v3590_v32 = vsel %vm2967_vm6, %v3527_v25, 0 }
 0x358   :  { %3683 = vmatpush.bf16.msra.mxu1 %v3590_v32 }
 0x359   :  { %v2220_v4 = vsel %vm814_vm3, %v2216_v22, %v2218_v37  ;;  %v2217_v24 = vsel %vm814_vm3, %v2212_v6, %v2216_v22 }
 0x35a   :  { %v10134_v11 = vadd.f32 %v2220_v4, %v2025_v10  ;;  %v10136_v58 = vadd.f32 %v2217_v24, %v2023_v8  ;;  %v2617_v8 = vadd.f32 %v2616_v12, %v9878_v48 }
 0x35c   :  { %2601 = vmatmul.bf16.gmra.mxu2 %v2379_v54  ;;  %v2380_v1 = vpack.c.bf16 %v10134_v11, %v10136_v58  ;;  %v2696_v27 = vpack.c.bf16 %v2617_v8, %v2617_v8  ;;  %v8263_v8 = vld [vmem:[%s12462_s4 + $0xf4] sm:$0xf] }
 0x35e   :  { %v2618_v16 = vpop.f32.mrf.mxu3  ;;  %v2760_v46 = vunpack.c.l.b16 %v2696_v27 }
 0x35f   :  { %v2619_v37 = vadd.f32 %v2618_v16, %v9895_v57  ;;  %v10144_v47 = vpop.f32.mrf.mxu2 }
 0x361   :  { %v2697_v6 = vpack.c.bf16 %v2619_v37, %v2619_v37 }
 0x363   :  { %7439 = vmatmul.msk.bf16.gmra.mxu3 %vm2465_vm7, %v2368_v15  ;;  %v2761_v56 = vunpack.c.l.b16 %v2697_v6  ;;  %v7651_v6 = vor.u32 %v8263_v8, %v7648_v9 }
 0x365   :  { %v10155_v48 = vpack.c.b16 %v2761_v56, %v2760_v46  ;;  %3684 = vmatpush.bf16.msra.mxu1 %v7651_v6  ;;  %v8261_v6 = vld [vmem:[%s12462_s4 + $0xe4] sm:$0xf] }
 0x366   :  { %v2621_v31 = vpop.f32.mrf.mxu3 }
 0x367   :  { %v10153_v57 = vpop.f32.mrf.mxu2  ;;  %12756 = vst [vmem:[#allocation13_spill] sm:$0xff] %v10155_v48  ;;  %v2622_v42 = vadd.f32 %v2621_v31, %v9911_v3  ;;  %v8239_v3 = vld [vmem:[%s12462_s4 + $0x24] sm:$0xf]  ;;  %v2831_v4 = vrot.slane %v10155_v48, 1  ;;  %v3451_v60 = vrot.slane %v10155_v48, 2 }
 0x369   :  { %v2698_v39 = vpack.c.bf16 %v2622_v42, %v2622_v42 }
 0x36b   :  { %v2762_v51 = vunpack.c.l.b16 %v2698_v39 }
 0x36c   :  { %7569 = vmatmul.msk.bf16.vlgmr.msrb.gmra.mxu2 %vm2918_vm8, %v10155_v48 }
 0x36e   :  { %v2623_v59 = vpop.f32.mrf.mxu3 }
 0x36f   :  { %v2624_v35 = vadd.f32 %v2623_v59, %v9928_v0  ;;  %v10161_v53 = vpop.f32.mrf.mxu2  ;;  %v7549_v0 = vld [vmem:[%s12462_s4 + $0x28] sm:$0xf0] }
 0x370   :  { %v7552_v12 = vor.u32 %v8239_v3, %v7549_v0 }
 0x371   :  { %v2699_v15 = vpack.c.bf16 %v2624_v35, %v2624_v35 }
 0x372   :  { %3355 = vmatpush.bf16.msra.mxu3 %v7552_v12 }
 0x373   :  { %v2763_v54 = vunpack.c.l.b16 %v2699_v15  ;;  %7440 = vmatmul.msk.bf16.gmra.mxu3 %vm2465_vm7, %v2370_v5 }
 0x375   :  { %v10167_v29 = vpack.c.b16 %v2763_v54, %v2762_v51 }
 0x376   :  { %v2626_v10 = vpop.f32.mrf.mxu3 }
 0x377   :  { %12757 = vst [vmem:[#allocation42_spill] sm:$0xff] %v10167_v29  ;;  %v10175_v22 = vpop.f32.mrf.mxu2  ;;  %v2832_v30 = vrot.slane %v10167_v29, 1  ;;  %v2627_v5 = vadd.f32 %v2626_v10, %v9951_v2  ;;  %v7646_v2 = vld [vmem:[%s12462_s4 + $0xf0] sm:$0xf] }
 0x379   :  { %v2833_v17 = vsel %vm814_vm3, %v2831_v4, %v2832_v30  ;;  %v2700_v26 = vpack.c.bf16 %v2627_v5, %v2627_v5 }
 0x37a   :  { %7497 = vmatmul.msk.bf16.vlgmr.msrb.gmra.mxu0 %vm2918_vm8, %v2833_v17  ;;  %7513 = vmatmul.msk.bf16.vlgmr.msrb.gmra.mxu1 %vm2918_vm8, %v2833_v17 }
 0x37b   :  { %v2764_v45 = vunpack.c.l.b16 %v2700_v26 }
 0x37c   :  { %7570 = vmatmul.msk.bf16.gmra.mxu2 %vm2918_vm8, %v10167_v29 }
 0x37e   :  { %v2628_v24 = vpop.f32.mrf.mxu3 }
 0x37f   :  { %v2629_v19 = vadd.f32 %v2628_v24, %v9968_v38  ;;  %v10186_v36 = vpop.f32.mrf.mxu2  ;;  %v8264_v38 = vld [vmem:[%s12462_s4 + $0xf4] sm:$0xf0] }
 0x380   :  { %v7647_v32 = vor.u32 %v8264_v38, %v7646_v2 }
 0x381   :  { %v2701_v16 = vpack.c.bf16 %v2629_v19, %v2629_v19 }
 0x382   :  { %3595 = vmatpush.bf16.msra.mxu0 %v7647_v32 }
 0x383   :  { %v2765_v25 = vunpack.c.l.b16 %v2701_v16  ;;  %7441 = vmatmul.msk.bf16.gmra.mxu3 %vm2465_vm7, %v2372_v23  ;;  %v7533_v16 = vld [vmem:[%s12462_s4 + $0x8] sm:$0xf0] }
 0x385   :  { %v10192_v37 = vpack.c.b16 %v2765_v25, %v2764_v45 }
 0x386   :  { %v2631_v63 = vpop.f32.mrf.mxu3 }
 0x387   :  { %12758 = vst [vmem:[#allocation22_spill] sm:$0xff] %v10192_v37  ;;  %v10206_v28 = vpop.f32.mrf.mxu2  ;;  %v2834_v23 = vrot.slane %v10192_v37, 1  ;;  %v2632_v56 = vadd.f32 %v2631_v63, %v9979_v61 }
 0x389   :  { %v2835_v27 = vsel %vm814_vm3, %v2832_v30, %v2834_v23  ;;  %v2702_v46 = vpack.c.bf16 %v2632_v56, %v2632_v56 }
 0x38a   :  { %7498 = vmatmul.msk.bf16.gmra.mxu0 %vm2918_vm8, %v2835_v27  ;;  %7514 = vmatmul.msk.bf16.gmra.mxu1 %vm2918_vm8, %v2835_v27 }
 0x38b   :  { %v2766_v35 = vunpack.c.l.b16 %v2702_v46 }
 0x38c   :  { %7571 = vmatmul.msk.bf16.gmra.mxu2 %vm2918_vm8, %v10192_v37 }
 0x38e   :  { %v2633_v31 = vpop.f32.mrf.mxu3 }
 0x38f   :  { %v2634_v42 = vadd.f32 %v2633_v31, %v9996_v18  ;;  %v10216_v59 = vpop.f32.mrf.mxu2  ;;  %v7643_v31 = vor.u32 %v8261_v6, %v7640_v62 }
 0x391   :  { %v2703_v39 = vpack.c.bf16 %v2634_v42, %v2634_v42  ;;  %3685 = vmatpush.bf16.msra.mxu1 %v7643_v31 }
 0x393   :  { %v2767_v15 = vunpack.c.l.b16 %v2703_v39  ;;  %7442 = vmatmul.msk.bf16.gmra.mxu3 %vm2465_vm7, %v2374_v34 }
 0x395   :  { %v10222_v51 = vpack.c.b16 %v2767_v15, %v2766_v35 }
 0x396   :  { %v2636_v61 = vpop.f32.mrf.mxu3 }
 0x397   :  { %12759 = vst [vmem:[#allocation38_spill] sm:$0xff] %v10222_v51  ;;  %v10224_v54 = vpop.f32.mrf.mxu2  ;;  %v2836_v3 = vrot.slane %v10222_v51, 1  ;;  %v2637_v18 = vadd.f32 %v2636_v61, %v10019_v7  ;;  %v8237_v7 = vld [vmem:[%s12462_s4 + $0x14] sm:$0xf] }
 0x399   :  { %v2837_v0 = vsel %vm814_vm3, %v2834_v23, %v2836_v3  ;;  %v2704_v33 = vpack.c.bf16 %v2637_v18, %v2637_v18  ;;  %v7638_v23 = vld [vmem:[%s12462_s4 + $0xe0] sm:$0xf] }
 0x39a   :  { %7499 = vmatmul.msk.bf16.gmra.mxu0 %vm2918_vm8, %v2837_v0  ;;  %7515 = vmatmul.msk.bf16.gmra.mxu1 %vm2918_vm8, %v2837_v0 }
 0x39b   :  { %v2768_v4 = vunpack.c.l.b16 %v2704_v33 }
 0x39c   :  { %7572 = vmatmul.msk.bf16.gmra.mxu2 %vm2918_vm8, %v10222_v51 }
 0x39e   :  { %v2638_v43 = vpop.f32.mrf.mxu3 }
 0x39f   :  { %v2639_v34 = vadd.f32 %v2638_v43, %v10036_v52  ;;  %v10234_v10 = vpop.f32.mrf.mxu2  ;;  %v7541_v52 = vld [vmem:[%s12462_s4 + $0x18] sm:$0xf0] }
 0x3a0   :  { %v7544_v24 = vor.u32 %v8237_v7, %v7541_v52 }
 0x3a1   :  { %v2705_v12 = vpack.c.bf16 %v2639_v34, %v2639_v34 }
 0x3a2   :  { %3356 = vmatpush.bf16.msra.mxu3 %v7544_v24 }
 0x3a3   :  { %v2769_v30 = vunpack.c.l.b16 %v2705_v12  ;;  %7443 = vmatmul.msk.bf16.gmra.mxu3 %vm2465_vm7, %v2376_v14  ;;  %v8235_v14 = vld [vmem:[%s12462_s4 + $0x4] sm:$0xf] }
 0x3a4   :  { %v7536_v25 = vor.u32 %v8235_v14, %v7533_v16  ;;  %v8260_v14 = vld [vmem:[%s12462_s4 + $0xd4] sm:$0xf0]  ;;  %v8259_v16 = vld [vmem:[%s12462_s4 + $0xd4] sm:$0xf] }
 0x3a5   :  { %v10240_v17 = vpack.c.b16 %v2769_v30, %v2768_v4 }
 0x3a6   :  { %v2641_v5 = vpop.f32.mrf.mxu3  ;;  %3357 = vmatpush.bf16.msra.mxu3 %v7536_v25 }
 0x3a7   :  { %12760 = vst [vmem:[#allocation14_spill] sm:$0xff] %v10240_v17  ;;  %v10248_v26 = vpop.f32.mrf.mxu2  ;;  %v2838_v19 = vrot.slane %v10240_v17, 1  ;;  %v2642_v41 = vadd.f32 %v2641_v5, %v10065_v49 }
 0x3a9   :  { %v2839_v44 = vsel %vm814_vm3, %v2836_v3, %v2838_v19  ;;  %v2706_v2 = vpack.c.bf16 %v2642_v41, %v2642_v41  ;;  %v7630_v41 = vld [vmem:[%s12462_s4 + $0xd0] sm:$0xf] }
 0x3aa   :  { %7500 = vmatmul.msk.bf16.gmra.mxu0 %vm2918_vm8, %v2839_v44  ;;  %7516 = vmatmul.msk.bf16.gmra.mxu1 %vm2918_vm8, %v2839_v44 }
 0x3ab   :  { %v2770_v63 = vunpack.c.l.b16 %v2706_v2 }
 0x3ac   :  { %7573 = vmatmul.msk.bf16.gmra.mxu2 %vm2918_vm8, %v10240_v17 }
 0x3ae   :  { %v2643_v45 = vpop.f32.mrf.mxu3 }
 0x3af   :  { %v2644_v38 = vadd.f32 %v2643_v45, %v10094_v20  ;;  %v10264_v8 = vpop.f32.mrf.mxu2  ;;  %v8262_v20 = vld [vmem:[%s12462_s4 + $0xe4] sm:$0xf0]  ;;  %v7631_v45 = vor.u32 %v8260_v14, %v7630_v41 }
 0x3b0   :  { %v7639_v56 = vor.u32 %v8262_v20, %v7638_v23 }
 0x3b1   :  { %v2707_v49 = vpack.c.bf16 %v2644_v38, %v2644_v38 }
 0x3b2   :  { %3596 = vmatpush.bf16.msra.mxu0 %v7639_v56 }
 0x3b3   :  { %v2771_v32 = vunpack.c.l.b16 %v2707_v49  ;;  %7444 = vmatmul.msk.bf16.gmra.mxu3 %vm2465_vm7, %v2378_v13 }
 0x3b5   :  { %v10270_v9 = vpack.c.b16 %v2771_v32, %v2770_v63 }
 0x3b6   :  { %v2646_v27 = vpop.f32.mrf.mxu3  ;;  %3597 = vmatpush.bf16.msra.mxu0 %v7631_v45 }
 0x3b7   :  { %12761 = vst [vmem:[#allocation45_spill] sm:$0xff] %v10270_v9  ;;  %v10284_v40 = vpop.f32.mrf.mxu2  ;;  %v2840_v13 = vrot.slane %v10270_v9, 1  ;;  %v2647_v42 = vadd.f32 %v2646_v27, %v10116_v55 }
 0x3b9   :  { %v2841_v46 = vsel %vm814_vm3, %v2838_v19, %v2840_v13  ;;  %v2708_v35 = vpack.c.bf16 %v2647_v42, %v2647_v42 }
 0x3ba   :  { %7501 = vmatmul.msk.bf16.gmra.mxu0 %vm2918_vm8, %v2841_v46  ;;  %7517 = vmatmul.msk.bf16.gmra.mxu1 %vm2918_vm8, %v2841_v46 }
 0x3bb   :  { %v2772_v0 = vunpack.c.l.b16 %v2708_v35 }
 0x3bc   :  { %7574 = vmatmul.msk.bf16.gmra.mxu2 %vm2918_vm8, %v10270_v9 }
 0x3be   :  { %v2648_v39 = vpop.f32.mrf.mxu3 }
 0x3bf   :  { %v2649_v15 = vadd.f32 %v2648_v39, %v10130_v21  ;;  %v10294_v61 = vpop.f32.mrf.mxu2 }
 0x3c1   :  { %v2709_v3 = vpack.c.bf16 %v2649_v15, %v2649_v15 }
 0x3c3   :  { %v2773_v18 = vunpack.c.l.b16 %v2709_v3  ;;  %7445 = vmatmul.msk.bf16.gmra.mxu3 %vm2465_vm7, %v2380_v1 }
 0x3c5   :  { %v10300_v43 = vpack.c.b16 %v2773_v18, %v2772_v0 }
 0x3c6   :  { %v2651_v55 = vpop.f32.mrf.mxu3 }
 0x3c7   :  { %12762 = vst [vmem:[#allocation23_spill] sm:$0xff] %v10300_v43  ;;  %v10302_v33 = vpop.f32.mrf.mxu2  ;;  %v2842_v34 = vrot.slane %v10300_v43, 1  ;;  %v2652_v21 = vadd.f32 %v2651_v55, %v10144_v47 }
 0x3c9   :  { %v2843_v12 = vsel %vm814_vm3, %v2840_v13, %v2842_v34  ;;  %v2710_v58 = vpack.c.bf16 %v2652_v21, %v2652_v21 }
 0x3ca   :  { %7502 = vmatmul.msk.bf16.gmra.mxu0 %vm2918_vm8, %v2843_v12  ;;  %7518 = vmatmul.msk.bf16.gmra.mxu1 %vm2918_vm8, %v2843_v12 }
 0x3cb   :  { %v2774_v7 = vunpack.c.l.b16 %v2710_v58 }
 0x3cc   :  { %7575 = vmatmul.msk.bf16.gmra.mxu2 %vm2918_vm8, %v10300_v43 }
 0x3ce   :  { %v2653_v11 = vpop.f32.mrf.mxu3 }
 0x3cf   :  { %v2654_v1 = vadd.f32 %v2653_v11, %v10153_v57  ;;  %v10312_v4 = vpop.f32.mrf.mxu2 }
 0x3d1   :  { %v2711_v30 = vpack.c.bf16 %v2654_v1, %v2654_v1 }
 0x3d3   :  { %v2775_v52 = vunpack.c.l.b16 %v2711_v30  ;;  %7585 = vmatmul.msk.bf16.vlgmr.msra.gmra.mxu3 %vm2918_vm8, %v10155_v48 }
 0x3d5   :  { %v10316_v5 = vpack.c.b16 %v2775_v52, %v2774_v7 }
 0x3d6   :  { %v2656_v24 = vpop.f32.mrf.mxu3 }
 0x3d7   :  { %12763 = vst [vmem:[#allocation15_spill] sm:$0xff] %v10316_v5  ;;  %v10318_v19 = vpop.f32.mrf.mxu2  ;;  %v2844_v47 = vrot.slane %v10316_v5, 1  ;;  %v2657_v57 = vadd.f32 %v2656_v24, %v10161_v53  ;;  %v7632_v53 = vld [vmem:[%s12462_s4 + $0xd8] sm:$0xf0] }
 0x3d8   :  { %v7635_v25 = vor.u32 %v8259_v16, %v7632_v53 }
 0x3d9   :  { %v2845_v44 = vsel %vm814_vm3, %v2842_v34, %v2844_v47  ;;  %v2712_v38 = vpack.c.bf16 %v2657_v57, %v2657_v57 }
 0x3da   :  { %7503 = vmatmul.msk.bf16.gmra.mxu0 %vm2918_vm8, %v2845_v44  ;;  %7519 = vmatmul.msk.bf16.gmra.mxu1 %vm2918_vm8, %v2845_v44 }
 0x3db   :  { %3686 = vmatpush.bf16.msra.mxu1 %v7635_v25  ;;  %v2776_v23 = vunpack.c.l.b16 %v2712_v38 }
 0x3dc   :  { %7576 = vmatmul.msk.bf16.gmra.mxu2 %vm2918_vm8, %v10316_v5 }
 0x3de   :  { %v2658_v2 = vpop.f32.mrf.mxu3 }
 0x3df   :  { %v2659_v49 = vadd.f32 %v2658_v2, %v10175_v22  ;;  %v10340_v63 = vpop.f32.mrf.mxu2 }
 0x3e1   :  { %v2713_v32 = vpack.c.bf16 %v2659_v49, %v2659_v49  ;;  %v7622_v49 = vld [vmem:[%s12462_s4 + $0xc0] sm:$0xf] }
 0x3e3   :  { %v2777_v20 = vunpack.c.l.b16 %v2713_v32  ;;  %7586 = vmatmul.msk.bf16.gmra.mxu3 %vm2918_vm8, %v10167_v29  ;;  %v8257_v32 = vld [vmem:[%s12462_s4 + $0xc4] sm:$0xf] }
 0x3e5   :  { %v10344_v6 = vpack.c.b16 %v2777_v20, %v2776_v23 }
 0x3e6   :  { %v2661_v27 = vpop.f32.mrf.mxu3 }
 0x3e7   :  { %12764 = vst [vmem:[#allocation48_spill] sm:$0xff] %v10344_v6  ;;  %v10346_v56 = vpop.f32.mrf.mxu2  ;;  %v2846_v62 = vrot.slane %v10344_v6, 1  ;;  %v2662_v22 = vadd.f32 %v2661_v27, %v10186_v36  ;;  %v7694_v36 = vld [vmem:[%s12462_s4 + $0x158] sm:$0x33]  ;;  %v7624_v27 = vld [vmem:[%s12462_s4 + $0xc8] sm:$0xf0] }
 0x3e8   :  { %v3911_v55 = vunpack.c.l.b16 %v7694_v36  ;;  %v3912_v34 = vunpack.c.h.b16 %v7694_v36 }
 0x3e9   :  { %v2847_v13 = vsel %vm814_vm3, %v2844_v47, %v2846_v62  ;;  %v2714_v46 = vpack.c.bf16 %v2662_v22, %v2662_v22 }
 0x3ea   :  { %7504 = vmatmul.msk.bf16.gmra.mxu0 %vm2918_vm8, %v2847_v13  ;;  %7520 = vmatmul.msk.bf16.gmra.mxu1 %vm2918_vm8, %v2847_v13  ;;  %v3923_v1 = vpack.c.b16 %v3911_v55, %v3911_v55  ;;  %v3924_v30 = vpack.c.b16 %v3912_v34, %v3912_v34 }
 0x3eb   :  { %v2778_v15 = vunpack.c.l.b16 %v2714_v46 }
 0x3ec   :  { %7577 = vmatmul.msk.bf16.gmra.mxu2 %vm2918_vm8, %v10344_v6  ;;  %v3984_v52 = vsel %vm2967_vm6, %v3923_v1, 0  ;;  %v3987_v24 = vsel %vm2967_vm6, %v3924_v30, 0 }
 0x3ed   :  { %3991 = vmatpush.bf16.msra.mxu2 %v3984_v52  ;;  %4080 = vmatpush.bf16.msrb.mxu3 %v3987_v24 }
 0x3ee   :  { %v2663_v31 = vpop.f32.mrf.mxu3 }
 0x3ef   :  { %v2664_v42 = vadd.f32 %v2663_v31, %v10206_v28  ;;  %v3270_v39 = vpop.f32.mrf.mxu2  ;;  %v7627_v31 = vor.u32 %v8257_v32, %v7624_v27  ;;  %v8273_v27 = vld [vmem:[%s12462_s4 + $0x14c] sm:$0xf] }
 0x3f1   :  { %v2715_v35 = vpack.c.bf16 %v2664_v42, %v2664_v42  ;;  %3687 = vmatpush.bf16.msra.mxu1 %v7627_v31  ;;  %v7731_v31 = vld [vmem:[%s12462_s4 + $0x150] sm:$0xf0] }
 0x3f3   :  { %v2779_v3 = vunpack.c.l.b16 %v2715_v35  ;;  %7587 = vmatmul.msk.bf16.gmra.mxu3 %vm2918_vm8, %v10192_v37 }
 0x3f5   :  { %v10358_v0 = vpack.c.b16 %v2779_v3, %v2778_v15 }
 0x3f6   :  { %v2666_v18 = vpop.f32.mrf.mxu3 }
 0x3f7   :  { %v2983_v12 = vpop.f32.mrf.mxu0  ;;  %v10363_v21 = vpop.f32.mrf.mxu1  ;;  %v2848_v28 = vrot.slane %v10358_v0, 1  ;;  %v2667_v47 = vadd.f32 %v2666_v18, %v10216_v59 }
 0x3f8   :  { %v10366_v11 = vadd.f32 %v3270_v39, %v2983_v12  ;;  %v3272_v58 = vpop.f32.mrf.mxu2 }
 0x3f9   :  { %v2849_v7 = vsel %vm814_vm3, %v2846_v62, %v2848_v28  ;;  %v2716_v57 = vpack.c.bf16 %v2667_v47, %v2667_v47 }
 0x3fa   :  { %7505 = vmatmul.msk.bf16.gmra.mxu0 %vm2918_vm8, %v2849_v7  ;;  %7521 = vmatmul.msk.bf16.gmra.mxu1 %vm2918_vm8, %v2849_v7 }
 0x3fb   :  { %v2780_v2 = vunpack.c.l.b16 %v2716_v57 }
 0x3fc   :  { %7578 = vmatmul.msk.bf16.gmra.mxu2 %vm2918_vm8, %v10358_v0 }
 0x3fe   :  { %v2668_v44 = vpop.f32.mrf.mxu3 }
 0x3ff   :  { %v2669_v41 = vadd.f32 %v2668_v44, %v10224_v54  ;;  %v2985_v14 = vpop.f32.mrf.mxu0  ;;  %v10377_v16 = vpop.f32.mrf.mxu1  ;;  %v8258_v54 = vld [vmem:[%s12462_s4 + $0xc4] sm:$0xf0] }
 0x400   :  { %v10379_v45 = vadd.f32 %v3272_v58, %v2985_v14  ;;  %v3275_v53 = vpop.f32.mrf.mxu2  ;;  %v7623_v20 = vor.u32 %v8258_v54, %v7622_v49 }
 0x401   :  { %v2717_v25 = vpack.c.bf16 %v2669_v41, %v2669_v41 }
 0x402   :  { %3598 = vmatpush.bf16.msra.mxu0 %v7623_v20  ;;  %v7729_v20 = vld [vmem:[%s12462_s4 + $0x148] sm:$0xf] }
 0x403   :  { %v2781_v38 = vunpack.c.l.b16 %v2717_v25  ;;  %7588 = vmatmul.msk.bf16.gmra.mxu3 %vm2918_vm8, %v10222_v51 }
 0x405   :  { %v10383_v59 = vpack.c.b16 %v2781_v38, %v2780_v2 }
 0x406   :  { %v2671_v23 = vpop.f32.mrf.mxu3 }
 0x407   :  { %v2988_v62 = vpop.f32.mrf.mxu0  ;;  %v10397_v13 = vpop.f32.mrf.mxu1  ;;  %v2850_v22 = vrot.slane %v10383_v59, 1  ;;  %v2672_v35 = vadd.f32 %v2671_v23, %v10234_v10 }
 0x408   :  { %v10400_v46 = vadd.f32 %v3275_v53, %v2988_v62  ;;  %v3277_v42 = vpop.f32.mrf.mxu2 }
 0x409   :  { %v2851_v39 = vsel %vm814_vm3, %v2848_v28, %v2850_v22  ;;  %v2718_v3 = vpack.c.bf16 %v2672_v35, %v2672_v35 }
 0x40a   :  { %7506 = vmatmul.msk.bf16.gmra.mxu0 %vm2918_vm8, %v2851_v39  ;;  %7522 = vmatmul.msk.bf16.gmra.mxu1 %vm2918_vm8, %v2851_v39 }
 0x40b   :  { %v2782_v58 = vunpack.c.l.b16 %v2718_v3 }
 0x40c   :  { %7579 = vmatmul.msk.bf16.gmra.mxu2 %vm2918_vm8, %v10383_v59 }
 0x40e   :  { %v2673_v15 = vpop.f32.mrf.mxu3 }
 0x40f   :  { %v2674_v36 = vadd.f32 %v2673_v15, %v10248_v26  ;;  %v2990_v18 = vpop.f32.mrf.mxu0  ;;  %v10409_v55 = vpop.f32.mrf.mxu1  ;;  %v7734_v15 = vor.u32 %v8273_v27, %v7731_v31 }
 0x410   :  { %v10411_v34 = vadd.f32 %v3277_v42, %v2990_v18  ;;  %v3280_v12 = vpop.f32.mrf.mxu2 }
 0x411   :  { %v2719_v28 = vpack.c.bf16 %v2674_v36, %v2674_v36  ;;  %4081 = vmatpush.bf16.msrb.mxu3 %v7734_v15  ;;  %v8272_v15 = vld [vmem:[%s12462_s4 + $0x13c] sm:$0xf0] }
 0x413   :  { %v2783_v1 = vunpack.c.l.b16 %v2719_v28  ;;  %7589 = vmatmul.msk.bf16.gmra.mxu3 %vm2918_vm8, %v10240_v17 }
 0x415   :  { %v10415_v10 = vpack.c.b16 %v2783_v1, %v2782_v58 }
 0x416   :  { %v2676_v30 = vpop.f32.mrf.mxu3 }
 0x417   :  { %v2993_v7 = vpop.f32.mrf.mxu0  ;;  %v10417_v52 = vpop.f32.mrf.mxu1  ;;  %v2852_v26 = vrot.slane %v10415_v10, 1  ;;  %v2677_v57 = vadd.f32 %v2676_v30, %v10264_v8 }
 0x418   :  { %v10420_v24 = vadd.f32 %v3280_v12, %v2993_v7  ;;  %v3282_v47 = vpop.f32.mrf.mxu2 }
 0x419   :  { %v2853_v44 = vsel %vm814_vm3, %v2850_v22, %v2852_v26  ;;  %v2720_v14 = vpack.c.bf16 %v2677_v57, %v2677_v57 }
 0x41a   :  { %7507 = vmatmul.msk.bf16.gmra.mxu0 %vm2918_vm8, %v2853_v44  ;;  %7523 = vmatmul.msk.bf16.gmra.mxu1 %vm2918_vm8, %v2853_v44 }
 0x41b   :  { %v2784_v32 = vunpack.c.l.b16 %v2720_v14  ;;  %v7614_v14 = vld [vmem:[%s12462_s4 + $0xb0] sm:$0xf] }
 0x41c   :  { %7580 = vmatmul.msk.bf16.gmra.mxu2 %vm2918_vm8, %v10415_v10 }
 0x41e   :  { %v2678_v41 = vpop.f32.mrf.mxu3 }
 0x41f   :  { %v2679_v53 = vadd.f32 %v2678_v41, %v10284_v40  ;;  %v2995_v25 = vpop.f32.mrf.mxu0  ;;  %v10429_v2 = vpop.f32.mrf.mxu1  ;;  %v8274_v40 = vld [vmem:[%s12462_s4 + $0x14c] sm:$0xf0] }
 0x420   :  { %v10431_v38 = vadd.f32 %v3282_v47, %v2995_v25  ;;  %v3285_v49 = vpop.f32.mrf.mxu2  ;;  %v7730_v22 = vor.u32 %v8274_v40, %v7729_v20 }
 0x421   :  { %v2721_v54 = vpack.c.bf16 %v2679_v53, %v2679_v53  ;;  %v8255_v53 = vld [vmem:[%s12462_s4 + $0xb4] sm:$0xf] }
 0x422   :  { %3992 = vmatpush.bf16.msra.mxu2 %v7730_v22 }
 0x423   :  { %v2785_v23 = vunpack.c.l.b16 %v2721_v54  ;;  %7590 = vmatmul.msk.bf16.gmra.mxu3 %vm2918_vm8, %v10270_v9  ;;  %v7616_v54 = vld [vmem:[%s12462_s4 + $0xb8] sm:$0xf0] }
 0x424   :  { %v7619_v40 = vor.u32 %v8255_v53, %v7616_v54 }
 0x425   :  { %v10435_v8 = vpack.c.b16 %v2785_v23, %v2784_v32 }
 0x426   :  { %v2681_v62 = vpop.f32.mrf.mxu3  ;;  %3688 = vmatpush.bf16.msra.mxu1 %v7619_v40 }
 0x427   :  { %v2998_v42 = vpop.f32.mrf.mxu0  ;;  %v10449_v39 = vpop.f32.mrf.mxu1  ;;  %v2854_v35 = vrot.slane %v10435_v8, 1  ;;  %v2682_v12 = vadd.f32 %v2681_v62, %v10294_v61 }
 0x428   :  { %v10452_v3 = vadd.f32 %v3285_v49, %v2998_v42  ;;  %v3287_v36 = vpop.f32.mrf.mxu2  ;;  %v7721_v42 = vld [vmem:[%s12462_s4 + $0x138] sm:$0xf] }
 0x429   :  { %v2855_v18 = vsel %vm814_vm3, %v2852_v26, %v2854_v35  ;;  %v2722_v58 = vpack.c.bf16 %v2682_v12, %v2682_v12 }
 0x42a   :  { %7508 = vmatmul.msk.bf16.gmra.mxu0 %vm2918_vm8, %v2855_v18  ;;  %7524 = vmatmul.msk.bf16.gmra.mxu1 %vm2918_vm8, %v2855_v18 }
 0x42b   :  { %v2786_v57 = vunpack.c.l.b16 %v2722_v58 }
 0x42c   :  { %7581 = vmatmul.msk.bf16.gmra.mxu2 %vm2918_vm8, %v10435_v8 }
 0x42e   :  { %v2683_v28 = vpop.f32.mrf.mxu3 }
 0x42f   :  { %v2684_v1 = vadd.f32 %v2683_v28, %v10302_v33  ;;  %v3000_v30 = vpop.f32.mrf.mxu0  ;;  %v10461_v7 = vpop.f32.mrf.mxu1  ;;  %v8256_v33 = vld [vmem:[%s12462_s4 + $0xb4] sm:$0xf0] }
 0x430   :  { %v10463_v47 = vadd.f32 %v3287_v36, %v3000_v30  ;;  %v3290_v26 = vpop.f32.mrf.mxu2  ;;  %v7615_v49 = vor.u32 %v8256_v33, %v7614_v14  ;;  %v7722_v36 = vor.u32 %v8272_v15, %v7721_v42  ;;  %v7713_v30 = vld [vmem:[%s12462_s4 + $0x128] sm:$0xf]  ;;  %v8268_v33 = vld [vmem:[%s12462_s4 + $0x11c] sm:$0xf0]  ;;  %v8266_v42 = vld [vmem:[%s12462_s4 + $0x10c] sm:$0xf0] }
 0x431   :  { %v2723_v44 = vpack.c.bf16 %v2684_v1, %v2684_v1 }
 0x432   :  { %3599 = vmatpush.bf16.msra.mxu0 %v7615_v49  ;;  %3993 = vmatpush.bf16.msra.mxu2 %v7722_v36 }
 0x433   :  { %v2787_v41 = vunpack.c.l.b16 %v2723_v44  ;;  %7591 = vmatmul.msk.bf16.gmra.mxu3 %vm2918_vm8, %v10300_v43 }
 0x435   :  { %v10467_v61 = vpack.c.b16 %v2787_v41, %v2786_v57 }
 0x436   :  { %v2686_v25 = vpop.f32.mrf.mxu3 }
 0x437   :  { %v3003_v32 = vpop.f32.mrf.mxu0  ;;  %v10481_v23 = vpop.f32.mrf.mxu1  ;;  %v2856_v20 = vrot.slane %v10467_v61, 1  ;;  %v2687_v31 = vadd.f32 %v2686_v25, %v10312_v4 }
 0x438   :  { %v10484_v27 = vadd.f32 %v3290_v26, %v3003_v32  ;;  %v3292_v62 = vpop.f32.mrf.mxu2  ;;  %v8270_v26 = vld [vmem:[%s12462_s4 + $0x12c] sm:$0xf0] }
 0x439   :  { %v2857_v22 = vsel %vm814_vm3, %v2854_v35, %v2856_v20  ;;  %v2724_v18 = vpack.c.bf16 %v2687_v31, %v2687_v31  ;;  %v7714_v57 = vor.u32 %v8270_v26, %v7713_v30  ;;  %v7697_v31 = vld [vmem:[%s12462_s4 + $0x108] sm:$0xf] }
 0x43a   :  { %7509 = vmatmul.msk.bf16.gmra.mxu0 %vm2918_vm8, %v2857_v22  ;;  %7525 = vmatmul.msk.bf16.gmra.mxu1 %vm2918_vm8, %v2857_v22  ;;  %v7698_v36 = vor.u32 %v8266_v42, %v7697_v31 }
 0x43b   :  { %v2788_v41 = vunpack.c.l.b16 %v2724_v18  ;;  %3994 = vmatpush.bf16.msra.mxu2 %v7714_v57  ;;  %v7723_v18 = vld [vmem:[%s12462_s4 + $0x140] sm:$0xf0] }
 0x43c   :  { %7582 = vmatmul.msk.bf16.gmra.mxu2 %vm2918_vm8, %v10467_v61 }
 0x43e   :  { %v2688_v35 = vpop.f32.mrf.mxu3 }
 0x43f   :  { %v2689_v12 = vadd.f32 %v2688_v35, %v10318_v19  ;;  %v3005_v28 = vpop.f32.mrf.mxu0  ;;  %v10499_v58 = vpop.f32.mrf.mxu1  ;;  %v7705_v19 = vld [vmem:[%s12462_s4 + $0x118] sm:$0xf]  ;;  %v8271_v35 = vld [vmem:[%s12462_s4 + $0x13c] sm:$0xf] }
 0x440   :  { %v10501_v4 = vadd.f32 %v3292_v62, %v3005_v28  ;;  %v3295_v1 = vpop.f32.mrf.mxu2  ;;  %v7706_v25 = vor.u32 %v8268_v33, %v7705_v19  ;;  %v7726_v28 = vor.u32 %v8271_v35, %v7723_v18 }
 0x441   :  { %v2725_v44 = vpack.c.bf16 %v2689_v12, %v2689_v12 }
 0x442   :  { %3995 = vmatpush.bf16.msra.mxu2 %v7706_v25  ;;  %4082 = vmatpush.bf16.msrb.mxu3 %v7726_v28 }
 0x443   :  { %v2789_v14 = vunpack.c.l.b16 %v2725_v44  ;;  %7592 = vmatmul.msk.bf16.gmra.mxu3 %vm2918_vm8, %v10316_v5 }
 0x445   :  { %v10517_v53 = vpack.c.b16 %v2789_v14, %v2788_v41 }
 0x446   :  { %v2691_v49 = vpop.f32.mrf.mxu3  ;;  %3996 = vmatpush.bf16.msra.mxu2 %v7698_v36 }
 0x447   :  { %12765 = vst [vmem:[#allocation25_spill] sm:$0xff] %v10517_v53  ;;  %v3008_v54 = vpop.f32.mrf.mxu0  ;;  %v10519_v32 = vpop.f32.mrf.mxu1  ;;  %v2858_v40 = vrot.slane %v10517_v53, 1  ;;  %v2692_v12 = vadd.f32 %v2691_v49, %v10340_v63 }
 0x448   :  { %v10522_v62 = vadd.f32 %v3295_v1, %v3008_v54  ;;  %v3297_v22 = vpop.f32.mrf.mxu2 }
 0x449   :  { %v2859_v15 = vsel %vm814_vm3, %v2856_v20, %v2858_v40  ;;  %v2726_v1 = vpack.c.bf16 %v2692_v12, %v2692_v12 }
 0x44a   :  { %7510 = vmatmul.msk.bf16.gmra.mxu0 %vm2918_vm8, %v2859_v15  ;;  %7526 = vmatmul.msk.bf16.gmra.mxu1 %vm2918_vm8, %v2859_v15  ;;  %v7777_v15 = vld [vmem:[%s12462_s4 + $0x1b0] sm:$0x33] }
 0x44b   :  { %v2790_v19 = vunpack.c.l.b16 %v2726_v1  ;;  %v4308_v36 = vunpack.c.l.b16 %v7777_v15  ;;  %v4309_v35 = vunpack.c.h.b16 %v7777_v15 }
 0x44c   :  { %7583 = vmatmul.msk.bf16.gmra.mxu2 %vm2918_vm8, %v10517_v53 }
 0x44d   :  { %v4320_v18 = vpack.c.b16 %v4308_v36, %v4308_v36  ;;  %v4321_v12 = vpack.c.b16 %v4309_v35, %v4309_v35  ;;  %v12775_v36 = vld [vmem:[#allocation5_spill] sm:$0xff]  ;;  %v3847_v35 = vrot.slane %v10155_v48, 3 }
 0x44e   :  { %v2693_v20 = vpop.f32.mrf.mxu3 }
 0x44f   :  { %v2694_v30 = vadd.f32 %v2693_v20, %v10346_v56  ;;  %v3010_v26 = vpop.f32.mrf.mxu0  ;;  %v10543_v44 = vpop.f32.mrf.mxu1 }
 0x450   :  { %12766 = vst [vmem:[#allocation44_spill] sm:$0xff] %v10543_v44  ;;  %v10545_v57 = vadd.f32 %v3297_v22, %v3010_v26  ;;  %v3300_v41 = vpop.f32.mrf.mxu2 }
 0x451   :  { %v2727_v14 = vpack.c.bf16 %v2694_v30, %v2694_v30  ;;  %v4384_v30 = vsel %vm2967_vm6, %v4321_v12, 0 }
 0x452   :  { %12767 = vst [vmem:[#allocation16_spill] sm:$0xff] %v10545_v57  ;;  %4477 = vmatpush.bf16.msrb.mxu1 %v4384_v30  ;;  %v8281_v57 = vld [vmem:[%s12462_s4 + $0x194] sm:$0xf] }
 0x453   :  { %v2791_v33 = vunpack.c.l.b16 %v2727_v14  ;;  %7593 = vmatmul.msk.bf16.gmra.mxu3 %vm2918_vm8, %v10344_v6 }
 0x455   :  { %v10549_v63 = vpack.c.b16 %v2791_v33, %v2790_v19 }
 0x456   :  { %v10551_v25 = vpop.f32.mrf.mxu3 }
 0x457   :  { %12768 = vst [vmem:[#allocation52_spill] sm:$0xff] %v10549_v63  ;;  %v3013_v49 = vpop.f32.mrf.mxu0  ;;  %v10553_v54 = vpop.f32.mrf.mxu1  ;;  %v2860_v56 = vrot.slane %v10549_v63, 1 }
 0x458   :  { %12769 = vst [vmem:[#allocation26_spill] sm:$0xff] %v10553_v54  ;;  %v10556_v31 = vadd.f32 %v3300_v41, %v3013_v49  ;;  %v3302_v22 = vpop.f32.mrf.mxu2  ;;  %v3848_v49 = vrot.slane %v10167_v29, 3 }
 0x459   :  { %v2861_v42 = vsel %vm814_vm3, %v2858_v40, %v2860_v56  ;;  %v4381_v40 = vsel %vm2967_vm6, %v4320_v18, 0 }
 0x45a   :  { %12770 = vst [vmem:[#allocation28_spill] sm:$0xff] %v10556_v31  ;;  %7511 = vmatmul.msk.bf16.gmra.mxu0 %vm2918_vm8, %v2861_v42  ;;  %7527 = vmatmul.msk.bf16.gmra.mxu1 %vm2918_vm8, %v2861_v42  ;;  %v10589_v18 = vsel %vm3846_vm9, %v3847_v35, %v3848_v49 }
 0x45b   :  { %4388 = vmatpush.bf16.msrb.mxu0 %v4381_v40 }
 0x45c   :  { %7584 = vmatmul.msk.bf16.gmra.mxu2 %vm2918_vm8, %v10549_v63 }
 0x45e   :  { %v10566_v28 = vpop.f32.mrf.mxu3 }
 0x45f   :  { %v3015_v20 = vpop.f32.mrf.mxu0  ;;  %v10568_v1 = vpop.f32.mrf.mxu1 }
 0x460   :  { %12771 = vst [vmem:[#allocation51_spill] sm:$0xff] %v10568_v1  ;;  %v10572_v26 = vadd.f32 %v3302_v22, %v3015_v20  ;;  %v3305_v41 = vpop.f32.mrf.mxu2  ;;  %v2862_v22 = vsel %vm814_vm3, %v2860_v56, %v12775_v36 }
 0x462   :  { %12772 = vst [vmem:[#allocation53_spill] sm:$0xff] %v10572_v26 }
 0x463   :  { %7594 = vmatmul.msk.bf16.gmra.mxu3 %vm2918_vm8, %v10358_v0 }
 0x466   :  { %v10576_v14 = vpop.f32.mrf.mxu3 }
 0x467   :  { %v3018_v19 = vpop.f32.mrf.mxu0  ;;  %v10578_v33 = vpop.f32.mrf.mxu1 }
 0x468   :  { %12773 = vst [vmem:[#allocation54_spill] sm:$0xff] %v10578_v33  ;;  %v10581_v42 = vadd.f32 %v3305_v41, %v3018_v19  ;;  %v3307_v15 = vpop.f32.mrf.mxu2  ;;  %v8269_v41 = vld [vmem:[%s12462_s4 + $0x12c] sm:$0xf]  ;;  %v7715_v19 = vld [vmem:[%s12462_s4 + $0x130] sm:$0xf0]  ;;  %v3852_v33 = vrot.slane %v10222_v51, 3 }
 0x469   :  { %v7718_v36 = vor.u32 %v8269_v41, %v7715_v19 }
 0x46a   :  { %12774 = vst [vmem:[#allocation55_spill] sm:$0xff] %v10581_v42  ;;  %7512 = vmatmul.msk.bf16.gmra.mxu0 %vm2918_vm8, %v2862_v22  ;;  %7528 = vmatmul.msk.bf16.gmra.mxu1 %vm2918_vm8, %v2862_v22  ;;  %v3452_v22 = vrot.slane %v10167_v29, 2 }
 0x46b   :  { %4083 = vmatpush.bf16.msrb.mxu3 %v7718_v36 }
 0x46c   :  { %7735 = vmatmul.msk.bf16.vlgmr.msra.gmra.mxu2 %vm2918_vm8, %v10589_v18  ;;  %v3453_v42 = vsel %vm1548_vm5, %v3451_v60, %v3452_v22  ;;  %v7812_v60 = vld [vmem:[%s12462_s4 + $0x1a0] sm:$0xf] }
 0x46e   :  { %v10593_v12 = vpop.f32.mrf.mxu3 }
 0x46f   :  { %v3020_v20 = vpop.f32.mrf.mxu0  ;;  %v10595_v40 = vpop.f32.mrf.mxu1 }
 0x470   :  { %12776 = vst [vmem:[#allocation56_spill] sm:$0xff] %v10595_v40  ;;  %v10597_v30 = vadd.f32 %v3307_v15, %v3020_v20  ;;  %v3310_v56 = vpop.f32.mrf.mxu2 }
 0x472   :  { %12777 = vst [vmem:[#allocation57_spill] sm:$0xff] %v10597_v30  ;;  %v3850_v30 = vrot.slane %v10192_v37, 3 }
 0x473   :  { %7595 = vmatmul.msk.bf16.gmra.mxu3 %vm2918_vm8, %v10383_v59 }
 0x474   :  { %v10620_v41 = vsel %vm3846_vm9, %v3848_v49, %v3850_v30  ;;  %v8284_v49 = vld [vmem:[%s12462_s4 + $0x1a4] sm:$0xf0] }
 0x476   :  { %v10608_v35 = vpop.f32.mrf.mxu3 }
 0x477   :  { %v3023_v15 = vpop.f32.mrf.mxu0  ;;  %v10610_v20 = vpop.f32.mrf.mxu1 }
 0x478   :  { %12778 = vst [vmem:[#allocation58_spill] sm:$0xff] %v10610_v20  ;;  %v10614_v40 = vadd.f32 %v3310_v56, %v3023_v15  ;;  %v3312_v50 = vpop.f32.mrf.mxu2 }
 0x47a   :  { %12779 = vst [vmem:[#allocation60_spill] sm:$0xff] %v10614_v40  ;;  %7652 = vmatmul.msk.bf16.vlgmr.msra.gmra.mxu0 %vm2918_vm8, %v3453_v42  ;;  %7668 = vmatmul.msk.bf16.vlgmr.msra.gmra.mxu1 %vm2918_vm8, %v3453_v42  ;;  %v8283_v42 = vld [vmem:[%s12462_s4 + $0x1a4] sm:$0xf]  ;;  %v7813_v40 = vor.u32 %v8284_v49, %v7812_v60  ;;  %v10656_v49 = vsel %vm3846_vm9, %v3850_v30, %v3852_v33 }
 0x47c   :  { %7736 = vmatmul.msk.bf16.gmra.mxu2 %vm2918_vm8, %v10620_v41  ;;  %4389 = vmatpush.bf16.msrb.mxu0 %v7813_v40 }
 0x47e   :  { %v10624_v19 = vpop.f32.mrf.mxu3 }
 0x47f   :  { %v3025_v36 = vpop.f32.mrf.mxu0  ;;  %v10626_v48 = vpop.f32.mrf.mxu1 }
 0x480   :  { %12780 = vst [vmem:[#allocation59_spill] sm:$0xff] %v10626_v48  ;;  %v10628_v56 = vadd.f32 %v3312_v50, %v3025_v36  ;;  %v3315_v15 = vpop.f32.mrf.mxu2  ;;  %v7814_v50 = vld [vmem:[%s12462_s4 + $0x1a8] sm:$0xf0]  ;;  %v3454_v36 = vrot.slane %v10192_v37, 2 }
 0x482   :  { %12781 = vst [vmem:[#allocation63_spill] sm:$0xff] %v10628_v56  ;;  %v7817_v56 = vor.u32 %v8283_v42, %v7814_v50  ;;  %v3455_v60 = vsel %vm1548_vm5, %v3452_v22, %v3454_v36  ;;  %v3456_v22 = vrot.slane %v10222_v51, 2 }
 0x483   :  { %7596 = vmatmul.msk.bf16.gmra.mxu3 %vm2918_vm8, %v10415_v10 }
 0x484   :  { %4478 = vmatpush.bf16.msrb.mxu1 %v7817_v56 }
 0x486   :  { %v10645_v48 = vpop.f32.mrf.mxu3 }
 0x487   :  { %v3028_v20 = vpop.f32.mrf.mxu0  ;;  %v10647_v29 = vpop.f32.mrf.mxu1 }
 0x488   :  { %12782 = vst [vmem:[#allocation62_spill] sm:$0xff] %v10647_v29  ;;  %v10650_v26 = vadd.f32 %v3315_v15, %v3028_v20  ;;  %v3317_v1 = vpop.f32.mrf.mxu2 }
 0x48a   :  { %12783 = vst [vmem:[#allocation64_spill] sm:$0xff] %v10650_v26  ;;  %7653 = vmatmul.msk.bf16.gmra.mxu0 %vm2918_vm8, %v3455_v60  ;;  %7669 = vmatmul.msk.bf16.gmra.mxu1 %vm2918_vm8, %v3455_v60  ;;  %v3854_v26 = vrot.slane %v10240_v17, 3 }
 0x48c   :  { %7737 = vmatmul.msk.bf16.gmra.mxu2 %vm2918_vm8, %v10656_v49 }
 0x48e   :  { %v10660_v40 = vpop.f32.mrf.mxu3 }
 0x48f   :  { %v3030_v42 = vpop.f32.mrf.mxu0  ;;  %v10662_v50 = vpop.f32.mrf.mxu1 }
 0x490   :  { %12784 = vst [vmem:[#allocation35_spill] sm:$0xff] %v10662_v50  ;;  %v10664_v20 = vadd.f32 %v3317_v1, %v3030_v42  ;;  %v3320_v56 = vpop.f32.mrf.mxu2  ;;  %v3457_v50 = vsel %vm1548_vm5, %v3454_v36, %v3456_v22  ;;  %v10680_v1 = vsel %vm3846_vm9, %v3852_v33, %v3854_v26  ;;  %v8267_v36 = vld [vmem:[%s12462_s4 + $0x11c] sm:$0xf]  ;;  %v7707_v33 = vld [vmem:[%s12462_s4 + $0x120] sm:$0xf0] }
 0x492   :  { %12785 = vst [vmem:[#allocation65_spill] sm:$0xff] %v10664_v20 }
 0x493   :  { %7597 = vmatmul.msk.bf16.gmra.mxu3 %vm2918_vm8, %v10435_v8 }
 0x496   :  { %v10669_v15 = vpop.f32.mrf.mxu3 }
 0x497   :  { %v3033_v30 = vpop.f32.mrf.mxu0  ;;  %v10671_v60 = vpop.f32.mrf.mxu1 }
 0x498   :  { %12786 = vst [vmem:[#allocation66_spill] sm:$0xff] %v10671_v60  ;;  %v10674_v29 = vadd.f32 %v3320_v56, %v3033_v30  ;;  %v3322_v37 = vpop.f32.mrf.mxu2 }
 0x49a   :  { %12787 = vst [vmem:[#allocation12_spill] sm:$0xff] %v10674_v29  ;;  %7654 = vmatmul.msk.bf16.gmra.mxu0 %vm2918_vm8, %v3457_v50  ;;  %7670 = vmatmul.msk.bf16.gmra.mxu1 %vm2918_vm8, %v3457_v50  ;;  %v7710_v50 = vor.u32 %v8267_v36, %v7707_v33  ;;  %v3458_v29 = vrot.slane %v10240_v17, 2  ;;  %v8282_v17 = vld [vmem:[%s12462_s4 + $0x194] sm:$0xf0] }
 0x49c   :  { %7738 = vmatmul.msk.bf16.gmra.mxu2 %vm2918_vm8, %v10680_v1  ;;  %4084 = vmatpush.bf16.msrb.mxu3 %v7710_v50  ;;  %v3459_v54 = vsel %vm1548_vm5, %v3456_v22, %v3458_v29  ;;  %v7699_v22 = vld [vmem:[%s12462_s4 + $0x110] sm:$0xf0] }
 0x49e   :  { %v10684_v42 = vpop.f32.mrf.mxu3 }
 0x49f   :  { %v3035_v60 = vpop.f32.mrf.mxu0  ;;  %v10686_v51 = vpop.f32.mrf.mxu1 }
 0x4a0   :  { %12788 = vst [vmem:[#allocation67_spill] sm:$0xff] %v10686_v51  ;;  %v10688_v56 = vadd.f32 %v3322_v37, %v3035_v60  ;;  %v3325_v30 = vpop.f32.mrf.mxu2 }
 0x4a2   :  { %12789 = vst [vmem:[#allocation31_spill] sm:$0xff] %v10688_v56  ;;  %v3856_v56 = vrot.slane %v10270_v9, 3 }
 0x4a3   :  { %7598 = vmatmul.msk.bf16.gmra.mxu3 %vm2918_vm8, %v10467_v61 }
 0x4a4   :  { %v10710_v36 = vsel %vm3846_vm9, %v3854_v26, %v3856_v56 }
 0x4a6   :  { %v10699_v20 = vpop.f32.mrf.mxu3 }
 0x4a7   :  { %v3038_v37 = vpop.f32.mrf.mxu0  ;;  %v10701_v60 = vpop.f32.mrf.mxu1 }
 0x4a8   :  { %12790 = vst [vmem:[#allocation20_spill] sm:$0xff] %v10701_v60  ;;  %v10704_v51 = vadd.f32 %v3325_v30, %v3038_v37  ;;  %v3327_v31 = vpop.f32.mrf.mxu2  ;;  %v8265_v30 = vld [vmem:[%s12462_s4 + $0x10c] sm:$0xf]  ;;  %v7804_v60 = vld [vmem:[%s12462_s4 + $0x190] sm:$0xf] }
 0x4aa   :  { %12791 = vst [vmem:[#allocation68_spill] sm:$0xff] %v10704_v51  ;;  %7655 = vmatmul.msk.bf16.gmra.mxu0 %vm2918_vm8, %v3459_v54  ;;  %7671 = vmatmul.msk.bf16.gmra.mxu1 %vm2918_vm8, %v3459_v54  ;;  %v7702_v54 = vor.u32 %v8265_v30, %v7699_v22  ;;  %v3460_v22 = vrot.slane %v10270_v9, 2 }
 0x4ac   :  { %7739 = vmatmul.msk.bf16.gmra.mxu2 %vm2918_vm8, %v10710_v36  ;;  %4085 = vmatpush.bf16.msrb.mxu3 %v7702_v54  ;;  %v3858_v54 = vrot.slane %v10300_v43, 3  ;;  %v3461_v44 = vsel %vm1548_vm5, %v3458_v29, %v3460_v22  ;;  %v3462_v29 = vrot.slane %v10300_v43, 2 }
 0x4ae   :  { %v10714_v33 = vpop.f32.mrf.mxu3 }
 0x4af   :  { %12792 = vst [vmem:[#allocation2_spill] sm:$0xff] %v10714_v33  ;;  %v3040_v50 = vpop.f32.mrf.mxu0  ;;  %v10722_v37 = vpop.f32.mrf.mxu1  ;;  %v7805_v33 = vor.u32 %v8282_v17, %v7804_v60 }
 0x4b0   :  { %12793 = vst [vmem:[#allocation8_spill] sm:$0xff] %v10722_v37  ;;  %v10724_v51 = vadd.f32 %v3327_v31, %v3040_v50  ;;  %v3330_v26 = vpop.f32.mrf.mxu2  ;;  %v7806_v31 = vld [vmem:[%s12462_s4 + $0x198] sm:$0xf0] }
 0x4b1   :  { %v7809_v30 = vor.u32 %v8281_v57, %v7806_v31  ;;  %4390 = vmatpush.bf16.msrb.mxu0 %v7805_v33  ;;  %v10752_v57 = vsel %vm3846_vm9, %v3856_v56, %v3858_v54 }
 0x4b2   :  { %12794 = vst [vmem:[#allocation30_spill] sm:$0xff] %v10724_v51 }
 0x4b3   :  { %7599 = vmatmul.msk.bf16.gmra.mxu3 %vm2918_vm8, %v10517_v53  ;;  %4479 = vmatpush.bf16.msrb.mxu1 %v7809_v30 }
 0x4b6   :  { %v10741_v50 = vpop.f32.mrf.mxu3 }
 0x4b7   :  { %12795 = vst [vmem:[#allocation18_spill] sm:$0xff] %v10741_v50  ;;  %v3043_v51 = vpop.f32.mrf.mxu0  ;;  %v10743_v37 = vpop.f32.mrf.mxu1 }
 0x4b8   :  { %12796 = vst [vmem:[#allocation34_spill] sm:$0xff] %v10743_v37  ;;  %v10746_v17 = vadd.f32 %v3330_v26, %v3043_v51  ;;  %v3332_v60 = vpop.f32.mrf.mxu2  ;;  %v3860_v37 = vrot.slane %v10316_v5, 3 }
 0x4ba   :  { %12797 = vst [vmem:[#allocation37_spill] sm:$0xff] %v10746_v17  ;;  %7656 = vmatmul.msk.bf16.gmra.mxu0 %vm2918_vm8, %v3461_v44  ;;  %7672 = vmatmul.msk.bf16.gmra.mxu1 %vm2918_vm8, %v3461_v44 }
 0x4bc   :  { %7740 = vmatmul.msk.bf16.gmra.mxu2 %vm2918_vm8, %v10752_v57 }
 0x4be   :  { %v10756_v33 = vpop.f32.mrf.mxu3 }
 0x4bf   :  { %12798 = vst [vmem:[#allocation3_spill] sm:$0xff] %v10756_v33  ;;  %v3045_v31 = vpop.f32.mrf.mxu0  ;;  %v10758_v30 = vpop.f32.mrf.mxu1 }
 0x4c0   :  { %12799 = vst [vmem:[#allocation36_spill] sm:$0xff] %v10758_v30  ;;  %v10760_v51 = vadd.f32 %v3332_v60, %v3045_v31  ;;  %v3335_v26 = vpop.f32.mrf.mxu2  ;;  %v3463_v30 = vsel %vm1548_vm5, %v3460_v22, %v3462_v29  ;;  %v10776_v60 = vsel %vm3846_vm9, %v3858_v54, %v3860_v37  ;;  %v3464_v22 = vrot.slane %v10316_v5, 2 }
 0x4c2   :  { %12800 = vst [vmem:[#allocation41_spill] sm:$0xff] %v10760_v51  ;;  %v3862_v51 = vrot.slane %v10344_v6, 3 }
 0x4c3   :  { %7600 = vmatmul.msk.bf16.gmra.mxu3 %vm2918_vm8, %v10549_v63 }
 0x4c6   :  { %v10765_v44 = vpop.f32.mrf.mxu3 }
 0x4c7   :  { %12801 = vst [vmem:[#allocation21_spill] sm:$0xff] %v10765_v44  ;;  %v3048_v56 = vpop.f32.mrf.mxu0  ;;  %v10767_v17 = vpop.f32.mrf.mxu1 }
 0x4c8   :  { %12802 = vst [vmem:[#allocation40_spill] sm:$0xff] %v10767_v17  ;;  %v10770_v9 = vadd.f32 %v3335_v26, %v3048_v56  ;;  %v3337_v33 = vpop.f32.mrf.mxu2 }
 0x4ca   :  { %12803 = vst [vmem:[#allocation4_spill] sm:$0xff] %v10770_v9  ;;  %7657 = vmatmul.msk.bf16.gmra.mxu0 %vm2918_vm8, %v3463_v30  ;;  %7673 = vmatmul.msk.bf16.gmra.mxu1 %vm2918_vm8, %v3463_v30 }
 0x4cc   :  { %7741 = vmatmul.msk.bf16.gmra.mxu2 %vm2918_vm8, %v10776_v60 }
 0x4ce   :  { %v10780_v31 = vpop.f32.mrf.mxu3 }
 0x4cf   :  { %12804 = vst [vmem:[#allocation43_spill] sm:$0xff] %v10780_v31  ;;  %v3050_v17 = vpop.f32.mrf.mxu0  ;;  %v10782_v43 = vpop.f32.mrf.mxu1 }
 0x4d0   :  { %12805 = vst [vmem:[#allocation47_spill] sm:$0xff] %v10782_v43  ;;  %v10784_v26 = vadd.f32 %v3337_v33, %v3050_v17  ;;  %v3340_v56 = vpop.f32.mrf.mxu2  ;;  %v3465_v43 = vsel %vm1548_vm5, %v3462_v29, %v3464_v22  ;;  %v8280_v17 = vld [vmem:[%s12462_s4 + $0x184] sm:$0xf0]  ;;  %v8279_v33 = vld [vmem:[%s12462_s4 + $0x184] sm:$0xf] }
 0x4d2   :  { %12806 = vst [vmem:[#allocation24_spill] sm:$0xff] %v10784_v26 }
 0x4d3   :  { %7751 = vmatmul.msk.bf16.vlgmr.msrb.gmra.mxu3 %vm2918_vm8, %v10589_v18  ;;  %v7796_v18 = vld [vmem:[%s12462_s4 + $0x180] sm:$0xf] }
 0x4d4   :  { %v7797_v29 = vor.u32 %v8280_v17, %v7796_v18  ;;  %v3466_v18 = vrot.slane %v10344_v6, 2 }
 0x4d6   :  { %v10789_v30 = vpop.f32.mrf.mxu3  ;;  %4391 = vmatpush.bf16.msrb.mxu0 %v7797_v29 }
 0x4d7   :  { %12807 = vst [vmem:[#allocation46_spill] sm:$0xff] %v10789_v30  ;;  %v3053_v54 = vpop.f32.mrf.mxu0  ;;  %v10791_v9 = vpop.f32.mrf.mxu1 }
 0x4d8   :  { %12808 = vst [vmem:[#allocation50_spill] sm:$0xff] %v10791_v9  ;;  %v10794_v44 = vadd.f32 %v3340_v56, %v3053_v54  ;;  %v3342_v31 = vpop.f32.mrf.mxu2  ;;  %v10809_v56 = vsel %vm3846_vm9, %v3860_v37, %v3862_v51 }
 0x4da   :  { %12809 = vst [vmem:[#allocation6_spill] sm:$0xff] %v10794_v44  ;;  %7658 = vmatmul.msk.bf16.gmra.mxu0 %vm2918_vm8, %v3465_v43  ;;  %7674 = vmatmul.msk.bf16.gmra.mxu1 %vm2918_vm8, %v3465_v43  ;;  %v7798_v43 = vld [vmem:[%s12462_s4 + $0x188] sm:$0xf0] }
 0x4db   :  { %v7801_v54 = vor.u32 %v8279_v33, %v7798_v43  ;;  %v3864_v33 = vrot.slane %v10358_v0, 3 }
 0x4dc   :  { %7742 = vmatmul.msk.bf16.gmra.mxu2 %vm2918_vm8, %v10809_v56 }
 0x4dd   :  { %4480 = vmatpush.bf16.msrb.mxu1 %v7801_v54  ;;  %v3467_v54 = vsel %vm1548_vm5, %v3464_v22, %v3466_v18  ;;  %v8292_v22 = vld [vmem:[%s12463_s6 + $0x38] sm:$0xff] }
 0x4de   :  { %v10816_v44 = vpop.f32.mrf.mxu3  ;;  %5244 = vmatpush.bf16.msrb.mxu2 %v8292_v22 }
 0x4df   :  { %v3055_v9 = vpop.f32.mrf.mxu0  ;;  %v10818_v5 = vpop.f32.mrf.mxu1 }
 0x4e0   :  { %12810 = vst [vmem:[#allocation9_spill] sm:$0xff] %v10818_v5  ;;  %v10820_v26 = vadd.f32 %v3342_v31, %v3055_v9  ;;  %v3345_v37 = vpop.f32.mrf.mxu2  ;;  %v10836_v9 = vsel %vm3846_vm9, %v3862_v51, %v3864_v33  ;;  %v8294_v51 = vld [vmem:[%s12463_s6 + $0x48] sm:$0xff] }
 0x4e1   :  { %5339 = vmatpush.bf16.msra.mxu3 %v8294_v51 }
 0x4e2   :  { %12811 = vst [vmem:[#allocation29_spill] sm:$0xff] %v10820_v26 }
 0x4e3   :  { %7752 = vmatmul.msk.bf16.gmra.mxu3 %vm2918_vm8, %v10620_v41 }
 0x4e6   :  { %v10825_v17 = vpop.f32.mrf.mxu3 }
 0x4e7   :  { %v3058_v30 = vpop.f32.mrf.mxu0  ;;  %v10827_v50 = vpop.f32.mrf.mxu1 }
 0x4e8   :  { %12812 = vst [vmem:[#allocation49_spill] sm:$0xff] %v10827_v50  ;;  %v10830_v29 = vadd.f32 %v3345_v37, %v3058_v30  ;;  %v3347_v43 = vpop.f32.mrf.mxu2 }
 0x4ea   :  { %12813 = vst [vmem:[#allocation27_spill] sm:$0xff] %v10830_v29  ;;  %7659 = vmatmul.msk.bf16.gmra.mxu0 %vm2918_vm8, %v3467_v54  ;;  %7675 = vmatmul.msk.bf16.gmra.mxu1 %vm2918_vm8, %v3467_v54  ;;  %v3468_v54 = vrot.slane %v10358_v0, 2 }
 0x4ec   :  { %7743 = vmatmul.msk.bf16.gmra.mxu2 %vm2918_vm8, %v10836_v9  ;;  %v3469_v5 = vsel %vm1548_vm5, %v3466_v18, %v3468_v54 }
 0x4ee   :  { %v10840_v41 = vpop.f32.mrf.mxu3 }
 0x4ef   :  { %v3060_v31 = vpop.f32.mrf.mxu0  ;;  %v10842_v50 = vpop.f32.mrf.mxu1 }
 0x4f0   :  { %12814 = vst [vmem:[#allocation10_spill] sm:$0xff] %v10842_v50  ;;  %v10844_v30 = vadd.f32 %v3347_v43, %v3060_v31  ;;  %v3998_v37 = vpop.f32.mrf.mxu2  ;;  %v3360_v43 = vadd.f32 %v10551_v25, %v10363_v21 }
 0x4f2   :  { %12815 = vst [vmem:[#allocation33_spill] sm:$0xff] %v10844_v30 }
 0x4f3   :  { %7753 = vmatmul.msk.bf16.gmra.mxu3 %vm2918_vm8, %v10656_v49  ;;  %v3866_v49 = vrot.slane %v10383_v59, 3 }
 0x4f5   :  { %v10869_v21 = vsel %vm3846_vm9, %v3864_v33, %v3866_v49  ;;  %v7788_v33 = vld [vmem:[%s12462_s4 + $0x170] sm:$0xf] }
 0x4f6   :  { %v10857_v31 = vpop.f32.mrf.mxu3 }
 0x4f7   :  { %v3601_v30 = vpop.f32.mrf.mxu0  ;;  %v3690_v50 = vpop.f32.mrf.mxu1 }
 0x4f8   :  { %v3770_v29 = vadd.f32 %v3601_v30, %v10366_v11  ;;  %v10861_v6 = vadd.f32 %v3690_v50, %v3360_v43  ;;  %v4000_v26 = vpop.f32.mrf.mxu2  ;;  %v3362_v11 = vadd.f32 %v10566_v28, %v10377_v16  ;;  %v8278_v16 = vld [vmem:[%s12462_s4 + $0x174] sm:$0xf0]  ;;  %v3365_v43 = vadd.f32 %v10576_v14, %v10397_v13 }
 0x4f9   :  { %v7789_v28 = vor.u32 %v8278_v16, %v7788_v33 }
 0x4fa   :  { %7660 = vmatmul.msk.bf16.gmra.mxu0 %vm2918_vm8, %v3469_v5  ;;  %7676 = vmatmul.msk.bf16.gmra.mxu1 %vm2918_vm8, %v3469_v5  ;;  %v10866_v22 = vadd.f32 %v3998_v37, %v3770_v29  ;;  %v3470_v37 = vrot.slane %v10383_v59, 2 }
 0x4fb   :  { %4392 = vmatpush.bf16.msrb.mxu0 %v7789_v28 }
 0x4fc   :  { %12816 = vst [vmem:[#allocation17_spill] sm:$0xff] %v10866_v22  ;;  %7744 = vmatmul.msk.bf16.gmra.mxu2 %vm2918_vm8, %v10869_v21  ;;  %v3471_v22 = vsel %vm1548_vm5, %v3468_v54, %v3470_v37 }
 0x4fe   :  { %v10875_v25 = vpop.f32.mrf.mxu3 }
 0x4ff   :  { %v3603_v50 = vpop.f32.mrf.mxu0  ;;  %v3692_v30 = vpop.f32.mrf.mxu1 }
 0x500   :  { %v3772_v18 = vadd.f32 %v3603_v50, %v10379_v45  ;;  %v10878_v51 = vadd.f32 %v3692_v30, %v3362_v11  ;;  %v4003_v5 = vpop.f32.mrf.mxu2  ;;  %v8277_v45 = vld [vmem:[%s12462_s4 + $0x174] sm:$0xf] }
 0x502   :  { %v10880_v29 = vadd.f32 %v4000_v26, %v3772_v18  ;;  %v7790_v26 = vld [vmem:[%s12462_s4 + $0x178] sm:$0xf0]  ;;  %v3868_v18 = vrot.slane %v10415_v10, 3 }
 0x503   :  { %7754 = vmatmul.msk.bf16.gmra.mxu3 %vm2918_vm8, %v10680_v1  ;;  %v7793_v1 = vor.u32 %v8277_v45, %v7790_v26 }
 0x504   :  { %12817 = vst [vmem:[#allocation7_spill] sm:$0xff] %v10880_v29  ;;  %v10911_v14 = vsel %vm3846_vm9, %v3866_v49, %v3868_v18  ;;  %v8291_v49 = vld [vmem:[%s12463_s6 + $0x30] sm:$0xff] }
 0x505   :  { %4481 = vmatpush.bf16.msrb.mxu1 %v7793_v1  ;;  %5245 = vmatpush.bf16.msrb.mxu2 %v8291_v49 }
 0x506   :  { %v10899_v11 = vpop.f32.mrf.mxu3 }
 0x507   :  { %v3606_v50 = vpop.f32.mrf.mxu0  ;;  %v3695_v30 = vpop.f32.mrf.mxu1 }
 0x508   :  { %v3774_v33 = vadd.f32 %v3606_v50, %v10400_v46  ;;  %v10903_v16 = vadd.f32 %v3695_v30, %v3365_v43  ;;  %v4005_v29 = vpop.f32.mrf.mxu2  ;;  %v3367_v46 = vadd.f32 %v10593_v12, %v10409_v55  ;;  %v3472_v55 = vrot.slane %v10415_v10, 2 }
 0x509   :  { %v3370_v12 = vadd.f32 %v10608_v35, %v10417_v52 }
 0x50a   :  { %7661 = vmatmul.msk.bf16.gmra.mxu0 %vm2918_vm8, %v3471_v22  ;;  %7677 = vmatmul.msk.bf16.gmra.mxu1 %vm2918_vm8, %v3471_v22  ;;  %v10908_v13 = vadd.f32 %v4003_v5, %v3774_v33 }
 0x50c   :  { %7745 = vmatmul.msk.bf16.gmra.mxu2 %vm2918_vm8, %v10911_v14 }
 0x50e   :  { %v10917_v45 = vpop.f32.mrf.mxu3 }
 0x50f   :  { %v3608_v28 = vpop.f32.mrf.mxu0  ;;  %v3697_v26 = vpop.f32.mrf.mxu1 }
 0x510   :  { %v3776_v54 = vadd.f32 %v3608_v28, %v10411_v34  ;;  %v10920_v1 = vadd.f32 %v3697_v26, %v3367_v46  ;;  %v4008_v22 = vpop.f32.mrf.mxu2  ;;  %v3473_v46 = vsel %vm1548_vm5, %v3470_v37, %v3472_v55 }
 0x512   :  { %v10922_v5 = vadd.f32 %v4005_v29, %v3776_v54  ;;  %v3870_v29 = vrot.slane %v10435_v8, 3 }
 0x513   :  { %7755 = vmatmul.msk.bf16.gmra.mxu3 %vm2918_vm8, %v10710_v36 }
 0x514   :  { %v10944_v52 = vsel %vm3846_vm9, %v3868_v18, %v3870_v29  ;;  %v3474_v18 = vrot.slane %v10435_v8, 2 }
 0x516   :  { %v10932_v43 = vpop.f32.mrf.mxu3 }
 0x517   :  { %v3611_v34 = vpop.f32.mrf.mxu0  ;;  %v3700_v50 = vpop.f32.mrf.mxu1 }
 0x518   :  { %v3778_v30 = vadd.f32 %v3611_v34, %v10420_v24  ;;  %v10936_v33 = vadd.f32 %v3700_v50, %v3370_v12  ;;  %v4010_v36 = vpop.f32.mrf.mxu2  ;;  %v3372_v24 = vadd.f32 %v10624_v19, %v10429_v2  ;;  %v3375_v34 = vadd.f32 %v10645_v48, %v10449_v39 }
 0x519   :  { %v3377_v39 = vadd.f32 %v10660_v40, %v10461_v7  ;;  %v8275_v7 = vld [vmem:[%s12462_s4 + $0x164] sm:$0xf] }
 0x51a   :  { %7662 = vmatmul.msk.bf16.gmra.mxu0 %vm2918_vm8, %v3473_v46  ;;  %7678 = vmatmul.msk.bf16.gmra.mxu1 %vm2918_vm8, %v3473_v46  ;;  %v10941_v28 = vadd.f32 %v4008_v22, %v3778_v30  ;;  %v3872_v30 = vrot.slane %v10467_v61, 3 }
 0x51c   :  { %7746 = vmatmul.msk.bf16.gmra.mxu2 %vm2918_vm8, %v10944_v52  ;;  %v10974_v48 = vsel %vm3846_vm9, %v3870_v29, %v3872_v30  ;;  %v7780_v29 = vld [vmem:[%s12462_s4 + $0x160] sm:$0xf] }
 0x51e   :  { %v10950_v35 = vpop.f32.mrf.mxu3 }
 0x51f   :  { %v3613_v26 = vpop.f32.mrf.mxu0  ;;  %v3702_v54 = vpop.f32.mrf.mxu1 }
 0x520   :  { %v3780_v37 = vadd.f32 %v3613_v26, %v10431_v38  ;;  %v10953_v49 = vadd.f32 %v3702_v54, %v3372_v24  ;;  %v4013_v12 = vpop.f32.mrf.mxu2  ;;  %v3475_v24 = vsel %vm1548_vm5, %v3472_v55, %v3474_v18 }
 0x522   :  { %v10955_v22 = vadd.f32 %v4010_v36, %v3780_v37 }
 0x523   :  { %7756 = vmatmul.msk.bf16.gmra.mxu3 %vm2918_vm8, %v10752_v57 }
 0x526   :  { %v10962_v2 = vpop.f32.mrf.mxu3 }
 0x527   :  { %v3616_v19 = vpop.f32.mrf.mxu0  ;;  %v3705_v50 = vpop.f32.mrf.mxu1 }
 0x528   :  { %v3782_v38 = vadd.f32 %v3616_v19, %v10452_v3  ;;  %v10966_v46 = vadd.f32 %v3705_v50, %v3375_v34  ;;  %v4015_v36 = vpop.f32.mrf.mxu2 }
 0x52a   :  { %7663 = vmatmul.msk.bf16.gmra.mxu0 %vm2918_vm8, %v3475_v24  ;;  %7679 = vmatmul.msk.bf16.gmra.mxu1 %vm2918_vm8, %v3475_v24  ;;  %v10971_v57 = vadd.f32 %v4013_v12, %v3782_v38  ;;  %v8276_v12 = vld [vmem:[%s12462_s4 + $0x164] sm:$0xf0]  ;;  %v3476_v24 = vrot.slane %v10467_v61, 2 }
 0x52b   :  { %v7781_v40 = vor.u32 %v8276_v12, %v7780_v29  ;;  %v8290_v38 = vld [vmem:[%s12463_s6 + $0x28] sm:$0xff] }
 0x52c   :  { %7747 = vmatmul.msk.bf16.gmra.mxu2 %vm2918_vm8, %v10974_v48 }
 0x52d   :  { %4393 = vmatpush.bf16.msrb.mxu0 %v7781_v40  ;;  %5246 = vmatpush.bf16.msrb.mxu2 %v8290_v38 }
 0x52e   :  { %v10980_v3 = vpop.f32.mrf.mxu3 }
 0x52f   :  { %v3618_v26 = vpop.f32.mrf.mxu0  ;;  %v3707_v54 = vpop.f32.mrf.mxu1 }
 0x530   :  { %v3784_v55 = vadd.f32 %v3618_v26, %v10463_v47  ;;  %v10983_v37 = vadd.f32 %v3707_v54, %v3377_v39  ;;  %v4018_v34 = vpop.f32.mrf.mxu2  ;;  %v7782_v47 = vld [vmem:[%s12462_s4 + $0x168] sm:$0xf0]  ;;  %v3380_v39 = vadd.f32 %v10669_v15, %v10481_v23 }
 0x531   :  { %v7785_v19 = vor.u32 %v8275_v7, %v7782_v47  ;;  %v3477_v7 = vsel %vm1548_vm5, %v3474_v18, %v3476_v24 }
 0x532   :  { %v10997_v50 = vadd.f32 %v4015_v36, %v3784_v55  ;;  %v3874_v55 = vrot.slane %v10517_v53, 3 }
 0x533   :  { %7757 = vmatmul.msk.bf16.gmra.mxu3 %vm2918_vm8, %v10776_v60  ;;  %4482 = vmatpush.bf16.msrb.mxu1 %v7785_v19 }
 0x534   :  { %v11021_v23 = vsel %vm3846_vm9, %v3872_v30, %v3874_v55  ;;  %v3478_v30 = vrot.slane %v10517_v53, 2 }
 0x536   :  { %v11007_v26 = vpop.f32.mrf.mxu3 }
 0x537   :  { %v3621_v54 = vpop.f32.mrf.mxu0  ;;  %v3710_v36 = vpop.f32.mrf.mxu1 }
 0x538   :  { %v3786_v60 = vadd.f32 %v3621_v54, %v10484_v27  ;;  %v11011_v29 = vadd.f32 %v3710_v36, %v3380_v39  ;;  %v11013_v12 = vpop.f32.mrf.mxu2  ;;  %v3382_v27 = vadd.f32 %v10684_v42, %v10499_v58  ;;  %v3385_v39 = vadd.f32 %v10699_v20, %v10519_v32  ;;  %v12822_v20 = vld [vmem:[#allocation44_spill] sm:$0xff] }
 0x539   :  { %12818 = vst [vmem:[#allocation11_spill] sm:$0xff] %v11013_v12  ;;  %v3876_v36 = vrot.slane %v10549_v63, 3 }
 0x53a   :  { %7664 = vmatmul.msk.bf16.gmra.mxu0 %vm2918_vm8, %v3477_v7  ;;  %7680 = vmatmul.msk.bf16.gmra.mxu1 %vm2918_vm8, %v3477_v7  ;;  %v11018_v40 = vadd.f32 %v4018_v34, %v3786_v60 }
 0x53b   :  { %v11053_v32 = vsel %vm3846_vm9, %v3874_v55, %v3876_v36  ;;  %v8289_v55 = vld [vmem:[%s12463_s6 + $0x20] sm:$0xff] }
 0x53c   :  { %7748 = vmatmul.msk.bf16.gmra.mxu2 %vm2918_vm8, %v11021_v23 }
 0x53d   :  { %5247 = vmatpush.bf16.msrb.mxu2 %v8289_v55 }
 0x53e   :  { %v11027_v15 = vpop.f32.mrf.mxu3 }
 0x53f   :  { %v3623_v47 = vpop.f32.mrf.mxu0  ;;  %v3712_v19 = vpop.f32.mrf.mxu1 }
 0x540   :  { %v11030_v18 = vadd.f32 %v3623_v47, %v10501_v4  ;;  %v11032_v38 = vadd.f32 %v3712_v19, %v3382_v27  ;;  %v4023_v34 = vpop.f32.mrf.mxu2  ;;  %v3479_v27 = vsel %vm1548_vm5, %v3476_v24, %v3478_v30  ;;  %v12824_v24 = vld [vmem:[#allocation16_spill] sm:$0xff] }
 0x542   :  { %12819 = vst [vmem:[#allocation19_spill] sm:$0xff] %v11030_v18 }
 0x543   :  { %7758 = vmatmul.msk.bf16.gmra.mxu3 %vm2918_vm8, %v10809_v56 }
 0x546   :  { %v11039_v54 = vpop.f32.mrf.mxu3 }
 0x547   :  { %v3626_v58 = vpop.f32.mrf.mxu0  ;;  %v3715_v42 = vpop.f32.mrf.mxu1 }
 0x548   :  { %v3790_v4 = vadd.f32 %v3626_v58, %v10522_v62  ;;  %v11043_v60 = vadd.f32 %v3715_v42, %v3385_v39  ;;  %v11045_v7 = vpop.f32.mrf.mxu2  ;;  %v12823_v62 = vld [vmem:[#allocation2_spill] sm:$0xff] }
 0x549   :  { %12820 = vst [vmem:[#allocation32_spill] sm:$0xff] %v11045_v7  ;;  %v3387_v47 = vadd.f32 %v12823_v62, %v12822_v20  ;;  %v12828_v20 = vld [vmem:[#allocation18_spill] sm:$0xff] }
 0x54a   :  { %7665 = vmatmul.msk.bf16.gmra.mxu0 %vm2918_vm8, %v3479_v27  ;;  %7681 = vmatmul.msk.bf16.gmra.mxu1 %vm2918_vm8, %v3479_v27  ;;  %v11050_v56 = vadd.f32 %v4023_v34, %v3790_v4  ;;  %v3480_v4 = vrot.slane %v10549_v63, 2  ;;  %v12827_v27 = vld [vmem:[#allocation26_spill] sm:$0xff] }
 0x54b   :  { %v3390_v62 = vadd.f32 %v12828_v20, %v12827_v27 }
 0x54c   :  { %12821 = vst [vmem:[#allocation39_spill] sm:$0xff] %v11050_v56  ;;  %7749 = vmatmul.msk.bf16.gmra.mxu2 %vm2918_vm8, %v11053_v32  ;;  %v3481_v63 = vsel %vm1548_vm5, %v3478_v30, %v3480_v4 }
 0x54e   :  { %v11059_v19 = vpop.f32.mrf.mxu3 }
 0x54f   :  { %v3628_v39 = vpop.f32.mrf.mxu0  ;;  %v3717_v58 = vpop.f32.mrf.mxu1 }
 0x550   :  { %v11062_v42 = vadd.f32 %v3628_v39, %v12824_v24  ;;  %v11064_v7 = vadd.f32 %v3717_v58, %v3387_v47  ;;  %v4028_v34 = vpop.f32.mrf.mxu2  ;;  %v12829_v24 = vmov 0  }
 0x552   :  { %12825 = vst [vmem:[#allocation5_spill] sm:$0xff] %v11062_v42  ;;  %v3878_v42 = vrot.slane %v12829_v24, 3 }
 0x553   :  { %12826 = vst [vmem:[#allocation44_spill] sm:$0xff] %v11064_v7  ;;  %7759 = vmatmul.msk.bf16.gmra.mxu3 %vm2918_vm8, %v10836_v9  ;;  %v12830_v7 = vld [vmem:[#allocation28_spill] sm:$0xff] }
 0x556   :  { %v4087_v56 = vpop.f32.mrf.mxu3 }
 0x557   :  { %v11075_v39 = vadd.f32 %v4087_v56, %v10861_v6  ;;  %v3631_v47 = vpop.f32.mrf.mxu0  ;;  %v3720_v58 = vpop.f32.mrf.mxu1  ;;  %v11089_v6 = vsel %vm3846_vm9, %v3876_v36, %v3878_v42  ;;  %v12833_v56 = vld [vmem:[#allocation51_spill] sm:$0xff]  ;;  %v12837_v36 = vld [vmem:[#allocation54_spill] sm:$0xff]  ;;  %v12838_v42 = vld [vmem:[#allocation21_spill] sm:$0xff] }
 0x558   :  { %v3794_v9 = vadd.f32 %v3631_v47, %v12830_v7  ;;  %v11079_v53 = vadd.f32 %v3720_v58, %v3390_v62  ;;  %v11081_v12 = vpop.f32.mrf.mxu2  ;;  %v12834_v7 = vld [vmem:[#allocation3_spill] sm:$0xff]  ;;  %v12835_v58 = vld [vmem:[#allocation53_spill] sm:$0xff] }
 0x559   :  { %12831 = vst [vmem:[#allocation2_spill] sm:$0xff] %v11081_v12  ;;  %v3392_v27 = vadd.f32 %v12834_v7, %v12833_v56 }
 0x55a   :  { %7666 = vmatmul.msk.bf16.gmra.mxu0 %vm2918_vm8, %v3481_v63  ;;  %7682 = vmatmul.msk.bf16.gmra.mxu1 %vm2918_vm8, %v3481_v63  ;;  %v11086_v55 = vadd.f32 %v4028_v34, %v3794_v9  ;;  %v3395_v9 = vadd.f32 %v12838_v42, %v12837_v36 }
 0x55c   :  { %12832 = vst [vmem:[#allocation16_spill] sm:$0xff] %v11086_v55  ;;  %7750 = vmatmul.msk.bf16.gmra.mxu2 %vm2918_vm8, %v11089_v6 }
 0x55e   :  { %v4089_v20 = vpop.f32.mrf.mxu3 }
 0x55f   :  { %v11096_v62 = vadd.f32 %v4089_v20, %v10878_v51  ;;  %v3633_v30 = vpop.f32.mrf.mxu0  ;;  %v3722_v47 = vpop.f32.mrf.mxu1  ;;  %v12839_v20 = vld [vmem:[#allocation55_spill] sm:$0xff] }
 0x560   :  { %v11099_v24 = vadd.f32 %v3633_v30, %v12835_v58  ;;  %v11101_v63 = vadd.f32 %v3722_v47, %v3392_v27  ;;  %v4033_v34 = vpop.f32.mrf.mxu2  ;;  %v12841_v27 = vld [vmem:[#allocation61_spill] sm:$0xff]  ;;  %v12843_v58 = vld [vmem:[#allocation56_spill] sm:$0xff] }
 0x561   :  { %v3482_v47 = vsel %vm1548_vm5, %v3480_v4, %v12841_v27 }
 0x562   :  { %12836 = vst [vmem:[#allocation26_spill] sm:$0xff] %v11099_v24 }
 0x563   :  { %7760 = vmatmul.msk.bf16.gmra.mxu3 %vm2918_vm8, %v10869_v21 }
 0x566   :  { %v4092_v12 = vpop.f32.mrf.mxu3 }
 0x567   :  { %v11108_v56 = vadd.f32 %v4092_v12, %v10903_v16  ;;  %v3636_v51 = vpop.f32.mrf.mxu0  ;;  %v3725_v7 = vpop.f32.mrf.mxu1  ;;  %v12844_v16 = vld [vmem:[#allocation43_spill] sm:$0xff] }
 0x568   :  { %v3798_v55 = vadd.f32 %v3636_v51, %v12839_v20  ;;  %v11111_v18 = vadd.f32 %v3725_v7, %v3395_v9  ;;  %v11113_v30 = vpop.f32.mrf.mxu2  ;;  %v3397_v12 = vadd.f32 %v12844_v16, %v12843_v58  ;;  %v12845_v7 = vld [vmem:[#allocation57_spill] sm:$0xff]  ;;  %v12849_v58 = vld [vmem:[#allocation58_spill] sm:$0xff] }
 0x569   :  { %12840 = vst [vmem:[#allocation18_spill] sm:$0xff] %v11113_v30  ;;  %v12850_v16 = vld [vmem:[#allocation46_spill] sm:$0xff] }
 0x56a   :  { %7667 = vmatmul.msk.bf16.gmra.mxu0 %vm2918_vm8, %v3482_v47  ;;  %7683 = vmatmul.msk.bf16.gmra.mxu1 %vm2918_vm8, %v3482_v47  ;;  %v11119_v21 = vadd.f32 %v4033_v34, %v3798_v55  ;;  %v8288_v55 = vld [vmem:[%s12463_s6 + $0x18] sm:$0xff]  ;;  %v12848_v34 = vld [vmem:[#allocation42_spill] sm:$0xff] }
 0x56b   :  { %v4245_v47 = vrot.slane %v12848_v34, 4  ;;  %5248 = vmatpush.bf16.msrb.mxu2 %v8288_v55 }
 0x56c   :  { %12842 = vst [vmem:[#allocation28_spill] sm:$0xff] %v11119_v21 }
 0x56e   :  { %v4094_v36 = vpop.f32.mrf.mxu3 }
 0x56f   :  { %v11124_v42 = vadd.f32 %v4094_v36, %v10920_v1  ;;  %v3638_v9 = vpop.f32.mrf.mxu0  ;;  %v3727_v51 = vpop.f32.mrf.mxu1  ;;  %v8293_v1 = vld [vmem:[%s12463_s6 + $0x40] sm:$0xff] }
 0x570   :  { %v11127_v20 = vadd.f32 %v3638_v9, %v12845_v7  ;;  %v11129_v30 = vadd.f32 %v3727_v51, %v3397_v12  ;;  %v4038_v4 = vpop.f32.mrf.mxu2  ;;  %5340 = vmatpush.bf16.msra.mxu3 %v8293_v1  ;;  %v3400_v12 = vadd.f32 %v12850_v16, %v12849_v58  ;;  %v12851_v7 = vld [vmem:[#allocation13_spill] sm:$0xff] }
 0x571   :  { %v4244_v27 = vrot.slane %v12851_v7, 4  ;;  %v12857_v7 = vld [vmem:[#allocation62_spill] sm:$0xff] }
 0x572   :  { %12846 = vst [vmem:[#allocation51_spill] sm:$0xff] %v11127_v20  ;;  %v12852_v20 = vld [vmem:[#allocation60_spill] sm:$0xff] }
 0x573   :  { %12847 = vst [vmem:[#allocation3_spill] sm:$0xff] %v11129_v30  ;;  %7761 = vmatmul.msk.bf16.gmra.mxu3 %vm2918_vm8, %v10911_v14  ;;  %v4246_v55 = vsel %vm2514_vm4, %v4244_v27, %v4245_v47 }
 0x576   :  { %v4097_v36 = vpop.f32.mrf.mxu3 }
 0x577   :  { %v11143_v9 = vadd.f32 %v4097_v36, %v10936_v33  ;;  %v3641_v14 = vpop.f32.mrf.mxu0  ;;  %v3730_v51 = vpop.f32.mrf.mxu1  ;;  %v12854_v33 = vld [vmem:[#allocation59_spill] sm:$0xff] }
 0x578   :  { %v3802_v30 = vadd.f32 %v3641_v14, %v12852_v20  ;;  %v11147_v21 = vadd.f32 %v3730_v51, %v3400_v12  ;;  %v11149_v24 = vpop.f32.mrf.mxu2  ;;  %v3402_v34 = vadd.f32 %v10816_v44, %v12854_v33  ;;  %v12855_v36 = vld [vmem:[#allocation63_spill] sm:$0xff]  ;;  %v3405_v44 = vadd.f32 %v10825_v17, %v12857_v7 }
 0x579   :  { %12853 = vst [vmem:[#allocation53_spill] sm:$0xff] %v11149_v24  ;;  %v12858_v24 = vld [vmem:[#allocation64_spill] sm:$0xff]  ;;  %v12860_v17 = vld [vmem:[#allocation35_spill] sm:$0xff] }
 0x57a   :  { %7818 = vmatmul.msk.bf16.vlgmr.msrb.gmra.mxu0 %vm2918_vm8, %v4246_v55  ;;  %7834 = vmatmul.msk.bf16.vlgmr.msrb.gmra.mxu1 %vm2918_vm8, %v4246_v55  ;;  %v11154_v1 = vadd.f32 %v4038_v4, %v3802_v30  ;;  %v12856_v30 = vld [vmem:[#allocation22_spill] sm:$0xff] }
 0x57b   :  { %v4247_v4 = vrot.slane %v12856_v30, 4 }
 0x57e   :  { %v4099_v58 = vpop.f32.mrf.mxu3 }
 0x57f   :  { %v11159_v16 = vadd.f32 %v4099_v58, %v10953_v49  ;;  %v3643_v20 = vpop.f32.mrf.mxu0  ;;  %v3732_v12 = vpop.f32.mrf.mxu1 }
 0x580   :  { %v11162_v14 = vadd.f32 %v3643_v20, %v12855_v36  ;;  %v11164_v51 = vadd.f32 %v3732_v12, %v3402_v34  ;;  %v4043_v27 = vpop.f32.mrf.mxu2  ;;  %v4248_v12 = vsel %vm2514_vm4, %v4245_v47, %v4247_v4 }
 0x583   :  { %7762 = vmatmul.msk.bf16.gmra.mxu3 %vm2918_vm8, %v10944_v52 }
 0x586   :  { %v4102_v55 = vpop.f32.mrf.mxu3 }
 0x587   :  { %v11172_v49 = vadd.f32 %v4102_v55, %v10966_v46  ;;  %v3646_v33 = vpop.f32.mrf.mxu0  ;;  %v3735_v58 = vpop.f32.mrf.mxu1  ;;  %v3407_v46 = vadd.f32 %v10840_v41, %v12860_v17  ;;  %v12861_v55 = vld [vmem:[#allocation65_spill] sm:$0xff]  ;;  %v12864_v41 = vld [vmem:[#allocation38_spill] sm:$0xff] }
 0x588   :  { %v3806_v20 = vadd.f32 %v3646_v33, %v12858_v24  ;;  %v11175_v36 = vadd.f32 %v3735_v58, %v3405_v44  ;;  %v11177_v34 = vpop.f32.mrf.mxu2 }
 0x589   :  { %12859 = vst [vmem:[#allocation54_spill] sm:$0xff] %v11177_v34 }
 0x58a   :  { %7819 = vmatmul.msk.bf16.gmra.mxu0 %vm2918_vm8, %v4248_v12  ;;  %7835 = vmatmul.msk.bf16.gmra.mxu1 %vm2918_vm8, %v4248_v12  ;;  %v11182_v52 = vadd.f32 %v4043_v27, %v3806_v20  ;;  %v8287_v27 = vld [vmem:[%s12463_s6 + $0x10] sm:$0xff]  ;;  %v4249_v20 = vrot.slane %v12864_v41, 4 }
 0x58b   :  { %5249 = vmatpush.bf16.msrb.mxu2 %v8287_v27  ;;  %v12869_v27 = vld [vmem:[#allocation67_spill] sm:$0xff] }
 0x58c   :  { %v3412_v41 = vadd.f32 %v10875_v25, %v12869_v27 }
 0x58e   :  { %v4104_v30 = vpop.f32.mrf.mxu3 }
 0x58f   :  { %v11187_v7 = vadd.f32 %v4104_v30, %v10983_v37  ;;  %v3648_v24 = vpop.f32.mrf.mxu0  ;;  %v3737_v44 = vpop.f32.mrf.mxu1  ;;  %v12865_v37 = vld [vmem:[#allocation66_spill] sm:$0xff] }
 0x590   :  { %v11190_v33 = vadd.f32 %v3648_v24, %v12861_v55  ;;  %v11192_v58 = vadd.f32 %v3737_v44, %v3407_v46  ;;  %v4048_v47 = vpop.f32.mrf.mxu2  ;;  %v3410_v12 = vadd.f32 %v10857_v31, %v12865_v37  ;;  %v12866_v44 = vld [vmem:[#allocation12_spill] sm:$0xff]  ;;  %v8304_v31 = vld [vmem:[%s12464_s7 + $0x48] sm:$0xff] }
 0x591   :  { %5669 = vmatpush.bf16.msra.mxu0 %v8304_v31 }
 0x592   :  { %12862 = vst [vmem:[#allocation21_spill] sm:$0xff] %v11190_v33  ;;  %v4250_v33 = vsel %vm2514_vm4, %v4247_v4, %v4249_v20 }
 0x593   :  { %12863 = vst [vmem:[#allocation55_spill] sm:$0xff] %v11192_v58  ;;  %7763 = vmatmul.msk.bf16.gmra.mxu3 %vm2918_vm8, %v10974_v48  ;;  %v12875_v58 = vld [vmem:[#allocation68_spill] sm:$0xff] }
 0x596   :  { %v4107_v17 = vpop.f32.mrf.mxu3 }
 0x597   :  { %v11203_v30 = vadd.f32 %v4107_v17, %v11011_v29  ;;  %v3651_v46 = vpop.f32.mrf.mxu0  ;;  %v3740_v24 = vpop.f32.mrf.mxu1 }
 0x598   :  { %v3810_v55 = vadd.f32 %v3651_v46, %v12866_v44  ;;  %v11206_v34 = vadd.f32 %v3740_v24, %v3410_v12  ;;  %v11208_v48 = vpop.f32.mrf.mxu2  ;;  %v12870_v46 = vld [vmem:[#allocation31_spill] sm:$0xff]  ;;  %v12873_v44 = vld [vmem:[#allocation14_spill] sm:$0xff] }
 0x599   :  { %12867 = vst [vmem:[#allocation56_spill] sm:$0xff] %v11208_v48 }
 0x59a   :  { %7820 = vmatmul.msk.bf16.gmra.mxu0 %vm2918_vm8, %v4250_v33  ;;  %7836 = vmatmul.msk.bf16.gmra.mxu1 %vm2918_vm8, %v4250_v33  ;;  %v11216_v29 = vadd.f32 %v4048_v47, %v3810_v55  ;;  %v4251_v47 = vrot.slane %v12873_v44, 4  ;;  %v12874_v55 = vld [vmem:[#allocation20_spill] sm:$0xff] }
 0x59b   :  { %v3415_v31 = vadd.f32 %v10899_v11, %v12874_v55  ;;  %v12878_v11 = vld [vmem:[#allocation8_spill] sm:$0xff] }
 0x59c   :  { %12868 = vst [vmem:[#allocation43_spill] sm:$0xff] %v11216_v29 }
 0x59e   :  { %v11220_v37 = vpop.f32.mrf.mxu3 }
 0x59f   :  { %v3653_v12 = vpop.f32.mrf.mxu0  ;;  %v3742_v17 = vpop.f32.mrf.mxu1 }
 0x5a0   :  { %v11223_v4 = vadd.f32 %v3653_v12, %v12870_v46  ;;  %v11225_v24 = vadd.f32 %v3742_v17, %v3412_v41  ;;  %v4053_v33 = vpop.f32.mrf.mxu2  ;;  %v4252_v17 = vsel %vm2514_vm4, %v4249_v20, %v4251_v47  ;;  %v8286_v20 = vld [vmem:[%s12463_s6 + $0x8] sm:$0xff] }
 0x5a1   :  { %5250 = vmatpush.bf16.msrb.mxu2 %v8286_v20 }
 0x5a2   :  { %12871 = vst [vmem:[#allocation57_spill] sm:$0xff] %v11223_v4 }
 0x5a3   :  { %12872 = vst [vmem:[#allocation42_spill] sm:$0xff] %v11225_v24  ;;  %7764 = vmatmul.msk.bf16.gmra.mxu3 %vm2918_vm8, %v11021_v23 }
 0x5a6   :  { %v4112_v48 = vpop.f32.mrf.mxu3 }
 0x5a7   :  { %v11233_v25 = vadd.f32 %v4112_v48, %v11043_v60  ;;  %v3656_v27 = vpop.f32.mrf.mxu0  ;;  %v3745_v29 = vpop.f32.mrf.mxu1  ;;  %v3417_v60 = vadd.f32 %v10917_v45, %v12878_v11 }
 0x5a8   :  { %v3814_v12 = vadd.f32 %v3656_v27, %v12875_v58  ;;  %v11236_v46 = vadd.f32 %v3745_v29, %v3415_v31  ;;  %v11238_v41 = vpop.f32.mrf.mxu2  ;;  %v12879_v58 = vld [vmem:[#allocation30_spill] sm:$0xff] }
 0x5a9   :  { %12876 = vst [vmem:[#allocation58_spill] sm:$0xff] %v11238_v41 }
 0x5aa   :  { %7821 = vmatmul.msk.bf16.gmra.mxu0 %vm2918_vm8, %v4252_v17  ;;  %7837 = vmatmul.msk.bf16.gmra.mxu1 %vm2918_vm8, %v4252_v17  ;;  %v11243_v23 = vadd.f32 %v4053_v33, %v3814_v12  ;;  %v12882_v33 = vld [vmem:[#allocation45_spill] sm:$0xff]  ;;  %v12883_v12 = vld [vmem:[#allocation34_spill] sm:$0xff] }
 0x5ab   :  { %v4253_v45 = vrot.slane %v12882_v33, 4  ;;  %v3420_v17 = vadd.f32 %v10932_v43, %v12883_v12  ;;  %v12887_v43 = vld [vmem:[#allocation36_spill] sm:$0xff] }
 0x5ac   :  { %12877 = vst [vmem:[#allocation46_spill] sm:$0xff] %v11243_v23  ;;  %v12893_v23 = vld [vmem:[#allocation4_spill] sm:$0xff] }
 0x5ad   :  { %v4254_v20 = vsel %vm2514_vm4, %v4251_v47, %v4253_v45  ;;  %v12891_v47 = vld [vmem:[#allocation23_spill] sm:$0xff] }
 0x5ae   :  { %v11247_v48 = vpop.f32.mrf.mxu3 }
 0x5af   :  { %v3658_v44 = vpop.f32.mrf.mxu0  ;;  %v3747_v55 = vpop.f32.mrf.mxu1 }
 0x5b0   :  { %v11250_v29 = vadd.f32 %v3658_v44, %v12879_v58  ;;  %v11252_v31 = vadd.f32 %v3747_v55, %v3417_v60  ;;  %v4058_v27 = vpop.f32.mrf.mxu2  ;;  %v12884_v58 = vld [vmem:[#allocation37_spill] sm:$0xff] }
 0x5b2   :  { %12880 = vst [vmem:[#allocation13_spill] sm:$0xff] %v11250_v29 }
 0x5b3   :  { %12881 = vst [vmem:[#allocation60_spill] sm:$0xff] %v11252_v31  ;;  %7765 = vmatmul.msk.bf16.gmra.mxu3 %vm2918_vm8, %v11053_v32 }
 0x5b6   :  { %v4117_v11 = vpop.f32.mrf.mxu3 }
 0x5b7   :  { %v11263_v44 = vadd.f32 %v4117_v11, %v11079_v53  ;;  %v3661_v60 = vpop.f32.mrf.mxu0  ;;  %v3750_v55 = vpop.f32.mrf.mxu1  ;;  %v3422_v53 = vadd.f32 %v10950_v35, %v12887_v43 }
 0x5b8   :  { %v3818_v41 = vadd.f32 %v3661_v60, %v12884_v58  ;;  %v11266_v29 = vadd.f32 %v3750_v55, %v3420_v17  ;;  %v11268_v31 = vpop.f32.mrf.mxu2  ;;  %v12888_v60 = vld [vmem:[#allocation41_spill] sm:$0xff] }
 0x5b9   :  { %12885 = vst [vmem:[#allocation59_spill] sm:$0xff] %v11268_v31 }
 0x5ba   :  { %7822 = vmatmul.msk.bf16.gmra.mxu0 %vm2918_vm8, %v4254_v20  ;;  %7838 = vmatmul.msk.bf16.gmra.mxu1 %vm2918_vm8, %v4254_v20  ;;  %v11273_v32 = vadd.f32 %v4058_v27, %v3818_v41  ;;  %v4255_v20 = vrot.slane %v12891_v47, 4  ;;  %v12892_v41 = vld [vmem:[#allocation40_spill] sm:$0xff] }
 0x5bb   :  { %v3425_v27 = vadd.f32 %v10962_v2, %v12892_v41  ;;  %v12896_v2 = vld [vmem:[#allocation47_spill] sm:$0xff] }
 0x5bc   :  { %12886 = vst [vmem:[#allocation63_spill] sm:$0xff] %v11273_v32 }
 0x5be   :  { %v11277_v33 = vpop.f32.mrf.mxu3 }
 0x5bf   :  { %v3663_v12 = vpop.f32.mrf.mxu0  ;;  %v3752_v11 = vpop.f32.mrf.mxu1 }
 0x5c0   :  { %v11280_v17 = vadd.f32 %v3663_v12, %v12888_v60  ;;  %v11282_v55 = vadd.f32 %v3752_v11, %v3422_v53  ;;  %v4063_v58 = vpop.f32.mrf.mxu2  ;;  %v4256_v53 = vsel %vm2514_vm4, %v4253_v45, %v4255_v20  ;;  %v8303_v45 = vld [vmem:[%s12464_s7 + $0x40] sm:$0xff] }
 0x5c1   :  { %5670 = vmatpush.bf16.msra.mxu0 %v8303_v45 }
 0x5c2   :  { %12889 = vst [vmem:[#allocation22_spill] sm:$0xff] %v11280_v17  ;;  %v12910_v17 = vld [vmem:[#allocation49_spill] sm:$0xff] }
 0x5c3   :  { %12890 = vst [vmem:[#allocation62_spill] sm:$0xff] %v11282_v55  ;;  %7766 = vmatmul.msk.bf16.gmra.mxu3 %vm2918_vm8, %v11089_v6 }
 0x5c6   :  { %v4122_v31 = vpop.f32.mrf.mxu3 }
 0x5c7   :  { %v11290_v35 = vadd.f32 %v4122_v31, %v11111_v18  ;;  %v3666_v43 = vpop.f32.mrf.mxu0  ;;  %v3755_v32 = vpop.f32.mrf.mxu1  ;;  %v3427_v18 = vadd.f32 %v10980_v3, %v12896_v2 }
 0x5c8   :  { %v3822_v12 = vadd.f32 %v3666_v43, %v12893_v23  ;;  %v11293_v60 = vadd.f32 %v3755_v32, %v3425_v27  ;;  %v11296_v11 = vpop.f32.mrf.mxu2  ;;  %v12897_v23 = vld [vmem:[#allocation24_spill] sm:$0xff]  ;;  %v12900_v43 = vld [vmem:[#allocation15_spill] sm:$0xff] }
 0x5c9   :  { %12894 = vst [vmem:[#allocation64_spill] sm:$0xff] %v11296_v11  ;;  %v12902_v11 = vld [vmem:[#allocation6_spill] sm:$0xff] }
 0x5ca   :  { %7823 = vmatmul.msk.bf16.gmra.mxu0 %vm2918_vm8, %v4256_v53  ;;  %7839 = vmatmul.msk.bf16.gmra.mxu1 %vm2918_vm8, %v4256_v53  ;;  %v11300_v6 = vadd.f32 %v4063_v58, %v3822_v12  ;;  %v8285_v58 = vld [vmem:[%s12463_s6] sm:$0xff]  ;;  %v4257_v12 = vrot.slane %v12900_v43, 4 }
 0x5cb   :  { %5251 = vmatpush.bf16.msrb.mxu2 %v8285_v58  ;;  %v12901_v53 = vld [vmem:[#allocation50_spill] sm:$0xff]  ;;  %v12904_v58 = vld [vmem:[#allocation9_spill] sm:$0xff] }
 0x5cc   :  { %12895 = vst [vmem:[#allocation35_spill] sm:$0xff] %v11300_v6  ;;  %v3430_v2 = vadd.f32 %v11007_v26, %v12901_v53  ;;  %v4258_v6 = vsel %vm2514_vm4, %v4255_v20, %v4257_v12  ;;  %v3432_v26 = vadd.f32 %v11027_v15, %v12904_v58  ;;  %v12909_v20 = vld [vmem:[#allocation48_spill] sm:$0xff] }
 0x5ce   :  { %v11304_v31 = vpop.f32.mrf.mxu3 }
 0x5cf   :  { %v3668_v47 = vpop.f32.mrf.mxu0  ;;  %v3757_v41 = vpop.f32.mrf.mxu1 }
 0x5d0   :  { %v11307_v32 = vadd.f32 %v3668_v47, %v12897_v23  ;;  %v11309_v27 = vadd.f32 %v3757_v41, %v3427_v18  ;;  %v4068_v3 = vpop.f32.mrf.mxu2 }
 0x5d2   :  { %12898 = vst [vmem:[#allocation65_spill] sm:$0xff] %v11307_v32 }
 0x5d3   :  { %12899 = vst [vmem:[#allocation38_spill] sm:$0xff] %v11309_v27 }
 0x5d6   :  { %v4127_v47 = vpop.f32.mrf.mxu3 }
 0x5d7   :  { %v11321_v18 = vadd.f32 %v4127_v47, %v11147_v21  ;;  %v3671_v41 = vpop.f32.mrf.mxu0  ;;  %v3760_v23 = vpop.f32.mrf.mxu1 }
 0x5d8   :  { %v3826_v32 = vadd.f32 %v3671_v41, %v12902_v11  ;;  %v11324_v27 = vadd.f32 %v3760_v23, %v3430_v2  ;;  %v11333_v43 = vpop.f32.mrf.mxu2  ;;  %v12906_v11 = vld [vmem:[#allocation29_spill] sm:$0xff]  ;;  %v4259_v23 = vrot.slane %v12909_v20, 4 }
 0x5d9   :  { %12905 = vst [vmem:[#allocation12_spill] sm:$0xff] %v11333_v43  ;;  %v12911_v43 = vld [vmem:[#allocation27_spill] sm:$0xff]  ;;  %v12914_v20 = vld [vmem:[#allocation33_spill] sm:$0xff] }
 0x5da   :  { %7824 = vmatmul.msk.bf16.gmra.mxu0 %vm2918_vm8, %v4258_v6  ;;  %7840 = vmatmul.msk.bf16.gmra.mxu1 %vm2918_vm8, %v4258_v6  ;;  %v11329_v45 = vadd.f32 %v4068_v3, %v3826_v32  ;;  %v3435_v6 = vadd.f32 %v11039_v54, %v12910_v17  ;;  %v12913_v54 = vld [vmem:[#allocation10_spill] sm:$0xff] }
 0x5db   :  { %v3437_v17 = vadd.f32 %v11059_v19, %v12913_v54  ;;  %v4628_v19 = vld [vmem:[%s12465_s5] sm:$0x3] }
 0x5dc   :  { %12903 = vst [vmem:[#allocation66_spill] sm:$0xff] %v11329_v45 }
 0x5de   :  { %v11335_v21 = vpop.f32.mrf.mxu3 }
 0x5df   :  { %v3673_v53 = vpop.f32.mrf.mxu0  ;;  %v3762_v47 = vpop.f32.mrf.mxu1 }
 0x5e0   :  { %v11338_v2 = vadd.f32 %v3673_v53, %v12906_v11  ;;  %v11340_v41 = vadd.f32 %v3762_v47, %v3432_v26  ;;  %v4073_v4 = vpop.f32.mrf.mxu2  ;;  %v4260_v53 = vsel %vm2514_vm4, %v4257_v12, %v4259_v23  ;;  %v4261_v12 = vrot.slane %v10358_v0, 4 }
 0x5e2   :  { %12907 = vst [vmem:[#allocation67_spill] sm:$0xff] %v11338_v2 }
 0x5e3   :  { %12908 = vst [vmem:[#allocation31_spill] sm:$0xff] %v11340_v41 }
 0x5e6   :  { %v4132_v32 = vpop.f32.mrf.mxu3 }
 0x5e7   :  { %v11346_v3 = vadd.f32 %v4132_v32, %v11175_v36  ;;  %v3676_v15 = vpop.f32.mrf.mxu0  ;;  %v3765_v58 = vpop.f32.mrf.mxu1 }
 0x5e8   :  { %v3830_v45 = vadd.f32 %v3676_v15, %v12911_v43  ;;  %v11349_v55 = vadd.f32 %v3765_v58, %v3435_v6  ;;  %v4262_v58 = vsel %vm2514_vm4, %v4259_v23, %v4261_v12 }
 0x5ea   :  { %7825 = vmatmul.msk.bf16.gmra.mxu0 %vm2918_vm8, %v4260_v53  ;;  %7841 = vmatmul.msk.bf16.gmra.mxu1 %vm2918_vm8, %v4260_v53  ;;  %v11354_v26 = vadd.f32 %v4073_v4, %v3830_v45  ;;  %v12918_v53 = vld [vmem:[#allocation17_spill] sm:$0xff] }
 0x5ec   :  { %12912 = vst [vmem:[#allocation14_spill] sm:$0xff] %v11354_v26 }
 0x5ee   :  { %v11358_v36 = vpop.f32.mrf.mxu3 }
 0x5ef   :  { %v3678_v47 = vpop.f32.mrf.mxu0  ;;  %v3767_v11 = vpop.f32.mrf.mxu1 }
 0x5f0   :  { %v11361_v43 = vadd.f32 %v3678_v47, %v12914_v20  ;;  %v11363_v6 = vadd.f32 %v3767_v11, %v3437_v17  ;;  %v11374_v47 = vperm.slane %v4628_v19, 0  ;;  %v11377_v11 = vperm.slane %v4628_v19, 1 }
 0x5f2   :  { %12915 = vst [vmem:[#allocation20_spill] sm:$0xff] %v11361_v43  ;;  %v12920_v43 = vld [vmem:[#allocation7_spill] sm:$0xff] }
 0x5f3   :  { %12916 = vst [vmem:[#allocation68_spill] sm:$0xff] %v11363_v6 }
 0x5f6   :  { %v4137_v32 = vpop.f32.mrf.mxu3 }
 0x5f7   :  { %v11367_v15 = vadd.f32 %v4137_v32, %v11206_v34  ;;  %v4395_v4 = vpop.f32.mrf.mxu0  ;;  %v4484_v45 = vpop.f32.mrf.mxu1 }
 0x5f8   :  { %v4564_v54 = vadd.f32 %v4395_v4, %v12918_v53  ;;  %v4565_v17 = vadd.f32 %v4484_v45, %v11075_v39 }
 0x5f9   :  { %12917 = vst [vmem:[#allocation8_spill] sm:$0xff] %v11367_v15 }
 0x5fa   :  { %7826 = vmatmul.msk.bf16.gmra.mxu0 %vm2918_vm8, %v4262_v58  ;;  %7842 = vmatmul.msk.bf16.gmra.mxu1 %vm2918_vm8, %v4262_v58  ;;  %v4634_v0 = vadd.f32 %v11374_v47, %v4564_v54  ;;  %v4635_v34 = vadd.f32 %v11377_v11, %v4565_v17  ;;  %v4263_v54 = vrot.slane %v10383_v59, 4 }
 0x5fc   :  { %v4698_v6 = vmax.f32 %v4634_v0, 0.0  ;;  %v4699_v39 = vmax.f32 %v4635_v34, 0.0 }
 0x5fe   :  { %v11383_v20 = vpop.f32.mrf.mxu3  ;;  %v4827_v2 = vrot.slane %v4698_v6, 2  ;;  %v4830_v17 = vrot.slane %v4699_v39, 2 }
 0x5ff   :  { %12919 = vst [vmem:[#allocation30_spill] sm:$0xff] %v11383_v20  ;;  %v4397_v32 = vpop.f32.mrf.mxu0  ;;  %v4486_v23 = vpop.f32.mrf.mxu1 }
 0x600   :  { %v4566_v4 = vadd.f32 %v4397_v32, %v12920_v43  ;;  %v4567_v53 = vadd.f32 %v4486_v23, %v11096_v62  ;;  %v8302_v43 = vld [vmem:[%s12464_s7 + $0x38] sm:$0xff] }
 0x601   :  { %5671 = vmatpush.bf16.msra.mxu0 %v8302_v43 }
 0x602   :  { %v4636_v19 = vadd.f32 %v11374_v47, %v4566_v4  ;;  %v4637_v45 = vadd.f32 %v11377_v11, %v4567_v53 }
 0x604   :  { %v4700_v26 = vmax.f32 %v4636_v19, 0.0  ;;  %v4701_v58 = vmax.f32 %v4637_v45, 0.0  ;;  %v4264_v45 = vsel %vm2514_vm4, %v4261_v12, %v4263_v54 }
 0x606   :  { %v4828_v41 = vrot.slane %v4700_v26, 2  ;;  %v4831_v20 = vrot.slane %v4701_v58, 2  ;;  %v4142_v24 = vpop.f32.mrf.mxu3 }
 0x607   :  { %v11394_v62 = vadd.f32 %v4142_v24, %v11236_v46  ;;  %v4400_v0 = vpop.f32.mrf.mxu0  ;;  %v4489_v34 = vpop.f32.mrf.mxu1 }
 0x608   :  { %v4829_v32 = vsel %vm1548_vm5, %v4827_v2, %v4828_v41  ;;  %v4832_v23 = vsel %vm1548_vm5, %v4830_v17, %v4831_v20  ;;  %v4568_v59 = vadd.f32 %v4400_v0, %v10908_v13  ;;  %v4569_v4 = vadd.f32 %v4489_v34, %v11108_v56 }
 0x609   :  { %12921 = vst [vmem:[#allocation45_spill] sm:$0xff] %v11394_v62  ;;  %v5020_v53 = vadd.f32 %v4829_v32, %v4698_v6  ;;  %v5021_v19 = vadd.f32 %v4832_v23, %v4699_v39 }
 0x60a   :  { %v4638_v15 = vadd.f32 %v11374_v47, %v4568_v59  ;;  %v4639_v24 = vadd.f32 %v11377_v11, %v4569_v4  ;;  %7827 = vmatmul.msk.bf16.gmra.mxu0 %vm2918_vm8, %v4264_v45  ;;  %7843 = vmatmul.msk.bf16.gmra.mxu1 %vm2918_vm8, %v4264_v45 }
 0x60c   :  { %v4702_v46 = vmax.f32 %v4638_v15, 0.0  ;;  %v4703_v2 = vmax.f32 %v4639_v24, 0.0 }
 0x60e   :  { %v4833_v17 = vrot.slane %v4702_v46, 2  ;;  %v4835_v62 = vrot.slane %v4703_v2, 2  ;;  %v11405_v13 = vpop.f32.mrf.mxu3 }
 0x60f   :  { %12922 = vst [vmem:[#allocation34_spill] sm:$0xff] %v11405_v13  ;;  %v4402_v56 = vpop.f32.mrf.mxu0  ;;  %v4491_v43 = vpop.f32.mrf.mxu1 }
 0x610   :  { %v4834_v6 = vsel %vm1548_vm5, %v4828_v41, %v4833_v17  ;;  %v4836_v12 = vsel %vm1548_vm5, %v4831_v20, %v4835_v62  ;;  %v4570_v39 = vadd.f32 %v4402_v56, %v10922_v5  ;;  %v4571_v0 = vadd.f32 %v4491_v43, %v11124_v42 }
 0x611   :  { %v5022_v34 = vadd.f32 %v4834_v6, %v4700_v26  ;;  %v5023_v32 = vadd.f32 %v4836_v12, %v4701_v58  ;;  %v4265_v41 = vrot.slane %v10415_v10, 4 }
 0x612   :  { %v4640_v23 = vadd.f32 %v11374_v47, %v4570_v39  ;;  %v4641_v15 = vadd.f32 %v11377_v11, %v4571_v0 }
 0x613   :  { %v5085_v59 = vpack.c.bf16 %v5023_v32, %v5021_v19  ;;  %v5084_v4 = vpack.c.bf16 %v5022_v34, %v5020_v53  ;;  %v4266_v6 = vsel %vm2514_vm4, %v4263_v54, %v4265_v41 }
 0x614   :  { %v4704_v45 = vmax.f32 %v4640_v23, 0.0  ;;  %v4705_v24 = vmax.f32 %v4641_v15, 0.0 }
 0x615   :  { %5252 = vmatmul.bf16.vlgmr.msrb.gmra.mxu2 %v5084_v4  ;;  %7890 = vmatmul.msk.bf16.vlgmr.msra.gmra.mxu3 %vm351_vm0, %v5085_v59 }
 0x616   :  { %v4837_v20 = vrot.slane %v4704_v45, 2  ;;  %v4839_v13 = vrot.slane %v4705_v24, 2  ;;  %v4147_v5 = vpop.f32.mrf.mxu3 }
 0x617   :  { %v11416_v42 = vadd.f32 %v4147_v5, %v11266_v29  ;;  %v4405_v26 = vpop.f32.mrf.mxu0  ;;  %v4494_v58 = vpop.f32.mrf.mxu1 }
 0x618   :  { %v4572_v56 = vadd.f32 %v4405_v26, %v10941_v28  ;;  %v4573_v19 = vadd.f32 %v4494_v58, %v11143_v9  ;;  %v4838_v53 = vsel %vm1548_vm5, %v4833_v17, %v4837_v20  ;;  %v4840_v43 = vsel %vm1548_vm5, %v4835_v62, %v4839_v13 }
 0x619   :  { %v5024_v12 = vadd.f32 %v4838_v53, %v4702_v46  ;;  %v5025_v10 = vadd.f32 %v4840_v43, %v4703_v2 }
 0x61a   :  { %v4642_v39 = vadd.f32 %v11374_v47, %v4572_v56  ;;  %v4643_v0 = vadd.f32 %v11377_v11, %v4573_v19  ;;  %7828 = vmatmul.msk.bf16.gmra.mxu0 %vm2918_vm8, %v4266_v6  ;;  %7844 = vmatmul.msk.bf16.gmra.mxu1 %vm2918_vm8, %v4266_v6 }
 0x61c   :  { %v4706_v29 = vmax.f32 %v4642_v39, 0.0  ;;  %v4707_v28 = vmax.f32 %v4643_v0, 0.0 }
 0x61e   :  { %v4841_v34 = vrot.slane %v4706_v29, 2  ;;  %v4843_v9 = vrot.slane %v4707_v28, 2  ;;  %v11427_v32 = vpop.f32.mrf.mxu3 }
 0x61f   :  { %v4407_v17 = vpop.f32.mrf.mxu0  ;;  %v4496_v62 = vpop.f32.mrf.mxu1 }
 0x620   :  { %v4844_v54 = vsel %vm1548_vm5, %v4839_v13, %v4843_v9  ;;  %v4574_v46 = vadd.f32 %v4407_v17, %v10955_v22  ;;  %v4575_v2 = vadd.f32 %v4496_v62, %v11159_v16  ;;  %v4842_v23 = vsel %vm1548_vm5, %v4837_v20, %v4841_v34 }
 0x621   :  { %v5026_v15 = vadd.f32 %v4842_v23, %v4704_v45  ;;  %v5027_v59 = vadd.f32 %v4844_v54, %v4705_v24  ;;  %v4267_v13 = vrot.slane %v10435_v8, 4  ;;  %v8299_v23 = vld [vmem:[%s12464_s7 + $0x20] sm:$0xff] }
 0x622   :  { %v4644_v4 = vadd.f32 %v11374_v47, %v4574_v46  ;;  %v4645_v5 = vadd.f32 %v11377_v11, %v4575_v2  ;;  %5836 = vmatpush.bf16.msra.mxu1 %v8299_v23 }
 0x623   :  { %v5086_v26 = vpack.c.bf16 %v5026_v15, %v5024_v12  ;;  %v5087_v58 = vpack.c.bf16 %v5027_v59, %v5025_v10  ;;  %v4268_v39 = vsel %vm2514_vm4, %v4265_v41, %v4267_v13 }
 0x624   :  { %v4708_v56 = vmax.f32 %v4644_v4, 0.0  ;;  %v4709_v19 = vmax.f32 %v4645_v5, 0.0 }
 0x625   :  { %5257 = vmatmul.bf16.gmra.mxu2 %v5086_v26  ;;  %7891 = vmatmul.msk.bf16.gmra.mxu3 %vm351_vm0, %v5087_v58 }
 0x626   :  { %v4845_v22 = vrot.slane %v4708_v56, 2  ;;  %v4847_v53 = vrot.slane %v4709_v19, 2  ;;  %v4152_v16 = vpop.f32.mrf.mxu3 }
 0x627   :  { %v11438_v20 = vadd.f32 %v4152_v16, %v11293_v60  ;;  %v4410_v45 = vpop.f32.mrf.mxu0  ;;  %v4499_v24 = vpop.f32.mrf.mxu1 }
 0x628   :  { %v4576_v43 = vadd.f32 %v4410_v45, %v10971_v57  ;;  %v4577_v6 = vadd.f32 %v4499_v24, %v11172_v49  ;;  %v4846_v12 = vsel %vm1548_vm5, %v4841_v34, %v4845_v22  ;;  %v4848_v10 = vsel %vm1548_vm5, %v4843_v9, %v4847_v53 }
 0x629   :  { %v5028_v0 = vadd.f32 %v4846_v12, %v4706_v29  ;;  %v5029_v8 = vadd.f32 %v4848_v10, %v4707_v28 }
 0x62a   :  { %v4646_v17 = vadd.f32 %v11374_v47, %v4576_v43  ;;  %v4647_v62 = vadd.f32 %v11377_v11, %v4577_v6  ;;  %7829 = vmatmul.msk.bf16.gmra.mxu0 %vm2918_vm8, %v4268_v39  ;;  %7845 = vmatmul.msk.bf16.gmra.mxu1 %vm2918_vm8, %v4268_v39 }
 0x62c   :  { %v4710_v60 = vmax.f32 %v4646_v17, 0.0  ;;  %v4711_v57 = vmax.f32 %v4647_v62, 0.0 }
 0x62e   :  { %v4849_v54 = vrot.slane %v4710_v60, 2  ;;  %v4851_v49 = vrot.slane %v4711_v57, 2  ;;  %v11449_v46 = vpop.f32.mrf.mxu3 }
 0x62f   :  { %v4412_v34 = vpop.f32.mrf.mxu0  ;;  %v4501_v9 = vpop.f32.mrf.mxu1 }
 0x630   :  { %v4852_v41 = vsel %vm1548_vm5, %v4847_v53, %v4851_v49  ;;  %v4578_v29 = vadd.f32 %v4412_v34, %v10997_v50  ;;  %v4579_v28 = vadd.f32 %v4501_v9, %v11187_v7  ;;  %v4850_v2 = vsel %vm1548_vm5, %v4845_v22, %v4849_v54 }
 0x631   :  { %v5030_v15 = vadd.f32 %v4850_v2, %v4708_v56  ;;  %v5031_v59 = vadd.f32 %v4852_v41, %v4709_v19  ;;  %v4269_v50 = vrot.slane %v10467_v61, 4  ;;  %v8301_v56 = vld [vmem:[%s12464_s7 + $0x30] sm:$0xff] }
 0x632   :  { %v4648_v4 = vadd.f32 %v11374_v47, %v4578_v29  ;;  %v4649_v5 = vadd.f32 %v11377_v11, %v4579_v28  ;;  %5672 = vmatpush.bf16.msra.mxu0 %v8301_v56 }
 0x633   :  { %v5088_v26 = vpack.c.bf16 %v5030_v15, %v5028_v0  ;;  %v5089_v58 = vpack.c.bf16 %v5031_v59, %v5029_v8  ;;  %v4270_v39 = vsel %vm2514_vm4, %v4267_v13, %v4269_v50  ;;  %v12923_v13 = vld [vmem:[#allocation19_spill] sm:$0xff] }
 0x634   :  { %v4712_v53 = vmax.f32 %v4648_v4, 0.0  ;;  %v4713_v16 = vmax.f32 %v4649_v5, 0.0 }
 0x635   :  { %5262 = vmatmul.bf16.gmra.mxu2 %v5088_v26  ;;  %7892 = vmatmul.msk.bf16.gmra.mxu3 %vm351_vm0, %v5089_v58 }
 0x636   :  { %v4853_v7 = vrot.slane %v4712_v53, 2  ;;  %v4855_v22 = vrot.slane %v4713_v16, 2  ;;  %v4157_v45 = vpop.f32.mrf.mxu3 }
 0x637   :  { %v11466_v19 = vadd.f32 %v4157_v45, %v11324_v27  ;;  %v4415_v24 = vpop.f32.mrf.mxu0  ;;  %v4504_v43 = vpop.f32.mrf.mxu1  ;;  %v12925_v45 = vld [vmem:[#allocation25_spill] sm:$0xff] }
 0x638   :  { %v4580_v6 = vadd.f32 %v4415_v24, %v11018_v40  ;;  %v4581_v12 = vadd.f32 %v4504_v43, %v11203_v30  ;;  %v4854_v10 = vsel %vm1548_vm5, %v4849_v54, %v4853_v7  ;;  %v4856_v61 = vsel %vm1548_vm5, %v4851_v49, %v4855_v22 }
 0x639   :  { %v5032_v0 = vadd.f32 %v4854_v10, %v4710_v60  ;;  %v5033_v8 = vadd.f32 %v4856_v61, %v4711_v57  ;;  %v4186_v30 = vadd.f32 %v11220_v37, %v11032_v38  ;;  %v12924_v60 = vld [vmem:[#allocation11_spill] sm:$0xff]  ;;  %v4271_v56 = vrot.slane %v12925_v45, 4  ;;  %v12930_v45 = vld [vmem:[#allocation52_spill] sm:$0xff] }
 0x63a   :  { %v4650_v17 = vadd.f32 %v11374_v47, %v4580_v6  ;;  %v4651_v27 = vadd.f32 %v11377_v11, %v4581_v12  ;;  %7830 = vmatmul.msk.bf16.gmra.mxu0 %vm2918_vm8, %v4270_v39  ;;  %7846 = vmatmul.msk.bf16.gmra.mxu1 %vm2918_vm8, %v4270_v39  ;;  %v4185_v57 = vadd.f32 %v12924_v60, %v12923_v13  ;;  %v12926_v6 = vld [vmem:[#allocation39_spill] sm:$0xff]  ;;  %v12927_v60 = vld [vmem:[#allocation44_spill] sm:$0xff] }
 0x63c   :  { %v4714_v40 = vmax.f32 %v4650_v17, 0.0  ;;  %v4715_v62 = vmax.f32 %v4651_v27, 0.0 }
 0x63e   :  { %v4857_v54 = vrot.slane %v4714_v40, 2  ;;  %v4859_v49 = vrot.slane %v4715_v62, 2  ;;  %v11479_v34 = vpop.f32.mrf.mxu3 }
 0x63f   :  { %v4417_v9 = vpop.f32.mrf.mxu0  ;;  %v4506_v41 = vpop.f32.mrf.mxu1 }
 0x640   :  { %v4860_v29 = vsel %vm1548_vm5, %v4855_v22, %v4859_v49  ;;  %v4582_v28 = vadd.f32 %v4417_v9, %v4185_v57  ;;  %v4583_v2 = vadd.f32 %v4506_v41, %v4186_v30  ;;  %v4858_v23 = vsel %vm1548_vm5, %v4853_v7, %v4857_v54  ;;  %v12929_v9 = vld [vmem:[#allocation32_spill] sm:$0xff] }
 0x641   :  { %v5034_v15 = vadd.f32 %v4858_v23, %v4712_v53  ;;  %v5035_v59 = vadd.f32 %v4860_v29, %v4713_v16 }
 0x642   :  { %v4652_v4 = vadd.f32 %v11374_v47, %v4582_v28  ;;  %v4653_v38 = vadd.f32 %v11377_v11, %v4583_v2 }
 0x643   :  { %v5090_v37 = vpack.c.bf16 %v5034_v15, %v5032_v0  ;;  %v5091_v5 = vpack.c.bf16 %v5035_v59, %v5033_v8  ;;  %v4272_v0 = vsel %vm2514_vm4, %v4269_v50, %v4271_v56 }
 0x644   :  { %v4716_v26 = vmax.f32 %v4652_v4, 0.0  ;;  %v4717_v58 = vmax.f32 %v4653_v38, 0.0 }
 0x645   :  { %5267 = vmatmul.bf16.gmra.mxu2 %v5090_v37  ;;  %7893 = vmatmul.msk.bf16.gmra.mxu3 %vm351_vm0, %v5091_v5 }
 0x646   :  { %v4861_v22 = vrot.slane %v4716_v26, 2  ;;  %v4863_v24 = vrot.slane %v4717_v58, 2  ;;  %v4162_v43 = vpop.f32.mrf.mxu3 }
 0x647   :  { %v11490_v7 = vadd.f32 %v4162_v43, %v11349_v55  ;;  %v4420_v53 = vpop.f32.mrf.mxu0  ;;  %v4509_v16 = vpop.f32.mrf.mxu1  ;;  %v4273_v43 = vrot.slane %v12930_v45, 4 }
 0x648   :  { %v4584_v12 = vadd.f32 %v4420_v53, %v12926_v6  ;;  %v4585_v10 = vadd.f32 %v4509_v16, %v11233_v25  ;;  %v4862_v61 = vsel %vm1548_vm5, %v4857_v54, %v4861_v22  ;;  %v4864_v39 = vsel %vm1548_vm5, %v4859_v49, %v4863_v24  ;;  %v12928_v49 = vld [vmem:[#allocation5_spill] sm:$0xff] }
 0x649   :  { %v5036_v8 = vadd.f32 %v4862_v61, %v4714_v40  ;;  %v5037_v17 = vadd.f32 %v4864_v39, %v4715_v62  ;;  %v4190_v25 = vadd.f32 %v11247_v48, %v12927_v60  ;;  %v4189_v50 = vadd.f32 %v12929_v9, %v12928_v49 }
 0x64a   :  { %v4654_v27 = vadd.f32 %v11374_v47, %v4584_v12  ;;  %v4655_v30 = vadd.f32 %v11377_v11, %v4585_v10  ;;  %7831 = vmatmul.msk.bf16.gmra.mxu0 %vm2918_vm8, %v4272_v0  ;;  %7847 = vmatmul.msk.bf16.gmra.mxu1 %vm2918_vm8, %v4272_v0  ;;  %v4274_v61 = vsel %vm2514_vm4, %v4271_v56, %v4273_v43 }
 0x64c   :  { %v4718_v55 = vmax.f32 %v4654_v27, 0.0  ;;  %v4719_v13 = vmax.f32 %v4655_v30, 0.0 }
 0x64e   :  { %v4865_v54 = vrot.slane %v4718_v55, 2  ;;  %v4867_v57 = vrot.slane %v4719_v13, 2 }
 0x64f   :  { %v4422_v40 = vpop.f32.mrf.mxu0  ;;  %v4511_v62 = vpop.f32.mrf.mxu1 }
 0x650   :  { %v4868_v41 = vsel %vm1548_vm5, %v4863_v24, %v4867_v57  ;;  %v4586_v29 = vadd.f32 %v4422_v40, %v4189_v50  ;;  %v4587_v28 = vadd.f32 %v4511_v62, %v4190_v25  ;;  %v4866_v2 = vsel %vm1548_vm5, %v4861_v22, %v4865_v54  ;;  %v12931_v22 = vld [vmem:[#allocation16_spill] sm:$0xff]  ;;  %v8298_v62 = vld [vmem:[%s12464_s7 + $0x18] sm:$0xff] }
 0x651   :  { %v5038_v23 = vadd.f32 %v4866_v2, %v4716_v26  ;;  %v5039_v15 = vadd.f32 %v4868_v41, %v4717_v58  ;;  %5837 = vmatpush.bf16.msra.mxu1 %v8298_v62 }
 0x652   :  { %v4656_v59 = vadd.f32 %v11374_v47, %v4586_v29  ;;  %v4657_v4 = vadd.f32 %v11377_v11, %v4587_v28 }
 0x653   :  { %v5092_v48 = vpack.c.bf16 %v5038_v23, %v5036_v8  ;;  %v5093_v38 = vpack.c.bf16 %v5039_v15, %v5037_v17 }
 0x654   :  { %v4720_v37 = vmax.f32 %v4656_v59, 0.0  ;;  %v4721_v5 = vmax.f32 %v4657_v4, 0.0  ;;  %v12934_v59 = vmov 0  }
 0x655   :  { %5272 = vmatmul.bf16.gmra.mxu2 %v5092_v48  ;;  %7894 = vmatmul.msk.bf16.gmra.mxu3 %vm351_vm0, %v5093_v38  ;;  %v11533_v4 = vrot.slane %v12934_v59, 4 }
 0x656   :  { %v4869_v24 = vrot.slane %v4720_v37, 2  ;;  %v4871_v53 = vrot.slane %v4721_v5, 2 }
 0x657   :  { %v4425_v16 = vpop.f32.mrf.mxu0  ;;  %v4514_v6 = vpop.f32.mrf.mxu1 }
 0x658   :  { %v4588_v26 = vadd.f32 %v4425_v16, %v12931_v22  ;;  %v4589_v58 = vadd.f32 %v4514_v6, %v11263_v44  ;;  %v4870_v12 = vsel %vm1548_vm5, %v4865_v54, %v4869_v24  ;;  %v4872_v10 = vsel %vm1548_vm5, %v4867_v57, %v4871_v53  ;;  %v12932_v54 = vld [vmem:[#allocation26_spill] sm:$0xff] }
 0x659   :  { %v5040_v39 = vadd.f32 %v4870_v12, %v4718_v55  ;;  %v5041_v0 = vadd.f32 %v4872_v10, %v4719_v13  ;;  %v4194_v44 = vadd.f32 %v11277_v33, %v11101_v63  ;;  %v12933_v57 = vld [vmem:[#allocation2_spill] sm:$0xff]  ;;  %v4276_v22 = vsel %vm2514_vm4, %v4273_v43, %v11533_v4 }
 0x65a   :  { %v4658_v8 = vadd.f32 %v11374_v47, %v4588_v26  ;;  %v4659_v17 = vadd.f32 %v11377_v11, %v4589_v58  ;;  %7832 = vmatmul.msk.bf16.gmra.mxu0 %vm2918_vm8, %v4274_v61  ;;  %7848 = vmatmul.msk.bf16.gmra.mxu1 %vm2918_vm8, %v4274_v61  ;;  %v4193_v56 = vadd.f32 %v12933_v57, %v12932_v54 }
 0x65c   :  { %v4722_v27 = vmax.f32 %v4658_v8, 0.0  ;;  %v4723_v30 = vmax.f32 %v4659_v17, 0.0 }
 0x65e   :  { %v4873_v60 = vrot.slane %v4722_v27, 2  ;;  %v4875_v25 = vrot.slane %v4723_v30, 2 }
 0x65f   :  { %v4427_v55 = vpop.f32.mrf.mxu0  ;;  %v4516_v13 = vpop.f32.mrf.mxu1 }
 0x660   :  { %v4876_v49 = vsel %vm1548_vm5, %v4871_v53, %v4875_v25  ;;  %v4590_v9 = vadd.f32 %v4427_v55, %v4193_v56  ;;  %v4591_v50 = vadd.f32 %v4516_v13, %v4194_v44  ;;  %v4874_v40 = vsel %vm1548_vm5, %v4869_v24, %v4873_v60  ;;  %v12937_v44 = vld [vmem:[#allocation51_spill] sm:$0xff] }
 0x661   :  { %v5042_v41 = vadd.f32 %v4874_v40, %v4720_v37  ;;  %v5043_v29 = vadd.f32 %v4876_v49, %v4721_v5  ;;  %v12935_v5 = vld [vmem:[#allocation28_spill] sm:$0xff]  ;;  %v8300_v55 = vld [vmem:[%s12464_s7 + $0x28] sm:$0xff] }
 0x662   :  { %v4660_v63 = vadd.f32 %v11374_v47, %v4590_v9  ;;  %v4661_v33 = vadd.f32 %v11377_v11, %v4591_v50  ;;  %5673 = vmatpush.bf16.msra.mxu0 %v8300_v55 }
 0x663   :  { %v5094_v28 = vpack.c.bf16 %v5042_v41, %v5040_v39  ;;  %v5095_v2 = vpack.c.bf16 %v5043_v29, %v5041_v0 }
 0x664   :  { %v4724_v23 = vmax.f32 %v4660_v63, 0.0  ;;  %v4725_v15 = vmax.f32 %v4661_v33, 0.0 }
 0x665   :  { %5277 = vmatmul.bf16.gmra.mxu2 %v5094_v28  ;;  %7895 = vmatmul.msk.bf16.gmra.mxu3 %vm351_vm0, %v5095_v2 }
 0x666   :  { %v4877_v48 = vrot.slane %v4724_v23, 2  ;;  %v4879_v38 = vrot.slane %v4725_v15, 2 }
 0x667   :  { %v4430_v45 = vpop.f32.mrf.mxu0  ;;  %v4519_v37 = vpop.f32.mrf.mxu1 }
 0x668   :  { %v4592_v24 = vadd.f32 %v4430_v45, %v12935_v5  ;;  %v4593_v53 = vadd.f32 %v4519_v37, %v11290_v35  ;;  %v4878_v16 = vsel %vm1548_vm5, %v4873_v60, %v4877_v48  ;;  %v4880_v6 = vsel %vm1548_vm5, %v4875_v25, %v4879_v38  ;;  %v12936_v35 = vld [vmem:[#allocation3_spill] sm:$0xff]  ;;  %v12938_v60 = vld [vmem:[#allocation18_spill] sm:$0xff] }
 0x669   :  { %v5044_v26 = vadd.f32 %v4878_v16, %v4722_v27  ;;  %v5045_v58 = vadd.f32 %v4880_v6, %v4723_v30  ;;  %v4198_v0 = vadd.f32 %v11304_v31, %v12936_v35  ;;  %v4197_v43 = vadd.f32 %v12938_v60, %v12937_v44 }
 0x66a   :  { %v4662_v12 = vadd.f32 %v11374_v47, %v4592_v24  ;;  %v4663_v10 = vadd.f32 %v11377_v11, %v4593_v53  ;;  %7833 = vmatmul.msk.bf16.gmra.mxu0 %vm2918_vm8, %v4276_v22  ;;  %7849 = vmatmul.msk.bf16.gmra.mxu1 %vm2918_vm8, %v4276_v22  ;;  %v4202_v16 = vadd.f32 %v11335_v21, %v11164_v51 }
 0x66c   :  { %v4726_v61 = vmax.f32 %v4662_v12, 0.0  ;;  %v4727_v39 = vmax.f32 %v4663_v10, 0.0 }
 0x66e   :  { %v4881_v8 = vrot.slane %v4726_v61, 2  ;;  %v4883_v17 = vrot.slane %v4727_v39, 2 }
 0x66f   :  { %v4432_v27 = vpop.f32.mrf.mxu0  ;;  %v4521_v30 = vpop.f32.mrf.mxu1 }
 0x670   :  { %v4884_v25 = vsel %vm1548_vm5, %v4879_v38, %v4883_v17  ;;  %v4594_v54 = vadd.f32 %v4432_v27, %v4197_v43  ;;  %v4595_v57 = vadd.f32 %v4521_v30, %v4198_v0  ;;  %v4882_v56 = vsel %vm1548_vm5, %v4877_v48, %v4881_v8 }
 0x671   :  { %v5046_v13 = vadd.f32 %v4882_v56, %v4724_v23  ;;  %v5047_v49 = vadd.f32 %v4884_v25, %v4725_v15  ;;  %v8295_v25 = vld [vmem:[%s12464_s7] sm:$0xff] }
 0x672   :  { %v4664_v31 = vadd.f32 %v11374_v47, %v4594_v54  ;;  %v4665_v9 = vadd.f32 %v11377_v11, %v4595_v57 }
 0x673   :  { %v5096_v50 = vpack.c.bf16 %v5046_v13, %v5044_v26  ;;  %v5097_v40 = vpack.c.bf16 %v5047_v49, %v5045_v58  ;;  %v8297_v26 = vld [vmem:[%s12464_s7 + $0x10] sm:$0xff] }
 0x674   :  { %v4728_v62 = vmax.f32 %v4664_v31, 0.0  ;;  %v4729_v41 = vmax.f32 %v4665_v9, 0.0  ;;  %5838 = vmatpush.bf16.msra.mxu1 %v8297_v26 }
 0x675   :  { %5282 = vmatmul.bf16.gmra.mxu2 %v5096_v50  ;;  %7896 = vmatmul.msk.bf16.gmra.mxu3 %vm351_vm0, %v5097_v40 }
 0x676   :  { %v4885_v29 = vrot.slane %v4728_v62, 2  ;;  %v4887_v63 = vrot.slane %v4729_v41, 2 }
 0x677   :  { %v4435_v33 = vpop.f32.mrf.mxu0  ;;  %v4524_v28 = vpop.f32.mrf.mxu1 }
 0x678   :  { %v4596_v2 = vadd.f32 %v4435_v33, %v11154_v1  ;;  %v4597_v23 = vadd.f32 %v4524_v28, %v11321_v18  ;;  %v4886_v15 = vsel %vm1548_vm5, %v4881_v8, %v4885_v29  ;;  %v4888_v48 = vsel %vm1548_vm5, %v4883_v17, %v4887_v63  ;;  %v12939_v1 = vld [vmem:[#allocation53_spill] sm:$0xff] }
 0x679   :  { %v5048_v38 = vadd.f32 %v4886_v15, %v4726_v61  ;;  %v5049_v45 = vadd.f32 %v4888_v48, %v4727_v39  ;;  %v4201_v18 = vadd.f32 %v12939_v1, %v11162_v14  ;;  %v8296_v14 = vld [vmem:[%s12464_s7 + $0x8] sm:$0xff]  ;;  %v12941_v28 = vld [vmem:[#allocation21_spill] sm:$0xff]  ;;  %v11591_v48 = vpop.f32.mrf.mxu2 }
 0x67a   :  { %v4666_v37 = vadd.f32 %v11374_v47, %v4596_v2  ;;  %v4667_v5 = vadd.f32 %v11377_v11, %v4597_v23  ;;  %5839 = vmatpush.bf16.msra.mxu1 %v8296_v14 }
 0x67c   :  { %v4730_v24 = vmax.f32 %v4666_v37, 0.0  ;;  %v4731_v53 = vmax.f32 %v4667_v5, 0.0 }
 0x67e   :  { %v4889_v6 = vrot.slane %v4730_v24, 2  ;;  %v4891_v22 = vrot.slane %v4731_v53, 2  ;;  %5840 = vmatpush.bf16.msra.mxu1 %v8295_v25 }
 0x67f   :  { %v4437_v58 = vpop.f32.mrf.mxu0  ;;  %v4526_v12 = vpop.f32.mrf.mxu1 }
 0x680   :  { %v4892_v10 = vsel %vm1548_vm5, %v4887_v63, %v4891_v22  ;;  %v4598_v61 = vadd.f32 %v4437_v58, %v4201_v18  ;;  %v4599_v39 = vadd.f32 %v4526_v12, %v4202_v16  ;;  %v4890_v35 = vsel %vm1548_vm5, %v4885_v29, %v4889_v6  ;;  %v12940_v29 = vld [vmem:[#allocation55_spill] sm:$0xff] }
 0x681   :  { %v5050_v0 = vadd.f32 %v4890_v35, %v4728_v62  ;;  %v5051_v51 = vadd.f32 %v4892_v10, %v4729_v41  ;;  %v4206_v63 = vadd.f32 %v11358_v36, %v12940_v29  ;;  %v8314_v35 = vld [vmem:[%s12464_s7 + $0x98] sm:$0xff] }
 0x682   :  { %v4668_v21 = vadd.f32 %v11374_v47, %v4598_v61  ;;  %v4669_v8 = vadd.f32 %v11377_v11, %v4599_v39  ;;  %v8309_v39 = vld [vmem:[%s12464_s7 + $0x70] sm:$0xff]  ;;  %6290 = vmatpush.bf16.msrb.mxu3 %v8314_v35  ;;  %v12949_v35 = vld [vmem:[#allocation46_spill] sm:$0xff] }
 0x683   :  { %v5098_v17 = vpack.c.bf16 %v5050_v0, %v5048_v38  ;;  %v5099_v44 = vpack.c.bf16 %v5051_v51, %v5049_v45  ;;  %v11593_v38 = vpop.f32.mrf.mxu3  ;;  %v12943_v0 = vld [vmem:[#allocation43_spill] sm:$0xff]  ;;  %6046 = vmatpush.bf16.msra.mxu2 %v8309_v39 }
 0x684   :  { %v4732_v60 = vmax.f32 %v4668_v21, 0.0  ;;  %v4733_v43 = vmax.f32 %v4669_v8, 0.0  ;;  %v12944_v21 = vld [vmem:[#allocation8_spill] sm:$0xff] }
 0x685   :  { %5287 = vmatmul.bf16.gmra.mxu2 %v5098_v17  ;;  %7897 = vmatmul.msk.bf16.gmra.mxu3 %vm351_vm0, %v5099_v44 }
 0x686   :  { %v4893_v27 = vrot.slane %v4732_v60, 2  ;;  %v4895_v30 = vrot.slane %v4733_v43, 2 }
 0x687   :  { %v4440_v54 = vpop.f32.mrf.mxu0  ;;  %v4529_v57 = vpop.f32.mrf.mxu1 }
 0x688   :  { %v4600_v56 = vadd.f32 %v4440_v54, %v11182_v52  ;;  %v4601_v55 = vadd.f32 %v4529_v57, %v11346_v3  ;;  %v4894_v13 = vsel %vm1548_vm5, %v4889_v6, %v4893_v27  ;;  %v4896_v49 = vsel %vm1548_vm5, %v4891_v22, %v4895_v30  ;;  %v12942_v3 = vld [vmem:[#allocation54_spill] sm:$0xff] }
 0x689   :  { %v5052_v31 = vadd.f32 %v4894_v13, %v4730_v24  ;;  %v5053_v9 = vadd.f32 %v4896_v49, %v4731_v53  ;;  %v4205_v2 = vadd.f32 %v12942_v3, %v12941_v28  ;;  %v12946_v13 = vld [vmem:[#allocation30_spill] sm:$0xff] }
 0x68a   :  { %v4670_v50 = vadd.f32 %v11374_v47, %v4600_v56  ;;  %v4671_v40 = vadd.f32 %v11377_v11, %v4601_v55  ;;  %v12945_v55 = vld [vmem:[#allocation42_spill] sm:$0xff] }
 0x68b   :  { %v4210_v49 = vadd.f32 %v12946_v13, %v12945_v55  ;;  %v12951_v13 = vld [vmem:[#allocation60_spill] sm:$0xff] }
 0x68c   :  { %v4734_v62 = vmax.f32 %v4670_v50, 0.0  ;;  %v4735_v41 = vmax.f32 %v4671_v40, 0.0  ;;  %v12947_v50 = vld [vmem:[#allocation57_spill] sm:$0xff]  ;;  %v12948_v40 = vld [vmem:[#allocation56_spill] sm:$0xff] }
 0x68d   :  { %v4209_v29 = vadd.f32 %v12948_v40, %v12947_v50 }
 0x68e   :  { %v4897_v33 = vrot.slane %v4734_v62, 2  ;;  %v4899_v52 = vrot.slane %v4735_v41, 2 }
 0x68f   :  { %v4442_v23 = vpop.f32.mrf.mxu0  ;;  %v4531_v15 = vpop.f32.mrf.mxu1 }
 0x690   :  { %v4900_v45 = vsel %vm1548_vm5, %v4895_v30, %v4899_v52  ;;  %v4602_v37 = vadd.f32 %v4442_v23, %v4205_v2  ;;  %v4603_v5 = vadd.f32 %v4531_v15, %v4206_v63  ;;  %v4898_v24 = vsel %vm1548_vm5, %v4893_v27, %v4897_v33  ;;  %v8319_v23 = vld [vmem:[%s12464_s7 + $0xc0] sm:$0xff] }
 0x691   :  { %v5054_v53 = vadd.f32 %v4898_v24, %v4732_v60  ;;  %v5055_v16 = vadd.f32 %v4900_v45, %v4733_v43  ;;  %6454 = vmatpush.bf16.msrb.mxu0 %v8319_v23 }
 0x692   :  { %v4672_v36 = vadd.f32 %v11374_v47, %v4602_v37  ;;  %v4673_v6 = vadd.f32 %v11377_v11, %v4603_v5 }
 0x693   :  { %v5100_v22 = vpack.c.bf16 %v5054_v53, %v5052_v31  ;;  %v5101_v1 = vpack.c.bf16 %v5055_v16, %v5053_v9 }
 0x694   :  { %v4736_v18 = vmax.f32 %v4672_v36, 0.0  ;;  %v4737_v26 = vmax.f32 %v4673_v6, 0.0 }
 0x695   :  { %5292 = vmatmul.bf16.gmra.mxu2 %v5100_v22  ;;  %7898 = vmatmul.msk.bf16.gmra.mxu3 %vm351_vm0, %v5101_v1 }
 0x696   :  { %v4901_v58 = vrot.slane %v4736_v18, 2  ;;  %v4903_v12 = vrot.slane %v4737_v26, 2 }
 0x697   :  { %v4445_v10 = vpop.f32.mrf.mxu0  ;;  %v4534_v61 = vpop.f32.mrf.mxu1 }
 0x698   :  { %v4604_v51 = vadd.f32 %v4445_v10, %v12943_v0  ;;  %v4605_v8 = vadd.f32 %v4534_v61, %v12944_v21  ;;  %v5253_v14 = vpop.f32.mrf.mxu2  ;;  %v5342_v17 = vpop.f32.mrf.mxu3  ;;  %v4902_v44 = vsel %vm1548_vm5, %v4897_v33, %v4901_v58  ;;  %v4904_v60 = vsel %vm1548_vm5, %v4899_v52, %v4903_v12 }
 0x699   :  { %v5056_v43 = vadd.f32 %v4902_v44, %v4734_v62  ;;  %v5057_v27 = vadd.f32 %v4904_v60, %v4735_v41  ;;  %v5343_v56 = vadd.f32 %v5342_v17, %v5253_v14 }
 0x69a   :  { %v4674_v30 = vadd.f32 %v11374_v47, %v4604_v51  ;;  %v4675_v25 = vadd.f32 %v11377_v11, %v4605_v8  ;;  %v12950_v51 = vld [vmem:[#allocation45_spill] sm:$0xff] }
 0x69b   :  { %v5422_v15 = vpack.c.bf16 %v5343_v56, %v5343_v56 }
 0x69c   :  { %v4738_v54 = vmax.f32 %v4674_v30, 0.0  ;;  %v4739_v57 = vmax.f32 %v4675_v25, 0.0 }
 0x69e   :  { %v4905_v31 = vrot.slane %v4738_v54, 2  ;;  %v4907_v9 = vrot.slane %v4739_v57, 2 }
 0x69f   :  { %v4447_v63 = vpop.f32.mrf.mxu0  ;;  %v4536_v62 = vpop.f32.mrf.mxu1 }
 0x6a0   :  { %v4908_v41 = vsel %vm1548_vm5, %v4903_v12, %v4907_v9  ;;  %v4606_v33 = vadd.f32 %v4447_v63, %v4209_v29  ;;  %v4607_v52 = vadd.f32 %v4536_v62, %v4210_v49  ;;  %v5255_v28 = vpop.f32.mrf.mxu2  ;;  %v5344_v3 = vpop.f32.mrf.mxu3  ;;  %v4906_v2 = vsel %vm1548_vm5, %v4901_v58, %v4905_v31  ;;  %v12952_v49 = vld [vmem:[#allocation34_spill] sm:$0xff] }
 0x6a1   :  { %v5345_v45 = vadd.f32 %v5344_v3, %v5255_v28  ;;  %v5058_v37 = vadd.f32 %v4906_v2, %v4736_v18  ;;  %v5059_v5 = vadd.f32 %v4908_v41, %v4737_v26  ;;  %v5486_v12 = vunpack.c.l.b16 %v5422_v15  ;;  %v12954_v63 = vld [vmem:[#allocation58_spill] sm:$0xff] }
 0x6a2   :  { %v4676_v24 = vadd.f32 %v11374_v47, %v4606_v33  ;;  %v4677_v53 = vadd.f32 %v11377_v11, %v4607_v52  ;;  %v4214_v50 = vadd.f32 %v12952_v49, %v12951_v13 }
 0x6a3   :  { %v5423_v16 = vpack.c.bf16 %v5345_v45, %v5345_v45  ;;  %v5102_v36 = vpack.c.bf16 %v5058_v37, %v5056_v43  ;;  %v5103_v6 = vpack.c.bf16 %v5059_v5, %v5057_v27 }
 0x6a4   :  { %v4740_v22 = vmax.f32 %v4676_v24, 0.0  ;;  %v4741_v1 = vmax.f32 %v4677_v53, 0.0 }
 0x6a5   :  { %v5487_v58 = vunpack.c.l.b16 %v5423_v16  ;;  %5297 = vmatmul.bf16.gmra.mxu2 %v5102_v36  ;;  %7899 = vmatmul.msk.bf16.gmra.mxu3 %vm351_vm0, %v5103_v6 }
 0x6a6   :  { %v4909_v10 = vrot.slane %v4740_v22, 2  ;;  %v4911_v61 = vrot.slane %v4741_v1, 2 }
 0x6a7   :  { %v11624_v18 = vpack.c.b16 %v5487_v58, %v5486_v12  ;;  %v4450_v26 = vpop.f32.mrf.mxu0  ;;  %v4539_v39 = vpop.f32.mrf.mxu1 }
 0x6a8   :  { %v4608_v0 = vadd.f32 %v4450_v26, %v12949_v35  ;;  %v4609_v21 = vadd.f32 %v4539_v39, %v12950_v51  ;;  %v5258_v8 = vpop.f32.mrf.mxu2  ;;  %v5347_v14 = vpop.f32.mrf.mxu3  ;;  %v4910_v17 = vsel %vm1548_vm5, %v4905_v31, %v4909_v10  ;;  %v4912_v44 = vsel %vm1548_vm5, %v4907_v9, %v4911_v61  ;;  %v12953_v31 = vld [vmem:[#allocation13_spill] sm:$0xff]  ;;  %v12955_v39 = vld [vmem:[#allocation63_spill] sm:$0xff] }
 0x6a9   :  { %7972 = vmatmul.msk.bf16.vlgmr.msra.gmra.mxu1 %vm5617_vm10, %v11624_v18  ;;  %v5060_v27 = vadd.f32 %v4910_v17, %v4738_v54  ;;  %v5061_v30 = vadd.f32 %v4912_v44, %v4739_v57  ;;  %v5348_v55 = vadd.f32 %v5347_v14, %v5258_v8  ;;  %v4213_v9 = vadd.f32 %v12954_v63, %v12953_v31  ;;  %v12957_v63 = vld [vmem:[#allocation22_spill] sm:$0xff] }
 0x6aa   :  { %v4678_v60 = vadd.f32 %v11374_v47, %v4608_v0  ;;  %v4679_v43 = vadd.f32 %v11377_v11, %v4609_v21  ;;  %v5555_v17 = vrot.slane %v11624_v18, 2 }
 0x6ab   :  { %v5424_v2 = vpack.c.bf16 %v5348_v55, %v5348_v55 }
 0x6ac   :  { %v4742_v25 = vmax.f32 %v4678_v60, 0.0  ;;  %v4743_v56 = vmax.f32 %v4679_v43, 0.0 }
 0x6ad   :  { %v5488_v12 = vunpack.c.l.b16 %v5424_v2 }
 0x6ae   :  { %v4913_v40 = vrot.slane %v4742_v25, 2  ;;  %v4915_v29 = vrot.slane %v4743_v56, 2 }
 0x6af   :  { %v4452_v62 = vpop.f32.mrf.mxu0  ;;  %v4541_v41 = vpop.f32.mrf.mxu1 }
 0x6b0   :  { %v4916_v33 = vsel %vm1548_vm5, %v4911_v61, %v4915_v29  ;;  %v4610_v52 = vadd.f32 %v4452_v62, %v4213_v9  ;;  %v4611_v28 = vadd.f32 %v4541_v41, %v4214_v50  ;;  %v5260_v3 = vpop.f32.mrf.mxu2  ;;  %v5349_v54 = vpop.f32.mrf.mxu3  ;;  %v4914_v57 = vsel %vm1548_vm5, %v4909_v10, %v4913_v40  ;;  %v12956_v50 = vld [vmem:[#allocation62_spill] sm:$0xff]  ;;  %v12958_v9 = vld [vmem:[#allocation59_spill] sm:$0xff] }
 0x6b1   :  { %v5350_v23 = vadd.f32 %v5349_v54, %v5260_v3  ;;  %v5062_v15 = vadd.f32 %v4914_v57, %v4740_v22  ;;  %v5063_v45 = vadd.f32 %v4916_v33, %v4741_v1 }
 0x6b2   :  { %v4680_v37 = vadd.f32 %v11374_v47, %v4610_v52  ;;  %v4681_v5 = vadd.f32 %v11377_v11, %v4611_v28 }
 0x6b3   :  { %v5425_v24 = vpack.c.bf16 %v5350_v23, %v5350_v23  ;;  %v5104_v53 = vpack.c.bf16 %v5062_v15, %v5060_v27  ;;  %v5105_v16 = vpack.c.bf16 %v5063_v45, %v5061_v30 }
 0x6b4   :  { %v4744_v36 = vmax.f32 %v4680_v37, 0.0  ;;  %v4745_v6 = vmax.f32 %v4681_v5, 0.0 }
 0x6b5   :  { %v5489_v58 = vunpack.c.l.b16 %v5425_v24  ;;  %5302 = vmatmul.bf16.gmra.mxu2 %v5104_v53  ;;  %7900 = vmatmul.msk.bf16.gmra.mxu3 %vm351_vm0, %v5105_v16 }
 0x6b6   :  { %v4917_v61 = vrot.slane %v4744_v36, 2  ;;  %v4919_v10 = vrot.slane %v4745_v6, 2 }
 0x6b7   :  { %v11643_v26 = vpack.c.b16 %v5489_v58, %v5488_v12  ;;  %v4455_v22 = vpop.f32.mrf.mxu0  ;;  %v4544_v1 = vpop.f32.mrf.mxu1 }
 0x6b8   :  { %v4612_v35 = vadd.f32 %v4455_v22, %v12955_v39  ;;  %v4613_v0 = vadd.f32 %v4544_v1, %v11416_v42  ;;  %v5263_v51 = vpop.f32.mrf.mxu2  ;;  %v5352_v21 = vpop.f32.mrf.mxu3  ;;  %v4918_v8 = vsel %vm1548_vm5, %v4913_v40, %v4917_v61  ;;  %v4920_v14 = vsel %vm1548_vm5, %v4915_v29, %v4919_v10  ;;  %v8308_v1 = vld [vmem:[%s12464_s7 + $0x68] sm:$0xff] }
 0x6b9   :  { %7973 = vmatmul.msk.bf16.gmra.mxu1 %vm5617_vm10, %v11643_v26  ;;  %v5556_v44 = vrot.slane %v11643_v26, 2  ;;  %v5064_v60 = vadd.f32 %v4918_v8, %v4742_v25  ;;  %v5065_v43 = vadd.f32 %v4920_v14, %v4743_v56  ;;  %v5353_v49 = vadd.f32 %v5352_v21, %v5263_v51  ;;  %v12959_v39 = vld [vmem:[#allocation35_spill] sm:$0xff]  ;;  %6047 = vmatpush.bf16.msra.mxu2 %v8308_v1 }
 0x6ba   :  { %v4682_v27 = vadd.f32 %v11374_v47, %v4612_v35  ;;  %v4683_v30 = vadd.f32 %v11377_v11, %v4613_v0  ;;  %v4218_v40 = vadd.f32 %v11427_v32, %v12956_v50  ;;  %v4217_v25 = vadd.f32 %v12958_v9, %v12957_v63  ;;  %v12961_v9 = vld [vmem:[#allocation65_spill] sm:$0xff] }
 0x6bb   :  { %v5557_v42 = vsel %vm1548_vm5, %v5555_v17, %v5556_v44  ;;  %v5426_v57 = vpack.c.bf16 %v5353_v49, %v5353_v49 }
 0x6bc   :  { %v4746_v55 = vmax.f32 %v4682_v27, 0.0  ;;  %v4747_v13 = vmax.f32 %v4683_v30, 0.0  ;;  %7936 = vmatmul.msk.bf16.vlgmr.msra.gmra.mxu0 %vm5617_vm10, %v5557_v42 }
 0x6bd   :  { %v5490_v12 = vunpack.c.l.b16 %v5426_v57 }
 0x6be   :  { %v4921_v29 = vrot.slane %v4746_v55, 2  ;;  %v4923_v31 = vrot.slane %v4747_v13, 2 }
 0x6bf   :  { %v4457_v56 = vpop.f32.mrf.mxu0  ;;  %v4546_v62 = vpop.f32.mrf.mxu1 }
 0x6c0   :  { %v4924_v41 = vsel %vm1548_vm5, %v4919_v10, %v4923_v31  ;;  %v4614_v33 = vadd.f32 %v4457_v56, %v4217_v25  ;;  %v4615_v52 = vadd.f32 %v4546_v62, %v4218_v40  ;;  %v5265_v28 = vpop.f32.mrf.mxu2  ;;  %v5354_v3 = vpop.f32.mrf.mxu3  ;;  %v4922_v54 = vsel %vm1548_vm5, %v4917_v61, %v4921_v29  ;;  %v12960_v40 = vld [vmem:[#allocation38_spill] sm:$0xff] }
 0x6c1   :  { %v5355_v2 = vadd.f32 %v5354_v3, %v5265_v28  ;;  %v5066_v23 = vadd.f32 %v4922_v54, %v4744_v36  ;;  %v5067_v15 = vadd.f32 %v4924_v41, %v4745_v6  ;;  %v8313_v3 = vld [vmem:[%s12464_s7 + $0x90] sm:$0xff] }
 0x6c2   :  { %v4684_v32 = vadd.f32 %v11374_v47, %v4614_v33  ;;  %v4685_v45 = vadd.f32 %v11377_v11, %v4615_v52  ;;  %6291 = vmatpush.bf16.msrb.mxu3 %v8313_v3 }
 0x6c3   :  { %v5427_v37 = vpack.c.bf16 %v5355_v2, %v5355_v2  ;;  %v5106_v5 = vpack.c.bf16 %v5066_v23, %v5064_v60  ;;  %v5107_v24 = vpack.c.bf16 %v5067_v15, %v5065_v43 }
 0x6c4   :  { %v4748_v53 = vmax.f32 %v4684_v32, 0.0  ;;  %v4749_v16 = vmax.f32 %v4685_v45, 0.0 }
 0x6c5   :  { %v5491_v58 = vunpack.c.l.b16 %v5427_v37  ;;  %5307 = vmatmul.bf16.gmra.mxu2 %v5106_v5  ;;  %7901 = vmatmul.msk.bf16.gmra.mxu3 %vm351_vm0, %v5107_v24 }
 0x6c6   :  { %v4925_v10 = vrot.slane %v4748_v53, 2  ;;  %v4927_v61 = vrot.slane %v4749_v16, 2 }
 0x6c7   :  { %v11666_v22 = vpack.c.b16 %v5491_v58, %v5490_v12  ;;  %v4460_v36 = vpop.f32.mrf.mxu0  ;;  %v4549_v6 = vpop.f32.mrf.mxu1 }
 0x6c8   :  { %v4616_v35 = vadd.f32 %v4460_v36, %v12959_v39  ;;  %v4617_v0 = vadd.f32 %v4549_v6, %v11438_v20  ;;  %v5268_v51 = vpop.f32.mrf.mxu2  ;;  %v5357_v21 = vpop.f32.mrf.mxu3  ;;  %v4926_v8 = vsel %vm1548_vm5, %v4921_v29, %v4925_v10  ;;  %v4928_v14 = vsel %vm1548_vm5, %v4923_v31, %v4927_v61  ;;  %v12963_v6 = vld [vmem:[#allocation66_spill] sm:$0xff] }
 0x6c9   :  { %7974 = vmatmul.msk.bf16.gmra.mxu1 %vm5617_vm10, %v11666_v22  ;;  %v5558_v17 = vrot.slane %v11666_v22, 2  ;;  %v5068_v60 = vadd.f32 %v4926_v8, %v4746_v55  ;;  %v5069_v43 = vadd.f32 %v4928_v14, %v4747_v13  ;;  %v5358_v50 = vadd.f32 %v5357_v21, %v5268_v51  ;;  %v12962_v55 = vld [vmem:[#allocation64_spill] sm:$0xff] }
 0x6ca   :  { %v4686_v27 = vadd.f32 %v11374_v47, %v4616_v35  ;;  %v4687_v30 = vadd.f32 %v11377_v11, %v4617_v0  ;;  %v4222_v29 = vadd.f32 %v11449_v46, %v12960_v40  ;;  %v4221_v13 = vadd.f32 %v12962_v55, %v12961_v9  ;;  %v12966_v9 = vld [vmem:[#allocation12_spill] sm:$0xff] }
 0x6cb   :  { %v5559_v20 = vsel %vm1548_vm5, %v5556_v44, %v5558_v17  ;;  %v5428_v46 = vpack.c.bf16 %v5358_v50, %v5358_v50 }
 0x6cc   :  { %v4750_v42 = vmax.f32 %v4686_v27, 0.0  ;;  %v4751_v49 = vmax.f32 %v4687_v30, 0.0  ;;  %7937 = vmatmul.msk.bf16.gmra.mxu0 %vm5617_vm10, %v5559_v20 }
 0x6cd   :  { %v5492_v12 = vunpack.c.l.b16 %v5428_v46 }
 0x6ce   :  { %v4929_v31 = vrot.slane %v4750_v42, 2  ;;  %v4931_v63 = vrot.slane %v4751_v49, 2 }
 0x6cf   :  { %v4462_v25 = vpop.f32.mrf.mxu0  ;;  %v4551_v56 = vpop.f32.mrf.mxu1 }
 0x6d0   :  { %v4932_v62 = vsel %vm1548_vm5, %v4927_v61, %v4931_v63  ;;  %v4618_v41 = vadd.f32 %v4462_v25, %v4221_v13  ;;  %v4619_v33 = vadd.f32 %v4551_v56, %v4222_v29  ;;  %v5270_v44 = vpop.f32.mrf.mxu2  ;;  %v5359_v52 = vpop.f32.mrf.mxu3  ;;  %v4930_v28 = vsel %vm1548_vm5, %v4925_v10, %v4929_v31  ;;  %v12964_v29 = vld [vmem:[#allocation31_spill] sm:$0xff] }
 0x6d1   :  { %v5360_v54 = vadd.f32 %v5359_v52, %v5270_v44  ;;  %v5070_v57 = vadd.f32 %v4930_v28, %v4748_v53  ;;  %v5071_v2 = vadd.f32 %v4932_v62, %v4749_v16 }
 0x6d2   :  { %v4688_v23 = vadd.f32 %v11374_v47, %v4618_v41  ;;  %v4689_v15 = vadd.f32 %v11377_v11, %v4619_v33 }
 0x6d3   :  { %v5429_v32 = vpack.c.bf16 %v5360_v54, %v5360_v54  ;;  %v5108_v45 = vpack.c.bf16 %v5070_v57, %v5068_v60  ;;  %v5109_v37 = vpack.c.bf16 %v5071_v2, %v5069_v43  ;;  %v8318_v43 = vld [vmem:[%s12464_s7 + $0xb8] sm:$0xff] }
 0x6d4   :  { %v4752_v5 = vmax.f32 %v4688_v23, 0.0  ;;  %v4753_v24 = vmax.f32 %v4689_v15, 0.0  ;;  %6455 = vmatpush.bf16.msrb.mxu0 %v8318_v43  ;;  %v8312_v43 = vld [vmem:[%s12464_s7 + $0x88] sm:$0xff] }
 0x6d5   :  { %v5493_v58 = vunpack.c.l.b16 %v5429_v32  ;;  %5312 = vmatmul.bf16.gmra.mxu2 %v5108_v45  ;;  %7902 = vmatmul.msk.bf16.gmra.mxu3 %vm351_vm0, %v5109_v37 }
 0x6d6   :  { %v4933_v10 = vrot.slane %v4752_v5, 2  ;;  %v4935_v61 = vrot.slane %v4753_v24, 2  ;;  %6292 = vmatpush.bf16.msrb.mxu3 %v8312_v43 }
 0x6d7   :  { %v11694_v36 = vpack.c.b16 %v5493_v58, %v5492_v12  ;;  %v4465_v53 = vpop.f32.mrf.mxu0  ;;  %v4554_v16 = vpop.f32.mrf.mxu1 }
 0x6d8   :  { %v4620_v1 = vadd.f32 %v4465_v53, %v12963_v6  ;;  %v4621_v39 = vadd.f32 %v4554_v16, %v11466_v19  ;;  %v5273_v35 = vpop.f32.mrf.mxu2  ;;  %v5362_v0 = vpop.f32.mrf.mxu3  ;;  %v4934_v51 = vsel %vm1548_vm5, %v4929_v31, %v4933_v10  ;;  %v4936_v21 = vsel %vm1548_vm5, %v4931_v63, %v4935_v61  ;;  %v12965_v63 = vld [vmem:[#allocation67_spill] sm:$0xff] }
 0x6d9   :  { %7975 = vmatmul.msk.bf16.gmra.mxu1 %vm5617_vm10, %v11694_v36  ;;  %v5560_v8 = vrot.slane %v11694_v36, 2  ;;  %v5072_v14 = vadd.f32 %v4934_v51, %v4750_v42  ;;  %v5073_v60 = vadd.f32 %v4936_v21, %v4751_v49  ;;  %v5363_v40 = vadd.f32 %v5362_v0, %v5273_v35 }
 0x6da   :  { %v4690_v27 = vadd.f32 %v11374_v47, %v4620_v1  ;;  %v4691_v19 = vadd.f32 %v11377_v11, %v4621_v39  ;;  %v4226_v42 = vadd.f32 %v11479_v34, %v12964_v29  ;;  %v4225_v55 = vadd.f32 %v12966_v9, %v12965_v63  ;;  %v12968_v29 = vld [vmem:[#allocation68_spill] sm:$0xff] }
 0x6db   :  { %v5561_v30 = vsel %vm1548_vm5, %v5558_v17, %v5560_v8  ;;  %v5430_v52 = vpack.c.bf16 %v5363_v40, %v5363_v40  ;;  %v8311_v40 = vld [vmem:[%s12464_s7 + $0x80] sm:$0xff] }
 0x6dc   :  { %v4754_v20 = vmax.f32 %v4690_v27, 0.0  ;;  %v4755_v50 = vmax.f32 %v4691_v19, 0.0  ;;  %7938 = vmatmul.msk.bf16.gmra.mxu0 %vm5617_vm10, %v5561_v30  ;;  %6293 = vmatpush.bf16.msrb.mxu3 %v8311_v40 }
 0x6dd   :  { %v5494_v45 = vunpack.c.l.b16 %v5430_v52 }
 0x6de   :  { %v4937_v49 = vrot.slane %v4754_v20, 2  ;;  %v4939_v31 = vrot.slane %v4755_v50, 2 }
 0x6df   :  { %v4467_v13 = vpop.f32.mrf.mxu0  ;;  %v4556_v25 = vpop.f32.mrf.mxu1 }
 0x6e0   :  { %v4940_v56 = vsel %vm1548_vm5, %v4935_v61, %v4939_v31  ;;  %v4622_v62 = vadd.f32 %v4467_v13, %v4225_v55  ;;  %v4623_v17 = vadd.f32 %v4556_v25, %v4226_v42  ;;  %v5275_v41 = vpop.f32.mrf.mxu2  ;;  %v5364_v33 = vpop.f32.mrf.mxu3  ;;  %v4938_v44 = vsel %vm1548_vm5, %v4933_v10, %v4937_v49  ;;  %v12967_v61 = vld [vmem:[#allocation14_spill] sm:$0xff] }
 0x6e1   :  { %v5365_v28 = vadd.f32 %v5364_v33, %v5275_v41  ;;  %v5074_v3 = vadd.f32 %v4938_v44, %v4752_v5  ;;  %v5075_v46 = vadd.f32 %v4940_v56, %v4753_v24  ;;  %v4230_v42 = vadd.f32 %v11593_v38, %v12968_v29 }
 0x6e2   :  { %v4692_v34 = vadd.f32 %v11374_v47, %v4622_v62  ;;  %v4693_v54 = vadd.f32 %v11377_v11, %v4623_v17 }
 0x6e3   :  { %v5431_v57 = vpack.c.bf16 %v5365_v28, %v5365_v28  ;;  %v5110_v2 = vpack.c.bf16 %v5074_v3, %v5072_v14  ;;  %v5111_v23 = vpack.c.bf16 %v5075_v46, %v5073_v60  ;;  %v8305_v3 = vld [vmem:[%s12464_s7 + $0x50] sm:$0xff]  ;;  %v8310_v46 = vld [vmem:[%s12464_s7 + $0x78] sm:$0xff] }
 0x6e4   :  { %v4756_v15 = vmax.f32 %v4692_v34, 0.0  ;;  %v4757_v32 = vmax.f32 %v4693_v54, 0.0  ;;  %6294 = vmatpush.bf16.msrb.mxu3 %v8310_v46 }
 0x6e5   :  { %v5495_v37 = vunpack.c.l.b16 %v5431_v57  ;;  %5317 = vmatmul.bf16.gmra.mxu2 %v5110_v2  ;;  %7903 = vmatmul.msk.bf16.gmra.mxu3 %vm351_vm0, %v5111_v23 }
 0x6e6   :  { %v4941_v12 = vrot.slane %v4756_v15, 2  ;;  %v4943_v58 = vrot.slane %v4757_v32, 2 }
 0x6e7   :  { %v11719_v10 = vpack.c.b16 %v5495_v37, %v5494_v45  ;;  %v4470_v5 = vpop.f32.mrf.mxu0  ;;  %v4559_v24 = vpop.f32.mrf.mxu1 }
 0x6e8   :  { %v4624_v53 = vadd.f32 %v4470_v5, %v12967_v61  ;;  %v4625_v16 = vadd.f32 %v4559_v24, %v11490_v7  ;;  %v5278_v6 = vpop.f32.mrf.mxu2  ;;  %v5367_v1 = vpop.f32.mrf.mxu3  ;;  %v4942_v39 = vsel %vm1548_vm5, %v4937_v49, %v4941_v12  ;;  %v4944_v35 = vsel %vm1548_vm5, %v4939_v31, %v4943_v58  ;;  %v8307_v7 = vld [vmem:[%s12464_s7 + $0x60] sm:$0xff]  ;;  %v12969_v31 = vld [vmem:[#allocation20_spill] sm:$0xff] }
 0x6e9   :  { %7976 = vmatmul.msk.bf16.gmra.mxu1 %vm5617_vm10, %v11719_v10  ;;  %v5562_v0 = vrot.slane %v11719_v10, 2  ;;  %v5076_v51 = vadd.f32 %v4942_v39, %v4754_v20  ;;  %v5077_v21 = vadd.f32 %v4944_v35, %v4755_v50  ;;  %6048 = vmatpush.bf16.msra.mxu2 %v8307_v7  ;;  %v5368_v20 = vadd.f32 %v5367_v1, %v5278_v6  ;;  %v8306_v50 = vld [vmem:[%s12464_s7 + $0x58] sm:$0xff] }
 0x6ea   :  { %v4694_v14 = vadd.f32 %v11374_v47, %v4624_v53  ;;  %v4695_v60 = vadd.f32 %v11377_v11, %v4625_v16  ;;  %v4229_v63 = vadd.f32 %v11591_v48, %v12969_v31 }
 0x6eb   :  { %v5563_v27 = vsel %vm1548_vm5, %v5560_v8, %v5562_v0  ;;  %v5432_v33 = vpack.c.bf16 %v5368_v20, %v5368_v20 }
 0x6ec   :  { %v4758_v19 = vmax.f32 %v4694_v14, 0.0  ;;  %v4759_v30 = vmax.f32 %v4695_v60, 0.0  ;;  %7939 = vmatmul.msk.bf16.gmra.mxu0 %vm5617_vm10, %v5563_v27 }
 0x6ed   :  { %6049 = vmatpush.bf16.msra.mxu2 %v8306_v50  ;;  %v5496_v45 = vunpack.c.l.b16 %v5432_v33 }
 0x6ee   :  { %v4945_v49 = vrot.slane %v4758_v19, 2  ;;  %v4947_v8 = vrot.slane %v4759_v30, 2 }
 0x6ef   :  { %v4472_v9 = vpop.f32.mrf.mxu0  ;;  %v4561_v55 = vpop.f32.mrf.mxu1 }
 0x6f0   :  { %v4948_v13 = vsel %vm1548_vm5, %v4943_v58, %v4947_v8  ;;  %v4626_v25 = vadd.f32 %v4472_v9, %v4229_v63  ;;  %v4627_v56 = vadd.f32 %v4561_v55, %v4230_v42  ;;  %v5280_v62 = vpop.f32.mrf.mxu2  ;;  %v5369_v17 = vpop.f32.mrf.mxu3  ;;  %v4946_v41 = vsel %vm1548_vm5, %v4941_v12, %v4945_v49 }
 0x6f1   :  { %v5370_v44 = vadd.f32 %v5369_v17, %v5280_v62  ;;  %v5078_v52 = vadd.f32 %v4946_v41, %v4756_v15  ;;  %v5079_v38 = vadd.f32 %v4948_v13, %v4757_v32  ;;  %v12970_v15 = vmov 0.0   ;;  %6050 = vmatpush.bf16.msra.mxu2 %v8305_v3 }
 0x6f2   :  { %v4696_v28 = vadd.f32 %v11374_v47, %v4626_v25  ;;  %v4697_v48 = vadd.f32 %v11377_v11, %v4627_v56  ;;  %v4953_v32 = vrot.slane %v12970_v15, 2  ;;  %v5934_v13 = vrot.slane %v11643_v26, 4 }
 0x6f3   :  { %v5433_v34 = vpack.c.bf16 %v5370_v44, %v5370_v44  ;;  %v5112_v54 = vpack.c.bf16 %v5078_v52, %v5076_v51  ;;  %v5113_v57 = vpack.c.bf16 %v5079_v38, %v5077_v21  ;;  %v6177_v25 = vrot.slane %v11643_v26, 6 }
 0x6f4   :  { %v4760_v2 = vmax.f32 %v4696_v28, 0.0  ;;  %v4761_v23 = vmax.f32 %v4697_v48, 0.0  ;;  %v5933_v17 = vrot.slane %v11624_v18, 4  ;;  %v6176_v41 = vrot.slane %v11624_v18, 6 }
 0x6f5   :  { %v5497_v47 = vunpack.c.l.b16 %v5433_v34  ;;  %5322 = vmatmul.bf16.gmra.mxu2 %v5112_v54  ;;  %7904 = vmatmul.msk.bf16.gmra.mxu3 %vm351_vm0, %v5113_v57  ;;  %v6179_v15 = vrot.slane %v11666_v22, 6 }
 0x6f6   :  { %v4949_v11 = vrot.slane %v4760_v2, 2  ;;  %v4951_v37 = vrot.slane %v4761_v23, 2  ;;  %v5935_v44 = vsel %vm2514_vm4, %v5933_v17, %v5934_v13  ;;  %v6178_v52 = vsel %vm2967_vm6, %v6176_v41, %v6177_v25 }
 0x6f7   :  { %v11762_v12 = vpack.c.b16 %v5497_v47, %v5496_v45 }
 0x6f8   :  { %v4955_v58 = vsel %vm1548_vm5, %v4951_v37, %v4953_v32  ;;  %v5283_v5 = vpop.f32.mrf.mxu2  ;;  %v5372_v24 = vpop.f32.mrf.mxu3  ;;  %v4950_v61 = vsel %vm1548_vm5, %v4945_v49, %v4949_v11  ;;  %v4954_v53 = vsel %vm1548_vm5, %v4949_v11, %v4953_v32  ;;  %v4952_v16 = vsel %vm1548_vm5, %v4947_v8, %v4951_v37 }
 0x6f9   :  { %v5083_v6 = vadd.f32 %v4955_v58, %v4761_v23  ;;  %7977 = vmatmul.msk.bf16.gmra.mxu1 %vm5617_vm10, %v11762_v12  ;;  %v5564_v1 = vrot.slane %v11762_v12, 2  ;;  %v5080_v39 = vadd.f32 %v4950_v61, %v4758_v19  ;;  %v5082_v35 = vadd.f32 %v4954_v53, %v4760_v2 }
 0x6fa   :  { %v5081_v51 = vadd.f32 %v4952_v16, %v4759_v30  ;;  %v5373_v7 = vadd.f32 %v5372_v24, %v5283_v5  ;;  %v5936_v23 = vrot.slane %v11666_v22, 4  ;;  %v6180_v37 = vsel %vm2967_vm6, %v6177_v25, %v6179_v15 }
 0x6fb   :  { %v5565_v21 = vsel %vm1548_vm5, %v5562_v0, %v5564_v1  ;;  %v5114_v14 = vpack.c.bf16 %v5082_v35, %v5080_v39  ;;  %v8317_v0 = vld [vmem:[%s12464_s7 + $0xb0] sm:$0xff]  ;;  %v6670_v35 = vld [vmem:[%s12466_s9 + $0x38] sm:$0xf] }
 0x6fc   :  { %7940 = vmatmul.msk.bf16.gmra.mxu0 %vm5617_vm10, %v5565_v21  ;;  %v5115_v60 = vpack.c.bf16 %v5083_v6, %v5081_v51  ;;  %v5434_v20 = vpack.c.bf16 %v5373_v7, %v5373_v7  ;;  %v5937_v11 = vsel %vm2514_vm4, %v5934_v13, %v5936_v23  ;;  %v6704_v21 = vunpack.c.l.b16 %v6670_v35 }
 0x6fd   :  { %6456 = vmatpush.bf16.msrb.mxu0 %v8317_v0  ;;  %v5938_v7 = vrot.slane %v11694_v36, 4  ;;  %v6185_v35 = vrot.slane %v11762_v12, 6 }
 0x6fe   :  { %v5498_v29 = vunpack.c.l.b16 %v5434_v20 }
 0x700   :  { %v5285_v43 = vpop.f32.mrf.mxu2  ;;  %v5374_v27 = vpop.f32.mrf.mxu3 }
 0x701   :  { %v5375_v50 = vadd.f32 %v5374_v27, %v5285_v43  ;;  %v6181_v43 = vrot.slane %v11694_v36, 6  ;;  %v6712_v27 = vpack.c.b16 %v6704_v21, %v6704_v21 }
 0x703   :  { %v5435_v40 = vpack.c.bf16 %v5375_v50, %v5375_v50  ;;  %v6182_v0 = vsel %vm2967_vm6, %v6179_v15, %v6181_v43 }
 0x705   :  { %v5499_v42 = vunpack.c.l.b16 %v5435_v40  ;;  %5327 = vmatmul.bf16.gmra.mxu2 %v5114_v14  ;;  %7905 = vmatmul.msk.bf16.gmra.mxu3 %vm351_vm0, %v5115_v60  ;;  %v6770_v40 = vsel %vm2514_vm4, %v6712_v27, 0 }
 0x706   :  { %6772 = vmatpush.bf16.msrb.mxu1 %v6770_v40 }
 0x707   :  { %v11776_v19 = vpack.c.b16 %v5499_v42, %v5498_v29  ;;  %v5939_v42 = vsel %vm2514_vm4, %v5936_v23, %v5938_v7 }
 0x708   :  { %v5288_v30 = vpop.f32.mrf.mxu2  ;;  %v5377_v49 = vpop.f32.mrf.mxu3 }
 0x709   :  { %7978 = vmatmul.msk.bf16.gmra.mxu1 %vm5617_vm10, %v11776_v19  ;;  %v5566_v8 = vrot.slane %v11776_v19, 2  ;;  %v5378_v63 = vadd.f32 %v5377_v49, %v5288_v30 }
 0x70b   :  { %v5567_v31 = vsel %vm1548_vm5, %v5564_v1, %v5566_v8  ;;  %v5436_v56 = vpack.c.bf16 %v5378_v63, %v5378_v63  ;;  %v8316_v63 = vld [vmem:[%s12464_s7 + $0xa8] sm:$0xff] }
 0x70c   :  { %7941 = vmatmul.msk.bf16.gmra.mxu0 %vm5617_vm10, %v5567_v31 }
 0x70d   :  { %v5500_v38 = vunpack.c.l.b16 %v5436_v56  ;;  %6457 = vmatpush.bf16.msrb.mxu0 %v8316_v63 }
 0x710   :  { %v5290_v9 = vpop.f32.mrf.mxu2  ;;  %v5379_v55 = vpop.f32.mrf.mxu3 }
 0x711   :  { %v5380_v62 = vadd.f32 %v5379_v55, %v5290_v9 }
 0x713   :  { %v5437_v33 = vpack.c.bf16 %v5380_v62, %v5380_v62 }
 0x715   :  { %v5501_v28 = vunpack.c.l.b16 %v5437_v33  ;;  %8018 = vmatmul.msk.bf16.vlgmr.msra.gmra.mxu2 %vm5617_vm10, %v5935_v44  ;;  %8064 = vmatmul.msk.bf16.vlgmr.msrb.gmra.mxu3 %vm5617_vm10, %v6178_v52  ;;  %v5940_v52 = vrot.slane %v11719_v10, 4 }
 0x717   :  { %v11794_v48 = vpack.c.b16 %v5501_v28, %v5500_v38  ;;  %v6183_v38 = vrot.slane %v11719_v10, 6 }
 0x718   :  { %v5293_v3 = vpop.f32.mrf.mxu2  ;;  %v5382_v46 = vpop.f32.mrf.mxu3 }
 0x719   :  { %7979 = vmatmul.msk.bf16.gmra.mxu1 %vm5617_vm10, %v11794_v48  ;;  %v5568_v18 = vrot.slane %v11794_v48, 2  ;;  %v5383_v54 = vadd.f32 %v5382_v46, %v5293_v3  ;;  %v6186_v27 = vsel %vm2967_vm6, %v6183_v38, %v6185_v35 }
 0x71b   :  { %v5569_v34 = vsel %vm1548_vm5, %v5566_v8, %v5568_v18  ;;  %v5438_v32 = vpack.c.bf16 %v5383_v54, %v5383_v54  ;;  %v5941_v54 = vsel %vm2514_vm4, %v5938_v7, %v5940_v52 }
 0x71c   :  { %7942 = vmatmul.msk.bf16.gmra.mxu0 %vm5617_vm10, %v5569_v34 }
 0x71d   :  { %v5502_v58 = vunpack.c.l.b16 %v5438_v32 }
 0x720   :  { %v5295_v57 = vpop.f32.mrf.mxu2  ;;  %v5384_v2 = vpop.f32.mrf.mxu3 }
 0x721   :  { %v5385_v45 = vadd.f32 %v5384_v2, %v5295_v57  ;;  %v6184_v57 = vsel %vm2967_vm6, %v6181_v43, %v6183_v38 }
 0x723   :  { %v5439_v47 = vpack.c.bf16 %v5385_v45, %v5385_v45 }
 0x725   :  { %v5503_v5 = vunpack.c.l.b16 %v5439_v47  ;;  %8019 = vmatmul.msk.bf16.gmra.mxu2 %vm5617_vm10, %v5937_v11  ;;  %8065 = vmatmul.msk.bf16.gmra.mxu3 %vm5617_vm10, %v6180_v37 }
 0x726   :  { %v5842_v24 = vpop.f32.mrf.mxu1 }
 0x727   :  { %v11807_v61 = vpack.c.b16 %v5503_v5, %v5502_v58 }
 0x728   :  { %v5298_v53 = vpop.f32.mrf.mxu2  ;;  %v5387_v16 = vpop.f32.mrf.mxu3 }
 0x729   :  { %7980 = vmatmul.msk.bf16.gmra.mxu1 %vm5617_vm10, %v11807_v61  ;;  %v5570_v6 = vrot.slane %v11807_v61, 2  ;;  %v5388_v39 = vadd.f32 %v5387_v16, %v5298_v53  ;;  %v8326_v53 = vld [vmem:[%s12466_s9 + $0x30] sm:$0xff] }
 0x72a   :  { %6773 = vmatpush.bf16.msrb.mxu1 %v8326_v53 }
 0x72b   :  { %v5571_v1 = vsel %vm1548_vm5, %v5568_v18, %v5570_v6  ;;  %v5440_v20 = vpack.c.bf16 %v5388_v39, %v5388_v39  ;;  %v5942_v39 = vrot.slane %v11762_v12, 4 }
 0x72c   :  { %7943 = vmatmul.msk.bf16.gmra.mxu0 %vm5617_vm10, %v5571_v1 }
 0x72d   :  { %v5504_v30 = vunpack.c.l.b16 %v5440_v20  ;;  %v5943_v43 = vsel %vm2514_vm4, %v5940_v52, %v5942_v39 }
 0x72e   :  { %v5844_v51 = vpop.f32.mrf.mxu1 }
 0x730   :  { %v5300_v14 = vpop.f32.mrf.mxu2  ;;  %v5389_v60 = vpop.f32.mrf.mxu3 }
 0x731   :  { %v5390_v50 = vadd.f32 %v5389_v60, %v5300_v14 }
 0x733   :  { %v5441_v29 = vpack.c.bf16 %v5390_v50, %v5390_v50 }
 0x735   :  { %v5505_v49 = vunpack.c.l.b16 %v5441_v29  ;;  %8020 = vmatmul.msk.bf16.gmra.mxu2 %vm5617_vm10, %v5939_v42  ;;  %8066 = vmatmul.msk.bf16.gmra.mxu3 %vm5617_vm10, %v6182_v0 }
 0x736   :  { %v5847_v8 = vpop.f32.mrf.mxu1 }
 0x737   :  { %v11824_v31 = vpack.c.b16 %v5505_v49, %v5504_v30 }
 0x738   :  { %v5303_v9 = vpop.f32.mrf.mxu2  ;;  %v5392_v55 = vpop.f32.mrf.mxu3 }
 0x739   :  { %v5675_v13 = vpop.f32.mrf.mxu0  ;;  %7981 = vmatmul.msk.bf16.gmra.mxu1 %vm5617_vm10, %v11824_v31  ;;  %v5572_v25 = vrot.slane %v11824_v31, 2  ;;  %v5393_v17 = vadd.f32 %v5392_v55, %v5303_v9 }
 0x73a   :  { %v11832_v56 = vadd.f32 %v5842_v24, %v5675_v13 }
 0x73b   :  { %v5573_v62 = vsel %vm1548_vm5, %v5570_v6, %v5572_v25  ;;  %v5442_v28 = vpack.c.bf16 %v5393_v17, %v5393_v17  ;;  %v6187_v17 = vrot.slane %v11776_v19, 6 }
 0x73c   :  { %7944 = vmatmul.msk.bf16.gmra.mxu0 %vm5617_vm10, %v5573_v62  ;;  %v5944_v62 = vrot.slane %v11776_v19, 4 }
 0x73d   :  { %v5506_v2 = vunpack.c.l.b16 %v5442_v28 }
 0x73e   :  { %v5849_v41 = vpop.f32.mrf.mxu1  ;;  %v5945_v28 = vsel %vm2514_vm4, %v5942_v39, %v5944_v62  ;;  %v6189_v39 = vrot.slane %v11794_v48, 6 }
 0x740   :  { %v5305_v33 = vpop.f32.mrf.mxu2  ;;  %v5394_v44 = vpop.f32.mrf.mxu3 }
 0x741   :  { %v5395_v3 = vadd.f32 %v5394_v44, %v5305_v33  ;;  %v5677_v46 = vpop.f32.mrf.mxu0 }
 0x742   :  { %v11838_v18 = vadd.f32 %v5844_v51, %v5677_v46 }
 0x743   :  { %v5443_v34 = vpack.c.bf16 %v5395_v3, %v5395_v3  ;;  %v6188_v3 = vsel %vm2967_vm6, %v6185_v35, %v6187_v17 }
 0x745   :  { %v5507_v23 = vunpack.c.l.b16 %v5443_v34  ;;  %8021 = vmatmul.msk.bf16.gmra.mxu2 %vm5617_vm10, %v5941_v54  ;;  %8067 = vmatmul.msk.bf16.gmra.mxu3 %vm5617_vm10, %v6184_v57 }
 0x746   :  { %v5852_v15 = vpop.f32.mrf.mxu1 }
 0x747   :  { %v11844_v32 = vpack.c.b16 %v5507_v23, %v5506_v2 }
 0x748   :  { %v5308_v45 = vpop.f32.mrf.mxu2  ;;  %v5397_v47 = vpop.f32.mrf.mxu3 }
 0x749   :  { %v5680_v11 = vpop.f32.mrf.mxu0  ;;  %7982 = vmatmul.msk.bf16.gmra.mxu1 %vm5617_vm10, %v11844_v32  ;;  %v5574_v37 = vrot.slane %v11844_v32, 2  ;;  %v5398_v24 = vadd.f32 %v5397_v47, %v5308_v45 }
 0x74a   :  { %v11849_v58 = vadd.f32 %v5847_v8, %v5680_v11 }
 0x74b   :  { %v5575_v5 = vsel %vm1548_vm5, %v5572_v25, %v5574_v37  ;;  %v5444_v51 = vpack.c.bf16 %v5398_v24, %v5398_v24  ;;  %v8325_v24 = vld [vmem:[%s12466_s9 + $0x28] sm:$0xff] }
 0x74c   :  { %7945 = vmatmul.msk.bf16.gmra.mxu0 %vm5617_vm10, %v5575_v5  ;;  %v8315_v5 = vld [vmem:[%s12464_s7 + $0xa0] sm:$0xff]  ;;  %6774 = vmatpush.bf16.msrb.mxu1 %v8325_v24 }
 0x74d   :  { %v5508_v20 = vunpack.c.l.b16 %v5444_v51  ;;  %6458 = vmatpush.bf16.msrb.mxu0 %v8315_v5 }
 0x74e   :  { %v5854_v16 = vpop.f32.mrf.mxu1 }
 0x750   :  { %v5310_v6 = vpop.f32.mrf.mxu2  ;;  %v5399_v1 = vpop.f32.mrf.mxu3 }
 0x751   :  { %v5400_v21 = vadd.f32 %v5399_v1, %v5310_v6  ;;  %v5682_v14 = vpop.f32.mrf.mxu0  ;;  %v5946_v1 = vrot.slane %v11794_v48, 4 }
 0x752   :  { %v11858_v60 = vadd.f32 %v5849_v41, %v5682_v14 }
 0x753   :  { %v5445_v7 = vpack.c.bf16 %v5400_v21, %v5400_v21 }
 0x755   :  { %v5509_v50 = vunpack.c.l.b16 %v5445_v7  ;;  %8022 = vmatmul.msk.bf16.gmra.mxu2 %vm5617_vm10, %v5943_v43  ;;  %8068 = vmatmul.msk.bf16.gmra.mxu3 %vm5617_vm10, %v6186_v27  ;;  %v5947_v43 = vsel %vm2514_vm4, %v5944_v62, %v5946_v1  ;;  %v6190_v27 = vsel %vm2967_vm6, %v6187_v17, %v6189_v39 }
 0x756   :  { %v5857_v40 = vpop.f32.mrf.mxu1 }
 0x757   :  { %v11864_v29 = vpack.c.b16 %v5509_v50, %v5508_v20 }
 0x758   :  { %v5313_v42 = vpop.f32.mrf.mxu2  ;;  %v5402_v0 = vpop.f32.mrf.mxu3 }
 0x759   :  { %v5685_v30 = vpop.f32.mrf.mxu0  ;;  %7983 = vmatmul.msk.bf16.gmra.mxu1 %vm5617_vm10, %v11864_v29  ;;  %v5576_v49 = vrot.slane %v11864_v29, 2  ;;  %v5403_v9 = vadd.f32 %v5402_v0, %v5313_v42 }
 0x75a   :  { %v11869_v8 = vadd.f32 %v5852_v15, %v5685_v30 }
 0x75b   :  { %v5577_v63 = vsel %vm1548_vm5, %v5574_v37, %v5576_v49  ;;  %v5446_v41 = vpack.c.bf16 %v5403_v9, %v5403_v9 }
 0x75c   :  { %7946 = vmatmul.msk.bf16.gmra.mxu0 %vm5617_vm10, %v5577_v63 }
 0x75d   :  { %v5510_v46 = vunpack.c.l.b16 %v5446_v41  ;;  %v5948_v41 = vrot.slane %v11807_v61, 4 }
 0x75e   :  { %v5859_v55 = vpop.f32.mrf.mxu1 }
 0x760   :  { %v5315_v13 = vpop.f32.mrf.mxu2  ;;  %v5404_v25 = vpop.f32.mrf.mxu3 }
 0x761   :  { %v5405_v33 = vadd.f32 %v5404_v25, %v5315_v13  ;;  %v5687_v44 = vpop.f32.mrf.mxu0 }
 0x762   :  { %v11875_v52 = vadd.f32 %v5854_v16, %v5687_v44 }
 0x763   :  { %v5447_v38 = vpack.c.bf16 %v5405_v33, %v5405_v33  ;;  %v6191_v33 = vrot.slane %v11807_v61, 6 }
 0x765   :  { %v5511_v34 = vunpack.c.l.b16 %v5447_v38  ;;  %8023 = vmatmul.msk.bf16.gmra.mxu2 %vm5617_vm10, %v5945_v28  ;;  %8069 = vmatmul.msk.bf16.gmra.mxu3 %vm5617_vm10, %v6188_v3 }
 0x766   :  { %v5862_v54 = vpop.f32.mrf.mxu1 }
 0x767   :  { %v11881_v57 = vpack.c.b16 %v5511_v34, %v5510_v46  ;;  %v5949_v46 = vsel %vm2514_vm4, %v5946_v1, %v5948_v41  ;;  %v6192_v34 = vsel %vm2967_vm6, %v6189_v39, %v6191_v33 }
 0x768   :  { %v5318_v2 = vpop.f32.mrf.mxu2  ;;  %v5407_v23 = vpop.f32.mrf.mxu3 }
 0x769   :  { %v5690_v15 = vpop.f32.mrf.mxu0  ;;  %7984 = vmatmul.msk.bf16.gmra.mxu1 %vm5617_vm10, %v11881_v57  ;;  %v5578_v45 = vrot.slane %v11881_v57, 2  ;;  %v5408_v37 = vadd.f32 %v5407_v23, %v5318_v2 }
 0x76a   :  { %v11886_v47 = vadd.f32 %v5857_v40, %v5690_v15 }
 0x76b   :  { %v5579_v11 = vsel %vm1548_vm5, %v5576_v49, %v5578_v45  ;;  %v5448_v35 = vpack.c.bf16 %v5408_v37, %v5408_v37 }
 0x76c   :  { %7947 = vmatmul.msk.bf16.gmra.mxu0 %vm5617_vm10, %v5579_v11 }
 0x76d   :  { %v5512_v20 = vunpack.c.l.b16 %v5448_v35 }
 0x76e   :  { %v11896_v53 = vpop.f32.mrf.mxu1 }
 0x770   :  { %v5320_v16 = vpop.f32.mrf.mxu2  ;;  %v5409_v6 = vpop.f32.mrf.mxu3 }
 0x771   :  { %v5410_v51 = vadd.f32 %v5409_v6, %v5320_v16  ;;  %v5692_v21 = vpop.f32.mrf.mxu0  ;;  %v8324_v6 = vld [vmem:[%s12466_s9 + $0x20] sm:$0xff] }
 0x772   :  { %v11900_v14 = vadd.f32 %v5859_v55, %v5692_v21  ;;  %6775 = vmatpush.bf16.msrb.mxu1 %v8324_v6  ;;  %v5950_v21 = vrot.slane %v11824_v31, 4 }
 0x773   :  { %v5449_v7 = vpack.c.bf16 %v5410_v51, %v5410_v51 }
 0x775   :  { %v5513_v50 = vunpack.c.l.b16 %v5449_v7  ;;  %8024 = vmatmul.msk.bf16.gmra.mxu2 %vm5617_vm10, %v5947_v43  ;;  %8070 = vmatmul.msk.bf16.gmra.mxu3 %vm5617_vm10, %v6190_v27  ;;  %v6193_v7 = vrot.slane %v11824_v31, 6 }
 0x776   :  { %v5867_v40 = vpop.f32.mrf.mxu1 }
 0x777   :  { %v11906_v42 = vpack.c.b16 %v5513_v50, %v5512_v20 }
 0x778   :  { %v5323_v0 = vpop.f32.mrf.mxu2  ;;  %v5412_v30 = vpop.f32.mrf.mxu3 }
 0x779   :  { %v5695_v49 = vpop.f32.mrf.mxu0  ;;  %7985 = vmatmul.msk.bf16.gmra.mxu1 %vm5617_vm10, %v11906_v42  ;;  %v5580_v63 = vrot.slane %v11906_v42, 2  ;;  %v5413_v13 = vadd.f32 %v5412_v30, %v5323_v0  ;;  %v6194_v0 = vsel %vm2967_vm6, %v6191_v33, %v6193_v7 }
 0x77a   :  { %v11911_v9 = vadd.f32 %v5862_v54, %v5695_v49 }
 0x77b   :  { %v5581_v55 = vsel %vm1548_vm5, %v5578_v45, %v5580_v63  ;;  %v5450_v44 = vpack.c.bf16 %v5413_v13, %v5413_v13 }
 0x77c   :  { %7948 = vmatmul.msk.bf16.gmra.mxu0 %vm5617_vm10, %v5581_v55 }
 0x77d   :  { %v5514_v54 = vunpack.c.l.b16 %v5450_v44 }
 0x77e   :  { %v11915_v25 = vpop.f32.mrf.mxu1 }
 0x780   :  { %v5325_v62 = vpop.f32.mrf.mxu2  ;;  %v5414_v17 = vpop.f32.mrf.mxu3 }
 0x781   :  { %v5415_v38 = vadd.f32 %v5414_v17, %v5325_v62  ;;  %v11919_v28 = vpop.f32.mrf.mxu0 }
 0x783   :  { %v5451_v3 = vpack.c.bf16 %v5415_v38, %v5415_v38 }
 0x785   :  { %v5515_v2 = vunpack.c.l.b16 %v5451_v3  ;;  %8025 = vmatmul.msk.bf16.gmra.mxu2 %vm5617_vm10, %v5949_v46  ;;  %8071 = vmatmul.msk.bf16.gmra.mxu3 %vm5617_vm10, %v6192_v34 }
 0x786   :  { %v5872_v23 = vpop.f32.mrf.mxu1 }
 0x787   :  { %v11925_v15 = vpack.c.b16 %v5515_v2, %v5514_v54  ;;  %v6195_v2 = vrot.slane %v11844_v32, 6 }
 0x788   :  { %v5328_v45 = vpop.f32.mrf.mxu2  ;;  %v5417_v11 = vpop.f32.mrf.mxu3 }
 0x789   :  { %v5700_v37 = vpop.f32.mrf.mxu0  ;;  %7986 = vmatmul.msk.bf16.gmra.mxu1 %vm5617_vm10, %v11925_v15  ;;  %v5582_v5 = vrot.slane %v11925_v15, 2  ;;  %v5418_v1 = vadd.f32 %v5417_v11, %v5328_v45 }
 0x78a   :  { %v11930_v24 = vadd.f32 %v5867_v40, %v5700_v37  ;;  %v5951_v40 = vsel %vm2514_vm4, %v5948_v41, %v5950_v21 }
 0x78b   :  { %v5583_v16 = vsel %vm1548_vm5, %v5580_v63, %v5582_v5  ;;  %v5452_v43 = vpack.c.bf16 %v5418_v1, %v5418_v1 }
 0x78c   :  { %7949 = vmatmul.msk.bf16.gmra.mxu0 %vm5617_vm10, %v5583_v16 }
 0x78d   :  { %v5516_v30 = vunpack.c.l.b16 %v5452_v43 }
 0x78e   :  { %v11937_v39 = vpop.f32.mrf.mxu1 }
 0x790   :  { %v5330_v35 = vpop.f32.mrf.mxu2  ;;  %v5419_v51 = vpop.f32.mrf.mxu3 }
 0x791   :  { %v5420_v27 = vadd.f32 %v5419_v51, %v5330_v35  ;;  %v11941_v20 = vpop.f32.mrf.mxu0 }
 0x793   :  { %v5453_v50 = vpack.c.bf16 %v5420_v27, %v5420_v27  ;;  %v12971_v27 = vld [vmem:[#allocation61_spill] sm:$0xff] }
 0x795   :  { %v5517_v49 = vunpack.c.l.b16 %v5453_v50  ;;  %8026 = vmatmul.msk.bf16.gmra.mxu2 %vm5617_vm10, %v5951_v40  ;;  %8072 = vmatmul.msk.bf16.gmra.mxu3 %vm5617_vm10, %v6194_v0 }
 0x796   :  { %v5877_v63 = vpop.f32.mrf.mxu1 }
 0x797   :  { %v11947_v55 = vpack.c.b16 %v5517_v49, %v5516_v30  ;;  %v6197_v30 = vrot.slane %v11864_v29, 6 }
 0x798   :  { %v6052_v13 = vpop.f32.mrf.mxu2  ;;  %v6296_v62 = vpop.f32.mrf.mxu3 }
 0x799   :  { %v6132_v17 = vadd.f32 %v6052_v13, %v11832_v56  ;;  %v5705_v44 = vpop.f32.mrf.mxu0  ;;  %7987 = vmatmul.msk.bf16.gmra.mxu1 %vm5617_vm10, %v11947_v55  ;;  %v5584_v41 = vrot.slane %v11947_v55, 2  ;;  %v5952_v56 = vrot.slane %v11844_v32, 4 }
 0x79a   :  { %v11953_v33 = vadd.f32 %v5872_v23, %v5705_v44 }
 0x79b   :  { %v11955_v38 = vadd.f32 %v6296_v62, %v6132_v17  ;;  %v5585_v3 = vsel %vm1548_vm5, %v5582_v5, %v5584_v41  ;;  %v5953_v37 = vsel %vm2514_vm4, %v5950_v21, %v5952_v56  ;;  %v6196_v5 = vsel %vm2967_vm6, %v6193_v7, %v6195_v2  ;;  %v8323_v21 = vld [vmem:[%s12466_s9 + $0x18] sm:$0xff] }
 0x79c   :  { %7950 = vmatmul.msk.bf16.gmra.mxu0 %vm5617_vm10, %v5585_v3  ;;  %v5586_v50 = vsel %vm1548_vm5, %v5584_v41, %v12971_v27  ;;  %6776 = vmatpush.bf16.msrb.mxu1 %v8323_v21  ;;  %v6198_v17 = vsel %vm2967_vm6, %v6195_v2, %v6197_v30  ;;  %v6919_v41 = vld [vmem:[%s12467_s11 + $0x28] sm:$0x3] }
 0x79d   :  { %v6945_v3 = vunpack.c.l.b16 %v6919_v41 }
 0x79e   :  { %v11959_v46 = vpop.f32.mrf.mxu1 }
 0x7a0   :  { %v6054_v34 = vpop.f32.mrf.mxu2  ;;  %v6298_v54 = vpop.f32.mrf.mxu3 }
 0x7a1   :  { %v6133_v45 = vadd.f32 %v6054_v34, %v11838_v18  ;;  %v11964_v11 = vpop.f32.mrf.mxu0 }
 0x7a3   :  { %v11966_v23 = vadd.f32 %v6298_v54, %v6133_v45 }
 0x7a5   :  { %8027 = vmatmul.msk.bf16.gmra.mxu2 %vm5617_vm10, %v5953_v37  ;;  %8073 = vmatmul.msk.bf16.gmra.mxu3 %vm5617_vm10, %v6196_v5  ;;  %v6951_v37 = vpack.c.b16 %v6945_v3, %v6945_v3 }
 0x7a6   :  { %v5882_v16 = vpop.f32.mrf.mxu1 }
 0x7a7   :  { %v7006_v2 = vsel %vm2967_vm6, %v6951_v37, 0 }
 0x7a8   :  { %v6057_v6 = vpop.f32.mrf.mxu2  ;;  %v6301_v1 = vpop.f32.mrf.mxu3  ;;  %7010 = vmatpush.bf16.msrb.mxu2 %v7006_v2 }
 0x7a9   :  { %v6134_v35 = vadd.f32 %v6057_v6, %v11849_v58  ;;  %v5710_v51 = vpop.f32.mrf.mxu0  ;;  %v5954_v58 = vrot.slane %v11864_v29, 4 }
 0x7aa   :  { %v11973_v43 = vadd.f32 %v5877_v63, %v5710_v51  ;;  %v5956_v51 = vrot.slane %v11881_v57, 4 }
 0x7ab   :  { %v11975_v18 = vadd.f32 %v6301_v1, %v6134_v35  ;;  %v5955_v62 = vsel %vm2514_vm4, %v5952_v56, %v5954_v58 }
 0x7ac   :  { %7951 = vmatmul.msk.bf16.gmra.mxu0 %vm5617_vm10, %v5586_v50  ;;  %v5957_v21 = vsel %vm2514_vm4, %v5954_v58, %v5956_v51  ;;  %v8322_v58 = vld [vmem:[%s12466_s9 + $0x10] sm:$0xff] }
 0x7ad   :  { %6777 = vmatpush.bf16.msrb.mxu1 %v8322_v58  ;;  %v6205_v58 = vrot.slane %v11947_v55, 6 }
 0x7ae   :  { %v11983_v7 = vpop.f32.mrf.mxu1 }
 0x7b0   :  { %v6059_v40 = vpop.f32.mrf.mxu2  ;;  %v6303_v0 = vpop.f32.mrf.mxu3 }
 0x7b1   :  { %v6135_v49 = vadd.f32 %v6059_v40, %v11858_v60  ;;  %v11988_v63 = vpop.f32.mrf.mxu0 }
 0x7b3   :  { %v11990_v13 = vadd.f32 %v6303_v0, %v6135_v49 }
 0x7b5   :  { %8028 = vmatmul.msk.bf16.gmra.mxu2 %vm5617_vm10, %v5955_v62  ;;  %8074 = vmatmul.msk.bf16.gmra.mxu3 %vm5617_vm10, %v6198_v17 }
 0x7b6   :  { %v5887_v44 = vpop.f32.mrf.mxu1 }
 0x7b8   :  { %v6062_v34 = vpop.f32.mrf.mxu2  ;;  %v6306_v60 = vpop.f32.mrf.mxu3 }
 0x7b9   :  { %v6136_v54 = vadd.f32 %v6062_v34, %v11869_v8  ;;  %v5715_v45 = vpop.f32.mrf.mxu0  ;;  %v6199_v8 = vrot.slane %v11881_v57, 6  ;;  %v5958_v34 = vrot.slane %v11906_v42, 4 }
 0x7ba   :  { %v12000_v5 = vadd.f32 %v5882_v16, %v5715_v45 }
 0x7bb   :  { %v12002_v56 = vadd.f32 %v6306_v60, %v6136_v54  ;;  %v6200_v40 = vsel %vm2967_vm6, %v6197_v30, %v6199_v8  ;;  %v5959_v37 = vsel %vm2514_vm4, %v5956_v51, %v5958_v34 }
 0x7bc   :  { %8110 = vmatmul.msk.bf16.vlgmr.msrb.gmra.mxu0 %vm5617_vm10, %v11643_v26 }
 0x7be   :  { %v12007_v6 = vpop.f32.mrf.mxu1 }
 0x7c0   :  { %v6064_v1 = vpop.f32.mrf.mxu2  ;;  %v6308_v35 = vpop.f32.mrf.mxu3 }
 0x7c1   :  { %v6137_v27 = vadd.f32 %v6064_v1, %v11875_v52  ;;  %v12012_v16 = vpop.f32.mrf.mxu0 }
 0x7c3   :  { %v12014_v50 = vadd.f32 %v6308_v35, %v6137_v27  ;;  %v6203_v27 = vrot.slane %v11925_v15, 6 }
 0x7c5   :  { %8029 = vmatmul.msk.bf16.gmra.mxu2 %vm5617_vm10, %v5957_v21  ;;  %8075 = vmatmul.msk.bf16.gmra.mxu3 %vm5617_vm10, %v6200_v40 }
 0x7c6   :  { %v5892_v26 = vpop.f32.mrf.mxu1 }
 0x7c8   :  { %v6067_v0 = vpop.f32.mrf.mxu2  ;;  %v6311_v49 = vpop.f32.mrf.mxu3 }
 0x7c9   :  { %v6138_v62 = vadd.f32 %v6067_v0, %v11886_v47  ;;  %v5720_v17 = vpop.f32.mrf.mxu0  ;;  %v6201_v47 = vrot.slane %v11906_v42, 6 }
 0x7ca   :  { %v12021_v41 = vadd.f32 %v5887_v44, %v5720_v17  ;;  %v5962_v17 = vrot.slane %v11947_v55, 4 }
 0x7cb   :  { %v12023_v52 = vadd.f32 %v6311_v49, %v6138_v62  ;;  %v6202_v2 = vsel %vm2967_vm6, %v6199_v8, %v6201_v47  ;;  %v8331_v8 = vld [vmem:[%s12467_s11 + $0x20] sm:$0xff]  ;;  %v8321_v49 = vld [vmem:[%s12466_s9 + $0x8] sm:$0xff] }
 0x7cc   :  { %8111 = vmatmul.msk.bf16.gmra.mxu0 %vm5617_vm10, %v11666_v22  ;;  %7011 = vmatpush.bf16.msrb.mxu2 %v8331_v8 }
 0x7cd   :  { %6778 = vmatpush.bf16.msrb.mxu1 %v8321_v49 }
 0x7ce   :  { %v12030_v30 = vpop.f32.mrf.mxu1 }
 0x7d0   :  { %v6069_v3 = vpop.f32.mrf.mxu2  ;;  %v6313_v54 = vpop.f32.mrf.mxu3 }
 0x7d1   :  { %v6139_v44 = vadd.f32 %v6069_v3, %v11900_v14  ;;  %v12035_v60 = vpop.f32.mrf.mxu0  ;;  %v5960_v14 = vrot.slane %v11925_v15, 4 }
 0x7d3   :  { %v12037_v45 = vadd.f32 %v6313_v54, %v6139_v44  ;;  %v5961_v40 = vsel %vm2514_vm4, %v5958_v34, %v5960_v14  ;;  %v5963_v34 = vsel %vm2514_vm4, %v5960_v14, %v5962_v17 }
 0x7d5   :  { %8030 = vmatmul.msk.bf16.gmra.mxu2 %vm5617_vm10, %v5959_v37  ;;  %8076 = vmatmul.msk.bf16.gmra.mxu3 %vm5617_vm10, %v6202_v2  ;;  %v6207_v37 = vrot.slane %v12934_v59, 6 }
 0x7d6   :  { %v5897_v22 = vpop.f32.mrf.mxu1 }
 0x7d7   :  { %v6208_v14 = vsel %vm2967_vm6, %v6205_v58, %v6207_v37  ;;  %v8329_v37 = vld [vmem:[%s12467_s11 + $0x10] sm:$0xff] }
 0x7d9   :  { %v5725_v1 = vpop.f32.mrf.mxu0 }
 0x7da   :  { %v12043_v35 = vadd.f32 %v5892_v26, %v5725_v1  ;;  %v6204_v26 = vsel %vm2967_vm6, %v6201_v47, %v6203_v27  ;;  %v6206_v47 = vsel %vm2967_vm6, %v6203_v27, %v6205_v58  ;;  %v5964_v1 = vsel %vm2514_vm4, %v5962_v17, %v11533_v4  ;;  %v8330_v4 = vld [vmem:[%s12467_s11 + $0x18] sm:$0xff] }
 0x7db   :  { %7012 = vmatpush.bf16.msrb.mxu2 %v8330_v4 }
 0x7dc   :  { %8112 = vmatmul.msk.bf16.gmra.mxu0 %vm5617_vm10, %v11694_v36 }
 0x7de   :  { %v12051_v51 = vpop.f32.mrf.mxu1 }
 0x7df   :  { %7013 = vmatpush.bf16.msrb.mxu2 %v8329_v37 }
 0x7e1   :  { %v12049_v21 = vpop.f32.mrf.mxu0 }
 0x7e5   :  { %8031 = vmatmul.msk.bf16.gmra.mxu2 %vm5617_vm10, %v5961_v40  ;;  %8077 = vmatmul.msk.bf16.gmra.mxu3 %vm5617_vm10, %v6204_v26 }
 0x7e6   :  { %v5902_v62 = vpop.f32.mrf.mxu1 }
 0x7e9   :  { %v5730_v36 = vpop.f32.mrf.mxu0 }
 0x7ea   :  { %v12060_v0 = vadd.f32 %v5897_v22, %v5730_v36 }
 0x7ec   :  { %8113 = vmatmul.msk.bf16.gmra.mxu0 %vm5617_vm10, %v11719_v10 }
 0x7ee   :  { %v12075_v44 = vpop.f32.mrf.mxu1 }
 0x7f1   :  { %v12069_v3 = vpop.f32.mrf.mxu0 }
 0x7f5   :  { %8032 = vmatmul.msk.bf16.gmra.mxu2 %vm5617_vm10, %v5963_v34  ;;  %8078 = vmatmul.msk.bf16.gmra.mxu3 %vm5617_vm10, %v6206_v47 }
 0x7f6   :  { %v5907_v2 = vpop.f32.mrf.mxu1 }
 0x7f9   :  { %v5735_v54 = vpop.f32.mrf.mxu0 }
 0x7fa   :  { %v12077_v10 = vadd.f32 %v5902_v62, %v5735_v54 }
 0x7fc   :  { %8114 = vmatmul.msk.bf16.gmra.mxu0 %vm5617_vm10, %v11762_v12  ;;  %v8320_v12 = vld [vmem:[%s12466_s9] sm:$0xff] }
 0x7fd   :  { %6779 = vmatpush.bf16.msrb.mxu1 %v8320_v12  ;;  %v6072_v12 = vpop.f32.mrf.mxu2 }
 0x7fe   :  { %v12091_v40 = vpop.f32.mrf.mxu1 }
 0x801   :  { %v12082_v22 = vpop.f32.mrf.mxu0 }
 0x805   :  { %8033 = vmatmul.msk.bf16.gmra.mxu2 %vm5617_vm10, %v5964_v1  ;;  %8079 = vmatmul.msk.bf16.gmra.mxu3 %vm5617_vm10, %v6208_v14  ;;  %v12126_v1 = vld [vmem:[%s12468_s8] ss:$0 sm:$0xff] }
 0x806   :  { %v5912_v36 = vpop.f32.mrf.mxu1 }
 0x809   :  { %v5740_v27 = vpop.f32.mrf.mxu0 }
 0x80a   :  { %v12089_v8 = vadd.f32 %v5907_v2, %v5740_v27 }
 0x80c   :  { %8115 = vmatmul.msk.bf16.gmra.mxu0 %vm5617_vm10, %v11776_v19 }
 0x80e   :  { %v12107_v17 = vpop.f32.mrf.mxu1 }
 0x811   :  { %v12101_v26 = vpop.f32.mrf.mxu0 }
 0x816   :  { %v5917_v19 = vpop.f32.mrf.mxu1 }
 0x819   :  { %v5745_v49 = vpop.f32.mrf.mxu0 }
 0x81a   :  { %v12103_v62 = vadd.f32 %v5912_v36, %v5745_v49 }
 0x81c   :  { %8116 = vmatmul.msk.bf16.gmra.mxu0 %vm5617_vm10, %v11794_v48 }
 0x821   :  { %v12109_v58 = vpop.f32.mrf.mxu0 }
 0x829   :  { %v5750_v34 = vpop.f32.mrf.mxu0 }
 0x82a   :  { %v12111_v47 = vadd.f32 %v5917_v19, %v5750_v34 }
 0x82c   :  { %12972 = vst [vmem:[#allocation37_spill] sm:$0xff] %v12111_v47  ;;  %8117 = vmatmul.msk.bf16.gmra.mxu0 %vm5617_vm10, %v11807_v61 }
 0x831   :  { %v12115_v54 = vpop.f32.mrf.mxu0 }
 0x832   :  { %12973 = vst [vmem:[#allocation36_spill] sm:$0xff] %v12115_v54 }
 0x839   :  { %v6460_v2 = vpop.f32.mrf.mxu0 }
 0x83a   :  { %v6540_v48 = vadd.f32 %v6460_v2, %v11955_v38  ;;  %v6074_v38 = vpop.f32.mrf.mxu2 }
 0x83c   :  { %8118 = vmatmul.msk.bf16.gmra.mxu0 %vm5617_vm10, %v11824_v31  ;;  %v6576_v61 = vadd.f32 %v12126_v1, %v6540_v48  ;;  %v6316_v31 = vpop.f32.mrf.mxu3 }
 0x83e   :  { %v6608_v36 = vmax.f32 %v6576_v61, 0.0 }
 0x841   :  { %v6462_v14 = vpop.f32.mrf.mxu0 }
 0x842   :  { %v6541_v27 = vadd.f32 %v6462_v14, %v11966_v23 }
 0x844   :  { %v6577_v4 = vadd.f32 %v12126_v1, %v6541_v27  ;;  %v6318_v14 = vpop.f32.mrf.mxu3 }
 0x846   :  { %v6609_v49 = vmax.f32 %v6577_v4, 0.0 }
 0x848   :  { %v6640_v19 = vpack.c.bf16 %v6609_v49, %v6608_v36  ;;  %v6077_v36 = vpop.f32.mrf.mxu2 }
 0x849   :  { %v6465_v34 = vpop.f32.mrf.mxu0 }
 0x84a   :  { %8153 = vmatmul.msk.bf16.vlgmr.msrb.gmra.mxu1 %vm6720_vm11, %v6640_v19  ;;  %v6542_v37 = vadd.f32 %v6465_v34, %v11975_v18 }
 0x84c   :  { %8119 = vmatmul.msk.bf16.gmra.mxu0 %vm5617_vm10, %v11844_v32  ;;  %v6578_v23 = vadd.f32 %v12126_v1, %v6542_v37  ;;  %v6321_v32 = vpop.f32.mrf.mxu3 }
 0x84e   :  { %v6610_v27 = vmax.f32 %v6578_v23, 0.0 }
 0x850   :  { %v6079_v19 = vpop.f32.mrf.mxu2 }
 0x851   :  { %v6467_v2 = vpop.f32.mrf.mxu0 }
 0x852   :  { %v6543_v48 = vadd.f32 %v6467_v2, %v11990_v13 }
 0x854   :  { %v6579_v61 = vadd.f32 %v12126_v1, %v6543_v48 }
 0x856   :  { %v6611_v4 = vmax.f32 %v6579_v61, 0.0  ;;  %v6323_v61 = vpop.f32.mrf.mxu3 }
 0x858   :  { %v6641_v49 = vpack.c.bf16 %v6611_v4, %v6610_v27  ;;  %v8328_v4 = vld [vmem:[%s12467_s11 + $0x8] sm:$0xff] }
 0x859   :  { %v6470_v54 = vpop.f32.mrf.mxu0  ;;  %7014 = vmatpush.bf16.msrb.mxu2 %v8328_v4 }
 0x85a   :  { %8154 = vmatmul.msk.bf16.gmra.mxu1 %vm6720_vm11, %v6641_v49  ;;  %v6544_v18 = vadd.f32 %v6470_v54, %v12002_v56  ;;  %v6082_v56 = vpop.f32.mrf.mxu2 }
 0x85c   :  { %8120 = vmatmul.msk.bf16.gmra.mxu0 %vm5617_vm10, %v11864_v29  ;;  %v6580_v13 = vadd.f32 %v12126_v1, %v6544_v18 }
 0x85e   :  { %v6612_v23 = vmax.f32 %v6580_v13, 0.0  ;;  %v6326_v54 = vpop.f32.mrf.mxu3 }
 0x861   :  { %v6472_v34 = vpop.f32.mrf.mxu0 }
 0x862   :  { %v6545_v37 = vadd.f32 %v6472_v34, %v12014_v50 }
 0x864   :  { %v6581_v2 = vadd.f32 %v12126_v1, %v6545_v37  ;;  %v6084_v37 = vpop.f32.mrf.mxu2 }
 0x866   :  { %v6613_v48 = vmax.f32 %v6581_v2, 0.0 }
 0x868   :  { %v6642_v27 = vpack.c.bf16 %v6613_v48, %v6612_v23  ;;  %v6140_v48 = vadd.f32 %v6072_v12, %v11911_v9 }
 0x869   :  { %v6475_v29 = vpop.f32.mrf.mxu0 }
 0x86a   :  { %8155 = vmatmul.msk.bf16.gmra.mxu1 %vm6720_vm11, %v6642_v27  ;;  %v6546_v50 = vadd.f32 %v6475_v29, %v12023_v52  ;;  %v6328_v52 = vpop.f32.mrf.mxu3  ;;  %v6384_v29 = vadd.f32 %v6316_v31, %v6140_v48 }
 0x86c   :  { %8121 = vmatmul.msk.bf16.gmra.mxu0 %vm5617_vm10, %v11881_v57  ;;  %v6582_v18 = vadd.f32 %v12126_v1, %v6546_v50  ;;  %v5865_v57 = vadd.f32 %v11896_v53, %v11919_v28  ;;  %v6087_v50 = vpop.f32.mrf.mxu2  ;;  %v6142_v28 = vadd.f32 %v6077_v36, %v11930_v24 }
 0x86e   :  { %v6614_v2 = vmax.f32 %v6582_v18, 0.0  ;;  %v6141_v47 = vadd.f32 %v6074_v38, %v5865_v57 }
 0x871   :  { %v6477_v49 = vpop.f32.mrf.mxu0 }
 0x872   :  { %v6547_v34 = vadd.f32 %v6477_v49, %v12037_v45  ;;  %v6385_v49 = vadd.f32 %v6318_v14, %v6141_v47  ;;  %v6386_v47 = vadd.f32 %v6321_v32, %v6142_v28 }
 0x874   :  { %v6583_v13 = vadd.f32 %v12126_v1, %v6547_v34  ;;  %v6089_v31 = vpop.f32.mrf.mxu2 }
 0x876   :  { %v6615_v23 = vmax.f32 %v6583_v13, 0.0  ;;  %v6331_v13 = vpop.f32.mrf.mxu3 }
 0x878   :  { %v6643_v27 = vpack.c.bf16 %v6615_v23, %v6614_v2 }
 0x879   :  { %v6480_v4 = vpop.f32.mrf.mxu0 }
 0x87a   :  { %8156 = vmatmul.msk.bf16.gmra.mxu1 %vm6720_vm11, %v6643_v27  ;;  %v6548_v45 = vadd.f32 %v6480_v4, %v6384_v29  ;;  %v8327_v27 = vld [vmem:[%s12467_s11] sm:$0xff] }
 0x87b   :  { %7015 = vmatpush.bf16.msrb.mxu2 %v8327_v27 }
 0x87c   :  { %8122 = vmatmul.msk.bf16.gmra.mxu0 %vm5617_vm10, %v11906_v42  ;;  %v6584_v34 = vadd.f32 %v12126_v1, %v6548_v45  ;;  %v5870_v42 = vadd.f32 %v11915_v25, %v11941_v20  ;;  %v6092_v25 = vpop.f32.mrf.mxu2  ;;  %v6144_v45 = vadd.f32 %v6082_v56, %v11953_v33 }
 0x87e   :  { %v6616_v2 = vmax.f32 %v6584_v34, 0.0  ;;  %v6143_v14 = vadd.f32 %v6079_v19, %v5870_v42  ;;  %v6333_v4 = vpop.f32.mrf.mxu3  ;;  %v5875_v34 = vadd.f32 %v11937_v39, %v11964_v11  ;;  %v6146_v11 = vadd.f32 %v6087_v50, %v11973_v43 }
 0x880   :  { %v6387_v24 = vadd.f32 %v6323_v61, %v6143_v14  ;;  %v6388_v61 = vadd.f32 %v6326_v54, %v6144_v45 }
 0x881   :  { %v6482_v18 = vpop.f32.mrf.mxu0 }
 0x882   :  { %v6549_v9 = vadd.f32 %v6482_v18, %v6385_v49 }
 0x884   :  { %v6585_v12 = vadd.f32 %v12126_v1, %v6549_v9  ;;  %v6145_v9 = vadd.f32 %v6084_v37, %v5875_v34 }
 0x886   :  { %v6617_v53 = vmax.f32 %v6585_v12, 0.0  ;;  %v6336_v49 = vpop.f32.mrf.mxu3  ;;  %v6094_v12 = vpop.f32.mrf.mxu2 }
 0x888   :  { %v6644_v23 = vpack.c.bf16 %v6617_v53, %v6616_v2  ;;  %v6389_v53 = vadd.f32 %v6328_v52, %v6145_v9  ;;  %v6390_v52 = vadd.f32 %v6331_v13, %v6146_v11 }
 0x889   :  { %v6485_v38 = vpop.f32.mrf.mxu0 }
 0x88a   :  { %8157 = vmatmul.msk.bf16.gmra.mxu1 %vm6720_vm11, %v6644_v23  ;;  %v6550_v48 = vadd.f32 %v6485_v38, %v6386_v47 }
 0x88c   :  { %8123 = vmatmul.msk.bf16.gmra.mxu0 %vm5617_vm10, %v11925_v15  ;;  %v6586_v57 = vadd.f32 %v12126_v1, %v6550_v48 }
 0x88e   :  { %v6618_v32 = vmax.f32 %v6586_v57, 0.0  ;;  %v6338_v56 = vpop.f32.mrf.mxu3  ;;  %v6097_v39 = vpop.f32.mrf.mxu2 }
 0x891   :  { %v6487_v36 = vpop.f32.mrf.mxu0 }
 0x892   :  { %v6551_v29 = vadd.f32 %v6487_v36, %v6387_v24 }
 0x894   :  { %v6587_v20 = vadd.f32 %v12126_v1, %v6551_v29 }
 0x896   :  { %v6619_v19 = vmax.f32 %v6587_v20, 0.0  ;;  %v6341_v48 = vpop.f32.mrf.mxu3  ;;  %v6099_v36 = vpop.f32.mrf.mxu2 }
 0x898   :  { %v6645_v15 = vpack.c.bf16 %v6619_v19, %v6618_v32 }
 0x899   :  { %v6490_v18 = vpop.f32.mrf.mxu0 }
 0x89a   :  { %8158 = vmatmul.msk.bf16.gmra.mxu1 %vm6720_vm11, %v6645_v15  ;;  %v6552_v2 = vadd.f32 %v6490_v18, %v6388_v61  ;;  %v12193_v18 = vpop.f32.mrf.mxu1 }
 0x89c   :  { %8124 = vmatmul.msk.bf16.gmra.mxu0 %vm5617_vm10, %v11947_v55  ;;  %v6588_v23 = vadd.f32 %v12126_v1, %v6552_v2  ;;  %v5880_v55 = vadd.f32 %v11959_v46, %v11988_v63  ;;  %v6148_v46 = vadd.f32 %v6092_v25, %v12000_v5 }
 0x89e   :  { %v6620_v42 = vmax.f32 %v6588_v23, 0.0  ;;  %v6147_v14 = vadd.f32 %v6089_v31, %v5880_v55  ;;  %v6343_v19 = vpop.f32.mrf.mxu3  ;;  %v6102_v31 = vpop.f32.mrf.mxu2 }
 0x8a0   :  { %v6391_v24 = vadd.f32 %v6333_v4, %v6147_v14  ;;  %v6392_v4 = vadd.f32 %v6336_v49, %v6148_v46  ;;  %v5895_v46 = vadd.f32 %v12030_v30, %v12049_v21 }
 0x8a1   :  { %v6492_v28 = vpop.f32.mrf.mxu0 }
 0x8a2   :  { %v6553_v33 = vadd.f32 %v6492_v28, %v6389_v53 }
 0x8a4   :  { %v6589_v38 = vadd.f32 %v12126_v1, %v6553_v33 }
 0x8a6   :  { %v6621_v47 = vmax.f32 %v6589_v38, 0.0  ;;  %v6346_v61 = vpop.f32.mrf.mxu3  ;;  %v6104_v25 = vpop.f32.mrf.mxu2 }
 0x8a8   :  { %v6646_v54 = vpack.c.bf16 %v6621_v47, %v6620_v42 }
 0x8a9   :  { %v6495_v37 = vpop.f32.mrf.mxu0 }
 0x8aa   :  { %8159 = vmatmul.msk.bf16.gmra.mxu1 %vm6720_vm11, %v6646_v54  ;;  %v6554_v27 = vadd.f32 %v6495_v37, %v6390_v52 }
 0x8ac   :  { %6534 = vmatmul.bf16.gmra.mxu0 %v12934_v59  ;;  %v6590_v29 = vadd.f32 %v12126_v1, %v6554_v27  ;;  %v5885_v59 = vadd.f32 %v11983_v7, %v12012_v16  ;;  %v6150_v16 = vadd.f32 %v6097_v39, %v12021_v41 }
 0x8ae   :  { %v6622_v50 = vmax.f32 %v6590_v29, 0.0  ;;  %v6149_v45 = vadd.f32 %v6094_v12, %v5885_v59  ;;  %v5890_v12 = vadd.f32 %v12007_v6, %v12035_v60  ;;  %v6348_v38 = vpop.f32.mrf.mxu3  ;;  %v6394_v42 = vadd.f32 %v6341_v48, %v6150_v16  ;;  %v6107_v37 = vpop.f32.mrf.mxu2 }
 0x8b0   :  { %v6393_v34 = vadd.f32 %v6338_v56, %v6149_v45  ;;  %v12203_v56 = vld [vmem:[%s12469_s10] ss:$0 sm:$0xff]  ;;  %v6151_v47 = vadd.f32 %v6099_v36, %v5890_v12  ;;  %v5900_v12 = vadd.f32 %v12051_v51, %v12069_v3 }
 0x8b1   :  { %v6497_v57 = vpop.f32.mrf.mxu0 }
 0x8b2   :  { %v6555_v20 = vadd.f32 %v6497_v57, %v6391_v24  ;;  %v6395_v39 = vadd.f32 %v6343_v19, %v6151_v47 }
 0x8b4   :  { %v6591_v43 = vadd.f32 %v12126_v1, %v6555_v20 }
 0x8b6   :  { %v6623_v32 = vmax.f32 %v6591_v43, 0.0  ;;  %v6351_v29 = vpop.f32.mrf.mxu3  ;;  %v6152_v43 = vadd.f32 %v6102_v31, %v12043_v35 }
 0x8b8   :  { %v6647_v63 = vpack.c.bf16 %v6623_v32, %v6622_v50  ;;  %v6109_v32 = vpop.f32.mrf.mxu2 }
 0x8b9   :  { %v6500_v13 = vpop.f32.mrf.mxu0 }
 0x8ba   :  { %8160 = vmatmul.msk.bf16.gmra.mxu1 %vm6720_vm11, %v6647_v63  ;;  %v6556_v15 = vadd.f32 %v6500_v13, %v6392_v4  ;;  %v6396_v63 = vadd.f32 %v6346_v61, %v6152_v43  ;;  %v6153_v13 = vadd.f32 %v6104_v25, %v5895_v46  ;;  %v5905_v43 = vadd.f32 %v12075_v44, %v12082_v22 }
 0x8bc   :  { %v6592_v2 = vadd.f32 %v12126_v1, %v6556_v15 }
 0x8be   :  { %v6624_v28 = vmax.f32 %v6592_v2, 0.0  ;;  %v6353_v45 = vpop.f32.mrf.mxu3 }
 0x8c1   :  { %v6502_v9 = vpop.f32.mrf.mxu0 }
 0x8c2   :  { %v6557_v53 = vadd.f32 %v6502_v9, %v6393_v34  ;;  %v6397_v34 = vadd.f32 %v6348_v38, %v6153_v13 }
 0x8c4   :  { %v6593_v5 = vadd.f32 %v12126_v1, %v6557_v53 }
 0x8c6   :  { %v6625_v23 = vmax.f32 %v6593_v5, 0.0 }
 0x8c7   :  { %v6781_v7 = vpop.f32.mrf.mxu1 }
 0x8c8   :  { %v6648_v33 = vpack.c.bf16 %v6625_v23, %v6624_v28  ;;  %v6782_v11 = vadd.f32 %v12203_v56, %v6781_v7  ;;  %v6112_v28 = vpop.f32.mrf.mxu2  ;;  %v6154_v7 = vadd.f32 %v6107_v37, %v12060_v0 }
 0x8c9   :  { %v6505_v49 = vpop.f32.mrf.mxu0 }
 0x8ca   :  { %8161 = vmatmul.msk.bf16.gmra.mxu1 %vm6720_vm11, %v6648_v33  ;;  %v6558_v54 = vadd.f32 %v6505_v49, %v6394_v42  ;;  %v6861_v6 = vmax.f32 %v6782_v11, 0.0  ;;  %v6356_v33 = vpop.f32.mrf.mxu3  ;;  %v6398_v38 = vadd.f32 %v6351_v29, %v6154_v7  ;;  %v6155_v42 = vadd.f32 %v6109_v32, %v5900_v12 }
 0x8cc   :  { %v6594_v60 = vadd.f32 %v12126_v1, %v6558_v54 }
 0x8ce   :  { %v6626_v48 = vmax.f32 %v6594_v60, 0.0 }
 0x8cf   :  { %v6783_v41 = vpop.f32.mrf.mxu1 }
 0x8d0   :  { %v6784_v55 = vadd.f32 %v12203_v56, %v6783_v41  ;;  %v6114_v47 = vpop.f32.mrf.mxu2 }
 0x8d1   :  { %v6507_v52 = vpop.f32.mrf.mxu0  ;;  %v6157_v32 = vadd.f32 %v6114_v47, %v5905_v43 }
 0x8d2   :  { %v6862_v14 = vmax.f32 %v6784_v55, 0.0  ;;  %v6559_v27 = vadd.f32 %v6507_v52, %v6395_v39  ;;  %v6399_v39 = vadd.f32 %v6353_v45, %v6155_v42 }
 0x8d4   :  { %v6893_v24 = vpack.c.bf16 %v6862_v14, %v6861_v6  ;;  %v6595_v57 = vadd.f32 %v12126_v1, %v6559_v27  ;;  %v6358_v14 = vpop.f32.mrf.mxu3 }
 0x8d6   :  { %v6627_v36 = vmax.f32 %v6595_v57, 0.0  ;;  %8189 = vmatmul.msk.bf16.vlgmr.msrb.gmra.mxu2 %vm2918_vm8, %v6893_v24 }
 0x8d7   :  { %v6786_v20 = vpop.f32.mrf.mxu1 }
 0x8d8   :  { %v6649_v50 = vpack.c.bf16 %v6627_v36, %v6626_v48  ;;  %v6787_v59 = vadd.f32 %v12203_v56, %v6786_v20  ;;  %v6117_v57 = vpop.f32.mrf.mxu2  ;;  %v6156_v48 = vadd.f32 %v6112_v28, %v12077_v10 }
 0x8d9   :  { %v6510_v19 = vpop.f32.mrf.mxu0  ;;  %v6158_v28 = vadd.f32 %v6117_v57, %v12089_v8 }
 0x8da   :  { %8162 = vmatmul.msk.bf16.gmra.mxu1 %vm6720_vm11, %v6649_v50  ;;  %v6560_v4 = vadd.f32 %v6510_v19, %v6396_v63  ;;  %v6863_v35 = vmax.f32 %v6787_v59, 0.0  ;;  %v6400_v50 = vadd.f32 %v6356_v33, %v6156_v48  ;;  %v6401_v59 = vadd.f32 %v6358_v14, %v6157_v32 }
 0x8db   :  { %v5915_v14 = vadd.f32 %v12107_v17, %v12109_v58 }
 0x8dc   :  { %v6596_v31 = vadd.f32 %v12126_v1, %v6560_v4  ;;  %v6361_v19 = vpop.f32.mrf.mxu3 }
 0x8de   :  { %v6628_v61 = vmax.f32 %v6596_v31, 0.0 }
 0x8df   :  { %v6788_v15 = vpop.f32.mrf.mxu1 }
 0x8e0   :  { %v6789_v9 = vadd.f32 %v12203_v56, %v6788_v15  ;;  %v6119_v45 = vpop.f32.mrf.mxu2 }
 0x8e1   :  { %v6512_v2 = vpop.f32.mrf.mxu0 }
 0x8e2   :  { %v6864_v53 = vmax.f32 %v6789_v9, 0.0  ;;  %v6561_v5 = vadd.f32 %v6512_v2, %v6397_v34 }
 0x8e4   :  { %v6894_v30 = vpack.c.bf16 %v6864_v53, %v6863_v35  ;;  %v6597_v21 = vadd.f32 %v12126_v1, %v6561_v5  ;;  %v6363_v53 = vpop.f32.mrf.mxu3 }
 0x8e6   :  { %v6629_v25 = vmax.f32 %v6597_v21, 0.0  ;;  %8190 = vmatmul.msk.bf16.gmra.mxu2 %vm2918_vm8, %v6894_v30 }
 0x8e7   :  { %v6791_v23 = vpop.f32.mrf.mxu1 }
 0x8e8   :  { %v6650_v16 = vpack.c.bf16 %v6629_v25, %v6628_v61  ;;  %v6792_v11 = vadd.f32 %v12203_v56, %v6791_v23  ;;  %v5910_v61 = vadd.f32 %v12091_v40, %v12101_v26  ;;  %v6122_v25 = vpop.f32.mrf.mxu2  ;;  %v6402_v23 = vadd.f32 %v6361_v19, %v6158_v28 }
 0x8e9   :  { %v6515_v49 = vpop.f32.mrf.mxu0 }
 0x8ea   :  { %8163 = vmatmul.msk.bf16.gmra.mxu1 %vm6720_vm11, %v6650_v16  ;;  %v6562_v54 = vadd.f32 %v6515_v49, %v6398_v38  ;;  %v6865_v0 = vmax.f32 %v6792_v11, 0.0  ;;  %v6159_v7 = vadd.f32 %v6119_v45, %v5910_v61 }
 0x8ec   :  { %v6598_v37 = vadd.f32 %v12126_v1, %v6562_v54  ;;  %v6403_v12 = vadd.f32 %v6363_v53, %v6159_v7  ;;  %v6366_v42 = vpop.f32.mrf.mxu3 }
 0x8ee   :  { %v6630_v27 = vmax.f32 %v6598_v37, 0.0  ;;  %v6160_v37 = vadd.f32 %v6122_v25, %v12103_v62 }
 0x8ef   :  { %v6793_v41 = vpop.f32.mrf.mxu1 }
 0x8f0   :  { %v6794_v55 = vadd.f32 %v12203_v56, %v6793_v41 }
 0x8f1   :  { %v6517_v52 = vpop.f32.mrf.mxu0 }
 0x8f2   :  { %v6866_v6 = vmax.f32 %v6794_v55, 0.0  ;;  %v6563_v60 = vadd.f32 %v6517_v52, %v6399_v39  ;;  %v6124_v39 = vpop.f32.mrf.mxu2 }
 0x8f4   :  { %v6895_v51 = vpack.c.bf16 %v6866_v6, %v6865_v0  ;;  %v6599_v3 = vadd.f32 %v12126_v1, %v6563_v60 }
 0x8f6   :  { %v6631_v24 = vmax.f32 %v6599_v3, 0.0  ;;  %8191 = vmatmul.msk.bf16.gmra.mxu2 %vm2918_vm8, %v6895_v51  ;;  %v6368_v51 = vpop.f32.mrf.mxu3  ;;  %v6404_v3 = vadd.f32 %v6366_v42, %v6160_v37  ;;  %v12275_v37 = vld [vmem:[%s12470_s12] ss:$0 sm:$0xff] }
 0x8f7   :  { %v6796_v29 = vpop.f32.mrf.mxu1 }
 0x8f8   :  { %v6651_v36 = vpack.c.bf16 %v6631_v24, %v6630_v27  ;;  %v6797_v46 = vadd.f32 %v12203_v56, %v6796_v29  ;;  %v6161_v27 = vadd.f32 %v6124_v39, %v5915_v14 }
 0x8f9   :  { %v6520_v20 = vpop.f32.mrf.mxu0 }
 0x8fa   :  { %8164 = vmatmul.msk.bf16.gmra.mxu1 %vm6720_vm11, %v6651_v36  ;;  %v6564_v63 = vadd.f32 %v6520_v20, %v6400_v50  ;;  %v6867_v10 = vmax.f32 %v6797_v46, 0.0  ;;  %v6127_v29 = vpop.f32.mrf.mxu2  ;;  %v6405_v36 = vadd.f32 %v6368_v51, %v6161_v27 }
 0x8fc   :  { %v6600_v34 = vadd.f32 %v12126_v1, %v6564_v63 }
 0x8fe   :  { %v6632_v35 = vmax.f32 %v6600_v34, 0.0  ;;  %v6371_v46 = vpop.f32.mrf.mxu3 }
 0x8ff   :  { %v6798_v13 = vpop.f32.mrf.mxu1 }
 0x900   :  { %v6799_v4 = vadd.f32 %v12203_v56, %v6798_v13 }
 0x901   :  { %v6522_v15 = vpop.f32.mrf.mxu0 }
 0x902   :  { %v6868_v9 = vmax.f32 %v6799_v4, 0.0  ;;  %v6565_v2 = vadd.f32 %v6522_v15, %v6401_v59  ;;  %v12974_v4 = vld [vmem:[#allocation37_spill] sm:$0xff] }
 0x903   :  { %v6162_v45 = vadd.f32 %v6127_v29, %v12974_v4 }
 0x904   :  { %v6896_v44 = vpack.c.bf16 %v6868_v9, %v6867_v10  ;;  %v6601_v22 = vadd.f32 %v12126_v1, %v6565_v2  ;;  %v6129_v10 = vpop.f32.mrf.mxu2  ;;  %v12975_v9 = vld [vmem:[#allocation36_spill] sm:$0xff] }
 0x905   :  { %v5920_v2 = vadd.f32 %v12193_v18, %v12975_v9 }
 0x906   :  { %v6633_v31 = vmax.f32 %v6601_v22, 0.0  ;;  %8192 = vmatmul.msk.bf16.gmra.mxu2 %vm2918_vm8, %v6896_v44  ;;  %v6406_v44 = vadd.f32 %v6371_v46, %v6162_v45  ;;  %v6373_v53 = vpop.f32.mrf.mxu3 }
 0x907   :  { %v6801_v5 = vpop.f32.mrf.mxu1  ;;  %v6163_v22 = vadd.f32 %v6129_v10, %v5920_v2 }
 0x908   :  { %v6652_v30 = vpack.c.bf16 %v6633_v31, %v6632_v35  ;;  %v6802_v16 = vadd.f32 %v12203_v56, %v6801_v5 }
 0x909   :  { %v6525_v21 = vpop.f32.mrf.mxu0  ;;  %v6407_v28 = vadd.f32 %v6373_v53, %v6163_v22 }
 0x90a   :  { %8165 = vmatmul.msk.bf16.gmra.mxu1 %vm6720_vm11, %v6652_v30  ;;  %v6566_v33 = vadd.f32 %v6525_v21, %v6402_v23  ;;  %v6869_v8 = vmax.f32 %v6802_v16, 0.0 }
 0x90c   :  { %v6602_v11 = vadd.f32 %v12126_v1, %v6566_v33 }
 0x90e   :  { %v6634_v55 = vmax.f32 %v6602_v11, 0.0 }
 0x90f   :  { %v6803_v49 = vpop.f32.mrf.mxu1 }
 0x910   :  { %v6804_v38 = vadd.f32 %v12203_v56, %v6803_v49 }
 0x911   :  { %v6527_v47 = vpop.f32.mrf.mxu0 }
 0x912   :  { %v6870_v54 = vmax.f32 %v6804_v38, 0.0  ;;  %v6567_v41 = vadd.f32 %v6527_v47, %v6403_v12 }
 0x914   :  { %v6897_v40 = vpack.c.bf16 %v6870_v54, %v6869_v8  ;;  %v6603_v26 = vadd.f32 %v12126_v1, %v6567_v41 }
 0x916   :  { %v6635_v52 = vmax.f32 %v6603_v26, 0.0  ;;  %8193 = vmatmul.msk.bf16.gmra.mxu2 %vm2918_vm8, %v6897_v40 }
 0x917   :  { %v6806_v0 = vpop.f32.mrf.mxu1 }
 0x918   :  { %v6653_v6 = vpack.c.bf16 %v6635_v52, %v6634_v55  ;;  %v6807_v24 = vadd.f32 %v12203_v56, %v6806_v0 }
 0x919   :  { %v6530_v60 = vpop.f32.mrf.mxu0 }
 0x91a   :  { %8166 = vmatmul.msk.bf16.gmra.mxu1 %vm6720_vm11, %v6653_v6  ;;  %v6568_v57 = vadd.f32 %v6530_v60, %v6404_v3  ;;  %v6871_v62 = vmax.f32 %v6807_v24, 0.0 }
 0x91c   :  { %v6604_v50 = vadd.f32 %v12126_v1, %v6568_v57 }
 0x91e   :  { %v6636_v63 = vmax.f32 %v6604_v50, 0.0 }
 0x91f   :  { %v6808_v48 = vpop.f32.mrf.mxu1 }
 0x920   :  { %v6809_v20 = vadd.f32 %v12203_v56, %v6808_v48 }
 0x921   :  { %v6532_v43 = vpop.f32.mrf.mxu0 }
 0x922   :  { %v6872_v32 = vmax.f32 %v6809_v20, 0.0  ;;  %v6569_v19 = vadd.f32 %v6532_v43, %v6405_v36 }
 0x924   :  { %v6898_v17 = vpack.c.bf16 %v6872_v32, %v6871_v62  ;;  %v6605_v58 = vadd.f32 %v12126_v1, %v6569_v19 }
 0x926   :  { %v6637_v13 = vmax.f32 %v6605_v58, 0.0  ;;  %8194 = vmatmul.msk.bf16.gmra.mxu2 %vm2918_vm8, %v6898_v17 }
 0x927   :  { %v6811_v59 = vpop.f32.mrf.mxu1 }
 0x928   :  { %v6654_v15 = vpack.c.bf16 %v6637_v13, %v6636_v63  ;;  %v6812_v35 = vadd.f32 %v12203_v56, %v6811_v59 }
 0x929   :  { %v6535_v34 = vpop.f32.mrf.mxu0 }
 0x92a   :  { %8167 = vmatmul.msk.bf16.gmra.mxu1 %vm6720_vm11, %v6654_v15  ;;  %v6570_v31 = vadd.f32 %v6535_v34, %v6406_v44  ;;  %v6873_v61 = vmax.f32 %v6812_v35, 0.0 }
 0x92c   :  { %v6606_v25 = vadd.f32 %v12126_v1, %v6570_v31 }
 0x92e   :  { %v6638_v33 = vmax.f32 %v6606_v25, 0.0 }
 0x92f   :  { %v6813_v5 = vpop.f32.mrf.mxu1 }
 0x930   :  { %v6814_v30 = vadd.f32 %v12203_v56, %v6813_v5 }
 0x931   :  { %v6537_v21 = vpop.f32.mrf.mxu0 }
 0x932   :  { %v6874_v23 = vmax.f32 %v6814_v30, 0.0  ;;  %v6571_v7 = vadd.f32 %v6537_v21, %v6407_v28 }
 0x934   :  { %v6899_v16 = vpack.c.bf16 %v6874_v23, %v6873_v61  ;;  %v6607_v18 = vadd.f32 %v12126_v1, %v6571_v7 }
 0x936   :  { %v6639_v49 = vmax.f32 %v6607_v18, 0.0  ;;  %8195 = vmatmul.msk.bf16.gmra.mxu2 %vm2918_vm8, %v6899_v16 }
 0x937   :  { %v6816_v12 = vpop.f32.mrf.mxu1 }
 0x938   :  { %v6655_v38 = vpack.c.bf16 %v6639_v49, %v6638_v33  ;;  %v6817_v42 = vadd.f32 %v12203_v56, %v6816_v12 }
 0x93a   :  { %8168 = vmatmul.msk.bf16.gmra.mxu1 %vm6720_vm11, %v6655_v38  ;;  %v6875_v11 = vmax.f32 %v6817_v42, 0.0 }
 0x93f   :  { %v6818_v47 = vpop.f32.mrf.mxu1 }
 0x940   :  { %v6819_v8 = vadd.f32 %v12203_v56, %v6818_v47 }
 0x942   :  { %v6876_v54 = vmax.f32 %v6819_v8, 0.0 }
 0x944   :  { %v6900_v41 = vpack.c.bf16 %v6876_v54, %v6875_v11 }
 0x946   :  { %8196 = vmatmul.msk.bf16.gmra.mxu2 %vm2918_vm8, %v6900_v41 }
 0x947   :  { %v6821_v40 = vpop.f32.mrf.mxu1 }
 0x948   :  { %v6822_v1 = vadd.f32 %v12203_v56, %v6821_v40 }
 0x94a   :  { %v6877_v55 = vmax.f32 %v6822_v1, 0.0 }
 0x94f   :  { %v6823_v26 = vpop.f32.mrf.mxu1 }
 0x950   :  { %v6824_v39 = vadd.f32 %v12203_v56, %v6823_v26 }
 0x952   :  { %v6878_v52 = vmax.f32 %v6824_v39, 0.0 }
 0x954   :  { %v6901_v0 = vpack.c.bf16 %v6878_v52, %v6877_v55 }
 0x956   :  { %8197 = vmatmul.msk.bf16.gmra.mxu2 %vm2918_vm8, %v6901_v0 }
 0x957   :  { %v6826_v6 = vpop.f32.mrf.mxu1 }
 0x958   :  { %v6827_v51 = vadd.f32 %v12203_v56, %v6826_v6 }
 0x959   :  { %v7017_v60 = vpop.f32.mrf.mxu2 }
 0x95a   :  { %v7018_v14 = vadd.f32 %v12275_v37, %v7017_v60  ;;  %v6879_v57 = vmax.f32 %v6827_v51, 0.0 }
 0x95c   :  { %7098 = vst.msk [vmem:[%s12471_s13] sm:$0xff] %vm7097_vm12, %v7018_v14 }
 0x95f   :  { %v6828_v3 = vpop.f32.mrf.mxu1 }
 0x960   :  { %v6829_v27 = vadd.f32 %v12203_v56, %v6828_v3 }
 0x961   :  { %v7019_v24 = vpop.f32.mrf.mxu2 }
 0x962   :  { %v6880_v29 = vmax.f32 %v6829_v27, 0.0  ;;  %v7020_v48 = vadd.f32 %v12275_v37, %v7019_v24 }
 0x964   :  { %v6902_v36 = vpack.c.bf16 %v6880_v29, %v6879_v57  ;;  %7099 = vst.msk [vmem:[%s12471_s13 + $0x8] sm:$0xff] %vm7097_vm12, %v7020_v48 }
 0x966   :  { %8198 = vmatmul.msk.bf16.gmra.mxu2 %vm2918_vm8, %v6902_v36 }
 0x967   :  { %v6831_v20 = vpop.f32.mrf.mxu1 }
 0x968   :  { %v6832_v50 = vadd.f32 %v12203_v56, %v6831_v20 }
 0x969   :  { %v7022_v43 = vpop.f32.mrf.mxu2 }
 0x96a   :  { %v7023_v62 = vadd.f32 %v12275_v37, %v7022_v43  ;;  %v6881_v58 = vmax.f32 %v6832_v50, 0.0 }
 0x96c   :  { %7100 = vst.msk [vmem:[%s12471_s13 + $0x10] sm:$0xff] %vm7097_vm12, %v7023_v62 }
 0x96f   :  { %v6833_v32 = vpop.f32.mrf.mxu1 }
 0x970   :  { %v6834_v19 = vadd.f32 %v12203_v56, %v6833_v32 }
 0x971   :  { %v7024_v17 = vpop.f32.mrf.mxu2 }
 0x972   :  { %v6882_v46 = vmax.f32 %v6834_v19, 0.0  ;;  %v7025_v63 = vadd.f32 %v12275_v37, %v7024_v17 }
 0x974   :  { %v6903_v13 = vpack.c.bf16 %v6882_v46, %v6881_v58  ;;  %7101 = vst.msk [vmem:[%s12471_s13 + $0x18] sm:$0xff] %vm7097_vm12, %v7025_v63 }
 0x976   :  { %8199 = vmatmul.msk.bf16.gmra.mxu2 %vm2918_vm8, %v6903_v13 }
 0x977   :  { %v6836_v59 = vpop.f32.mrf.mxu1 }
 0x978   :  { %v6837_v15 = vadd.f32 %v12203_v56, %v6836_v59 }
 0x979   :  { %v7027_v4 = vpop.f32.mrf.mxu2 }
 0x97a   :  { %v7028_v45 = vadd.f32 %v12275_v37, %v7027_v4  ;;  %v6883_v2 = vmax.f32 %v6837_v15, 0.0 }
 0x97c   :  { %7102 = vst.msk [vmem:[%s12471_s13 + $0x20] sm:$0xff] %vm7097_vm12, %v7028_v45 }
 0x97f   :  { %v6838_v10 = vpop.f32.mrf.mxu1 }
 0x980   :  { %v6839_v34 = vadd.f32 %v12203_v56, %v6838_v10 }
 0x981   :  { %v7029_v9 = vpop.f32.mrf.mxu2 }
 0x982   :  { %v6884_v44 = vmax.f32 %v6839_v34, 0.0  ;;  %v7030_v22 = vadd.f32 %v12275_v37, %v7029_v9 }
 0x984   :  { %v6904_v35 = vpack.c.bf16 %v6884_v44, %v6883_v2  ;;  %7103 = vst.msk [vmem:[%s12471_s13 + $0x28] sm:$0xff] %vm7097_vm12, %v7030_v22 }
 0x986   :  { %8200 = vmatmul.msk.bf16.gmra.mxu2 %vm2918_vm8, %v6904_v35 }
 0x987   :  { %v6841_v31 = vpop.f32.mrf.mxu1 }
 0x988   :  { %v6842_v28 = vadd.f32 %v12203_v56, %v6841_v31 }
 0x989   :  { %v7032_v53 = vpop.f32.mrf.mxu2 }
 0x98a   :  { %v7033_v5 = vadd.f32 %v12275_v37, %v7032_v53  ;;  %v6885_v25 = vmax.f32 %v6842_v28, 0.0 }
 0x98c   :  { %7104 = vst.msk [vmem:[%s12471_s13 + $0x30] sm:$0xff] %vm7097_vm12, %v7033_v5 }
 0x98f   :  { %v6843_v30 = vpop.f32.mrf.mxu1 }
 0x990   :  { %v6844_v21 = vadd.f32 %v12203_v56, %v6843_v30 }
 0x991   :  { %v7034_v61 = vpop.f32.mrf.mxu2 }
 0x992   :  { %v6886_v23 = vmax.f32 %v6844_v21, 0.0  ;;  %v7035_v7 = vadd.f32 %v12275_v37, %v7034_v61 }
 0x994   :  { %v6905_v16 = vpack.c.bf16 %v6886_v23, %v6885_v25  ;;  %7105 = vst.msk [vmem:[%s12471_s13 + $0x38] sm:$0xff] %vm7097_vm12, %v7035_v7 }
 0x996   :  { %8201 = vmatmul.msk.bf16.gmra.mxu2 %vm2918_vm8, %v6905_v16 }
 0x997   :  { %v6846_v18 = vpop.f32.mrf.mxu1 }
 0x998   :  { %v6847_v12 = vadd.f32 %v12203_v56, %v6846_v18 }
 0x999   :  { %v7037_v33 = vpop.f32.mrf.mxu2 }
 0x99a   :  { %v7038_v49 = vadd.f32 %v12275_v37, %v7037_v33  ;;  %v6887_v8 = vmax.f32 %v6847_v12, 0.0 }
 0x99c   :  { %7106 = vst.msk [vmem:[%s12471_s13 + $0x40] sm:$0xff] %vm7097_vm12, %v7038_v49 }
 0x99f   :  { %v6848_v38 = vpop.f32.mrf.mxu1 }
 0x9a0   :  { %v6849_v42 = vadd.f32 %v12203_v56, %v6848_v38 }
 0x9a1   :  { %v7039_v47 = vpop.f32.mrf.mxu2 }
 0x9a2   :  { %v6888_v11 = vmax.f32 %v6849_v42, 0.0  ;;  %v7040_v54 = vadd.f32 %v12275_v37, %v7039_v47 }
 0x9a4   :  { %v6906_v41 = vpack.c.bf16 %v6888_v11, %v6887_v8  ;;  %7107 = vst.msk [vmem:[%s12471_s13 + $0x48] sm:$0xff] %vm7097_vm12, %v7040_v54 }
 0x9a6   :  { %8202 = vmatmul.msk.bf16.gmra.mxu2 %vm2918_vm8, %v6906_v41 }
 0x9a7   :  { %v6851_v40 = vpop.f32.mrf.mxu1 }
 0x9a8   :  { %v6852_v39 = vadd.f32 %v12203_v56, %v6851_v40 }
 0x9a9   :  { %v7042_v1 = vpop.f32.mrf.mxu2 }
 0x9aa   :  { %v7043_v26 = vadd.f32 %v12275_v37, %v7042_v1  ;;  %v6889_v6 = vmax.f32 %v6852_v39, 0.0 }
 0x9ac   :  { %7108 = vst.msk [vmem:[%s12471_s13 + $0x50] sm:$0xff] %vm7097_vm12, %v7043_v26 }
 0x9af   :  { %v6853_v55 = vpop.f32.mrf.mxu1 }
 0x9b0   :  { %v6854_v52 = vadd.f32 %v12203_v56, %v6853_v55 }
 0x9b1   :  { %v7044_v0 = vpop.f32.mrf.mxu2 }
 0x9b2   :  { %v6890_v60 = vmax.f32 %v6854_v52, 0.0  ;;  %v7045_v14 = vadd.f32 %v12275_v37, %v7044_v0 }
 0x9b4   :  { %v6907_v51 = vpack.c.bf16 %v6890_v60, %v6889_v6  ;;  %7109 = vst.msk [vmem:[%s12471_s13 + $0x58] sm:$0xff] %vm7097_vm12, %v7045_v14 }
 0x9b6   :  { %8203 = vmatmul.msk.bf16.gmra.mxu2 %vm2918_vm8, %v6907_v51 }
 0x9b7   :  { %v6856_v3 = vpop.f32.mrf.mxu1 }
 0x9b8   :  { %v6857_v57 = vadd.f32 %v12203_v56, %v6856_v3 }
 0x9b9   :  { %v7047_v27 = vpop.f32.mrf.mxu2 }
 0x9ba   :  { %v7048_v24 = vadd.f32 %v12275_v37, %v7047_v27  ;;  %v6891_v20 = vmax.f32 %v6857_v57, 0.0 }
 0x9bc   :  { %7110 = vst.msk [vmem:[%s12471_s13 + $0x60] sm:$0xff] %vm7097_vm12, %v7048_v24 }
 0x9bf   :  { %v6858_v29 = vpop.f32.mrf.mxu1 }
 0x9c0   :  { %v6859_v48 = vadd.f32 %v12203_v56, %v6858_v29 }
 0x9c1   :  { %v7049_v36 = vpop.f32.mrf.mxu2 }
 0x9c2   :  { %v6892_v43 = vmax.f32 %v6859_v48, 0.0  ;;  %v7050_v62 = vadd.f32 %v12275_v37, %v7049_v36 }
 0x9c4   :  { %v6908_v50 = vpack.c.bf16 %v6892_v43, %v6891_v20  ;;  %7111 = vst.msk [vmem:[%s12471_s13 + $0x68] sm:$0xff] %vm7097_vm12, %v7050_v62 }
 0x9c6   :  { %8204 = vmatmul.msk.bf16.gmra.mxu2 %vm2918_vm8, %v6908_v50 }
 0x9c9   :  { %v7052_v32 = vpop.f32.mrf.mxu2 }
 0x9ca   :  { %v7053_v19 = vadd.f32 %v12275_v37, %v7052_v32 }
 0x9cc   :  { %7112 = vst.msk [vmem:[%s12471_s13 + $0x70] sm:$0xff] %vm7097_vm12, %v7053_v19 }
 0x9d1   :  { %v7054_v56 = vpop.f32.mrf.mxu2 }
 0x9d2   :  { %v7055_v17 = vadd.f32 %v12275_v37, %v7054_v56 }
 0x9d4   :  { %7113 = vst.msk [vmem:[%s12471_s13 + $0x78] sm:$0xff] %vm7097_vm12, %v7055_v17 }
 0x9d9   :  { %v7057_v58 = vpop.f32.mrf.mxu2 }
 0x9da   :  { %v7058_v46 = vadd.f32 %v12275_v37, %v7057_v58 }
 0x9dc   :  { %7114 = vst.msk [vmem:[%s12471_s13 + $0x80] sm:$0xff] %vm7097_vm12, %v7058_v46 }
 0x9e1   :  { %v7059_v63 = vpop.f32.mrf.mxu2 }
 0x9e2   :  { %v7060_v13 = vadd.f32 %v12275_v37, %v7059_v63 }
 0x9e4   :  { %7115 = vst.msk [vmem:[%s12471_s13 + $0x88] sm:$0xff] %vm7097_vm12, %v7060_v13 }
 0x9e9   :  { %v7062_v59 = vpop.f32.mrf.mxu2 }
 0x9ea   :  { %v7063_v4 = vadd.f32 %v12275_v37, %v7062_v59 }
 0x9ec   :  { %7116 = vst.msk [vmem:[%s12471_s13 + $0x90] sm:$0xff] %vm7097_vm12, %v7063_v4 }
 0x9f1   :  { %v7064_v45 = vpop.f32.mrf.mxu2 }
 0x9f2   :  { %v7065_v15 = vadd.f32 %v12275_v37, %v7064_v45 }
 0x9f4   :  { %7117 = vst.msk [vmem:[%s12471_s13 + $0x98] sm:$0xff] %vm7097_vm12, %v7065_v15 }
 0x9f9   :  { %v7067_v10 = vpop.f32.mrf.mxu2 }
 0x9fa   :  { %v7068_v34 = vadd.f32 %v12275_v37, %v7067_v10 }
 0x9fc   :  { %7118 = vst.msk [vmem:[%s12471_s13 + $0xa0] sm:$0xff] %vm7097_vm12, %v7068_v34 }
 0xa01   :  { %v7069_v9 = vpop.f32.mrf.mxu2 }
 0xa02   :  { %v7070_v2 = vadd.f32 %v12275_v37, %v7069_v9 }
 0xa04   :  { %7119 = vst.msk [vmem:[%s12471_s13 + $0xa8] sm:$0xff] %vm7097_vm12, %v7070_v2 }
 0xa09   :  { %v7072_v44 = vpop.f32.mrf.mxu2 }
 0xa0a   :  { %v7073_v22 = vadd.f32 %v12275_v37, %v7072_v44 }
 0xa0c   :  { %7120 = vst.msk [vmem:[%s12471_s13 + $0xb0] sm:$0xff] %vm7097_vm12, %v7073_v22 }
 0xa11   :  { %v7074_v35 = vpop.f32.mrf.mxu2 }
 0xa12   :  { %v7075_v31 = vadd.f32 %v12275_v37, %v7074_v35 }
 0xa14   :  { %7121 = vst.msk [vmem:[%s12471_s13 + $0xb8] sm:$0xff] %vm7097_vm12, %v7075_v31 }
 0xa19   :  { %v7077_v53 = vpop.f32.mrf.mxu2 }
 0xa1a   :  { %v7078_v5 = vadd.f32 %v12275_v37, %v7077_v53 }
 0xa1c   :  { %7122 = vst.msk [vmem:[%s12471_s13 + $0xc0] sm:$0xff] %vm7097_vm12, %v7078_v5 }
 0xa21   :  { %v7079_v28 = vpop.f32.mrf.mxu2 }
 0xa22   :  { %v7080_v30 = vadd.f32 %v12275_v37, %v7079_v28 }
 0xa24   :  { %7123 = vst.msk [vmem:[%s12471_s13 + $0xc8] sm:$0xff] %vm7097_vm12, %v7080_v30 }
 0xa29   :  { %v7082_v21 = vpop.f32.mrf.mxu2 }
 0xa2a   :  { %v7083_v61 = vadd.f32 %v12275_v37, %v7082_v21 }
 0xa2c   :  { %7124 = vst.msk [vmem:[%s12471_s13 + $0xd0] sm:$0xff] %vm7097_vm12, %v7083_v61 }
 0xa31   :  { %v7084_v25 = vpop.f32.mrf.mxu2 }
 0xa32   :  { %v7085_v23 = vadd.f32 %v12275_v37, %v7084_v25 }
 0xa34   :  { %7125 = vst.msk [vmem:[%s12471_s13 + $0xd8] sm:$0xff] %vm7097_vm12, %v7085_v23 }
 0xa39   :  { %v7087_v7 = vpop.f32.mrf.mxu2 }
 0xa3a   :  { %v7088_v16 = vadd.f32 %v12275_v37, %v7087_v7 }
 0xa3c   :  { %7126 = vst.msk [vmem:[%s12471_s13 + $0xe0] sm:$0xff] %vm7097_vm12, %v7088_v16 }
 0xa41   :  { %v7089_v18 = vpop.f32.mrf.mxu2 }
 0xa42   :  { %v7090_v33 = vadd.f32 %v12275_v37, %v7089_v18 }
 0xa44   :  { %7127 = vst.msk [vmem:[%s12471_s13 + $0xe8] sm:$0xff] %vm7097_vm12, %v7090_v33 }
 0xa49   :  { %v7092_v49 = vpop.f32.mrf.mxu2 }
 0xa4a   :  { %v7093_v12 = vadd.f32 %v12275_v37, %v7092_v49 }
 0xa4c   :  { %7128 = vst.msk [vmem:[%s12471_s13 + $0xf0] sm:$0xff] %vm7097_vm12, %v7093_v12 }
 0xa51   :  { %v7094_v38 = vpop.f32.mrf.mxu2 }
 0xa52   :  { %v7095_v42 = vadd.f32 %v12275_v37, %v7094_v38 }
 0xa54   :  { %7129 = vst.msk [vmem:[%s12471_s13 + $0xf8] sm:$0xff] %vm7097_vm12, %v7095_v42 }

</bundles_post_ra>
